<compile_context>
chip_gen: v7x
topology: tpu7x:2x2x1
jax: 0.10.0
libtpu: 0.0.40
codegen_flags: <defaults>
</compile_context>

<pallas_src>
import functools

import jax
import jax.numpy as jnp
from jax.experimental import pallas as pl
from jax.experimental.pallas import tpu as pltpu


# ----------------------------------------------------------------------------
# helpers
# ----------------------------------------------------------------------------
def _round_up(x, m):
    return ((x + m - 1) // m) * m


def _hswish(z):
    # hard_swish: x * relu6(x + 3) / 6
    return z * jnp.clip(z + 3.0, 0.0, 6.0) * (1.0 / 6.0)


# Per-step activation+output tile budget (keeps the double-buffered working set
# well under v7x's 64 MiB VMEM at production widths; irrelevant at toy sizes).
_TILE_BUDGET_BYTES = 4 * 1024 * 1024


def _choose_tm(M, cin_total, cout):
    row_bytes = 2 * (cin_total * 2 + cout * 4)   # bf16 input rows + f32 output rows, x2 buffers
    tm = max(8, min(1024, _TILE_BUDGET_BYTES // max(row_bytes, 1)))
    tm = (tm // 8) * 8
    tm = min(tm, _round_up(M, 8))
    return max(8, tm)


# ----------------------------------------------------------------------------
# Pallas kernels
# ----------------------------------------------------------------------------
def _mm_bn_hswish_kernel(x_ref, w_ref, s_ref, b_ref, o_ref):
    # x: (TM, Cin) bf16  w: (Cin, Cout) bf16  s/b: (1, Cout) f32  o: (TM, Cout) f32
    z = jnp.dot(x_ref[...], w_ref[...], preferred_element_type=jnp.float32)
    z = z * s_ref[...] + b_ref[...]
    o_ref[...] = _hswish(z).astype(o_ref.dtype)


def _mm2_bn_hswish_kernel(a_ref, b_ref, wa_ref, wb_ref, s_ref, bias_ref, o_ref):
    # Fused 1x1 conv over the logical channel-concat [a, b]: two accumulating
    # matmuls with the weight split by input channel — no concat is materialized.
    z = jnp.dot(a_ref[...], wa_ref[...], preferred_element_type=jnp.float32)
    z = z + jnp.dot(b_ref[...], wb_ref[...], preferred_element_type=jnp.float32)
    z = z * s_ref[...] + bias_ref[...]
    o_ref[...] = _hswish(z).astype(o_ref.dtype)


def _bottleneck_kernel(x_ref, w1_ref, s1_ref, b1_ref,
                       wd_ref, sd_ref, bd_ref,
                       wp_ref, sp_ref, bp_ref,
                       o_ref, pad_ref, flat_ref, *, H, W, K, PD):
    # Whole Bottleneck for one image, intermediates stay in VMEM/registers.
    Ch = pad_ref.shape[-1]

    # (a) 1x1 conv + BN + hard_swish  (MXU)
    z1 = jnp.dot(x_ref[0], w1_ref[...], preferred_element_type=jnp.float32)
    y1 = _hswish(z1 * s1_ref[...] + b1_ref[...])                 # (H*W, Ch) f32

    # (b) scatter rows into a zero-padded (Hp, Wp, Ch) VMEM scratch (no reshape)
    pad_ref[...] = jnp.zeros(pad_ref.shape, jnp.float32)
    for h in range(H):
        pad_ref[PD + h, PD:PD + W, :] = y1[h * W:(h + 1) * W, :]

    # (c) depthwise KxK (stride 1, same padding) + BN + hard_swish  (VPU, f32)
    xp = pad_ref[...]                                            # (Hp, Wp, Ch)
    wd = wd_ref[...]                                             # (K*K, Ch)
    acc = jnp.zeros((H, W, Ch), jnp.float32)
    for kh in range(K):
        for kw in range(K):
            acc = acc + xp[kh:kh + H, kw:kw + W, :] * wd[kh * K + kw].reshape(1, 1, Ch)
    y2 = _hswish(acc * sd_ref[...].reshape(1, 1, Ch) + bd_ref[...].reshape(1, 1, Ch))

    # (d) flatten rows back to (H*W, Ch) via row stores (no in-kernel reshape)
    for h in range(H):
        flat_ref[h * W:(h + 1) * W, :] = y2[h]

    # (e) pointwise 1x1 conv + BN + hard_swish  (MXU)
    z3 = jnp.dot(flat_ref[...].astype(jnp.bfloat16), wp_ref[...],
                 preferred_element_type=jnp.float32)
    o_ref[0] = _hswish(z3 * sp_ref[...] + bp_ref[...]).astype(o_ref.dtype)


# ----------------------------------------------------------------------------
# kernel wrappers
# ----------------------------------------------------------------------------
def mm_bn_hswish(x2d, w, scale, bias):
    # 1x1 conv (as matmul) + folded BN + hard_swish, row-tiled and pipelined.
    M, Cin = x2d.shape
    Cout = w.shape[1]
    tm = _choose_tm(M, Cin, Cout)
    grid_m = pl.cdiv(M, tm)
    Mp = grid_m * tm
    xb = x2d.astype(jnp.bfloat16)
    if Mp != M:
        xb = jnp.pad(xb, ((0, Mp - M), (0, 0)))
    out = pl.pallas_call(
        _mm_bn_hswish_kernel,
        grid=(grid_m,),
        out_shape=jax.ShapeDtypeStruct((Mp, Cout), jnp.float32),
        in_specs=[
            pl.BlockSpec((tm, Cin), lambda i: (i, 0)),
            pl.BlockSpec((Cin, Cout), lambda i: (0, 0)),
            pl.BlockSpec((1, Cout), lambda i: (0, 0)),
            pl.BlockSpec((1, Cout), lambda i: (0, 0)),
        ],
        out_specs=pl.BlockSpec((tm, Cout), lambda i: (i, 0)),
        compiler_params=pltpu.CompilerParams(dimension_semantics=("parallel",)),
    )(xb, w.astype(jnp.bfloat16), scale.reshape(1, Cout), bias.reshape(1, Cout))
    return out[:M] if Mp != M else out


def mm2_bn_hswish(a2d, b2d, wa, wb, scale, bias):
    # 1x1 conv over the logical concat [a, b] on channels, row-tiled + pipelined.
    M, Ca = a2d.shape
    Cb = b2d.shape[1]
    Cout = wa.shape[1]
    tm = _choose_tm(M, Ca + Cb, Cout)
    grid_m = pl.cdiv(M, tm)
    Mp = grid_m * tm
    ab = a2d.astype(jnp.bfloat16)
    bb = b2d.astype(jnp.bfloat16)
    if Mp != M:
        ab = jnp.pad(ab, ((0, Mp - M), (0, 0)))
        bb = jnp.pad(bb, ((0, Mp - M), (0, 0)))
    out = pl.pallas_call(
        _mm2_bn_hswish_kernel,
        grid=(grid_m,),
        out_shape=jax.ShapeDtypeStruct((Mp, Cout), jnp.float32),
        in_specs=[
            pl.BlockSpec((tm, Ca), lambda i: (i, 0)),
            pl.BlockSpec((tm, Cb), lambda i: (i, 0)),
            pl.BlockSpec((Ca, Cout), lambda i: (0, 0)),
            pl.BlockSpec((Cb, Cout), lambda i: (0, 0)),
            pl.BlockSpec((1, Cout), lambda i: (0, 0)),
            pl.BlockSpec((1, Cout), lambda i: (0, 0)),
        ],
        out_specs=pl.BlockSpec((tm, Cout), lambda i: (i, 0)),
        compiler_params=pltpu.CompilerParams(dimension_semantics=("parallel",)),
    )(ab, bb, wa.astype(jnp.bfloat16), wb.astype(jnp.bfloat16),
      scale.reshape(1, Cout), bias.reshape(1, Cout))
    return out[:M] if Mp != M else out


def apply_bottleneck_fused(p, x, H, W):
    # Bottleneck (1x1 BaseConv -> depthwise 5x5 BaseConv -> pointwise 1x1 BaseConv),
    # fused into a single pallas_call per image.  x: (N, H*W, Cin)
    # TODO(synk): at production feature-map sizes, additionally tile over rows
    #             (with a 2*pad halo) to bound VMEM instead of whole-image blocks.
    w1, s1, b1 = p["conv1"]        # (Ch, Cin, 1, 1)
    wd, sd, bd = p["conv2_dw"]     # (Ch, 1, K, K)  depthwise
    wp, sp, bp = p["conv2_pw"]     # (Cout, Ch, 1, 1)
    N, HW, Cin = x.shape
    Ch = w1.shape[0]
    Cout = wp.shape[0]
    K = wd.shape[-1]
    PD = (K - 1) // 2
    Hp, Wp = H + 2 * PD, W + 2 * PD
    w1m = w1.reshape(Ch, Cin).T.astype(jnp.bfloat16)     # (Cin, Ch)
    wdm = wd.reshape(Ch, K * K).T                         # (K*K, Ch) f32
    wpm = wp.reshape(Cout, Ch).T.astype(jnp.bfloat16)     # (Ch, Cout)
    kern = functools.partial(_bottleneck_kernel, H=H, W=W, K=K, PD=PD)
    return pl.pallas_call(
        kern,
        grid=(N,),
        out_shape=jax.ShapeDtypeStruct((N, HW, Cout), jnp.float32),
        in_specs=[
            pl.BlockSpec((1, HW, Cin), lambda n: (n, 0, 0)),
            pl.BlockSpec((Cin, Ch), lambda n: (0, 0)),
            pl.BlockSpec((1, Ch), lambda n: (0, 0)),
            pl.BlockSpec((1, Ch), lambda n: (0, 0)),
            pl.BlockSpec((K * K, Ch), lambda n: (0, 0)),
            pl.BlockSpec((1, Ch), lambda n: (0, 0)),
            pl.BlockSpec((1, Ch), lambda n: (0, 0)),
            pl.BlockSpec((Ch, Cout), lambda n: (0, 0)),
            pl.BlockSpec((1, Cout), lambda n: (0, 0)),
            pl.BlockSpec((1, Cout), lambda n: (0, 0)),
        ],
        out_specs=pl.BlockSpec((1, HW, Cout), lambda n: (n, 0, 0)),
        scratch_shapes=[pltpu.VMEM((Hp, Wp, Ch), jnp.float32),
                        pltpu.VMEM((HW, Ch), jnp.float32)],
        compiler_params=pltpu.CompilerParams(dimension_semantics=("parallel",)),
    )(x.astype(jnp.bfloat16), w1m, s1.reshape(1, Ch), b1.reshape(1, Ch),
      wdm, sd.reshape(1, Ch), bd.reshape(1, Ch),
      wpm, sp.reshape(1, Cout), bp.reshape(1, Cout))


# ----------------------------------------------------------------------------
# layer wrappers (weight reshapes, padding, im2col, upsample glue)
# ----------------------------------------------------------------------------
def apply_conv1x1(params, x):
    # BaseConv(cin, cout, 1, 1): 1x1 conv (no bias) + BN + hard_swish;  x: (N, H*W, Cin)
    w, s, b = params                 # w: (Cout, Cin, 1, 1)
    N, HW, Cin = x.shape
    Cout = w.shape[0]
    y = mm_bn_hswish(x.reshape(N * HW, Cin), w.reshape(Cout, Cin).T, s, b)
    return y.reshape(N, HW, Cout)


def apply_conv_k_s(params, x, H, W, K, stride):
    # BaseConv(cin, cout, K, stride): conv via JAX-side im2col (bf16) + fused matmul kernel.
    # TODO(synk): move the K*K strided tap gather in-kernel to avoid the K*K-fold
    #             im2col HBM copy at production feature-map sizes.
    w, s, b = params                 # w: (Cout, Cin, K, K)
    N, HW, Cin = x.shape
    Cout = w.shape[0]
    pad = (K - 1) // 2
    xs = x.reshape(N, H, W, Cin)
    xp = jnp.pad(xs, ((0, 0), (pad, pad), (pad, pad), (0, 0))).astype(jnp.bfloat16)
    Ho = (H + 2 * pad - K) // stride + 1
    Wo = (W + 2 * pad - K) // stride + 1
    cols = []
    for kh in range(K):
        for kw in range(K):
            cols.append(xp[:, kh:kh + stride * (Ho - 1) + 1:stride,
                           kw:kw + stride * (Wo - 1) + 1:stride, :])
    cols = jnp.concatenate(cols, axis=-1).reshape(N * Ho * Wo, K * K * Cin)
    # weight rows ordered (kh, kw, cin) to match the patch concat order
    w2 = jnp.transpose(w, (2, 3, 1, 0)).reshape(K * K * Cin, Cout)
    y = mm_bn_hswish(cols, w2, s, b)
    return y.reshape(N, Ho * Wo, Cout)


def apply_csp(p, a, b, H, W):
    # CSPLayerCustom over the logical channel-concat [a, b];  a/b: (N, H*W, Ca/Cb)
    N, HW, Ca = a.shape
    Cb = b.shape[-1]
    w1, s1, b1 = p["conv1"]
    w2, s2, b2 = p["conv2"]
    hid = w1.shape[0]
    # Fuse conv1 + conv2 (same input) into one matmul with 2*hid output lanes,
    # consuming [a, b] through two accumulating matmuls (no concat in HBM).
    w12 = jnp.concatenate([w1.reshape(hid, Ca + Cb), w2.reshape(hid, Ca + Cb)], axis=0).T
    s12 = jnp.concatenate([s1, s2])
    b12 = jnp.concatenate([b1, b2])
    z = mm2_bn_hswish(a.reshape(N * HW, Ca), b.reshape(N * HW, Cb),
                      w12[:Ca], w12[Ca:], s12, b12)              # (N*HW, 2*hid)
    x1 = z[:, :hid].reshape(N, HW, hid)
    x2 = z[:, hid:]                                              # stays 2D for conv3
    for bp in p["m"]:
        x1 = apply_bottleneck_fused(bp, x1, H, W)                # shortcut=False
    w3, s3, b3 = p["conv3"]
    cout = w3.shape[0]
    w3m = w3.reshape(cout, 2 * hid).T
    y = mm2_bn_hswish(x1.reshape(N * HW, hid), x2, w3m[:hid], w3m[hid:], s3, b3)
    return y.reshape(N, HW, cout)


def upsample2(x, H, W):
    # nn.Upsample(scale_factor=2, mode="nearest");  x: (N, H*W, C) -> (N, 4*H*W, C)
    # TODO(synk): fold the 2x replication into the consuming kernel's index_map to
    #             avoid materializing the 4x tensor in HBM.
    N, _, C = x.shape
    y = x.reshape(N, H, W, C)
    y = jnp.repeat(jnp.repeat(y, 2, axis=1), 2, axis=2)
    return y.reshape(N, 4 * H * W, C)


# ----------------------------------------------------------------------------
# parameter construction (deterministic, synthetic)
# ----------------------------------------------------------------------------
class KeyGen:
    def __init__(self, key):
        self.key = key

    def __call__(self):
        self.key, sub = jax.random.split(self.key)
        return sub


def conv_params(key, cin, cout, k):
    # Conv2d(cin, cout, k, bias=False) weight + BatchNorm2d(cout) folded to (scale, bias)
    kw, kg, kb = jax.random.split(key, 3)
    fan_in = cin * k * k
    w = jax.random.normal(kw, (cout, cin, k, k), jnp.float32) * (0.5 / jnp.sqrt(fan_in))
    gamma = 1.0 + 0.1 * jax.random.normal(kg, (cout,), jnp.float32)
    beta = 0.1 * jax.random.normal(kb, (cout,), jnp.float32)
    mean = jnp.zeros((cout,), jnp.float32)
    var = jnp.ones((cout,), jnp.float32)
    eps = 1e-3  # YOLOX BN eps
    scale = gamma / jnp.sqrt(var + eps)
    bias = beta - mean * scale
    return w, scale, bias


def make_bottleneck(kg, c, ks):
    return dict(
        conv1=conv_params(kg(), c, c, 1),
        conv2_dw=conv_params(kg(), 1, c, ks),   # depthwise weight (C, 1, K, K)
        conv2_pw=conv_params(kg(), c, c, 1),
    )


def make_csp(kg, cin, cout, n, ks):
    hidden = int(cout * 0.5)
    return dict(
        conv1=conv_params(kg(), cin, hidden, 1),
        conv2=conv_params(kg(), cin, hidden, 1),
        conv3=conv_params(kg(), 2 * hidden, cout, 1),
        m=[make_bottleneck(kg, hidden, ks) for _ in range(max(n, 1))],
    )


def make_pafpn_params(key, depth, width, in_channels=(256, 512, 768)):
    kg = KeyGen(key)
    c0 = int(in_channels[0] * width)
    c1 = int(in_channels[1] * width)
    c2 = int(in_channels[2] * width)
    n = round(3 * depth)
    p = dict(
        lateral_conv0=conv_params(kg(), c2, c1, 1),
        C3_p4=make_csp(kg, 2 * c1, c1, n, 5),
        reduce_conv1=conv_params(kg(), c1, c0, 1),
        C3_p3=make_csp(kg, 2 * c0, c0, n, 5),
        bu_conv2=conv_params(kg(), c0, c0, 4),
        C3_n3=make_csp(kg, 2 * c0, c1, n, 5),
        bu_conv1=conv_params(kg(), c1, c1, 4),
        C3_n4=make_csp(kg, 2 * c1, c2, n, 5),
    )
    return p, (c0, c1, c2)


# ----------------------------------------------------------------------------
# YOLOPAFPNCustom forward (FPN/PAN over backbone features x2/x1/x0)
# ----------------------------------------------------------------------------
def yolo_pafpn_forward(params, x2, x1, x0):
    # x2: dark3 (stride 8), x1: dark4 (stride 16), x0: dark5 (stride 32)  -- NHWC
    N, H2, W2, _ = x2.shape
    _, H1, W1, _ = x1.shape
    _, H0, W0, _ = x0.shape
    f_x2 = x2.reshape(N, H2 * W2, -1)
    f_x1 = x1.reshape(N, H1 * W1, -1)
    f_x0 = x0.reshape(N, H0 * W0, -1)

    fpn_out0 = apply_conv1x1(params["lateral_conv0"], f_x0)            # (N, H0W0, c1)
    up0 = upsample2(fpn_out0, H0, W0)                                   # (N, H1W1, c1)
    f_out0 = apply_csp(params["C3_p4"], up0, f_x1, H1, W1)              # (N, H1W1, c1)

    fpn_out1 = apply_conv1x1(params["reduce_conv1"], f_out0)            # (N, H1W1, c0)
    up1 = upsample2(fpn_out1, H1, W1)                                   # (N, H2W2, c0)
    pan_out2 = apply_csp(params["C3_p3"], up1, f_x2, H2, W2)            # (N, H2W2, c0)

    p_out1 = apply_conv_k_s(params["bu_conv2"], pan_out2, H2, W2, 4, 2)  # (N, H1W1, c0)
    pan_out1 = apply_csp(params["C3_n3"], p_out1, fpn_out1, H1, W1)      # (N, H1W1, c1)

    p_out0 = apply_conv_k_s(params["bu_conv1"], pan_out1, H1, W1, 4, 2)  # (N, H0W0, c1)
    pan_out0 = apply_csp(params["C3_n4"], p_out0, fpn_out0, H0, W0)      # (N, H0W0, c2)

    return (pan_out2.reshape(N, H2, W2, -1),
            pan_out1.reshape(N, H1, W1, -1),
            pan_out0.reshape(N, H0, W0, -1))


# ----------------------------------------------------------------------------
if __name__ == "__main__":
    depth, width = 1.0 / 3.0, 1.0 / 32.0   # small synthetic config
    key = jax.random.PRNGKey(0)
    params, (c0, c1, c2) = make_pafpn_params(jax.random.fold_in(key, 1), depth, width)

    N = 2
    k2, k1, k0 = jax.random.split(key, 3)
    # Backbone features in PyTorch NCHW convention (strides 8 / 16 / 32 of a 64x64 image)
    x2_nchw = jax.random.normal(k2, (N, c0, 8, 8), jnp.float32)   # dark3
    x1_nchw = jax.random.normal(k1, (N, c1, 4, 4), jnp.float32)   # dark4
    x0_nchw = jax.random.normal(k0, (N, c2, 2, 2), jnp.float32)   # dark5

    to_nhwc = lambda a: jnp.transpose(a, (0, 2, 3, 1))
    to_nchw = lambda a: jnp.transpose(a, (0, 3, 1, 2))

    fwd = jax.jit(functools.partial(yolo_pafpn_forward, params))
    pan_out2, pan_out1, pan_out0 = fwd(to_nhwc(x2_nchw), to_nhwc(x1_nchw), to_nhwc(x0_nchw))
    outs = tuple(to_nchw(o) for o in (pan_out2, pan_out1, pan_out0))
    jax.block_until_ready(outs)

    assert outs[0].shape == (N, c0, 8, 8)
    assert outs[1].shape == (N, c1, 4, 4)
    assert outs[2].shape == (N, c2, 2, 2)
    print("KERNEL_OK")
</pallas_src>

<mosaic_0001>
module attributes {stable_mosaic.version = 11 : i64} {
  func.func @_mm_bn_hswish_kernel(%arg0: i32, %arg1: memref<8x24xbf16, #tpu.memory_space<vmem>>, %arg2: memref<24x16xbf16, #tpu.memory_space<vmem>>, %arg3: memref<1x16xf32, #tpu.memory_space<vmem>>, %arg4: memref<1x16xf32, #tpu.memory_space<vmem>>, %arg5: memref<8x16xf32, #tpu.memory_space<vmem>>) attributes {dimension_semantics = [#tpu.dimension_semantics<parallel>], iteration_bounds = array<i64: 1>, scalar_prefetch = 0 : i64, scratch_operands = 0 : i64, tpu.core_type = #tpu.core_type<tc>, window_params = [{transform_indices = @transform_0, window_bounds = array<i64: 8, 24>}, {pipeline_mode = #tpu.pipeline_mode<synchronous>, transform_indices = @transform_1, window_bounds = array<i64: 24, 16>}, {pipeline_mode = #tpu.pipeline_mode<synchronous>, transform_indices = @transform_2, window_bounds = array<i64: 1, 16>}, {pipeline_mode = #tpu.pipeline_mode<synchronous>, transform_indices = @transform_3, window_bounds = array<i64: 1, 16>}, {transform_indices = @transform_4, window_bounds = array<i64: 8, 16>}]} {
    %c0 = arith.constant 0 : index
    %c0_0 = arith.constant 0 : index
    %0 = vector.load %arg1[%c0, %c0_0] : memref<8x24xbf16, #tpu.memory_space<vmem>>, vector<8x24xbf16>
    %c0_1 = arith.constant 0 : index
    %c0_2 = arith.constant 0 : index
    %1 = vector.load %arg2[%c0_1, %c0_2] : memref<24x16xbf16, #tpu.memory_space<vmem>>, vector<24x16xbf16>
    %cst = arith.constant dense<0.000000e+00> : vector<8x16xf32>
    %2 = tpu.matmul %0, %1, %cst {dimension_numbers = #tpu.dot_dimension_numbers<[1], [0], [0], [1], [0, 0, 1, 1], [], []>} : vector<8x24xbf16>, vector<24x16xbf16>, vector<8x16xf32> -> vector<8x16xf32>
    %c0_3 = arith.constant 0 : index
    %c0_4 = arith.constant 0 : index
    %3 = vector.load %arg3[%c0_3, %c0_4] : memref<1x16xf32, #tpu.memory_space<vmem>>, vector<1x16xf32>
    %4 = vector.broadcast %3 : vector<1x16xf32> to vector<8x16xf32>
    %5 = arith.mulf %2, %4 : vector<8x16xf32>
    %c0_5 = arith.constant 0 : index
    %c0_6 = arith.constant 0 : index
    %6 = vector.load %arg4[%c0_5, %c0_6] : memref<1x16xf32, #tpu.memory_space<vmem>>, vector<1x16xf32>
    %7 = vector.broadcast %6 : vector<1x16xf32> to vector<8x16xf32>
    %8 = arith.addf %5, %7 : vector<8x16xf32>
    %cst_7 = arith.constant 3.000000e+00 : f32
    %9 = vector.broadcast %cst_7 : f32 to vector<8x16xf32>
    %10 = arith.addf %8, %9 : vector<8x16xf32>
    %cst_8 = arith.constant 0.000000e+00 : f32
    %cst_9 = arith.constant 6.000000e+00 : f32
    %11 = vector.broadcast %cst_8 : f32 to vector<8x16xf32>
    %12 = arith.maximumf %11, %10 : vector<8x16xf32>
    %13 = vector.broadcast %cst_9 : f32 to vector<8x16xf32>
    %14 = arith.minimumf %13, %12 : vector<8x16xf32>
    %15 = arith.mulf %8, %14 : vector<8x16xf32>
    %cst_10 = arith.constant 0.166666672 : f32
    %16 = vector.broadcast %cst_10 : f32 to vector<8x16xf32>
    %17 = arith.mulf %15, %16 : vector<8x16xf32>
    %c0_11 = arith.constant 0 : index
    %c0_12 = arith.constant 0 : index
    %18 = vector.load %arg5[%c0_11, %c0_12] : memref<8x16xf32, #tpu.memory_space<vmem>>, vector<8x16xf32>
    tpu.vector_store %arg5[%c0_11, %c0_12], %17 {strides = array<i32>} : memref<8x16xf32, #tpu.memory_space<vmem>>, vector<8x16xf32>,
    return
  }
  func.func @transform_0(%arg0: i32) -> (i32, i32) {
    %c0_i32 = arith.constant 0 : i32
    %c0_i32_0 = arith.constant 0 : i32
    return %arg0, %c0_i32 : i32, i32
  }
  func.func @transform_1(%arg0: i32) -> (i32, i32) {
    %c0_i32 = arith.constant 0 : i32
    %c0_i32_0 = arith.constant 0 : i32
    %c0_i32_1 = arith.constant 0 : i32
    return %c0_i32, %c0_i32_0 : i32, i32
  }
  func.func @transform_2(%arg0: i32) -> (i32, i32) {
    %c0_i32 = arith.constant 0 : i32
    %c0_i32_0 = arith.constant 0 : i32
    %c0_i32_1 = arith.constant 0 : i32
    return %c0_i32, %c0_i32_0 : i32, i32
  }
  func.func @transform_3(%arg0: i32) -> (i32, i32) {
    %c0_i32 = arith.constant 0 : i32
    %c0_i32_0 = arith.constant 0 : i32
    %c0_i32_1 = arith.constant 0 : i32
    return %c0_i32, %c0_i32_0 : i32, i32
  }
  func.func @transform_4(%arg0: i32) -> (i32, i32) {
    %c0_i32 = arith.constant 0 : i32
    %c0_i32_0 = arith.constant 0 : i32
    return %arg0, %c0_i32 : i32, i32
  }
}

module attributes {stable_mosaic.version = 11 : i64} {
  func.func @_mm2_bn_hswish_kernel(%arg0: i32, %arg1: memref<32x16xbf16, #tpu.memory_space<vmem>>, %arg2: memref<32x16xbf16, #tpu.memory_space<vmem>>, %arg3: memref<16x16xbf16, #tpu.memory_space<vmem>>, %arg4: memref<16x16xbf16, #tpu.memory_space<vmem>>, %arg5: memref<1x16xf32, #tpu.memory_space<vmem>>, %arg6: memref<1x16xf32, #tpu.memory_space<vmem>>, %arg7: memref<32x16xf32, #tpu.memory_space<vmem>>) attributes {dimension_semantics = [#tpu.dimension_semantics<parallel>], iteration_bounds = array<i64: 1>, scalar_prefetch = 0 : i64, scratch_operands = 0 : i64, tpu.core_type = #tpu.core_type<tc>, window_params = [{transform_indices = @transform_0, window_bounds = array<i64: 32, 16>}, {transform_indices = @transform_1, window_bounds = array<i64: 32, 16>}, {pipeline_mode = #tpu.pipeline_mode<synchronous>, transform_indices = @transform_2, window_bounds = array<i64: 16, 16>}, {pipeline_mode = #tpu.pipeline_mode<synchronous>, transform_indices = @transform_3, window_bounds = array<i64: 16, 16>}, {pipeline_mode = #tpu.pipeline_mode<synchronous>, transform_indices = @transform_4, window_bounds = array<i64: 1, 16>}, {pipeline_mode = #tpu.pipeline_mode<synchronous>, transform_indices = @transform_5, window_bounds = array<i64: 1, 16>}, {transform_indices = @transform_6, window_bounds = array<i64: 32, 16>}]} {
    %c0 = arith.constant 0 : index
    %c0_0 = arith.constant 0 : index
    %0 = vector.load %arg1[%c0, %c0_0] : memref<32x16xbf16, #tpu.memory_space<vmem>>, vector<32x16xbf16>
    %c0_1 = arith.constant 0 : index
    %c0_2 = arith.constant 0 : index
    %1 = vector.load %arg3[%c0_1, %c0_2] : memref<16x16xbf16, #tpu.memory_space<vmem>>, vector<16x16xbf16>
    %cst = arith.constant dense<0.000000e+00> : vector<32x16xf32>
    %2 = tpu.matmul %0, %1, %cst {dimension_numbers = #tpu.dot_dimension_numbers<[1], [0], [0], [1], [0, 0, 1, 1], [], []>} : vector<32x16xbf16>, vector<16x16xbf16>, vector<32x16xf32> -> vector<32x16xf32>
    %c0_3 = arith.constant 0 : index
    %c0_4 = arith.constant 0 : index
    %3 = vector.load %arg2[%c0_3, %c0_4] : memref<32x16xbf16, #tpu.memory_space<vmem>>, vector<32x16xbf16>
    %c0_5 = arith.constant 0 : index
    %c0_6 = arith.constant 0 : index
    %4 = vector.load %arg4[%c0_5, %c0_6] : memref<16x16xbf16, #tpu.memory_space<vmem>>, vector<16x16xbf16>
    %cst_7 = arith.constant dense<0.000000e+00> : vector<32x16xf32>
    %5 = tpu.matmul %3, %4, %cst_7 {dimension_numbers = #tpu.dot_dimension_numbers<[1], [0], [0], [1], [0, 0, 1, 1], [], []>} : vector<32x16xbf16>, vector<16x16xbf16>, vector<32x16xf32> -> vector<32x16xf32>
    %6 = arith.addf %2, %5 : vector<32x16xf32>
    %c0_8 = arith.constant 0 : index
    %c0_9 = arith.constant 0 : index
    %7 = vector.load %arg5[%c0_8, %c0_9] : memref<1x16xf32, #tpu.memory_space<vmem>>, vector<1x16xf32>
    %8 = vector.broadcast %7 : vector<1x16xf32> to vector<32x16xf32>
    %9 = arith.mulf %6, %8 : vector<32x16xf32>
    %c0_10 = arith.constant 0 : index
    %c0_11 = arith.constant 0 : index
    %10 = vector.load %arg6[%c0_10, %c0_11] : memref<1x16xf32, #tpu.memory_space<vmem>>, vector<1x16xf32>
    %11 = vector.broadcast %10 : vector<1x16xf32> to vector<32x16xf32>
    %12 = arith.addf %9, %11 : vector<32x16xf32>
    %cst_12 = arith.constant 3.000000e+00 : f32
    %13 = vector.broadcast %cst_12 : f32 to vector<32x16xf32>
    %14 = arith.addf %12, %13 : vector<32x16xf32>
    %cst_13 = arith.constant 0.000000e+00 : f32
    %cst_14 = arith.constant 6.000000e+00 : f32
    %15 = vector.broadcast %cst_13 : f32 to vector<32x16xf32>
    %16 = arith.maximumf %15, %14 : vector<32x16xf32>
    %17 = vector.broadcast %cst_14 : f32 to vector<32x16xf32>
    %18 = arith.minimumf %17, %16 : vector<32x16xf32>
    %19 = arith.mulf %12, %18 : vector<32x16xf32>
    %cst_15 = arith.constant 0.166666672 : f32
    %20 = vector.broadcast %cst_15 : f32 to vector<32x16xf32>
    %21 = arith.mulf %19, %20 : vector<32x16xf32>
    %c0_16 = arith.constant 0 : index
    %c0_17 = arith.constant 0 : index
    %22 = vector.load %arg7[%c0_16, %c0_17] : memref<32x16xf32, #tpu.memory_space<vmem>>, vector<32x16xf32>
    tpu.vector_store %arg7[%c0_16, %c0_17], %21 {strides = array<i32>} : memref<32x16xf32, #tpu.memory_space<vmem>>, vector<32x16xf32>,
    return
  }
  func.func @transform_0(%arg0: i32) -> (i32, i32) {
    %c0_i32 = arith.constant 0 : i32
    %c0_i32_0 = arith.constant 0 : i32
    return %arg0, %c0_i32 : i32, i32
  }
  func.func @transform_1(%arg0: i32) -> (i32, i32) {
    %c0_i32 = arith.constant 0 : i32
    %c0_i32_0 = arith.constant 0 : i32
    return %arg0, %c0_i32 : i32, i32
  }
  func.func @transform_2(%arg0: i32) -> (i32, i32) {
    %c0_i32 = arith.constant 0 : i32
    %c0_i32_0 = arith.constant 0 : i32
    %c0_i32_1 = arith.constant 0 : i32
    return %c0_i32, %c0_i32_0 : i32, i32
  }
  func.func @transform_3(%arg0: i32) -> (i32, i32) {
    %c0_i32 = arith.constant 0 : i32
    %c0_i32_0 = arith.constant 0 : i32
    %c0_i32_1 = arith.constant 0 : i32
    return %c0_i32, %c0_i32_0 : i32, i32
  }
  func.func @transform_4(%arg0: i32) -> (i32, i32) {
    %c0_i32 = arith.constant 0 : i32
    %c0_i32_0 = arith.constant 0 : i32
    %c0_i32_1 = arith.constant 0 : i32
    return %c0_i32, %c0_i32_0 : i32, i32
  }
  func.func @transform_5(%arg0: i32) -> (i32, i32) {
    %c0_i32 = arith.constant 0 : i32
    %c0_i32_0 = arith.constant 0 : i32
    %c0_i32_1 = arith.constant 0 : i32
    return %c0_i32, %c0_i32_0 : i32, i32
  }
  func.func @transform_6(%arg0: i32) -> (i32, i32) {
    %c0_i32 = arith.constant 0 : i32
    %c0_i32_0 = arith.constant 0 : i32
    return %arg0, %c0_i32 : i32, i32
  }
}

module attributes {stable_mosaic.version = 11 : i64} {
  func.func @_bottleneck_kernel(%arg0: i32, %arg1: memref<1x16x8xbf16, #tpu.memory_space<vmem>>, %arg2: memref<8x8xbf16, #tpu.memory_space<vmem>>, %arg3: memref<1x8xf32, #tpu.memory_space<vmem>>, %arg4: memref<1x8xf32, #tpu.memory_space<vmem>>, %arg5: memref<25x8xf32, #tpu.memory_space<vmem>>, %arg6: memref<1x8xf32, #tpu.memory_space<vmem>>, %arg7: memref<1x8xf32, #tpu.memory_space<vmem>>, %arg8: memref<8x8xbf16, #tpu.memory_space<vmem>>, %arg9: memref<1x8xf32, #tpu.memory_space<vmem>>, %arg10: memref<1x8xf32, #tpu.memory_space<vmem>>, %arg11: memref<1x16x8xf32, #tpu.memory_space<vmem>>, %arg12: memref<8x8x8xf32, #tpu.memory_space<vmem>>, %arg13: memref<16x8xf32, #tpu.memory_space<vmem>>) attributes {dimension_semantics = [#tpu.dimension_semantics<parallel>], iteration_bounds = array<i64: 2>, scalar_prefetch = 0 : i64, scratch_operands = 2 : i64, tpu.core_type = #tpu.core_type<tc>, window_params = [{transform_indices = @transform_0, window_bounds = array<i64: 1, 16, 8>}, {pipeline_mode = #tpu.pipeline_mode<synchronous>, transform_indices = @transform_1, window_bounds = array<i64: 8, 8>}, {pipeline_mode = #tpu.pipeline_mode<synchronous>, transform_indices = @transform_2, window_bounds = array<i64: 1, 8>}, {pipeline_mode = #tpu.pipeline_mode<synchronous>, transform_indices = @transform_3, window_bounds = array<i64: 1, 8>}, {pipeline_mode = #tpu.pipeline_mode<synchronous>, transform_indices = @transform_4, window_bounds = array<i64: 25, 8>}, {pipeline_mode = #tpu.pipeline_mode<synchronous>, transform_indices = @transform_5, window_bounds = array<i64: 1, 8>}, {pipeline_mode = #tpu.pipeline_mode<synchronous>, transform_indices = @transform_6, window_bounds = array<i64: 1, 8>}, {pipeline_mode = #tpu.pipeline_mode<synchronous>, transform_indices = @transform_7, window_bounds = array<i64: 8, 8>}, {pipeline_mode = #tpu.pipeline_mode<synchronous>, transform_indices = @transform_8, window_bounds = array<i64: 1, 8>}, {pipeline_mode = #tpu.pipeline_mode<synchronous>, transform_indices = @transform_9, window_bounds = array<i64: 1, 8>}, {transform_indices = @transform_10, window_bounds = array<i64: 1, 16, 8>}]} {
    %c0 = arith.constant 0 : index
    %c0_0 = arith.constant 0 : index
    %c0_1 = arith.constant 0 : index
    %0 = vector.load %arg1[%c0, %c0_0, %c0_1] : memref<1x16x8xbf16, #tpu.memory_space<vmem>>, vector<1x16x8xbf16>
    %1 = vector.shape_cast %0 : vector<1x16x8xbf16> to vector<16x8xbf16>
    %c0_2 = arith.constant 0 : index
    %c0_3 = arith.constant 0 : index
    %2 = vector.load %arg2[%c0_2, %c0_3] : memref<8x8xbf16, #tpu.memory_space<vmem>>, vector<8x8xbf16>
    %cst = arith.constant dense<0.000000e+00> : vector<16x8xf32>
    %3 = tpu.matmul %1, %2, %cst {dimension_numbers = #tpu.dot_dimension_numbers<[1], [0], [0], [1], [0, 0, 1, 1], [], []>} : vector<16x8xbf16>, vector<8x8xbf16>, vector<16x8xf32> -> vector<16x8xf32>
    %c0_4 = arith.constant 0 : index
    %c0_5 = arith.constant 0 : index
    %4 = vector.load %arg3[%c0_4, %c0_5] : memref<1x8xf32, #tpu.memory_space<vmem>>, vector<1x8xf32>
    %5 = vector.broadcast %4 : vector<1x8xf32> to vector<16x8xf32>
    %6 = arith.mulf %3, %5 : vector<16x8xf32>
    %c0_6 = arith.constant 0 : index
    %c0_7 = arith.constant 0 : index
    %7 = vector.load %arg4[%c0_6, %c0_7] : memref<1x8xf32, #tpu.memory_space<vmem>>, vector<1x8xf32>
    %8 = vector.broadcast %7 : vector<1x8xf32> to vector<16x8xf32>
    %9 = arith.addf %6, %8 : vector<16x8xf32>
    %cst_8 = arith.constant 3.000000e+00 : f32
    %10 = vector.broadcast %cst_8 : f32 to vector<16x8xf32>
    %11 = arith.addf %9, %10 : vector<16x8xf32>
    %cst_9 = arith.constant 0.000000e+00 : f32
    %cst_10 = arith.constant 6.000000e+00 : f32
    %12 = vector.broadcast %cst_9 : f32 to vector<16x8xf32>
    %13 = arith.maximumf %12, %11 : vector<16x8xf32>
    %14 = vector.broadcast %cst_10 : f32 to vector<16x8xf32>
    %15 = arith.minimumf %14, %13 : vector<16x8xf32>
    %16 = arith.mulf %9, %15 : vector<16x8xf32>
    %cst_11 = arith.constant 0.166666672 : f32
    %17 = vector.broadcast %cst_11 : f32 to vector<16x8xf32>
    %18 = arith.mulf %16, %17 : vector<16x8xf32>
    %cst_12 = arith.constant 0.000000e+00 : f32
    %19 = vector.broadcast %cst_12 : f32 to vector<8x8x8xf32>
    %c0_13 = arith.constant 0 : index
    %c0_14 = arith.constant 0 : index
    %c0_15 = arith.constant 0 : index
    %20 = vector.load %arg12[%c0_13, %c0_14, %c0_15] : memref<8x8x8xf32, #tpu.memory_space<vmem>>, vector<8x8x8xf32>
    tpu.vector_store %arg12[%c0_13, %c0_14, %c0_15], %19 {strides = array<i32>} : memref<8x8x8xf32, #tpu.memory_space<vmem>>, vector<8x8x8xf32>,
    %21 = vector.extract_strided_slice %18 {offsets = [0, 0], sizes = [4, 8], strides = [1, 1]} : vector<16x8xf32> to vector<4x8xf32>
    %c2 = arith.constant 2 : index
    %c2_16 = arith.constant 2 : index
    %c0_17 = arith.constant 0 : index
    %22 = vector.load %arg12[%c2, %c2_16, %c0_17] : memref<8x8x8xf32, #tpu.memory_space<vmem>>, vector<1x4x8xf32>
    %23 = vector.shape_cast %22 : vector<1x4x8xf32> to vector<4x8xf32>
    %24 = vector.shape_cast %21 : vector<4x8xf32> to vector<1x4x8xf32>
    tpu.vector_store %arg12[%c2, %c2_16, %c0_17], %24 {strides = array<i32>} : memref<8x8x8xf32, #tpu.memory_space<vmem>>, vector<1x4x8xf32>,
    %25 = vector.extract_strided_slice %18 {offsets = [4, 0], sizes = [4, 8], strides = [1, 1]} : vector<16x8xf32> to vector<4x8xf32>
    %c3 = arith.constant 3 : index
    %c2_18 = arith.constant 2 : index
    %c0_19 = arith.constant 0 : index
    %26 = vector.load %arg12[%c3, %c2_18, %c0_19] : memref<8x8x8xf32, #tpu.memory_space<vmem>>, vector<1x4x8xf32>
    %27 = vector.shape_cast %26 : vector<1x4x8xf32> to vector<4x8xf32>
    %28 = vector.shape_cast %25 : vector<4x8xf32> to vector<1x4x8xf32>
    tpu.vector_store %arg12[%c3, %c2_18, %c0_19], %28 {strides = array<i32>} : memref<8x8x8xf32, #tpu.memory_space<vmem>>, vector<1x4x8xf32>,
    %29 = vector.extract_strided_slice %18 {offsets = [8, 0], sizes = [4, 8], strides = [1, 1]} : vector<16x8xf32> to vector<4x8xf32>
    %c4 = arith.constant 4 : index
    %c2_20 = arith.constant 2 : index
    %c0_21 = arith.constant 0 : index
    %30 = vector.load %arg12[%c4, %c2_20, %c0_21] : memref<8x8x8xf32, #tpu.memory_space<vmem>>, vector<1x4x8xf32>
    %31 = vector.shape_cast %30 : vector<1x4x8xf32> to vector<4x8xf32>
    %32 = vector.shape_cast %29 : vector<4x8xf32> to vector<1x4x8xf32>
    tpu.vector_store %arg12[%c4, %c2_20, %c0_21], %32 {strides = array<i32>} : memref<8x8x8xf32, #tpu.memory_space<vmem>>, vector<1x4x8xf32>,
    %33 = vector.extract_strided_slice %18 {offsets = [12, 0], sizes = [4, 8], strides = [1, 1]} : vector<16x8xf32> to vector<4x8xf32>
    %c5 = arith.constant 5 : index
    %c2_22 = arith.constant 2 : index
    %c0_23 = arith.constant 0 : index
    %34 = vector.load %arg12[%c5, %c2_22, %c0_23] : memref<8x8x8xf32, #tpu.memory_space<vmem>>, vector<1x4x8xf32>
    %35 = vector.shape_cast %34 : vector<1x4x8xf32> to vector<4x8xf32>
    %36 = vector.shape_cast %33 : vector<4x8xf32> to vector<1x4x8xf32>
    tpu.vector_store %arg12[%c5, %c2_22, %c0_23], %36 {strides = array<i32>} : memref<8x8x8xf32, #tpu.memory_space<vmem>>, vector<1x4x8xf32>,
    %c0_24 = arith.constant 0 : index
    %c0_25 = arith.constant 0 : index
    %c0_26 = arith.constant 0 : index
    %37 = vector.load %arg12[%c0_24, %c0_25, %c0_26] : memref<8x8x8xf32, #tpu.memory_space<vmem>>, vector<8x8x8xf32>
    %c0_27 = arith.constant 0 : index
    %c0_28 = arith.constant 0 : index
    %38 = vector.load %arg5[%c0_27, %c0_28] : memref<25x8xf32, #tpu.memory_space<vmem>>, vector<25x8xf32>
    %cst_29 = arith.constant 0.000000e+00 : f32
    %39 = vector.broadcast %cst_29 : f32 to vector<4x4x8xf32>
    %40 = vector.extract_strided_slice %37 {offsets = [0, 0, 0], sizes = [4, 4, 8], strides = [1, 1, 1]} : vector<8x8x8xf32> to vector<4x4x8xf32>
    %41 = vector.extract_strided_slice %38 {offsets = [0, 0], sizes = [1, 8], strides = [1, 1]} : vector<25x8xf32> to vector<1x8xf32>
    %42 = vector.shape_cast %41 : vector<1x8xf32> to vector<8xf32>
    %43 = vector.shape_cast %42 : vector<8xf32> to vector<1x1x8xf32>
    %44 = vector.broadcast %43 : vector<1x1x8xf32> to vector<4x4x8xf32>
    %45 = arith.mulf %40, %44 : vector<4x4x8xf32>
    %46 = arith.addf %39, %45 : vector<4x4x8xf32>
    %47 = vector.extract_strided_slice %37 {offsets = [0, 1, 0], sizes = [4, 4, 8], strides = [1, 1, 1]} : vector<8x8x8xf32> to vector<4x4x8xf32>
    %48 = vector.extract_strided_slice %38 {offsets = [1, 0], sizes = [1, 8], strides = [1, 1]} : vector<25x8xf32> to vector<1x8xf32>
    %49 = vector.shape_cast %48 : vector<1x8xf32> to vector<8xf32>
    %50 = vector.shape_cast %49 : vector<8xf32> to vector<1x1x8xf32>
    %51 = vector.broadcast %50 : vector<1x1x8xf32> to vector<4x4x8xf32>
    %52 = arith.mulf %47, %51 : vector<4x4x8xf32>
    %53 = arith.addf %46, %52 : vector<4x4x8xf32>
    %54 = vector.extract_strided_slice %37 {offsets = [0, 2, 0], sizes = [4, 4, 8], strides = [1, 1, 1]} : vector<8x8x8xf32> to vector<4x4x8xf32>
    %55 = vector.extract_strided_slice %38 {offsets = [2, 0], sizes = [1, 8], strides = [1, 1]} : vector<25x8xf32> to vector<1x8xf32>
    %56 = vector.shape_cast %55 : vector<1x8xf32> to vector<8xf32>
    %57 = vector.shape_cast %56 : vector<8xf32> to vector<1x1x8xf32>
    %58 = vector.broadcast %57 : vector<1x1x8xf32> to vector<4x4x8xf32>
    %59 = arith.mulf %54, %58 : vector<4x4x8xf32>
    %60 = arith.addf %53, %59 : vector<4x4x8xf32>
    %61 = vector.extract_strided_slice %37 {offsets = [0, 3, 0], sizes = [4, 4, 8], strides = [1, 1, 1]} : vector<8x8x8xf32> to vector<4x4x8xf32>
    %62 = vector.extract_strided_slice %38 {offsets = [3, 0], sizes = [1, 8], strides = [1, 1]} : vector<25x8xf32> to vector<1x8xf32>
    %63 = vector.shape_cast %62 : vector<1x8xf32> to vector<8xf32>
    %64 = vector.shape_cast %63 : vector<8xf32> to vector<1x1x8xf32>
    %65 = vector.broadcast %64 : vector<1x1x8xf32> to vector<4x4x8xf32>
    %66 = arith.mulf %61, %65 : vector<4x4x8xf32>
    %67 = arith.addf %60, %66 : vector<4x4x8xf32>
    %68 = vector.extract_strided_slice %37 {offsets = [0, 4, 0], sizes = [4, 4, 8], strides = [1, 1, 1]} : vector<8x8x8xf32> to vector<4x4x8xf32>
    %69 = vector.extract_strided_slice %38 {offsets = [4, 0], sizes = [1, 8], strides = [1, 1]} : vector<25x8xf32> to vector<1x8xf32>
    %70 = vector.shape_cast %69 : vector<1x8xf32> to vector<8xf32>
    %71 = vector.shape_cast %70 : vector<8xf32> to vector<1x1x8xf32>
    %72 = vector.broadcast %71 : vector<1x1x8xf32> to vector<4x4x8xf32>
    %73 = arith.mulf %68, %72 : vector<4x4x8xf32>
    %74 = arith.addf %67, %73 : vector<4x4x8xf32>
    %75 = vector.extract_strided_slice %37 {offsets = [1, 0, 0], sizes = [4, 4, 8], strides = [1, 1, 1]} : vector<8x8x8xf32> to vector<4x4x8xf32>
    %76 = vector.extract_strided_slice %38 {offsets = [5, 0], sizes = [1, 8], strides = [1, 1]} : vector<25x8xf32> to vector<1x8xf32>
    %77 = vector.shape_cast %76 : vector<1x8xf32> to vector<8xf32>
    %78 = vector.shape_cast %77 : vector<8xf32> to vector<1x1x8xf32>
    %79 = vector.broadcast %78 : vector<1x1x8xf32> to vector<4x4x8xf32>
    %80 = arith.mulf %75, %79 : vector<4x4x8xf32>
    %81 = arith.addf %74, %80 : vector<4x4x8xf32>
    %82 = vector.extract_strided_slice %37 {offsets = [1, 1, 0], sizes = [4, 4, 8], strides = [1, 1, 1]} : vector<8x8x8xf32> to vector<4x4x8xf32>
    %83 = vector.extract_strided_slice %38 {offsets = [6, 0], sizes = [1, 8], strides = [1, 1]} : vector<25x8xf32> to vector<1x8xf32>
    %84 = vector.shape_cast %83 : vector<1x8xf32> to vector<8xf32>
    %85 = vector.shape_cast %84 : vector<8xf32> to vector<1x1x8xf32>
    %86 = vector.broadcast %85 : vector<1x1x8xf32> to vector<4x4x8xf32>
    %87 = arith.mulf %82, %86 : vector<4x4x8xf32>
    %88 = arith.addf %81, %87 : vector<4x4x8xf32>
    %89 = vector.extract_strided_slice %37 {offsets = [1, 2, 0], sizes = [4, 4, 8], strides = [1, 1, 1]} : vector<8x8x8xf32> to vector<4x4x8xf32>
    %90 = vector.extract_strided_slice %38 {offsets = [7, 0], sizes = [1, 8], strides = [1, 1]} : vector<25x8xf32> to vector<1x8xf32>
    %91 = vector.shape_cast %90 : vector<1x8xf32> to vector<8xf32>
    %92 = vector.shape_cast %91 : vector<8xf32> to vector<1x1x8xf32>
    %93 = vector.broadcast %92 : vector<1x1x8xf32> to vector<4x4x8xf32>
    %94 = arith.mulf %89, %93 : vector<4x4x8xf32>
    %95 = arith.addf %88, %94 : vector<4x4x8xf32>
    %96 = vector.extract_strided_slice %37 {offsets = [1, 3, 0], sizes = [4, 4, 8], strides = [1, 1, 1]} : vector<8x8x8xf32> to vector<4x4x8xf32>
    %97 = vector.extract_strided_slice %38 {offsets = [8, 0], sizes = [1, 8], strides = [1, 1]} : vector<25x8xf32> to vector<1x8xf32>
    %98 = vector.shape_cast %97 : vector<1x8xf32> to vector<8xf32>
    %99 = vector.shape_cast %98 : vector<8xf32> to vector<1x1x8xf32>
    %100 = vector.broadcast %99 : vector<1x1x8xf32> to vector<4x4x8xf32>
    %101 = arith.mulf %96, %100 : vector<4x4x8xf32>
    %102 = arith.addf %95, %101 : vector<4x4x8xf32>
    %103 = vector.extract_strided_slice %37 {offsets = [1, 4, 0], sizes = [4, 4, 8], strides = [1, 1, 1]} : vector<8x8x8xf32> to vector<4x4x8xf32>
    %104 = vector.extract_strided_slice %38 {offsets = [9, 0], sizes = [1, 8], strides = [1, 1]} : vector<25x8xf32> to vector<1x8xf32>
    %105 = vector.shape_cast %104 : vector<1x8xf32> to vector<8xf32>
    %106 = vector.shape_cast %105 : vector<8xf32> to vector<1x1x8xf32>
    %107 = vector.broadcast %106 : vector<1x1x8xf32> to vector<4x4x8xf32>
    %108 = arith.mulf %103, %107 : vector<4x4x8xf32>
    %109 = arith.addf %102, %108 : vector<4x4x8xf32>
    %110 = vector.extract_strided_slice %37 {offsets = [2, 0, 0], sizes = [4, 4, 8], strides = [1, 1, 1]} : vector<8x8x8xf32> to vector<4x4x8xf32>
    %111 = vector.extract_strided_slice %38 {offsets = [10, 0], sizes = [1, 8], strides = [1, 1]} : vector<25x8xf32> to vector<1x8xf32>
    %112 = vector.shape_cast %111 : vector<1x8xf32> to vector<8xf32>
    %113 = vector.shape_cast %112 : vector<8xf32> to vector<1x1x8xf32>
    %114 = vector.broadcast %113 : vector<1x1x8xf32> to vector<4x4x8xf32>
    %115 = arith.mulf %110, %114 : vector<4x4x8xf32>
    %116 = arith.addf %109, %115 : vector<4x4x8xf32>
    %117 = vector.extract_strided_slice %37 {offsets = [2, 1, 0], sizes = [4, 4, 8], strides = [1, 1, 1]} : vector<8x8x8xf32> to vector<4x4x8xf32>
    %118 = vector.extract_strided_slice %38 {offsets = [11, 0], sizes = [1, 8], strides = [1, 1]} : vector<25x8xf32> to vector<1x8xf32>
    %119 = vector.shape_cast %118 : vector<1x8xf32> to vector<8xf32>
    %120 = vector.shape_cast %119 : vector<8xf32> to vector<1x1x8xf32>
    %121 = vector.broadcast %120 : vector<1x1x8xf32> to vector<4x4x8xf32>
    %122 = arith.mulf %117, %121 : vector<4x4x8xf32>
    %123 = arith.addf %116, %122 : vector<4x4x8xf32>
    %124 = vector.extract_strided_slice %37 {offsets = [2, 2, 0], sizes = [4, 4, 8], strides = [1, 1, 1]} : vector<8x8x8xf32> to vector<4x4x8xf32>
    %125 = vector.extract_strided_slice %38 {offsets = [12, 0], sizes = [1, 8], strides = [1, 1]} : vector<25x8xf32> to vector<1x8xf32>
    %126 = vector.shape_cast %125 : vector<1x8xf32> to vector<8xf32>
    %127 = vector.shape_cast %126 : vector<8xf32> to vector<1x1x8xf32>
    %128 = vector.broadcast %127 : vector<1x1x8xf32> to vector<4x4x8xf32>
    %129 = arith.mulf %124, %128 : vector<4x4x8xf32>
    %130 = arith.addf %123, %129 : vector<4x4x8xf32>
    %131 = vector.extract_strided_slice %37 {offsets = [2, 3, 0], sizes = [4, 4, 8], strides = [1, 1, 1]} : vector<8x8x8xf32> to vector<4x4x8xf32>
    %132 = vector.extract_strided_slice %38 {offsets = [13, 0], sizes = [1, 8], strides = [1, 1]} : vector<25x8xf32> to vector<1x8xf32>
    %133 = vector.shape_cast %132 : vector<1x8xf32> to vector<8xf32>
    %134 = vector.shape_cast %133 : vector<8xf32> to vector<1x1x8xf32>
    %135 = vector.broadcast %134 : vector<1x1x8xf32> to vector<4x4x8xf32>
    %136 = arith.mulf %131, %135 : vector<4x4x8xf32>
    %137 = arith.addf %130, %136 : vector<4x4x8xf32>
    %138 = vector.extract_strided_slice %37 {offsets = [2, 4, 0], sizes = [4, 4, 8], strides = [1, 1, 1]} : vector<8x8x8xf32> to vector<4x4x8xf32>
    %139 = vector.extract_strided_slice %38 {offsets = [14, 0], sizes = [1, 8], strides = [1, 1]} : vector<25x8xf32> to vector<1x8xf32>
    %140 = vector.shape_cast %139 : vector<1x8xf32> to vector<8xf32>
    %141 = vector.shape_cast %140 : vector<8xf32> to vector<1x1x8xf32>
    %142 = vector.broadcast %141 : vector<1x1x8xf32> to vector<4x4x8xf32>
    %143 = arith.mulf %138, %142 : vector<4x4x8xf32>
    %144 = arith.addf %137, %143 : vector<4x4x8xf32>
    %145 = vector.extract_strided_slice %37 {offsets = [3, 0, 0], sizes = [4, 4, 8], strides = [1, 1, 1]} : vector<8x8x8xf32> to vector<4x4x8xf32>
    %146 = vector.extract_strided_slice %38 {offsets = [15, 0], sizes = [1, 8], strides = [1, 1]} : vector<25x8xf32> to vector<1x8xf32>
    %147 = vector.shape_cast %146 : vector<1x8xf32> to vector<8xf32>
    %148 = vector.shape_cast %147 : vector<8xf32> to vector<1x1x8xf32>
    %149 = vector.broadcast %148 : vector<1x1x8xf32> to vector<4x4x8xf32>
    %150 = arith.mulf %145, %149 : vector<4x4x8xf32>
    %151 = arith.addf %144, %150 : vector<4x4x8xf32>
    %152 = vector.extract_strided_slice %37 {offsets = [3, 1, 0], sizes = [4, 4, 8], strides = [1, 1, 1]} : vector<8x8x8xf32> to vector<4x4x8xf32>
    %153 = vector.extract_strided_slice %38 {offsets = [16, 0], sizes = [1, 8], strides = [1, 1]} : vector<25x8xf32> to vector<1x8xf32>
    %154 = vector.shape_cast %153 : vector<1x8xf32> to vector<8xf32>
    %155 = vector.shape_cast %154 : vector<8xf32> to vector<1x1x8xf32>
    %156 = vector.broadcast %155 : vector<1x1x8xf32> to vector<4x4x8xf32>
    %157 = arith.mulf %152, %156 : vector<4x4x8xf32>
    %158 = arith.addf %151, %157 : vector<4x4x8xf32>
    %159 = vector.extract_strided_slice %37 {offsets = [3, 2, 0], sizes = [4, 4, 8], strides = [1, 1, 1]} : vector<8x8x8xf32> to vector<4x4x8xf32>
    %160 = vector.extract_strided_slice %38 {offsets = [17, 0], sizes = [1, 8], strides = [1, 1]} : vector<25x8xf32> to vector<1x8xf32>
    %161 = vector.shape_cast %160 : vector<1x8xf32> to vector<8xf32>
    %162 = vector.shape_cast %161 : vector<8xf32> to vector<1x1x8xf32>
    %163 = vector.broadcast %162 : vector<1x1x8xf32> to vector<4x4x8xf32>
    %164 = arith.mulf %159, %163 : vector<4x4x8xf32>
    %165 = arith.addf %158, %164 : vector<4x4x8xf32>
    %166 = vector.extract_strided_slice %37 {offsets = [3, 3, 0], sizes = [4, 4, 8], strides = [1, 1, 1]} : vector<8x8x8xf32> to vector<4x4x8xf32>
    %167 = vector.extract_strided_slice %38 {offsets = [18, 0], sizes = [1, 8], strides = [1, 1]} : vector<25x8xf32> to vector<1x8xf32>
    %168 = vector.shape_cast %167 : vector<1x8xf32> to vector<8xf32>
    %169 = vector.shape_cast %168 : vector<8xf32> to vector<1x1x8xf32>
    %170 = vector.broadcast %169 : vector<1x1x8xf32> to vector<4x4x8xf32>
    %171 = arith.mulf %166, %170 : vector<4x4x8xf32>
    %172 = arith.addf %165, %171 : vector<4x4x8xf32>
    %173 = vector.extract_strided_slice %37 {offsets = [3, 4, 0], sizes = [4, 4, 8], strides = [1, 1, 1]} : vector<8x8x8xf32> to vector<4x4x8xf32>
    %174 = vector.extract_strided_slice %38 {offsets = [19, 0], sizes = [1, 8], strides = [1, 1]} : vector<25x8xf32> to vector<1x8xf32>
    %175 = vector.shape_cast %174 : vector<1x8xf32> to vector<8xf32>
    %176 = vector.shape_cast %175 : vector<8xf32> to vector<1x1x8xf32>
    %177 = vector.broadcast %176 : vector<1x1x8xf32> to vector<4x4x8xf32>
    %178 = arith.mulf %173, %177 : vector<4x4x8xf32>
    %179 = arith.addf %172, %178 : vector<4x4x8xf32>
    %180 = vector.extract_strided_slice %37 {offsets = [4, 0, 0], sizes = [4, 4, 8], strides = [1, 1, 1]} : vector<8x8x8xf32> to vector<4x4x8xf32>
    %181 = vector.extract_strided_slice %38 {offsets = [20, 0], sizes = [1, 8], strides = [1, 1]} : vector<25x8xf32> to vector<1x8xf32>
    %182 = vector.shape_cast %181 : vector<1x8xf32> to vector<8xf32>
    %183 = vector.shape_cast %182 : vector<8xf32> to vector<1x1x8xf32>
    %184 = vector.broadcast %183 : vector<1x1x8xf32> to vector<4x4x8xf32>
    %185 = arith.mulf %180, %184 : vector<4x4x8xf32>
    %186 = arith.addf %179, %185 : vector<4x4x8xf32>
    %187 = vector.extract_strided_slice %37 {offsets = [4, 1, 0], sizes = [4, 4, 8], strides = [1, 1, 1]} : vector<8x8x8xf32> to vector<4x4x8xf32>
    %188 = vector.extract_strided_slice %38 {offsets = [21, 0], sizes = [1, 8], strides = [1, 1]} : vector<25x8xf32> to vector<1x8xf32>
    %189 = vector.shape_cast %188 : vector<1x8xf32> to vector<8xf32>
    %190 = vector.shape_cast %189 : vector<8xf32> to vector<1x1x8xf32>
    %191 = vector.broadcast %190 : vector<1x1x8xf32> to vector<4x4x8xf32>
    %192 = arith.mulf %187, %191 : vector<4x4x8xf32>
    %193 = arith.addf %186, %192 : vector<4x4x8xf32>
    %194 = vector.extract_strided_slice %37 {offsets = [4, 2, 0], sizes = [4, 4, 8], strides = [1, 1, 1]} : vector<8x8x8xf32> to vector<4x4x8xf32>
    %195 = vector.extract_strided_slice %38 {offsets = [22, 0], sizes = [1, 8], strides = [1, 1]} : vector<25x8xf32> to vector<1x8xf32>
    %196 = vector.shape_cast %195 : vector<1x8xf32> to vector<8xf32>
    %197 = vector.shape_cast %196 : vector<8xf32> to vector<1x1x8xf32>
    %198 = vector.broadcast %197 : vector<1x1x8xf32> to vector<4x4x8xf32>
    %199 = arith.mulf %194, %198 : vector<4x4x8xf32>
    %200 = arith.addf %193, %199 : vector<4x4x8xf32>
    %201 = vector.extract_strided_slice %37 {offsets = [4, 3, 0], sizes = [4, 4, 8], strides = [1, 1, 1]} : vector<8x8x8xf32> to vector<4x4x8xf32>
    %202 = vector.extract_strided_slice %38 {offsets = [23, 0], sizes = [1, 8], strides = [1, 1]} : vector<25x8xf32> to vector<1x8xf32>
    %203 = vector.shape_cast %202 : vector<1x8xf32> to vector<8xf32>
    %204 = vector.shape_cast %203 : vector<8xf32> to vector<1x1x8xf32>
    %205 = vector.broadcast %204 : vector<1x1x8xf32> to vector<4x4x8xf32>
    %206 = arith.mulf %201, %205 : vector<4x4x8xf32>
    %207 = arith.addf %200, %206 : vector<4x4x8xf32>
    %208 = vector.extract_strided_slice %37 {offsets = [4, 4, 0], sizes = [4, 4, 8], strides = [1, 1, 1]} : vector<8x8x8xf32> to vector<4x4x8xf32>
    %209 = vector.extract_strided_slice %38 {offsets = [24, 0], sizes = [1, 8], strides = [1, 1]} : vector<25x8xf32> to vector<1x8xf32>
    %210 = vector.shape_cast %209 : vector<1x8xf32> to vector<8xf32>
    %211 = vector.shape_cast %210 : vector<8xf32> to vector<1x1x8xf32>
    %212 = vector.broadcast %211 : vector<1x1x8xf32> to vector<4x4x8xf32>
    %213 = arith.mulf %208, %212 : vector<4x4x8xf32>
    %214 = arith.addf %207, %213 : vector<4x4x8xf32>
    %c0_30 = arith.constant 0 : index
    %c0_31 = arith.constant 0 : index
    %215 = vector.load %arg6[%c0_30, %c0_31] : memref<1x8xf32, #tpu.memory_space<vmem>>, vector<1x8xf32>
    %216 = vector.shape_cast %215 : vector<1x8xf32> to vector<1x1x8xf32>
    %217 = vector.broadcast %216 : vector<1x1x8xf32> to vector<4x4x8xf32>
    %218 = arith.mulf %214, %217 : vector<4x4x8xf32>
    %c0_32 = arith.constant 0 : index
    %c0_33 = arith.constant 0 : index
    %219 = vector.load %arg7[%c0_32, %c0_33] : memref<1x8xf32, #tpu.memory_space<vmem>>, vector<1x8xf32>
    %220 = vector.shape_cast %219 : vector<1x8xf32> to vector<1x1x8xf32>
    %221 = vector.broadcast %220 : vector<1x1x8xf32> to vector<4x4x8xf32>
    %222 = arith.addf %218, %221 : vector<4x4x8xf32>
    %cst_34 = arith.constant 3.000000e+00 : f32
    %223 = vector.broadcast %cst_34 : f32 to vector<4x4x8xf32>
    %224 = arith.addf %222, %223 : vector<4x4x8xf32>
    %cst_35 = arith.constant 0.000000e+00 : f32
    %cst_36 = arith.constant 6.000000e+00 : f32
    %225 = vector.broadcast %cst_35 : f32 to vector<4x4x8xf32>
    %226 = arith.maximumf %225, %224 : vector<4x4x8xf32>
    %227 = vector.broadcast %cst_36 : f32 to vector<4x4x8xf32>
    %228 = arith.minimumf %227, %226 : vector<4x4x8xf32>
    %229 = arith.mulf %222, %228 : vector<4x4x8xf32>
    %cst_37 = arith.constant 0.166666672 : f32
    %230 = vector.broadcast %cst_37 : f32 to vector<4x4x8xf32>
    %231 = arith.mulf %229, %230 : vector<4x4x8xf32>
    %232 = vector.extract_strided_slice %231 {offsets = [0, 0, 0], sizes = [1, 4, 8], strides = [1, 1, 1]} : vector<4x4x8xf32> to vector<1x4x8xf32>
    %233 = vector.shape_cast %232 : vector<1x4x8xf32> to vector<4x8xf32>
    %c0_38 = arith.constant 0 : index
    %c0_39 = arith.constant 0 : index
    %234 = vector.load %arg13[%c0_38, %c0_39] : memref<16x8xf32, #tpu.memory_space<vmem>>, vector<4x8xf32>
    tpu.vector_store %arg13[%c0_38, %c0_39], %233 {strides = array<i32>} : memref<16x8xf32, #tpu.memory_space<vmem>>, vector<4x8xf32>,
    %235 = vector.extract_strided_slice %231 {offsets = [1, 0, 0], sizes = [1, 4, 8], strides = [1, 1, 1]} : vector<4x4x8xf32> to vector<1x4x8xf32>
    %236 = vector.shape_cast %235 : vector<1x4x8xf32> to vector<4x8xf32>
    %c4_40 = arith.constant 4 : index
    %c0_41 = arith.constant 0 : index
    %237 = vector.load %arg13[%c4_40, %c0_41] : memref<16x8xf32, #tpu.memory_space<vmem>>, vector<4x8xf32>
    tpu.vector_store %arg13[%c4_40, %c0_41], %236 {strides = array<i32>} : memref<16x8xf32, #tpu.memory_space<vmem>>, vector<4x8xf32>,
    %238 = vector.extract_strided_slice %231 {offsets = [2, 0, 0], sizes = [1, 4, 8], strides = [1, 1, 1]} : vector<4x4x8xf32> to vector<1x4x8xf32>
    %239 = vector.shape_cast %238 : vector<1x4x8xf32> to vector<4x8xf32>
    %c8 = arith.constant 8 : index
    %c0_42 = arith.constant 0 : index
    %240 = vector.load %arg13[%c8, %c0_42] : memref<16x8xf32, #tpu.memory_space<vmem>>, vector<4x8xf32>
    tpu.vector_store %arg13[%c8, %c0_42], %239 {strides = array<i32>} : memref<16x8xf32, #tpu.memory_space<vmem>>, vector<4x8xf32>,
    %241 = vector.extract_strided_slice %231 {offsets = [3, 0, 0], sizes = [1, 4, 8], strides = [1, 1, 1]} : vector<4x4x8xf32> to vector<1x4x8xf32>
    %242 = vector.shape_cast %241 : vector<1x4x8xf32> to vector<4x8xf32>
    %c12 = arith.constant 12 : index
    %c0_43 = arith.constant 0 : index
    %243 = vector.load %arg13[%c12, %c0_43] : memref<16x8xf32, #tpu.memory_space<vmem>>, vector<4x8xf32>
    tpu.vector_store %arg13[%c12, %c0_43], %242 {strides = array<i32>} : memref<16x8xf32, #tpu.memory_space<vmem>>, vector<4x8xf32>,
    %c0_44 = arith.constant 0 : index
    %c0_45 = arith.constant 0 : index
    %244 = vector.load %arg13[%c0_44, %c0_45] : memref<16x8xf32, #tpu.memory_space<vmem>>, vector<16x8xf32>
    %245 = arith.truncf %244 : vector<16x8xf32> to vector<16x8xbf16>
    %c0_46 = arith.constant 0 : index
    %c0_47 = arith.constant 0 : index
    %246 = vector.load %arg8[%c0_46, %c0_47] : memref<8x8xbf16, #tpu.memory_space<vmem>>, vector<8x8xbf16>
    %cst_48 = arith.constant dense<0.000000e+00> : vector<16x8xf32>
    %247 = tpu.matmul %245, %246, %cst_48 {dimension_numbers = #tpu.dot_dimension_numbers<[1], [0], [0], [1], [0, 0, 1, 1], [], []>} : vector<16x8xbf16>, vector<8x8xbf16>, vector<16x8xf32> -> vector<16x8xf32>
    %c0_49 = arith.constant 0 : index
    %c0_50 = arith.constant 0 : index
    %248 = vector.load %arg9[%c0_49, %c0_50] : memref<1x8xf32, #tpu.memory_space<vmem>>, vector<1x8xf32>
    %249 = vector.broadcast %248 : vector<1x8xf32> to vector<16x8xf32>
    %250 = arith.mulf %247, %249 : vector<16x8xf32>
    %c0_51 = arith.constant 0 : index
    %c0_52 = arith.constant 0 : index
    %251 = vector.load %arg10[%c0_51, %c0_52] : memref<1x8xf32, #tpu.memory_space<vmem>>, vector<1x8xf32>
    %252 = vector.broadcast %251 : vector<1x8xf32> to vector<16x8xf32>
    %253 = arith.addf %250, %252 : vector<16x8xf32>
    %cst_53 = arith.constant 3.000000e+00 : f32
    %254 = vector.broadcast %cst_53 : f32 to vector<16x8xf32>
    %255 = arith.addf %253, %254 : vector<16x8xf32>
    %cst_54 = arith.constant 0.000000e+00 : f32
    %cst_55 = arith.constant 6.000000e+00 : f32
    %256 = vector.broadcast %cst_54 : f32 to vector<16x8xf32>
    %257 = arith.maximumf %256, %255 : vector<16x8xf32>
    %258 = vector.broadcast %cst_55 : f32 to vector<16x8xf32>
    %259 = arith.minimumf %258, %257 : vector<16x8xf32>
    %260 = arith.mulf %253, %259 : vector<16x8xf32>
    %cst_56 = arith.constant 0.166666672 : f32
    %261 = vector.broadcast %cst_56 : f32 to vector<16x8xf32>
    %262 = arith.mulf %260, %261 : vector<16x8xf32>
    %c0_57 = arith.constant 0 : index
    %c0_58 = arith.constant 0 : index
    %c0_59 = arith.constant 0 : index
    %263 = vector.load %arg11[%c0_57, %c0_58, %c0_59] : memref<1x16x8xf32, #tpu.memory_space<vmem>>, vector<1x16x8xf32>
    %264 = vector.shape_cast %263 : vector<1x16x8xf32> to vector<16x8xf32>
    %265 = vector.shape_cast %262 : vector<16x8xf32> to vector<1x16x8xf32>
    tpu.vector_store %arg11[%c0_57, %c0_58, %c0_59], %265 {strides = array<i32>} : memref<1x16x8xf32, #tpu.memory_space<vmem>>, vector<1x16x8xf32>,
    return
  }
  func.func @transform_0(%arg0: i32) -> (i32, i32, i32) {
    %c0_i32 = arith.constant 0 : i32
    %c0_i32_0 = arith.constant 0 : i32
    %c0_i32_1 = arith.constant 0 : i32
    return %arg0, %c0_i32, %c0_i32_0 : i32, i32, i32
  }
  func.func @transform_1(%arg0: i32) -> (i32, i32) {
    %c0_i32 = arith.constant 0 : i32
    %c0_i32_0 = arith.constant 0 : i32
    %c0_i32_1 = arith.constant 0 : i32
    return %c0_i32, %c0_i32_0 : i32, i32
  }
  func.func @transform_2(%arg0: i32) -> (i32, i32) {
    %c0_i32 = arith.constant 0 : i32
    %c0_i32_0 = arith.constant 0 : i32
    %c0_i32_1 = arith.constant 0 : i32
    return %c0_i32, %c0_i32_0 : i32, i32
  }
  func.func @transform_3(%arg0: i32) -> (i32, i32) {
    %c0_i32 = arith.constant 0 : i32
    %c0_i32_0 = arith.constant 0 : i32
    %c0_i32_1 = arith.constant 0 : i32
    return %c0_i32, %c0_i32_0 : i32, i32
  }
  func.func @transform_4(%arg0: i32) -> (i32, i32) {
    %c0_i32 = arith.constant 0 : i32
    %c0_i32_0 = arith.constant 0 : i32
    %c0_i32_1 = arith.constant 0 : i32
    return %c0_i32, %c0_i32_0 : i32, i32
  }
  func.func @transform_5(%arg0: i32) -> (i32, i32) {
    %c0_i32 = arith.constant 0 : i32
    %c0_i32_0 = arith.constant 0 : i32
    %c0_i32_1 = arith.constant 0 : i32
    return %c0_i32, %c0_i32_0 : i32, i32
  }
  func.func @transform_6(%arg0: i32) -> (i32, i32) {
    %c0_i32 = arith.constant 0 : i32
    %c0_i32_0 = arith.constant 0 : i32
    %c0_i32_1 = arith.constant 0 : i32
    return %c0_i32, %c0_i32_0 : i32, i32
  }
  func.func @transform_7(%arg0: i32) -> (i32, i32) {
    %c0_i32 = arith.constant 0 : i32
    %c0_i32_0 = arith.constant 0 : i32
    %c0_i32_1 = arith.constant 0 : i32
    return %c0_i32, %c0_i32_0 : i32, i32
  }
  func.func @transform_8(%arg0: i32) -> (i32, i32) {
    %c0_i32 = arith.constant 0 : i32
    %c0_i32_0 = arith.constant 0 : i32
    %c0_i32_1 = arith.constant 0 : i32
    return %c0_i32, %c0_i32_0 : i32, i32
  }
  func.func @transform_9(%arg0: i32) -> (i32, i32) {
    %c0_i32 = arith.constant 0 : i32
    %c0_i32_0 = arith.constant 0 : i32
    %c0_i32_1 = arith.constant 0 : i32
    return %c0_i32, %c0_i32_0 : i32, i32
  }
  func.func @transform_10(%arg0: i32) -> (i32, i32, i32) {
    %c0_i32 = arith.constant 0 : i32
    %c0_i32_0 = arith.constant 0 : i32
    %c0_i32_1 = arith.constant 0 : i32
    return %arg0, %c0_i32, %c0_i32_0 : i32, i32, i32
  }
}

module attributes {stable_mosaic.version = 11 : i64} {
  func.func @_mm2_bn_hswish_kernel(%arg0: i32, %arg1: memref<32x8xbf16, #tpu.memory_space<vmem>>, %arg2: memref<32x8xbf16, #tpu.memory_space<vmem>>, %arg3: memref<8x16xbf16, #tpu.memory_space<vmem>>, %arg4: memref<8x16xbf16, #tpu.memory_space<vmem>>, %arg5: memref<1x16xf32, #tpu.memory_space<vmem>>, %arg6: memref<1x16xf32, #tpu.memory_space<vmem>>, %arg7: memref<32x16xf32, #tpu.memory_space<vmem>>) attributes {dimension_semantics = [#tpu.dimension_semantics<parallel>], iteration_bounds = array<i64: 1>, scalar_prefetch = 0 : i64, scratch_operands = 0 : i64, tpu.core_type = #tpu.core_type<tc>, window_params = [{transform_indices = @transform_0, window_bounds = array<i64: 32, 8>}, {transform_indices = @transform_1, window_bounds = array<i64: 32, 8>}, {pipeline_mode = #tpu.pipeline_mode<synchronous>, transform_indices = @transform_2, window_bounds = array<i64: 8, 16>}, {pipeline_mode = #tpu.pipeline_mode<synchronous>, transform_indices = @transform_3, window_bounds = array<i64: 8, 16>}, {pipeline_mode = #tpu.pipeline_mode<synchronous>, transform_indices = @transform_4, window_bounds = array<i64: 1, 16>}, {pipeline_mode = #tpu.pipeline_mode<synchronous>, transform_indices = @transform_5, window_bounds = array<i64: 1, 16>}, {transform_indices = @transform_6, window_bounds = array<i64: 32, 16>}]} {
    %c0 = arith.constant 0 : index
    %c0_0 = arith.constant 0 : index
    %0 = vector.load %arg1[%c0, %c0_0] : memref<32x8xbf16, #tpu.memory_space<vmem>>, vector<32x8xbf16>
    %c0_1 = arith.constant 0 : index
    %c0_2 = arith.constant 0 : index
    %1 = vector.load %arg3[%c0_1, %c0_2] : memref<8x16xbf16, #tpu.memory_space<vmem>>, vector<8x16xbf16>
    %cst = arith.constant dense<0.000000e+00> : vector<32x16xf32>
    %2 = tpu.matmul %0, %1, %cst {dimension_numbers = #tpu.dot_dimension_numbers<[1], [0], [0], [1], [0, 0, 1, 1], [], []>} : vector<32x8xbf16>, vector<8x16xbf16>, vector<32x16xf32> -> vector<32x16xf32>
    %c0_3 = arith.constant 0 : index
    %c0_4 = arith.constant 0 : index
    %3 = vector.load %arg2[%c0_3, %c0_4] : memref<32x8xbf16, #tpu.memory_space<vmem>>, vector<32x8xbf16>
    %c0_5 = arith.constant 0 : index
    %c0_6 = arith.constant 0 : index
    %4 = vector.load %arg4[%c0_5, %c0_6] : memref<8x16xbf16, #tpu.memory_space<vmem>>, vector<8x16xbf16>
    %cst_7 = arith.constant dense<0.000000e+00> : vector<32x16xf32>
    %5 = tpu.matmul %3, %4, %cst_7 {dimension_numbers = #tpu.dot_dimension_numbers<[1], [0], [0], [1], [0, 0, 1, 1], [], []>} : vector<32x8xbf16>, vector<8x16xbf16>, vector<32x16xf32> -> vector<32x16xf32>
    %6 = arith.addf %2, %5 : vector<32x16xf32>
    %c0_8 = arith.constant 0 : index
    %c0_9 = arith.constant 0 : index
    %7 = vector.load %arg5[%c0_8, %c0_9] : memref<1x16xf32, #tpu.memory_space<vmem>>, vector<1x16xf32>
    %8 = vector.broadcast %7 : vector<1x16xf32> to vector<32x16xf32>
    %9 = arith.mulf %6, %8 : vector<32x16xf32>
    %c0_10 = arith.constant 0 : index
    %c0_11 = arith.constant 0 : index
    %10 = vector.load %arg6[%c0_10, %c0_11] : memref<1x16xf32, #tpu.memory_space<vmem>>, vector<1x16xf32>
    %11 = vector.broadcast %10 : vector<1x16xf32> to vector<32x16xf32>
    %12 = arith.addf %9, %11 : vector<32x16xf32>
    %cst_12 = arith.constant 3.000000e+00 : f32
    %13 = vector.broadcast %cst_12 : f32 to vector<32x16xf32>
    %14 = arith.addf %12, %13 : vector<32x16xf32>
    %cst_13 = arith.constant 0.000000e+00 : f32
    %cst_14 = arith.constant 6.000000e+00 : f32
    %15 = vector.broadcast %cst_13 : f32 to vector<32x16xf32>
    %16 = arith.maximumf %15, %14 : vector<32x16xf32>
    %17 = vector.broadcast %cst_14 : f32 to vector<32x16xf32>
    %18 = arith.minimumf %17, %16 : vector<32x16xf32>
    %19 = arith.mulf %12, %18 : vector<32x16xf32>
    %cst_15 = arith.constant 0.166666672 : f32
    %20 = vector.broadcast %cst_15 : f32 to vector<32x16xf32>
    %21 = arith.mulf %19, %20 : vector<32x16xf32>
    %c0_16 = arith.constant 0 : index
    %c0_17 = arith.constant 0 : index
    %22 = vector.load %arg7[%c0_16, %c0_17] : memref<32x16xf32, #tpu.memory_space<vmem>>, vector<32x16xf32>
    tpu.vector_store %arg7[%c0_16, %c0_17], %21 {strides = array<i32>} : memref<32x16xf32, #tpu.memory_space<vmem>>, vector<32x16xf32>,
    return
  }
  func.func @transform_0(%arg0: i32) -> (i32, i32) {
    %c0_i32 = arith.constant 0 : i32
    %c0_i32_0 = arith.constant 0 : i32
    return %arg0, %c0_i32 : i32, i32
  }
  func.func @transform_1(%arg0: i32) -> (i32, i32) {
    %c0_i32 = arith.constant 0 : i32
    %c0_i32_0 = arith.constant 0 : i32
    return %arg0, %c0_i32 : i32, i32
  }
  func.func @transform_2(%arg0: i32) -> (i32, i32) {
    %c0_i32 = arith.constant 0 : i32
    %c0_i32_0 = arith.constant 0 : i32
    %c0_i32_1 = arith.constant 0 : i32
    return %c0_i32, %c0_i32_0 : i32, i32
  }
  func.func @transform_3(%arg0: i32) -> (i32, i32) {
    %c0_i32 = arith.constant 0 : i32
    %c0_i32_0 = arith.constant 0 : i32
    %c0_i32_1 = arith.constant 0 : i32
    return %c0_i32, %c0_i32_0 : i32, i32
  }
  func.func @transform_4(%arg0: i32) -> (i32, i32) {
    %c0_i32 = arith.constant 0 : i32
    %c0_i32_0 = arith.constant 0 : i32
    %c0_i32_1 = arith.constant 0 : i32
    return %c0_i32, %c0_i32_0 : i32, i32
  }
  func.func @transform_5(%arg0: i32) -> (i32, i32) {
    %c0_i32 = arith.constant 0 : i32
    %c0_i32_0 = arith.constant 0 : i32
    %c0_i32_1 = arith.constant 0 : i32
    return %c0_i32, %c0_i32_0 : i32, i32
  }
  func.func @transform_6(%arg0: i32) -> (i32, i32) {
    %c0_i32 = arith.constant 0 : i32
    %c0_i32_0 = arith.constant 0 : i32
    return %arg0, %c0_i32 : i32, i32
  }
}

module attributes {stable_mosaic.version = 11 : i64} {
  func.func @_mm_bn_hswish_kernel(%arg0: i32, %arg1: memref<32x16xbf16, #tpu.memory_space<vmem>>, %arg2: memref<16x8xbf16, #tpu.memory_space<vmem>>, %arg3: memref<1x8xf32, #tpu.memory_space<vmem>>, %arg4: memref<1x8xf32, #tpu.memory_space<vmem>>, %arg5: memref<32x8xf32, #tpu.memory_space<vmem>>) attributes {dimension_semantics = [#tpu.dimension_semantics<parallel>], iteration_bounds = array<i64: 1>, scalar_prefetch = 0 : i64, scratch_operands = 0 : i64, tpu.core_type = #tpu.core_type<tc>, window_params = [{transform_indices = @transform_0, window_bounds = array<i64: 32, 16>}, {pipeline_mode = #tpu.pipeline_mode<synchronous>, transform_indices = @transform_1, window_bounds = array<i64: 16, 8>}, {pipeline_mode = #tpu.pipeline_mode<synchronous>, transform_indices = @transform_2, window_bounds = array<i64: 1, 8>}, {pipeline_mode = #tpu.pipeline_mode<synchronous>, transform_indices = @transform_3, window_bounds = array<i64: 1, 8>}, {transform_indices = @transform_4, window_bounds = array<i64: 32, 8>}]} {
    %c0 = arith.constant 0 : index
    %c0_0 = arith.constant 0 : index
    %0 = vector.load %arg1[%c0, %c0_0] : memref<32x16xbf16, #tpu.memory_space<vmem>>, vector<32x16xbf16>
    %c0_1 = arith.constant 0 : index
    %c0_2 = arith.constant 0 : index
    %1 = vector.load %arg2[%c0_1, %c0_2] : memref<16x8xbf16, #tpu.memory_space<vmem>>, vector<16x8xbf16>
    %cst = arith.constant dense<0.000000e+00> : vector<32x8xf32>
    %2 = tpu.matmul %0, %1, %cst {dimension_numbers = #tpu.dot_dimension_numbers<[1], [0], [0], [1], [0, 0, 1, 1], [], []>} : vector<32x16xbf16>, vector<16x8xbf16>, vector<32x8xf32> -> vector<32x8xf32>
    %c0_3 = arith.constant 0 : index
    %c0_4 = arith.constant 0 : index
    %3 = vector.load %arg3[%c0_3, %c0_4] : memref<1x8xf32, #tpu.memory_space<vmem>>, vector<1x8xf32>
    %4 = vector.broadcast %3 : vector<1x8xf32> to vector<32x8xf32>
    %5 = arith.mulf %2, %4 : vector<32x8xf32>
    %c0_5 = arith.constant 0 : index
    %c0_6 = arith.constant 0 : index
    %6 = vector.load %arg4[%c0_5, %c0_6] : memref<1x8xf32, #tpu.memory_space<vmem>>, vector<1x8xf32>
    %7 = vector.broadcast %6 : vector<1x8xf32> to vector<32x8xf32>
    %8 = arith.addf %5, %7 : vector<32x8xf32>
    %cst_7 = arith.constant 3.000000e+00 : f32
    %9 = vector.broadcast %cst_7 : f32 to vector<32x8xf32>
    %10 = arith.addf %8, %9 : vector<32x8xf32>
    %cst_8 = arith.constant 0.000000e+00 : f32
    %cst_9 = arith.constant 6.000000e+00 : f32
    %11 = vector.broadcast %cst_8 : f32 to vector<32x8xf32>
    %12 = arith.maximumf %11, %10 : vector<32x8xf32>
    %13 = vector.broadcast %cst_9 : f32 to vector<32x8xf32>
    %14 = arith.minimumf %13, %12 : vector<32x8xf32>
    %15 = arith.mulf %8, %14 : vector<32x8xf32>
    %cst_10 = arith.constant 0.166666672 : f32
    %16 = vector.broadcast %cst_10 : f32 to vector<32x8xf32>
    %17 = arith.mulf %15, %16 : vector<32x8xf32>
    %c0_11 = arith.constant 0 : index
    %c0_12 = arith.constant 0 : index
    %18 = vector.load %arg5[%c0_11, %c0_12] : memref<32x8xf32, #tpu.memory_space<vmem>>, vector<32x8xf32>
    tpu.vector_store %arg5[%c0_11, %c0_12], %17 {strides = array<i32>} : memref<32x8xf32, #tpu.memory_space<vmem>>, vector<32x8xf32>,
    return
  }
  func.func @transform_0(%arg0: i32) -> (i32, i32) {
    %c0_i32 = arith.constant 0 : i32
    %c0_i32_0 = arith.constant 0 : i32
    return %arg0, %c0_i32 : i32, i32
  }
  func.func @transform_1(%arg0: i32) -> (i32, i32) {
    %c0_i32 = arith.constant 0 : i32
    %c0_i32_0 = arith.constant 0 : i32
    %c0_i32_1 = arith.constant 0 : i32
    return %c0_i32, %c0_i32_0 : i32, i32
  }
  func.func @transform_2(%arg0: i32) -> (i32, i32) {
    %c0_i32 = arith.constant 0 : i32
    %c0_i32_0 = arith.constant 0 : i32
    %c0_i32_1 = arith.constant 0 : i32
    return %c0_i32, %c0_i32_0 : i32, i32
  }
  func.func @transform_3(%arg0: i32) -> (i32, i32) {
    %c0_i32 = arith.constant 0 : i32
    %c0_i32_0 = arith.constant 0 : i32
    %c0_i32_1 = arith.constant 0 : i32
    return %c0_i32, %c0_i32_0 : i32, i32
  }
  func.func @transform_4(%arg0: i32) -> (i32, i32) {
    %c0_i32 = arith.constant 0 : i32
    %c0_i32_0 = arith.constant 0 : i32
    return %arg0, %c0_i32 : i32, i32
  }
}

module attributes {stable_mosaic.version = 11 : i64} {
  func.func @_mm2_bn_hswish_kernel(%arg0: i32, %arg1: memref<128x8xbf16, #tpu.memory_space<vmem>>, %arg2: memref<128x8xbf16, #tpu.memory_space<vmem>>, %arg3: memref<8x8xbf16, #tpu.memory_space<vmem>>, %arg4: memref<8x8xbf16, #tpu.memory_space<vmem>>, %arg5: memref<1x8xf32, #tpu.memory_space<vmem>>, %arg6: memref<1x8xf32, #tpu.memory_space<vmem>>, %arg7: memref<128x8xf32, #tpu.memory_space<vmem>>) attributes {dimension_semantics = [#tpu.dimension_semantics<parallel>], iteration_bounds = array<i64: 1>, scalar_prefetch = 0 : i64, scratch_operands = 0 : i64, tpu.core_type = #tpu.core_type<tc>, window_params = [{transform_indices = @transform_0, window_bounds = array<i64: 128, 8>}, {transform_indices = @transform_1, window_bounds = array<i64: 128, 8>}, {pipeline_mode = #tpu.pipeline_mode<synchronous>, transform_indices = @transform_2, window_bounds = array<i64: 8, 8>}, {pipeline_mode = #tpu.pipeline_mode<synchronous>, transform_indices = @transform_3, window_bounds = array<i64: 8, 8>}, {pipeline_mode = #tpu.pipeline_mode<synchronous>, transform_indices = @transform_4, window_bounds = array<i64: 1, 8>}, {pipeline_mode = #tpu.pipeline_mode<synchronous>, transform_indices = @transform_5, window_bounds = array<i64: 1, 8>}, {transform_indices = @transform_6, window_bounds = array<i64: 128, 8>}]} {
    %c0 = arith.constant 0 : index
    %c0_0 = arith.constant 0 : index
    %0 = vector.load %arg1[%c0, %c0_0] : memref<128x8xbf16, #tpu.memory_space<vmem>>, vector<128x8xbf16>
    %c0_1 = arith.constant 0 : index
    %c0_2 = arith.constant 0 : index
    %1 = vector.load %arg3[%c0_1, %c0_2] : memref<8x8xbf16, #tpu.memory_space<vmem>>, vector<8x8xbf16>
    %cst = arith.constant dense<0.000000e+00> : vector<128x8xf32>
    %2 = tpu.matmul %0, %1, %cst {dimension_numbers = #tpu.dot_dimension_numbers<[1], [0], [0], [1], [0, 0, 1, 1], [], []>} : vector<128x8xbf16>, vector<8x8xbf16>, vector<128x8xf32> -> vector<128x8xf32>
    %c0_3 = arith.constant 0 : index
    %c0_4 = arith.constant 0 : index
    %3 = vector.load %arg2[%c0_3, %c0_4] : memref<128x8xbf16, #tpu.memory_space<vmem>>, vector<128x8xbf16>
    %c0_5 = arith.constant 0 : index
    %c0_6 = arith.constant 0 : index
    %4 = vector.load %arg4[%c0_5, %c0_6] : memref<8x8xbf16, #tpu.memory_space<vmem>>, vector<8x8xbf16>
    %cst_7 = arith.constant dense<0.000000e+00> : vector<128x8xf32>
    %5 = tpu.matmul %3, %4, %cst_7 {dimension_numbers = #tpu.dot_dimension_numbers<[1], [0], [0], [1], [0, 0, 1, 1], [], []>} : vector<128x8xbf16>, vector<8x8xbf16>, vector<128x8xf32> -> vector<128x8xf32>
    %6 = arith.addf %2, %5 : vector<128x8xf32>
    %c0_8 = arith.constant 0 : index
    %c0_9 = arith.constant 0 : index
    %7 = vector.load %arg5[%c0_8, %c0_9] : memref<1x8xf32, #tpu.memory_space<vmem>>, vector<1x8xf32>
    %8 = vector.broadcast %7 : vector<1x8xf32> to vector<128x8xf32>
    %9 = arith.mulf %6, %8 : vector<128x8xf32>
    %c0_10 = arith.constant 0 : index
    %c0_11 = arith.constant 0 : index
    %10 = vector.load %arg6[%c0_10, %c0_11] : memref<1x8xf32, #tpu.memory_space<vmem>>, vector<1x8xf32>
    %11 = vector.broadcast %10 : vector<1x8xf32> to vector<128x8xf32>
    %12 = arith.addf %9, %11 : vector<128x8xf32>
    %cst_12 = arith.constant 3.000000e+00 : f32
    %13 = vector.broadcast %cst_12 : f32 to vector<128x8xf32>
    %14 = arith.addf %12, %13 : vector<128x8xf32>
    %cst_13 = arith.constant 0.000000e+00 : f32
    %cst_14 = arith.constant 6.000000e+00 : f32
    %15 = vector.broadcast %cst_13 : f32 to vector<128x8xf32>
    %16 = arith.maximumf %15, %14 : vector<128x8xf32>
    %17 = vector.broadcast %cst_14 : f32 to vector<128x8xf32>
    %18 = arith.minimumf %17, %16 : vector<128x8xf32>
    %19 = arith.mulf %12, %18 : vector<128x8xf32>
    %cst_15 = arith.constant 0.166666672 : f32
    %20 = vector.broadcast %cst_15 : f32 to vector<128x8xf32>
    %21 = arith.mulf %19, %20 : vector<128x8xf32>
    %c0_16 = arith.constant 0 : index
    %c0_17 = arith.constant 0 : index
    %22 = vector.load %arg7[%c0_16, %c0_17] : memref<128x8xf32, #tpu.memory_space<vmem>>, vector<128x8xf32>
    tpu.vector_store %arg7[%c0_16, %c0_17], %21 {strides = array<i32>} : memref<128x8xf32, #tpu.memory_space<vmem>>, vector<128x8xf32>,
    return
  }
  func.func @transform_0(%arg0: i32) -> (i32, i32) {
    %c0_i32 = arith.constant 0 : i32
    %c0_i32_0 = arith.constant 0 : i32
    return %arg0, %c0_i32 : i32, i32
  }
  func.func @transform_1(%arg0: i32) -> (i32, i32) {
    %c0_i32 = arith.constant 0 : i32
    %c0_i32_0 = arith.constant 0 : i32
    return %arg0, %c0_i32 : i32, i32
  }
  func.func @transform_2(%arg0: i32) -> (i32, i32) {
    %c0_i32 = arith.constant 0 : i32
    %c0_i32_0 = arith.constant 0 : i32
    %c0_i32_1 = arith.constant 0 : i32
    return %c0_i32, %c0_i32_0 : i32, i32
  }
  func.func @transform_3(%arg0: i32) -> (i32, i32) {
    %c0_i32 = arith.constant 0 : i32
    %c0_i32_0 = arith.constant 0 : i32
    %c0_i32_1 = arith.constant 0 : i32
    return %c0_i32, %c0_i32_0 : i32, i32
  }
  func.func @transform_4(%arg0: i32) -> (i32, i32) {
    %c0_i32 = arith.constant 0 : i32
    %c0_i32_0 = arith.constant 0 : i32
    %c0_i32_1 = arith.constant 0 : i32
    return %c0_i32, %c0_i32_0 : i32, i32
  }
  func.func @transform_5(%arg0: i32) -> (i32, i32) {
    %c0_i32 = arith.constant 0 : i32
    %c0_i32_0 = arith.constant 0 : i32
    %c0_i32_1 = arith.constant 0 : i32
    return %c0_i32, %c0_i32_0 : i32, i32
  }
  func.func @transform_6(%arg0: i32) -> (i32, i32) {
    %c0_i32 = arith.constant 0 : i32
    %c0_i32_0 = arith.constant 0 : i32
    return %arg0, %c0_i32 : i32, i32
  }
}

module attributes {stable_mosaic.version = 11 : i64} {
  func.func @_bottleneck_kernel(%arg0: i32, %arg1: memref<1x64x4xbf16, #tpu.memory_space<vmem>>, %arg2: memref<4x4xbf16, #tpu.memory_space<vmem>>, %arg3: memref<1x4xf32, #tpu.memory_space<vmem>>, %arg4: memref<1x4xf32, #tpu.memory_space<vmem>>, %arg5: memref<25x4xf32, #tpu.memory_space<vmem>>, %arg6: memref<1x4xf32, #tpu.memory_space<vmem>>, %arg7: memref<1x4xf32, #tpu.memory_space<vmem>>, %arg8: memref<4x4xbf16, #tpu.memory_space<vmem>>, %arg9: memref<1x4xf32, #tpu.memory_space<vmem>>, %arg10: memref<1x4xf32, #tpu.memory_space<vmem>>, %arg11: memref<1x64x4xf32, #tpu.memory_space<vmem>>, %arg12: memref<12x12x4xf32, #tpu.memory_space<vmem>>, %arg13: memref<64x4xf32, #tpu.memory_space<vmem>>) attributes {dimension_semantics = [#tpu.dimension_semantics<parallel>], iteration_bounds = array<i64: 2>, scalar_prefetch = 0 : i64, scratch_operands = 2 : i64, tpu.core_type = #tpu.core_type<tc>, window_params = [{transform_indices = @transform_0, window_bounds = array<i64: 1, 64, 4>}, {pipeline_mode = #tpu.pipeline_mode<synchronous>, transform_indices = @transform_1, window_bounds = array<i64: 4, 4>}, {pipeline_mode = #tpu.pipeline_mode<synchronous>, transform_indices = @transform_2, window_bounds = array<i64: 1, 4>}, {pipeline_mode = #tpu.pipeline_mode<synchronous>, transform_indices = @transform_3, window_bounds = array<i64: 1, 4>}, {pipeline_mode = #tpu.pipeline_mode<synchronous>, transform_indices = @transform_4, window_bounds = array<i64: 25, 4>}, {pipeline_mode = #tpu.pipeline_mode<synchronous>, transform_indices = @transform_5, window_bounds = array<i64: 1, 4>}, {pipeline_mode = #tpu.pipeline_mode<synchronous>, transform_indices = @transform_6, window_bounds = array<i64: 1, 4>}, {pipeline_mode = #tpu.pipeline_mode<synchronous>, transform_indices = @transform_7, window_bounds = array<i64: 4, 4>}, {pipeline_mode = #tpu.pipeline_mode<synchronous>, transform_indices = @transform_8, window_bounds = array<i64: 1, 4>}, {pipeline_mode = #tpu.pipeline_mode<synchronous>, transform_indices = @transform_9, window_bounds = array<i64: 1, 4>}, {transform_indices = @transform_10, window_bounds = array<i64: 1, 64, 4>}]} {
    %c0 = arith.constant 0 : index
    %c0_0 = arith.constant 0 : index
    %c0_1 = arith.constant 0 : index
    %0 = vector.load %arg1[%c0, %c0_0, %c0_1] : memref<1x64x4xbf16, #tpu.memory_space<vmem>>, vector<1x64x4xbf16>
    %1 = vector.shape_cast %0 : vector<1x64x4xbf16> to vector<64x4xbf16>
    %c0_2 = arith.constant 0 : index
    %c0_3 = arith.constant 0 : index
    %2 = vector.load %arg2[%c0_2, %c0_3] : memref<4x4xbf16, #tpu.memory_space<vmem>>, vector<4x4xbf16>
    %cst = arith.constant dense<0.000000e+00> : vector<64x4xf32>
    %3 = tpu.matmul %1, %2, %cst {dimension_numbers = #tpu.dot_dimension_numbers<[1], [0], [0], [1], [0, 0, 1, 1], [], []>} : vector<64x4xbf16>, vector<4x4xbf16>, vector<64x4xf32> -> vector<64x4xf32>
    %c0_4 = arith.constant 0 : index
    %c0_5 = arith.constant 0 : index
    %4 = vector.load %arg3[%c0_4, %c0_5] : memref<1x4xf32, #tpu.memory_space<vmem>>, vector<1x4xf32>
    %5 = vector.broadcast %4 : vector<1x4xf32> to vector<64x4xf32>
    %6 = arith.mulf %3, %5 : vector<64x4xf32>
    %c0_6 = arith.constant 0 : index
    %c0_7 = arith.constant 0 : index
    %7 = vector.load %arg4[%c0_6, %c0_7] : memref<1x4xf32, #tpu.memory_space<vmem>>, vector<1x4xf32>
    %8 = vector.broadcast %7 : vector<1x4xf32> to vector<64x4xf32>
    %9 = arith.addf %6, %8 : vector<64x4xf32>
    %cst_8 = arith.constant 3.000000e+00 : f32
    %10 = vector.broadcast %cst_8 : f32 to vector<64x4xf32>
    %11 = arith.addf %9, %10 : vector<64x4xf32>
    %cst_9 = arith.constant 0.000000e+00 : f32
    %cst_10 = arith.constant 6.000000e+00 : f32
    %12 = vector.broadcast %cst_9 : f32 to vector<64x4xf32>
    %13 = arith.maximumf %12, %11 : vector<64x4xf32>
    %14 = vector.broadcast %cst_10 : f32 to vector<64x4xf32>
    %15 = arith.minimumf %14, %13 : vector<64x4xf32>
    %16 = arith.mulf %9, %15 : vector<64x4xf32>
    %cst_11 = arith.constant 0.166666672 : f32
    %17 = vector.broadcast %cst_11 : f32 to vector<64x4xf32>
    %18 = arith.mulf %16, %17 : vector<64x4xf32>
    %cst_12 = arith.constant 0.000000e+00 : f32
    %19 = vector.broadcast %cst_12 : f32 to vector<12x12x4xf32>
    %c0_13 = arith.constant 0 : index
    %c0_14 = arith.constant 0 : index
    %c0_15 = arith.constant 0 : index
    %20 = vector.load %arg12[%c0_13, %c0_14, %c0_15] : memref<12x12x4xf32, #tpu.memory_space<vmem>>, vector<12x12x4xf32>
    tpu.vector_store %arg12[%c0_13, %c0_14, %c0_15], %19 {strides = array<i32>} : memref<12x12x4xf32, #tpu.memory_space<vmem>>, vector<12x12x4xf32>,
    %21 = vector.extract_strided_slice %18 {offsets = [0, 0], sizes = [8, 4], strides = [1, 1]} : vector<64x4xf32> to vector<8x4xf32>
    %c2 = arith.constant 2 : index
    %c2_16 = arith.constant 2 : index
    %c0_17 = arith.constant 0 : index
    %22 = vector.load %arg12[%c2, %c2_16, %c0_17] : memref<12x12x4xf32, #tpu.memory_space<vmem>>, vector<1x8x4xf32>
    %23 = vector.shape_cast %22 : vector<1x8x4xf32> to vector<8x4xf32>
    %24 = vector.shape_cast %21 : vector<8x4xf32> to vector<1x8x4xf32>
    tpu.vector_store %arg12[%c2, %c2_16, %c0_17], %24 {strides = array<i32>} : memref<12x12x4xf32, #tpu.memory_space<vmem>>, vector<1x8x4xf32>,
    %25 = vector.extract_strided_slice %18 {offsets = [8, 0], sizes = [8, 4], strides = [1, 1]} : vector<64x4xf32> to vector<8x4xf32>
    %c3 = arith.constant 3 : index
    %c2_18 = arith.constant 2 : index
    %c0_19 = arith.constant 0 : index
    %26 = vector.load %arg12[%c3, %c2_18, %c0_19] : memref<12x12x4xf32, #tpu.memory_space<vmem>>, vector<1x8x4xf32>
    %27 = vector.shape_cast %26 : vector<1x8x4xf32> to vector<8x4xf32>
    %28 = vector.shape_cast %25 : vector<8x4xf32> to vector<1x8x4xf32>
    tpu.vector_store %arg12[%c3, %c2_18, %c0_19], %28 {strides = array<i32>} : memref<12x12x4xf32, #tpu.memory_space<vmem>>, vector<1x8x4xf32>,
    %29 = vector.extract_strided_slice %18 {offsets = [16, 0], sizes = [8, 4], strides = [1, 1]} : vector<64x4xf32> to vector<8x4xf32>
    %c4 = arith.constant 4 : index
    %c2_20 = arith.constant 2 : index
    %c0_21 = arith.constant 0 : index
    %30 = vector.load %arg12[%c4, %c2_20, %c0_21] : memref<12x12x4xf32, #tpu.memory_space<vmem>>, vector<1x8x4xf32>
    %31 = vector.shape_cast %30 : vector<1x8x4xf32> to vector<8x4xf32>
    %32 = vector.shape_cast %29 : vector<8x4xf32> to vector<1x8x4xf32>
    tpu.vector_store %arg12[%c4, %c2_20, %c0_21], %32 {strides = array<i32>} : memref<12x12x4xf32, #tpu.memory_space<vmem>>, vector<1x8x4xf32>,
    %33 = vector.extract_strided_slice %18 {offsets = [24, 0], sizes = [8, 4], strides = [1, 1]} : vector<64x4xf32> to vector<8x4xf32>
    %c5 = arith.constant 5 : index
    %c2_22 = arith.constant 2 : index
    %c0_23 = arith.constant 0 : index
    %34 = vector.load %arg12[%c5, %c2_22, %c0_23] : memref<12x12x4xf32, #tpu.memory_space<vmem>>, vector<1x8x4xf32>
    %35 = vector.shape_cast %34 : vector<1x8x4xf32> to vector<8x4xf32>
    %36 = vector.shape_cast %33 : vector<8x4xf32> to vector<1x8x4xf32>
    tpu.vector_store %arg12[%c5, %c2_22, %c0_23], %36 {strides = array<i32>} : memref<12x12x4xf32, #tpu.memory_space<vmem>>, vector<1x8x4xf32>,
    %37 = vector.extract_strided_slice %18 {offsets = [32, 0], sizes = [8, 4], strides = [1, 1]} : vector<64x4xf32> to vector<8x4xf32>
    %c6 = arith.constant 6 : index
    %c2_24 = arith.constant 2 : index
    %c0_25 = arith.constant 0 : index
    %38 = vector.load %arg12[%c6, %c2_24, %c0_25] : memref<12x12x4xf32, #tpu.memory_space<vmem>>, vector<1x8x4xf32>
    %39 = vector.shape_cast %38 : vector<1x8x4xf32> to vector<8x4xf32>
    %40 = vector.shape_cast %37 : vector<8x4xf32> to vector<1x8x4xf32>
    tpu.vector_store %arg12[%c6, %c2_24, %c0_25], %40 {strides = array<i32>} : memref<12x12x4xf32, #tpu.memory_space<vmem>>, vector<1x8x4xf32>,
    %41 = vector.extract_strided_slice %18 {offsets = [40, 0], sizes = [8, 4], strides = [1, 1]} : vector<64x4xf32> to vector<8x4xf32>
    %c7 = arith.constant 7 : index
    %c2_26 = arith.constant 2 : index
    %c0_27 = arith.constant 0 : index
    %42 = vector.load %arg12[%c7, %c2_26, %c0_27] : memref<12x12x4xf32, #tpu.memory_space<vmem>>, vector<1x8x4xf32>
    %43 = vector.shape_cast %42 : vector<1x8x4xf32> to vector<8x4xf32>
    %44 = vector.shape_cast %41 : vector<8x4xf32> to vector<1x8x4xf32>
    tpu.vector_store %arg12[%c7, %c2_26, %c0_27], %44 {strides = array<i32>} : memref<12x12x4xf32, #tpu.memory_space<vmem>>, vector<1x8x4xf32>,
    %45 = vector.extract_strided_slice %18 {offsets = [48, 0], sizes = [8, 4], strides = [1, 1]} : vector<64x4xf32> to vector<8x4xf32>
    %c8 = arith.constant 8 : index
    %c2_28 = arith.constant 2 : index
    %c0_29 = arith.constant 0 : index
    %46 = vector.load %arg12[%c8, %c2_28, %c0_29] : memref<12x12x4xf32, #tpu.memory_space<vmem>>, vector<1x8x4xf32>
    %47 = vector.shape_cast %46 : vector<1x8x4xf32> to vector<8x4xf32>
    %48 = vector.shape_cast %45 : vector<8x4xf32> to vector<1x8x4xf32>
    tpu.vector_store %arg12[%c8, %c2_28, %c0_29], %48 {strides = array<i32>} : memref<12x12x4xf32, #tpu.memory_space<vmem>>, vector<1x8x4xf32>,
    %49 = vector.extract_strided_slice %18 {offsets = [56, 0], sizes = [8, 4], strides = [1, 1]} : vector<64x4xf32> to vector<8x4xf32>
    %c9 = arith.constant 9 : index
    %c2_30 = arith.constant 2 : index
    %c0_31 = arith.constant 0 : index
    %50 = vector.load %arg12[%c9, %c2_30, %c0_31] : memref<12x12x4xf32, #tpu.memory_space<vmem>>, vector<1x8x4xf32>
    %51 = vector.shape_cast %50 : vector<1x8x4xf32> to vector<8x4xf32>
    %52 = vector.shape_cast %49 : vector<8x4xf32> to vector<1x8x4xf32>
    tpu.vector_store %arg12[%c9, %c2_30, %c0_31], %52 {strides = array<i32>} : memref<12x12x4xf32, #tpu.memory_space<vmem>>, vector<1x8x4xf32>,
    %c0_32 = arith.constant 0 : index
    %c0_33 = arith.constant 0 : index
    %c0_34 = arith.constant 0 : index
    %53 = vector.load %arg12[%c0_32, %c0_33, %c0_34] : memref<12x12x4xf32, #tpu.memory_space<vmem>>, vector<12x12x4xf32>
    %c0_35 = arith.constant 0 : index
    %c0_36 = arith.constant 0 : index
    %54 = vector.load %arg5[%c0_35, %c0_36] : memref<25x4xf32, #tpu.memory_space<vmem>>, vector<25x4xf32>
    %cst_37 = arith.constant 0.000000e+00 : f32
    %55 = vector.broadcast %cst_37 : f32 to vector<8x8x4xf32>
    %56 = vector.extract_strided_slice %53 {offsets = [0, 0, 0], sizes = [8, 8, 4], strides = [1, 1, 1]} : vector<12x12x4xf32> to vector<8x8x4xf32>
    %57 = vector.extract_strided_slice %54 {offsets = [0, 0], sizes = [1, 4], strides = [1, 1]} : vector<25x4xf32> to vector<1x4xf32>
    %58 = vector.shape_cast %57 : vector<1x4xf32> to vector<4xf32>
    %59 = vector.shape_cast %58 : vector<4xf32> to vector<1x1x4xf32>
    %60 = vector.broadcast %59 : vector<1x1x4xf32> to vector<8x8x4xf32>
    %61 = arith.mulf %56, %60 : vector<8x8x4xf32>
    %62 = arith.addf %55, %61 : vector<8x8x4xf32>
    %63 = vector.extract_strided_slice %53 {offsets = [0, 1, 0], sizes = [8, 8, 4], strides = [1, 1, 1]} : vector<12x12x4xf32> to vector<8x8x4xf32>
    %64 = vector.extract_strided_slice %54 {offsets = [1, 0], sizes = [1, 4], strides = [1, 1]} : vector<25x4xf32> to vector<1x4xf32>
    %65 = vector.shape_cast %64 : vector<1x4xf32> to vector<4xf32>
    %66 = vector.shape_cast %65 : vector<4xf32> to vector<1x1x4xf32>
    %67 = vector.broadcast %66 : vector<1x1x4xf32> to vector<8x8x4xf32>
    %68 = arith.mulf %63, %67 : vector<8x8x4xf32>
    %69 = arith.addf %62, %68 : vector<8x8x4xf32>
    %70 = vector.extract_strided_slice %53 {offsets = [0, 2, 0], sizes = [8, 8, 4], strides = [1, 1, 1]} : vector<12x12x4xf32> to vector<8x8x4xf32>
    %71 = vector.extract_strided_slice %54 {offsets = [2, 0], sizes = [1, 4], strides = [1, 1]} : vector<25x4xf32> to vector<1x4xf32>
    %72 = vector.shape_cast %71 : vector<1x4xf32> to vector<4xf32>
    %73 = vector.shape_cast %72 : vector<4xf32> to vector<1x1x4xf32>
    %74 = vector.broadcast %73 : vector<1x1x4xf32> to vector<8x8x4xf32>
    %75 = arith.mulf %70, %74 : vector<8x8x4xf32>
    %76 = arith.addf %69, %75 : vector<8x8x4xf32>
    %77 = vector.extract_strided_slice %53 {offsets = [0, 3, 0], sizes = [8, 8, 4], strides = [1, 1, 1]} : vector<12x12x4xf32> to vector<8x8x4xf32>
    %78 = vector.extract_strided_slice %54 {offsets = [3, 0], sizes = [1, 4], strides = [1, 1]} : vector<25x4xf32> to vector<1x4xf32>
    %79 = vector.shape_cast %78 : vector<1x4xf32> to vector<4xf32>
    %80 = vector.shape_cast %79 : vector<4xf32> to vector<1x1x4xf32>
    %81 = vector.broadcast %80 : vector<1x1x4xf32> to vector<8x8x4xf32>
    %82 = arith.mulf %77, %81 : vector<8x8x4xf32>
    %83 = arith.addf %76, %82 : vector<8x8x4xf32>
    %84 = vector.extract_strided_slice %53 {offsets = [0, 4, 0], sizes = [8, 8, 4], strides = [1, 1, 1]} : vector<12x12x4xf32> to vector<8x8x4xf32>
    %85 = vector.extract_strided_slice %54 {offsets = [4, 0], sizes = [1, 4], strides = [1, 1]} : vector<25x4xf32> to vector<1x4xf32>
    %86 = vector.shape_cast %85 : vector<1x4xf32> to vector<4xf32>
    %87 = vector.shape_cast %86 : vector<4xf32> to vector<1x1x4xf32>
    %88 = vector.broadcast %87 : vector<1x1x4xf32> to vector<8x8x4xf32>
    %89 = arith.mulf %84, %88 : vector<8x8x4xf32>
    %90 = arith.addf %83, %89 : vector<8x8x4xf32>
    %91 = vector.extract_strided_slice %53 {offsets = [1, 0, 0], sizes = [8, 8, 4], strides = [1, 1, 1]} : vector<12x12x4xf32> to vector<8x8x4xf32>
    %92 = vector.extract_strided_slice %54 {offsets = [5, 0], sizes = [1, 4], strides = [1, 1]} : vector<25x4xf32> to vector<1x4xf32>
    %93 = vector.shape_cast %92 : vector<1x4xf32> to vector<4xf32>
    %94 = vector.shape_cast %93 : vector<4xf32> to vector<1x1x4xf32>
    %95 = vector.broadcast %94 : vector<1x1x4xf32> to vector<8x8x4xf32>
    %96 = arith.mulf %91, %95 : vector<8x8x4xf32>
    %97 = arith.addf %90, %96 : vector<8x8x4xf32>
    %98 = vector.extract_strided_slice %53 {offsets = [1, 1, 0], sizes = [8, 8, 4], strides = [1, 1, 1]} : vector<12x12x4xf32> to vector<8x8x4xf32>
    %99 = vector.extract_strided_slice %54 {offsets = [6, 0], sizes = [1, 4], strides = [1, 1]} : vector<25x4xf32> to vector<1x4xf32>
    %100 = vector.shape_cast %99 : vector<1x4xf32> to vector<4xf32>
    %101 = vector.shape_cast %100 : vector<4xf32> to vector<1x1x4xf32>
    %102 = vector.broadcast %101 : vector<1x1x4xf32> to vector<8x8x4xf32>
    %103 = arith.mulf %98, %102 : vector<8x8x4xf32>
    %104 = arith.addf %97, %103 : vector<8x8x4xf32>
    %105 = vector.extract_strided_slice %53 {offsets = [1, 2, 0], sizes = [8, 8, 4], strides = [1, 1, 1]} : vector<12x12x4xf32> to vector<8x8x4xf32>
    %106 = vector.extract_strided_slice %54 {offsets = [7, 0], sizes = [1, 4], strides = [1, 1]} : vector<25x4xf32> to vector<1x4xf32>
    %107 = vector.shape_cast %106 : vector<1x4xf32> to vector<4xf32>
    %108 = vector.shape_cast %107 : vector<4xf32> to vector<1x1x4xf32>
    %109 = vector.broadcast %108 : vector<1x1x4xf32> to vector<8x8x4xf32>
    %110 = arith.mulf %105, %109 : vector<8x8x4xf32>
    %111 = arith.addf %104, %110 : vector<8x8x4xf32>
    %112 = vector.extract_strided_slice %53 {offsets = [1, 3, 0], sizes = [8, 8, 4], strides = [1, 1, 1]} : vector<12x12x4xf32> to vector<8x8x4xf32>
    %113 = vector.extract_strided_slice %54 {offsets = [8, 0], sizes = [1, 4], strides = [1, 1]} : vector<25x4xf32> to vector<1x4xf32>
    %114 = vector.shape_cast %113 : vector<1x4xf32> to vector<4xf32>
    %115 = vector.shape_cast %114 : vector<4xf32> to vector<1x1x4xf32>
    %116 = vector.broadcast %115 : vector<1x1x4xf32> to vector<8x8x4xf32>
    %117 = arith.mulf %112, %116 : vector<8x8x4xf32>
    %118 = arith.addf %111, %117 : vector<8x8x4xf32>
    %119 = vector.extract_strided_slice %53 {offsets = [1, 4, 0], sizes = [8, 8, 4], strides = [1, 1, 1]} : vector<12x12x4xf32> to vector<8x8x4xf32>
    %120 = vector.extract_strided_slice %54 {offsets = [9, 0], sizes = [1, 4], strides = [1, 1]} : vector<25x4xf32> to vector<1x4xf32>
    %121 = vector.shape_cast %120 : vector<1x4xf32> to vector<4xf32>
    %122 = vector.shape_cast %121 : vector<4xf32> to vector<1x1x4xf32>
    %123 = vector.broadcast %122 : vector<1x1x4xf32> to vector<8x8x4xf32>
    %124 = arith.mulf %119, %123 : vector<8x8x4xf32>
    %125 = arith.addf %118, %124 : vector<8x8x4xf32>
    %126 = vector.extract_strided_slice %53 {offsets = [2, 0, 0], sizes = [8, 8, 4], strides = [1, 1, 1]} : vector<12x12x4xf32> to vector<8x8x4xf32>
    %127 = vector.extract_strided_slice %54 {offsets = [10, 0], sizes = [1, 4], strides = [1, 1]} : vector<25x4xf32> to vector<1x4xf32>
    %128 = vector.shape_cast %127 : vector<1x4xf32> to vector<4xf32>
    %129 = vector.shape_cast %128 : vector<4xf32> to vector<1x1x4xf32>
    %130 = vector.broadcast %129 : vector<1x1x4xf32> to vector<8x8x4xf32>
    %131 = arith.mulf %126, %130 : vector<8x8x4xf32>
    %132 = arith.addf %125, %131 : vector<8x8x4xf32>
    %133 = vector.extract_strided_slice %53 {offsets = [2, 1, 0], sizes = [8, 8, 4], strides = [1, 1, 1]} : vector<12x12x4xf32> to vector<8x8x4xf32>
    %134 = vector.extract_strided_slice %54 {offsets = [11, 0], sizes = [1, 4], strides = [1, 1]} : vector<25x4xf32> to vector<1x4xf32>
    %135 = vector.shape_cast %134 : vector<1x4xf32> to vector<4xf32>
    %136 = vector.shape_cast %135 : vector<4xf32> to vector<1x1x4xf32>
    %137 = vector.broadcast %136 : vector<1x1x4xf32> to vector<8x8x4xf32>
    %138 = arith.mulf %133, %137 : vector<8x8x4xf32>
    %139 = arith.addf %132, %138 : vector<8x8x4xf32>
    %140 = vector.extract_strided_slice %53 {offsets = [2, 2, 0], sizes = [8, 8, 4], strides = [1, 1, 1]} : vector<12x12x4xf32> to vector<8x8x4xf32>
    %141 = vector.extract_strided_slice %54 {offsets = [12, 0], sizes = [1, 4], strides = [1, 1]} : vector<25x4xf32> to vector<1x4xf32>
    %142 = vector.shape_cast %141 : vector<1x4xf32> to vector<4xf32>
    %143 = vector.shape_cast %142 : vector<4xf32> to vector<1x1x4xf32>
    %144 = vector.broadcast %143 : vector<1x1x4xf32> to vector<8x8x4xf32>
    %145 = arith.mulf %140, %144 : vector<8x8x4xf32>
    %146 = arith.addf %139, %145 : vector<8x8x4xf32>
    %147 = vector.extract_strided_slice %53 {offsets = [2, 3, 0], sizes = [8, 8, 4], strides = [1, 1, 1]} : vector<12x12x4xf32> to vector<8x8x4xf32>
    %148 = vector.extract_strided_slice %54 {offsets = [13, 0], sizes = [1, 4], strides = [1, 1]} : vector<25x4xf32> to vector<1x4xf32>
    %149 = vector.shape_cast %148 : vector<1x4xf32> to vector<4xf32>
    %150 = vector.shape_cast %149 : vector<4xf32> to vector<1x1x4xf32>
    %151 = vector.broadcast %150 : vector<1x1x4xf32> to vector<8x8x4xf32>
    %152 = arith.mulf %147, %151 : vector<8x8x4xf32>
    %153 = arith.addf %146, %152 : vector<8x8x4xf32>
    %154 = vector.extract_strided_slice %53 {offsets = [2, 4, 0], sizes = [8, 8, 4], strides = [1, 1, 1]} : vector<12x12x4xf32> to vector<8x8x4xf32>
    %155 = vector.extract_strided_slice %54 {offsets = [14, 0], sizes = [1, 4], strides = [1, 1]} : vector<25x4xf32> to vector<1x4xf32>
    %156 = vector.shape_cast %155 : vector<1x4xf32> to vector<4xf32>
    %157 = vector.shape_cast %156 : vector<4xf32> to vector<1x1x4xf32>
    %158 = vector.broadcast %157 : vector<1x1x4xf32> to vector<8x8x4xf32>
    %159 = arith.mulf %154, %158 : vector<8x8x4xf32>
    %160 = arith.addf %153, %159 : vector<8x8x4xf32>
    %161 = vector.extract_strided_slice %53 {offsets = [3, 0, 0], sizes = [8, 8, 4], strides = [1, 1, 1]} : vector<12x12x4xf32> to vector<8x8x4xf32>
    %162 = vector.extract_strided_slice %54 {offsets = [15, 0], sizes = [1, 4], strides = [1, 1]} : vector<25x4xf32> to vector<1x4xf32>
    %163 = vector.shape_cast %162 : vector<1x4xf32> to vector<4xf32>
    %164 = vector.shape_cast %163 : vector<4xf32> to vector<1x1x4xf32>
    %165 = vector.broadcast %164 : vector<1x1x4xf32> to vector<8x8x4xf32>
    %166 = arith.mulf %161, %165 : vector<8x8x4xf32>
    %167 = arith.addf %160, %166 : vector<8x8x4xf32>
    %168 = vector.extract_strided_slice %53 {offsets = [3, 1, 0], sizes = [8, 8, 4], strides = [1, 1, 1]} : vector<12x12x4xf32> to vector<8x8x4xf32>
    %169 = vector.extract_strided_slice %54 {offsets = [16, 0], sizes = [1, 4], strides = [1, 1]} : vector<25x4xf32> to vector<1x4xf32>
    %170 = vector.shape_cast %169 : vector<1x4xf32> to vector<4xf32>
    %171 = vector.shape_cast %170 : vector<4xf32> to vector<1x1x4xf32>
    %172 = vector.broadcast %171 : vector<1x1x4xf32> to vector<8x8x4xf32>
    %173 = arith.mulf %168, %172 : vector<8x8x4xf32>
    %174 = arith.addf %167, %173 : vector<8x8x4xf32>
    %175 = vector.extract_strided_slice %53 {offsets = [3, 2, 0], sizes = [8, 8, 4], strides = [1, 1, 1]} : vector<12x12x4xf32> to vector<8x8x4xf32>
    %176 = vector.extract_strided_slice %54 {offsets = [17, 0], sizes = [1, 4], strides = [1, 1]} : vector<25x4xf32> to vector<1x4xf32>
    %177 = vector.shape_cast %176 : vector<1x4xf32> to vector<4xf32>
    %178 = vector.shape_cast %177 : vector<4xf32> to vector<1x1x4xf32>
    %179 = vector.broadcast %178 : vector<1x1x4xf32> to vector<8x8x4xf32>
    %180 = arith.mulf %175, %179 : vector<8x8x4xf32>
    %181 = arith.addf %174, %180 : vector<8x8x4xf32>
    %182 = vector.extract_strided_slice %53 {offsets = [3, 3, 0], sizes = [8, 8, 4], strides = [1, 1, 1]} : vector<12x12x4xf32> to vector<8x8x4xf32>
    %183 = vector.extract_strided_slice %54 {offsets = [18, 0], sizes = [1, 4], strides = [1, 1]} : vector<25x4xf32> to vector<1x4xf32>
    %184 = vector.shape_cast %183 : vector<1x4xf32> to vector<4xf32>
    %185 = vector.shape_cast %184 : vector<4xf32> to vector<1x1x4xf32>
    %186 = vector.broadcast %185 : vector<1x1x4xf32> to vector<8x8x4xf32>
    %187 = arith.mulf %182, %186 : vector<8x8x4xf32>
    %188 = arith.addf %181, %187 : vector<8x8x4xf32>
    %189 = vector.extract_strided_slice %53 {offsets = [3, 4, 0], sizes = [8, 8, 4], strides = [1, 1, 1]} : vector<12x12x4xf32> to vector<8x8x4xf32>
    %190 = vector.extract_strided_slice %54 {offsets = [19, 0], sizes = [1, 4], strides = [1, 1]} : vector<25x4xf32> to vector<1x4xf32>
    %191 = vector.shape_cast %190 : vector<1x4xf32> to vector<4xf32>
    %192 = vector.shape_cast %191 : vector<4xf32> to vector<1x1x4xf32>
    %193 = vector.broadcast %192 : vector<1x1x4xf32> to vector<8x8x4xf32>
    %194 = arith.mulf %189, %193 : vector<8x8x4xf32>
    %195 = arith.addf %188, %194 : vector<8x8x4xf32>
    %196 = vector.extract_strided_slice %53 {offsets = [4, 0, 0], sizes = [8, 8, 4], strides = [1, 1, 1]} : vector<12x12x4xf32> to vector<8x8x4xf32>
    %197 = vector.extract_strided_slice %54 {offsets = [20, 0], sizes = [1, 4], strides = [1, 1]} : vector<25x4xf32> to vector<1x4xf32>
    %198 = vector.shape_cast %197 : vector<1x4xf32> to vector<4xf32>
    %199 = vector.shape_cast %198 : vector<4xf32> to vector<1x1x4xf32>
    %200 = vector.broadcast %199 : vector<1x1x4xf32> to vector<8x8x4xf32>
    %201 = arith.mulf %196, %200 : vector<8x8x4xf32>
    %202 = arith.addf %195, %201 : vector<8x8x4xf32>
    %203 = vector.extract_strided_slice %53 {offsets = [4, 1, 0], sizes = [8, 8, 4], strides = [1, 1, 1]} : vector<12x12x4xf32> to vector<8x8x4xf32>
    %204 = vector.extract_strided_slice %54 {offsets = [21, 0], sizes = [1, 4], strides = [1, 1]} : vector<25x4xf32> to vector<1x4xf32>
    %205 = vector.shape_cast %204 : vector<1x4xf32> to vector<4xf32>
    %206 = vector.shape_cast %205 : vector<4xf32> to vector<1x1x4xf32>
    %207 = vector.broadcast %206 : vector<1x1x4xf32> to vector<8x8x4xf32>
    %208 = arith.mulf %203, %207 : vector<8x8x4xf32>
    %209 = arith.addf %202, %208 : vector<8x8x4xf32>
    %210 = vector.extract_strided_slice %53 {offsets = [4, 2, 0], sizes = [8, 8, 4], strides = [1, 1, 1]} : vector<12x12x4xf32> to vector<8x8x4xf32>
    %211 = vector.extract_strided_slice %54 {offsets = [22, 0], sizes = [1, 4], strides = [1, 1]} : vector<25x4xf32> to vector<1x4xf32>
    %212 = vector.shape_cast %211 : vector<1x4xf32> to vector<4xf32>
    %213 = vector.shape_cast %212 : vector<4xf32> to vector<1x1x4xf32>
    %214 = vector.broadcast %213 : vector<1x1x4xf32> to vector<8x8x4xf32>
    %215 = arith.mulf %210, %214 : vector<8x8x4xf32>
    %216 = arith.addf %209, %215 : vector<8x8x4xf32>
    %217 = vector.extract_strided_slice %53 {offsets = [4, 3, 0], sizes = [8, 8, 4], strides = [1, 1, 1]} : vector<12x12x4xf32> to vector<8x8x4xf32>
    %218 = vector.extract_strided_slice %54 {offsets = [23, 0], sizes = [1, 4], strides = [1, 1]} : vector<25x4xf32> to vector<1x4xf32>
    %219 = vector.shape_cast %218 : vector<1x4xf32> to vector<4xf32>
    %220 = vector.shape_cast %219 : vector<4xf32> to vector<1x1x4xf32>
    %221 = vector.broadcast %220 : vector<1x1x4xf32> to vector<8x8x4xf32>
    %222 = arith.mulf %217, %221 : vector<8x8x4xf32>
    %223 = arith.addf %216, %222 : vector<8x8x4xf32>
    %224 = vector.extract_strided_slice %53 {offsets = [4, 4, 0], sizes = [8, 8, 4], strides = [1, 1, 1]} : vector<12x12x4xf32> to vector<8x8x4xf32>
    %225 = vector.extract_strided_slice %54 {offsets = [24, 0], sizes = [1, 4], strides = [1, 1]} : vector<25x4xf32> to vector<1x4xf32>
    %226 = vector.shape_cast %225 : vector<1x4xf32> to vector<4xf32>
    %227 = vector.shape_cast %226 : vector<4xf32> to vector<1x1x4xf32>
    %228 = vector.broadcast %227 : vector<1x1x4xf32> to vector<8x8x4xf32>
    %229 = arith.mulf %224, %228 : vector<8x8x4xf32>
    %230 = arith.addf %223, %229 : vector<8x8x4xf32>
    %c0_38 = arith.constant 0 : index
    %c0_39 = arith.constant 0 : index
    %231 = vector.load %arg6[%c0_38, %c0_39] : memref<1x4xf32, #tpu.memory_space<vmem>>, vector<1x4xf32>
    %232 = vector.shape_cast %231 : vector<1x4xf32> to vector<1x1x4xf32>
    %233 = vector.broadcast %232 : vector<1x1x4xf32> to vector<8x8x4xf32>
    %234 = arith.mulf %230, %233 : vector<8x8x4xf32>
    %c0_40 = arith.constant 0 : index
    %c0_41 = arith.constant 0 : index
    %235 = vector.load %arg7[%c0_40, %c0_41] : memref<1x4xf32, #tpu.memory_space<vmem>>, vector<1x4xf32>
    %236 = vector.shape_cast %235 : vector<1x4xf32> to vector<1x1x4xf32>
    %237 = vector.broadcast %236 : vector<1x1x4xf32> to vector<8x8x4xf32>
    %238 = arith.addf %234, %237 : vector<8x8x4xf32>
    %cst_42 = arith.constant 3.000000e+00 : f32
    %239 = vector.broadcast %cst_42 : f32 to vector<8x8x4xf32>
    %240 = arith.addf %238, %239 : vector<8x8x4xf32>
    %cst_43 = arith.constant 0.000000e+00 : f32
    %cst_44 = arith.constant 6.000000e+00 : f32
    %241 = vector.broadcast %cst_43 : f32 to vector<8x8x4xf32>
    %242 = arith.maximumf %241, %240 : vector<8x8x4xf32>
    %243 = vector.broadcast %cst_44 : f32 to vector<8x8x4xf32>
    %244 = arith.minimumf %243, %242 : vector<8x8x4xf32>
    %245 = arith.mulf %238, %244 : vector<8x8x4xf32>
    %cst_45 = arith.constant 0.166666672 : f32
    %246 = vector.broadcast %cst_45 : f32 to vector<8x8x4xf32>
    %247 = arith.mulf %245, %246 : vector<8x8x4xf32>
    %248 = vector.extract_strided_slice %247 {offsets = [0, 0, 0], sizes = [1, 8, 4], strides = [1, 1, 1]} : vector<8x8x4xf32> to vector<1x8x4xf32>
    %249 = vector.shape_cast %248 : vector<1x8x4xf32> to vector<8x4xf32>
    %c0_46 = arith.constant 0 : index
    %c0_47 = arith.constant 0 : index
    %250 = vector.load %arg13[%c0_46, %c0_47] : memref<64x4xf32, #tpu.memory_space<vmem>>, vector<8x4xf32>
    tpu.vector_store %arg13[%c0_46, %c0_47], %249 {strides = array<i32>} : memref<64x4xf32, #tpu.memory_space<vmem>>, vector<8x4xf32>,
    %251 = vector.extract_strided_slice %247 {offsets = [1, 0, 0], sizes = [1, 8, 4], strides = [1, 1, 1]} : vector<8x8x4xf32> to vector<1x8x4xf32>
    %252 = vector.shape_cast %251 : vector<1x8x4xf32> to vector<8x4xf32>
    %c8_48 = arith.constant 8 : index
    %c0_49 = arith.constant 0 : index
    %253 = vector.load %arg13[%c8_48, %c0_49] : memref<64x4xf32, #tpu.memory_space<vmem>>, vector<8x4xf32>
    tpu.vector_store %arg13[%c8_48, %c0_49], %252 {strides = array<i32>} : memref<64x4xf32, #tpu.memory_space<vmem>>, vector<8x4xf32>,
    %254 = vector.extract_strided_slice %247 {offsets = [2, 0, 0], sizes = [1, 8, 4], strides = [1, 1, 1]} : vector<8x8x4xf32> to vector<1x8x4xf32>
    %255 = vector.shape_cast %254 : vector<1x8x4xf32> to vector<8x4xf32>
    %c16 = arith.constant 16 : index
    %c0_50 = arith.constant 0 : index
    %256 = vector.load %arg13[%c16, %c0_50] : memref<64x4xf32, #tpu.memory_space<vmem>>, vector<8x4xf32>
    tpu.vector_store %arg13[%c16, %c0_50], %255 {strides = array<i32>} : memref<64x4xf32, #tpu.memory_space<vmem>>, vector<8x4xf32>,
    %257 = vector.extract_strided_slice %247 {offsets = [3, 0, 0], sizes = [1, 8, 4], strides = [1, 1, 1]} : vector<8x8x4xf32> to vector<1x8x4xf32>
    %258 = vector.shape_cast %257 : vector<1x8x4xf32> to vector<8x4xf32>
    %c24 = arith.constant 24 : index
    %c0_51 = arith.constant 0 : index
    %259 = vector.load %arg13[%c24, %c0_51] : memref<64x4xf32, #tpu.memory_space<vmem>>, vector<8x4xf32>
    tpu.vector_store %arg13[%c24, %c0_51], %258 {strides = array<i32>} : memref<64x4xf32, #tpu.memory_space<vmem>>, vector<8x4xf32>,
    %260 = vector.extract_strided_slice %247 {offsets = [4, 0, 0], sizes = [1, 8, 4], strides = [1, 1, 1]} : vector<8x8x4xf32> to vector<1x8x4xf32>
    %261 = vector.shape_cast %260 : vector<1x8x4xf32> to vector<8x4xf32>
    %c32 = arith.constant 32 : index
    %c0_52 = arith.constant 0 : index
    %262 = vector.load %arg13[%c32, %c0_52] : memref<64x4xf32, #tpu.memory_space<vmem>>, vector<8x4xf32>
    tpu.vector_store %arg13[%c32, %c0_52], %261 {strides = array<i32>} : memref<64x4xf32, #tpu.memory_space<vmem>>, vector<8x4xf32>,
    %263 = vector.extract_strided_slice %247 {offsets = [5, 0, 0], sizes = [1, 8, 4], strides = [1, 1, 1]} : vector<8x8x4xf32> to vector<1x8x4xf32>
    %264 = vector.shape_cast %263 : vector<1x8x4xf32> to vector<8x4xf32>
    %c40 = arith.constant 40 : index
    %c0_53 = arith.constant 0 : index
    %265 = vector.load %arg13[%c40, %c0_53] : memref<64x4xf32, #tpu.memory_space<vmem>>, vector<8x4xf32>
    tpu.vector_store %arg13[%c40, %c0_53], %264 {strides = array<i32>} : memref<64x4xf32, #tpu.memory_space<vmem>>, vector<8x4xf32>,
    %266 = vector.extract_strided_slice %247 {offsets = [6, 0, 0], sizes = [1, 8, 4], strides = [1, 1, 1]} : vector<8x8x4xf32> to vector<1x8x4xf32>
    %267 = vector.shape_cast %266 : vector<1x8x4xf32> to vector<8x4xf32>
    %c48 = arith.constant 48 : index
    %c0_54 = arith.constant 0 : index
    %268 = vector.load %arg13[%c48, %c0_54] : memref<64x4xf32, #tpu.memory_space<vmem>>, vector<8x4xf32>
    tpu.vector_store %arg13[%c48, %c0_54], %267 {strides = array<i32>} : memref<64x4xf32, #tpu.memory_space<vmem>>, vector<8x4xf32>,
    %269 = vector.extract_strided_slice %247 {offsets = [7, 0, 0], sizes = [1, 8, 4], strides = [1, 1, 1]} : vector<8x8x4xf32> to vector<1x8x4xf32>
    %270 = vector.shape_cast %269 : vector<1x8x4xf32> to vector<8x4xf32>
    %c56 = arith.constant 56 : index
    %c0_55 = arith.constant 0 : index
    %271 = vector.load %arg13[%c56, %c0_55] : memref<64x4xf32, #tpu.memory_space<vmem>>, vector<8x4xf32>
    tpu.vector_store %arg13[%c56, %c0_55], %270 {strides = array<i32>} : memref<64x4xf32, #tpu.memory_space<vmem>>, vector<8x4xf32>,
    %c0_56 = arith.constant 0 : index
    %c0_57 = arith.constant 0 : index
    %272 = vector.load %arg13[%c0_56, %c0_57] : memref<64x4xf32, #tpu.memory_space<vmem>>, vector<64x4xf32>
    %273 = arith.truncf %272 : vector<64x4xf32> to vector<64x4xbf16>
    %c0_58 = arith.constant 0 : index
    %c0_59 = arith.constant 0 : index
    %274 = vector.load %arg8[%c0_58, %c0_59] : memref<4x4xbf16, #tpu.memory_space<vmem>>, vector<4x4xbf16>
    %cst_60 = arith.constant dense<0.000000e+00> : vector<64x4xf32>
    %275 = tpu.matmul %273, %274, %cst_60 {dimension_numbers = #tpu.dot_dimension_numbers<[1], [0], [0], [1], [0, 0, 1, 1], [], []>} : vector<64x4xbf16>, vector<4x4xbf16>, vector<64x4xf32> -> vector<64x4xf32>
    %c0_61 = arith.constant 0 : index
    %c0_62 = arith.constant 0 : index
    %276 = vector.load %arg9[%c0_61, %c0_62] : memref<1x4xf32, #tpu.memory_space<vmem>>, vector<1x4xf32>
    %277 = vector.broadcast %276 : vector<1x4xf32> to vector<64x4xf32>
    %278 = arith.mulf %275, %277 : vector<64x4xf32>
    %c0_63 = arith.constant 0 : index
    %c0_64 = arith.constant 0 : index
    %279 = vector.load %arg10[%c0_63, %c0_64] : memref<1x4xf32, #tpu.memory_space<vmem>>, vector<1x4xf32>
    %280 = vector.broadcast %279 : vector<1x4xf32> to vector<64x4xf32>
    %281 = arith.addf %278, %280 : vector<64x4xf32>
    %cst_65 = arith.constant 3.000000e+00 : f32
    %282 = vector.broadcast %cst_65 : f32 to vector<64x4xf32>
    %283 = arith.addf %281, %282 : vector<64x4xf32>
    %cst_66 = arith.constant 0.000000e+00 : f32
    %cst_67 = arith.constant 6.000000e+00 : f32
    %284 = vector.broadcast %cst_66 : f32 to vector<64x4xf32>
    %285 = arith.maximumf %284, %283 : vector<64x4xf32>
    %286 = vector.broadcast %cst_67 : f32 to vector<64x4xf32>
    %287 = arith.minimumf %286, %285 : vector<64x4xf32>
    %288 = arith.mulf %281, %287 : vector<64x4xf32>
    %cst_68 = arith.constant 0.166666672 : f32
    %289 = vector.broadcast %cst_68 : f32 to vector<64x4xf32>
    %290 = arith.mulf %288, %289 : vector<64x4xf32>
    %c0_69 = arith.constant 0 : index
    %c0_70 = arith.constant 0 : index
    %c0_71 = arith.constant 0 : index
    %291 = vector.load %arg11[%c0_69, %c0_70, %c0_71] : memref<1x64x4xf32, #tpu.memory_space<vmem>>, vector<1x64x4xf32>
    %292 = vector.shape_cast %291 : vector<1x64x4xf32> to vector<64x4xf32>
    %293 = vector.shape_cast %290 : vector<64x4xf32> to vector<1x64x4xf32>
    tpu.vector_store %arg11[%c0_69, %c0_70, %c0_71], %293 {strides = array<i32>} : memref<1x64x4xf32, #tpu.memory_space<vmem>>, vector<1x64x4xf32>,
    return
  }
  func.func @transform_0(%arg0: i32) -> (i32, i32, i32) {
    %c0_i32 = arith.constant 0 : i32
    %c0_i32_0 = arith.constant 0 : i32
    %c0_i32_1 = arith.constant 0 : i32
    return %arg0, %c0_i32, %c0_i32_0 : i32, i32, i32
  }
  func.func @transform_1(%arg0: i32) -> (i32, i32) {
    %c0_i32 = arith.constant 0 : i32
    %c0_i32_0 = arith.constant 0 : i32
    %c0_i32_1 = arith.constant 0 : i32
    return %c0_i32, %c0_i32_0 : i32, i32
  }
  func.func @transform_2(%arg0: i32) -> (i32, i32) {
    %c0_i32 = arith.constant 0 : i32
    %c0_i32_0 = arith.constant 0 : i32
    %c0_i32_1 = arith.constant 0 : i32
    return %c0_i32, %c0_i32_0 : i32, i32
  }
  func.func @transform_3(%arg0: i32) -> (i32, i32) {
    %c0_i32 = arith.constant 0 : i32
    %c0_i32_0 = arith.constant 0 : i32
    %c0_i32_1 = arith.constant 0 : i32
    return %c0_i32, %c0_i32_0 : i32, i32
  }
  func.func @transform_4(%arg0: i32) -> (i32, i32) {
    %c0_i32 = arith.constant 0 : i32
    %c0_i32_0 = arith.constant 0 : i32
    %c0_i32_1 = arith.constant 0 : i32
    return %c0_i32, %c0_i32_0 : i32, i32
  }
  func.func @transform_5(%arg0: i32) -> (i32, i32) {
    %c0_i32 = arith.constant 0 : i32
    %c0_i32_0 = arith.constant 0 : i32
    %c0_i32_1 = arith.constant 0 : i32
    return %c0_i32, %c0_i32_0 : i32, i32
  }
  func.func @transform_6(%arg0: i32) -> (i32, i32) {
    %c0_i32 = arith.constant 0 : i32
    %c0_i32_0 = arith.constant 0 : i32
    %c0_i32_1 = arith.constant 0 : i32
    return %c0_i32, %c0_i32_0 : i32, i32
  }
  func.func @transform_7(%arg0: i32) -> (i32, i32) {
    %c0_i32 = arith.constant 0 : i32
    %c0_i32_0 = arith.constant 0 : i32
    %c0_i32_1 = arith.constant 0 : i32
    return %c0_i32, %c0_i32_0 : i32, i32
  }
  func.func @transform_8(%arg0: i32) -> (i32, i32) {
    %c0_i32 = arith.constant 0 : i32
    %c0_i32_0 = arith.constant 0 : i32
    %c0_i32_1 = arith.constant 0 : i32
    return %c0_i32, %c0_i32_0 : i32, i32
  }
  func.func @transform_9(%arg0: i32) -> (i32, i32) {
    %c0_i32 = arith.constant 0 : i32
    %c0_i32_0 = arith.constant 0 : i32
    %c0_i32_1 = arith.constant 0 : i32
    return %c0_i32, %c0_i32_0 : i32, i32
  }
  func.func @transform_10(%arg0: i32) -> (i32, i32, i32) {
    %c0_i32 = arith.constant 0 : i32
    %c0_i32_0 = arith.constant 0 : i32
    %c0_i32_1 = arith.constant 0 : i32
    return %arg0, %c0_i32, %c0_i32_0 : i32, i32, i32
  }
}

module attributes {stable_mosaic.version = 11 : i64} {
  func.func @_mm2_bn_hswish_kernel(%arg0: i32, %arg1: memref<128x4xbf16, #tpu.memory_space<vmem>>, %arg2: memref<128x4xbf16, #tpu.memory_space<vmem>>, %arg3: memref<4x8xbf16, #tpu.memory_space<vmem>>, %arg4: memref<4x8xbf16, #tpu.memory_space<vmem>>, %arg5: memref<1x8xf32, #tpu.memory_space<vmem>>, %arg6: memref<1x8xf32, #tpu.memory_space<vmem>>, %arg7: memref<128x8xf32, #tpu.memory_space<vmem>>) attributes {dimension_semantics = [#tpu.dimension_semantics<parallel>], iteration_bounds = array<i64: 1>, scalar_prefetch = 0 : i64, scratch_operands = 0 : i64, tpu.core_type = #tpu.core_type<tc>, window_params = [{transform_indices = @transform_0, window_bounds = array<i64: 128, 4>}, {transform_indices = @transform_1, window_bounds = array<i64: 128, 4>}, {pipeline_mode = #tpu.pipeline_mode<synchronous>, transform_indices = @transform_2, window_bounds = array<i64: 4, 8>}, {pipeline_mode = #tpu.pipeline_mode<synchronous>, transform_indices = @transform_3, window_bounds = array<i64: 4, 8>}, {pipeline_mode = #tpu.pipeline_mode<synchronous>, transform_indices = @transform_4, window_bounds = array<i64: 1, 8>}, {pipeline_mode = #tpu.pipeline_mode<synchronous>, transform_indices = @transform_5, window_bounds = array<i64: 1, 8>}, {transform_indices = @transform_6, window_bounds = array<i64: 128, 8>}]} {
    %c0 = arith.constant 0 : index
    %c0_0 = arith.constant 0 : index
    %0 = vector.load %arg1[%c0, %c0_0] : memref<128x4xbf16, #tpu.memory_space<vmem>>, vector<128x4xbf16>
    %c0_1 = arith.constant 0 : index
    %c0_2 = arith.constant 0 : index
    %1 = vector.load %arg3[%c0_1, %c0_2] : memref<4x8xbf16, #tpu.memory_space<vmem>>, vector<4x8xbf16>
    %cst = arith.constant dense<0.000000e+00> : vector<128x8xf32>
    %2 = tpu.matmul %0, %1, %cst {dimension_numbers = #tpu.dot_dimension_numbers<[1], [0], [0], [1], [0, 0, 1, 1], [], []>} : vector<128x4xbf16>, vector<4x8xbf16>, vector<128x8xf32> -> vector<128x8xf32>
    %c0_3 = arith.constant 0 : index
    %c0_4 = arith.constant 0 : index
    %3 = vector.load %arg2[%c0_3, %c0_4] : memref<128x4xbf16, #tpu.memory_space<vmem>>, vector<128x4xbf16>
    %c0_5 = arith.constant 0 : index
    %c0_6 = arith.constant 0 : index
    %4 = vector.load %arg4[%c0_5, %c0_6] : memref<4x8xbf16, #tpu.memory_space<vmem>>, vector<4x8xbf16>
    %cst_7 = arith.constant dense<0.000000e+00> : vector<128x8xf32>
    %5 = tpu.matmul %3, %4, %cst_7 {dimension_numbers = #tpu.dot_dimension_numbers<[1], [0], [0], [1], [0, 0, 1, 1], [], []>} : vector<128x4xbf16>, vector<4x8xbf16>, vector<128x8xf32> -> vector<128x8xf32>
    %6 = arith.addf %2, %5 : vector<128x8xf32>
    %c0_8 = arith.constant 0 : index
    %c0_9 = arith.constant 0 : index
    %7 = vector.load %arg5[%c0_8, %c0_9] : memref<1x8xf32, #tpu.memory_space<vmem>>, vector<1x8xf32>
    %8 = vector.broadcast %7 : vector<1x8xf32> to vector<128x8xf32>
    %9 = arith.mulf %6, %8 : vector<128x8xf32>
    %c0_10 = arith.constant 0 : index
    %c0_11 = arith.constant 0 : index
    %10 = vector.load %arg6[%c0_10, %c0_11] : memref<1x8xf32, #tpu.memory_space<vmem>>, vector<1x8xf32>
    %11 = vector.broadcast %10 : vector<1x8xf32> to vector<128x8xf32>
    %12 = arith.addf %9, %11 : vector<128x8xf32>
    %cst_12 = arith.constant 3.000000e+00 : f32
    %13 = vector.broadcast %cst_12 : f32 to vector<128x8xf32>
    %14 = arith.addf %12, %13 : vector<128x8xf32>
    %cst_13 = arith.constant 0.000000e+00 : f32
    %cst_14 = arith.constant 6.000000e+00 : f32
    %15 = vector.broadcast %cst_13 : f32 to vector<128x8xf32>
    %16 = arith.maximumf %15, %14 : vector<128x8xf32>
    %17 = vector.broadcast %cst_14 : f32 to vector<128x8xf32>
    %18 = arith.minimumf %17, %16 : vector<128x8xf32>
    %19 = arith.mulf %12, %18 : vector<128x8xf32>
    %cst_15 = arith.constant 0.166666672 : f32
    %20 = vector.broadcast %cst_15 : f32 to vector<128x8xf32>
    %21 = arith.mulf %19, %20 : vector<128x8xf32>
    %c0_16 = arith.constant 0 : index
    %c0_17 = arith.constant 0 : index
    %22 = vector.load %arg7[%c0_16, %c0_17] : memref<128x8xf32, #tpu.memory_space<vmem>>, vector<128x8xf32>
    tpu.vector_store %arg7[%c0_16, %c0_17], %21 {strides = array<i32>} : memref<128x8xf32, #tpu.memory_space<vmem>>, vector<128x8xf32>,
    return
  }
  func.func @transform_0(%arg0: i32) -> (i32, i32) {
    %c0_i32 = arith.constant 0 : i32
    %c0_i32_0 = arith.constant 0 : i32
    return %arg0, %c0_i32 : i32, i32
  }
  func.func @transform_1(%arg0: i32) -> (i32, i32) {
    %c0_i32 = arith.constant 0 : i32
    %c0_i32_0 = arith.constant 0 : i32
    return %arg0, %c0_i32 : i32, i32
  }
  func.func @transform_2(%arg0: i32) -> (i32, i32) {
    %c0_i32 = arith.constant 0 : i32
    %c0_i32_0 = arith.constant 0 : i32
    %c0_i32_1 = arith.constant 0 : i32
    return %c0_i32, %c0_i32_0 : i32, i32
  }
  func.func @transform_3(%arg0: i32) -> (i32, i32) {
    %c0_i32 = arith.constant 0 : i32
    %c0_i32_0 = arith.constant 0 : i32
    %c0_i32_1 = arith.constant 0 : i32
    return %c0_i32, %c0_i32_0 : i32, i32
  }
  func.func @transform_4(%arg0: i32) -> (i32, i32) {
    %c0_i32 = arith.constant 0 : i32
    %c0_i32_0 = arith.constant 0 : i32
    %c0_i32_1 = arith.constant 0 : i32
    return %c0_i32, %c0_i32_0 : i32, i32
  }
  func.func @transform_5(%arg0: i32) -> (i32, i32) {
    %c0_i32 = arith.constant 0 : i32
    %c0_i32_0 = arith.constant 0 : i32
    %c0_i32_1 = arith.constant 0 : i32
    return %c0_i32, %c0_i32_0 : i32, i32
  }
  func.func @transform_6(%arg0: i32) -> (i32, i32) {
    %c0_i32 = arith.constant 0 : i32
    %c0_i32_0 = arith.constant 0 : i32
    return %arg0, %c0_i32 : i32, i32
  }
}

module attributes {stable_mosaic.version = 11 : i64} {
  func.func @_mm_bn_hswish_kernel(%arg0: i32, %arg1: memref<32x128xbf16, #tpu.memory_space<vmem>>, %arg2: memref<128x8xbf16, #tpu.memory_space<vmem>>, %arg3: memref<1x8xf32, #tpu.memory_space<vmem>>, %arg4: memref<1x8xf32, #tpu.memory_space<vmem>>, %arg5: memref<32x8xf32, #tpu.memory_space<vmem>>) attributes {dimension_semantics = [#tpu.dimension_semantics<parallel>], iteration_bounds = array<i64: 1>, scalar_prefetch = 0 : i64, scratch_operands = 0 : i64, tpu.core_type = #tpu.core_type<tc>, window_params = [{transform_indices = @transform_0, window_bounds = array<i64: 32, 128>}, {pipeline_mode = #tpu.pipeline_mode<synchronous>, transform_indices = @transform_1, window_bounds = array<i64: 128, 8>}, {pipeline_mode = #tpu.pipeline_mode<synchronous>, transform_indices = @transform_2, window_bounds = array<i64: 1, 8>}, {pipeline_mode = #tpu.pipeline_mode<synchronous>, transform_indices = @transform_3, window_bounds = array<i64: 1, 8>}, {transform_indices = @transform_4, window_bounds = array<i64: 32, 8>}]} {
    %c0 = arith.constant 0 : index
    %c0_0 = arith.constant 0 : index
    %0 = vector.load %arg1[%c0, %c0_0] : memref<32x128xbf16, #tpu.memory_space<vmem>>, vector<32x128xbf16>
    %c0_1 = arith.constant 0 : index
    %c0_2 = arith.constant 0 : index
    %1 = vector.load %arg2[%c0_1, %c0_2] : memref<128x8xbf16, #tpu.memory_space<vmem>>, vector<128x8xbf16>
    %cst = arith.constant dense<0.000000e+00> : vector<32x8xf32>
    %2 = tpu.matmul %0, %1, %cst {dimension_numbers = #tpu.dot_dimension_numbers<[1], [0], [0], [1], [0, 0, 1, 1], [], []>} : vector<32x128xbf16>, vector<128x8xbf16>, vector<32x8xf32> -> vector<32x8xf32>
    %c0_3 = arith.constant 0 : index
    %c0_4 = arith.constant 0 : index
    %3 = vector.load %arg3[%c0_3, %c0_4] : memref<1x8xf32, #tpu.memory_space<vmem>>, vector<1x8xf32>
    %4 = vector.broadcast %3 : vector<1x8xf32> to vector<32x8xf32>
    %5 = arith.mulf %2, %4 : vector<32x8xf32>
    %c0_5 = arith.constant 0 : index
    %c0_6 = arith.constant 0 : index
    %6 = vector.load %arg4[%c0_5, %c0_6] : memref<1x8xf32, #tpu.memory_space<vmem>>, vector<1x8xf32>
    %7 = vector.broadcast %6 : vector<1x8xf32> to vector<32x8xf32>
    %8 = arith.addf %5, %7 : vector<32x8xf32>
    %cst_7 = arith.constant 3.000000e+00 : f32
    %9 = vector.broadcast %cst_7 : f32 to vector<32x8xf32>
    %10 = arith.addf %8, %9 : vector<32x8xf32>
    %cst_8 = arith.constant 0.000000e+00 : f32
    %cst_9 = arith.constant 6.000000e+00 : f32
    %11 = vector.broadcast %cst_8 : f32 to vector<32x8xf32>
    %12 = arith.maximumf %11, %10 : vector<32x8xf32>
    %13 = vector.broadcast %cst_9 : f32 to vector<32x8xf32>
    %14 = arith.minimumf %13, %12 : vector<32x8xf32>
    %15 = arith.mulf %8, %14 : vector<32x8xf32>
    %cst_10 = arith.constant 0.166666672 : f32
    %16 = vector.broadcast %cst_10 : f32 to vector<32x8xf32>
    %17 = arith.mulf %15, %16 : vector<32x8xf32>
    %c0_11 = arith.constant 0 : index
    %c0_12 = arith.constant 0 : index
    %18 = vector.load %arg5[%c0_11, %c0_12] : memref<32x8xf32, #tpu.memory_space<vmem>>, vector<32x8xf32>
    tpu.vector_store %arg5[%c0_11, %c0_12], %17 {strides = array<i32>} : memref<32x8xf32, #tpu.memory_space<vmem>>, vector<32x8xf32>,
    return
  }
  func.func @transform_0(%arg0: i32) -> (i32, i32) {
    %c0_i32 = arith.constant 0 : i32
    %c0_i32_0 = arith.constant 0 : i32
    return %arg0, %c0_i32 : i32, i32
  }
  func.func @transform_1(%arg0: i32) -> (i32, i32) {
    %c0_i32 = arith.constant 0 : i32
    %c0_i32_0 = arith.constant 0 : i32
    %c0_i32_1 = arith.constant 0 : i32
    return %c0_i32, %c0_i32_0 : i32, i32
  }
  func.func @transform_2(%arg0: i32) -> (i32, i32) {
    %c0_i32 = arith.constant 0 : i32
    %c0_i32_0 = arith.constant 0 : i32
    %c0_i32_1 = arith.constant 0 : i32
    return %c0_i32, %c0_i32_0 : i32, i32
  }
  func.func @transform_3(%arg0: i32) -> (i32, i32) {
    %c0_i32 = arith.constant 0 : i32
    %c0_i32_0 = arith.constant 0 : i32
    %c0_i32_1 = arith.constant 0 : i32
    return %c0_i32, %c0_i32_0 : i32, i32
  }
  func.func @transform_4(%arg0: i32) -> (i32, i32) {
    %c0_i32 = arith.constant 0 : i32
    %c0_i32_0 = arith.constant 0 : i32
    return %arg0, %c0_i32 : i32, i32
  }
}

module attributes {stable_mosaic.version = 11 : i64} {
  func.func @_bottleneck_kernel(%arg0: i32, %arg1: memref<1x4x12xbf16, #tpu.memory_space<vmem>>, %arg2: memref<12x12xbf16, #tpu.memory_space<vmem>>, %arg3: memref<1x12xf32, #tpu.memory_space<vmem>>, %arg4: memref<1x12xf32, #tpu.memory_space<vmem>>, %arg5: memref<25x12xf32, #tpu.memory_space<vmem>>, %arg6: memref<1x12xf32, #tpu.memory_space<vmem>>, %arg7: memref<1x12xf32, #tpu.memory_space<vmem>>, %arg8: memref<12x12xbf16, #tpu.memory_space<vmem>>, %arg9: memref<1x12xf32, #tpu.memory_space<vmem>>, %arg10: memref<1x12xf32, #tpu.memory_space<vmem>>, %arg11: memref<1x4x12xf32, #tpu.memory_space<vmem>>, %arg12: memref<6x6x12xf32, #tpu.memory_space<vmem>>, %arg13: memref<4x12xf32, #tpu.memory_space<vmem>>) attributes {dimension_semantics = [#tpu.dimension_semantics<parallel>], iteration_bounds = array<i64: 2>, scalar_prefetch = 0 : i64, scratch_operands = 2 : i64, tpu.core_type = #tpu.core_type<tc>, window_params = [{transform_indices = @transform_0, window_bounds = array<i64: 1, 4, 12>}, {pipeline_mode = #tpu.pipeline_mode<synchronous>, transform_indices = @transform_1, window_bounds = array<i64: 12, 12>}, {pipeline_mode = #tpu.pipeline_mode<synchronous>, transform_indices = @transform_2, window_bounds = array<i64: 1, 12>}, {pipeline_mode = #tpu.pipeline_mode<synchronous>, transform_indices = @transform_3, window_bounds = array<i64: 1, 12>}, {pipeline_mode = #tpu.pipeline_mode<synchronous>, transform_indices = @transform_4, window_bounds = array<i64: 25, 12>}, {pipeline_mode = #tpu.pipeline_mode<synchronous>, transform_indices = @transform_5, window_bounds = array<i64: 1, 12>}, {pipeline_mode = #tpu.pipeline_mode<synchronous>, transform_indices = @transform_6, window_bounds = array<i64: 1, 12>}, {pipeline_mode = #tpu.pipeline_mode<synchronous>, transform_indices = @transform_7, window_bounds = array<i64: 12, 12>}, {pipeline_mode = #tpu.pipeline_mode<synchronous>, transform_indices = @transform_8, window_bounds = array<i64: 1, 12>}, {pipeline_mode = #tpu.pipeline_mode<synchronous>, transform_indices = @transform_9, window_bounds = array<i64: 1, 12>}, {transform_indices = @transform_10, window_bounds = array<i64: 1, 4, 12>}]} {
    %c0 = arith.constant 0 : index
    %c0_0 = arith.constant 0 : index
    %c0_1 = arith.constant 0 : index
    %0 = vector.load %arg1[%c0, %c0_0, %c0_1] : memref<1x4x12xbf16, #tpu.memory_space<vmem>>, vector<1x4x12xbf16>
    %1 = vector.shape_cast %0 : vector<1x4x12xbf16> to vector<4x12xbf16>
    %c0_2 = arith.constant 0 : index
    %c0_3 = arith.constant 0 : index
    %2 = vector.load %arg2[%c0_2, %c0_3] : memref<12x12xbf16, #tpu.memory_space<vmem>>, vector<12x12xbf16>
    %cst = arith.constant dense<0.000000e+00> : vector<4x12xf32>
    %3 = tpu.matmul %1, %2, %cst {dimension_numbers = #tpu.dot_dimension_numbers<[1], [0], [0], [1], [0, 0, 1, 1], [], []>} : vector<4x12xbf16>, vector<12x12xbf16>, vector<4x12xf32> -> vector<4x12xf32>
    %c0_4 = arith.constant 0 : index
    %c0_5 = arith.constant 0 : index
    %4 = vector.load %arg3[%c0_4, %c0_5] : memref<1x12xf32, #tpu.memory_space<vmem>>, vector<1x12xf32>
    %5 = vector.broadcast %4 : vector<1x12xf32> to vector<4x12xf32>
    %6 = arith.mulf %3, %5 : vector<4x12xf32>
    %c0_6 = arith.constant 0 : index
    %c0_7 = arith.constant 0 : index
    %7 = vector.load %arg4[%c0_6, %c0_7] : memref<1x12xf32, #tpu.memory_space<vmem>>, vector<1x12xf32>
    %8 = vector.broadcast %7 : vector<1x12xf32> to vector<4x12xf32>
    %9 = arith.addf %6, %8 : vector<4x12xf32>
    %cst_8 = arith.constant 3.000000e+00 : f32
    %10 = vector.broadcast %cst_8 : f32 to vector<4x12xf32>
    %11 = arith.addf %9, %10 : vector<4x12xf32>
    %cst_9 = arith.constant 0.000000e+00 : f32
    %cst_10 = arith.constant 6.000000e+00 : f32
    %12 = vector.broadcast %cst_9 : f32 to vector<4x12xf32>
    %13 = arith.maximumf %12, %11 : vector<4x12xf32>
    %14 = vector.broadcast %cst_10 : f32 to vector<4x12xf32>
    %15 = arith.minimumf %14, %13 : vector<4x12xf32>
    %16 = arith.mulf %9, %15 : vector<4x12xf32>
    %cst_11 = arith.constant 0.166666672 : f32
    %17 = vector.broadcast %cst_11 : f32 to vector<4x12xf32>
    %18 = arith.mulf %16, %17 : vector<4x12xf32>
    %cst_12 = arith.constant 0.000000e+00 : f32
    %19 = vector.broadcast %cst_12 : f32 to vector<6x6x12xf32>
    %c0_13 = arith.constant 0 : index
    %c0_14 = arith.constant 0 : index
    %c0_15 = arith.constant 0 : index
    %20 = vector.load %arg12[%c0_13, %c0_14, %c0_15] : memref<6x6x12xf32, #tpu.memory_space<vmem>>, vector<6x6x12xf32>
    tpu.vector_store %arg12[%c0_13, %c0_14, %c0_15], %19 {strides = array<i32>} : memref<6x6x12xf32, #tpu.memory_space<vmem>>, vector<6x6x12xf32>,
    %21 = vector.extract_strided_slice %18 {offsets = [0, 0], sizes = [2, 12], strides = [1, 1]} : vector<4x12xf32> to vector<2x12xf32>
    %c2 = arith.constant 2 : index
    %c2_16 = arith.constant 2 : index
    %c0_17 = arith.constant 0 : index
    %22 = vector.load %arg12[%c2, %c2_16, %c0_17] : memref<6x6x12xf32, #tpu.memory_space<vmem>>, vector<1x2x12xf32>
    %23 = vector.shape_cast %22 : vector<1x2x12xf32> to vector<2x12xf32>
    %24 = vector.shape_cast %21 : vector<2x12xf32> to vector<1x2x12xf32>
    tpu.vector_store %arg12[%c2, %c2_16, %c0_17], %24 {strides = array<i32>} : memref<6x6x12xf32, #tpu.memory_space<vmem>>, vector<1x2x12xf32>,
    %25 = vector.extract_strided_slice %18 {offsets = [2, 0], sizes = [2, 12], strides = [1, 1]} : vector<4x12xf32> to vector<2x12xf32>
    %c3 = arith.constant 3 : index
    %c2_18 = arith.constant 2 : index
    %c0_19 = arith.constant 0 : index
    %26 = vector.load %arg12[%c3, %c2_18, %c0_19] : memref<6x6x12xf32, #tpu.memory_space<vmem>>, vector<1x2x12xf32>
    %27 = vector.shape_cast %26 : vector<1x2x12xf32> to vector<2x12xf32>
    %28 = vector.shape_cast %25 : vector<2x12xf32> to vector<1x2x12xf32>
    tpu.vector_store %arg12[%c3, %c2_18, %c0_19], %28 {strides = array<i32>} : memref<6x6x12xf32, #tpu.memory_space<vmem>>, vector<1x2x12xf32>,
    %c0_20 = arith.constant 0 : index
    %c0_21 = arith.constant 0 : index
    %c0_22 = arith.constant 0 : index
    %29 = vector.load %arg12[%c0_20, %c0_21, %c0_22] : memref<6x6x12xf32, #tpu.memory_space<vmem>>, vector<6x6x12xf32>
    %c0_23 = arith.constant 0 : index
    %c0_24 = arith.constant 0 : index
    %30 = vector.load %arg5[%c0_23, %c0_24] : memref<25x12xf32, #tpu.memory_space<vmem>>, vector<25x12xf32>
    %cst_25 = arith.constant 0.000000e+00 : f32
    %31 = vector.broadcast %cst_25 : f32 to vector<2x2x12xf32>
    %32 = vector.extract_strided_slice %29 {offsets = [0, 0, 0], sizes = [2, 2, 12], strides = [1, 1, 1]} : vector<6x6x12xf32> to vector<2x2x12xf32>
    %33 = vector.extract_strided_slice %30 {offsets = [0, 0], sizes = [1, 12], strides = [1, 1]} : vector<25x12xf32> to vector<1x12xf32>
    %34 = vector.shape_cast %33 : vector<1x12xf32> to vector<12xf32>
    %35 = vector.shape_cast %34 : vector<12xf32> to vector<1x1x12xf32>
    %36 = vector.broadcast %35 : vector<1x1x12xf32> to vector<2x2x12xf32>
    %37 = arith.mulf %32, %36 : vector<2x2x12xf32>
    %38 = arith.addf %31, %37 : vector<2x2x12xf32>
    %39 = vector.extract_strided_slice %29 {offsets = [0, 1, 0], sizes = [2, 2, 12], strides = [1, 1, 1]} : vector<6x6x12xf32> to vector<2x2x12xf32>
    %40 = vector.extract_strided_slice %30 {offsets = [1, 0], sizes = [1, 12], strides = [1, 1]} : vector<25x12xf32> to vector<1x12xf32>
    %41 = vector.shape_cast %40 : vector<1x12xf32> to vector<12xf32>
    %42 = vector.shape_cast %41 : vector<12xf32> to vector<1x1x12xf32>
    %43 = vector.broadcast %42 : vector<1x1x12xf32> to vector<2x2x12xf32>
    %44 = arith.mulf %39, %43 : vector<2x2x12xf32>
    %45 = arith.addf %38, %44 : vector<2x2x12xf32>
    %46 = vector.extract_strided_slice %29 {offsets = [0, 2, 0], sizes = [2, 2, 12], strides = [1, 1, 1]} : vector<6x6x12xf32> to vector<2x2x12xf32>
    %47 = vector.extract_strided_slice %30 {offsets = [2, 0], sizes = [1, 12], strides = [1, 1]} : vector<25x12xf32> to vector<1x12xf32>
    %48 = vector.shape_cast %47 : vector<1x12xf32> to vector<12xf32>
    %49 = vector.shape_cast %48 : vector<12xf32> to vector<1x1x12xf32>
    %50 = vector.broadcast %49 : vector<1x1x12xf32> to vector<2x2x12xf32>
    %51 = arith.mulf %46, %50 : vector<2x2x12xf32>
    %52 = arith.addf %45, %51 : vector<2x2x12xf32>
    %53 = vector.extract_strided_slice %29 {offsets = [0, 3, 0], sizes = [2, 2, 12], strides = [1, 1, 1]} : vector<6x6x12xf32> to vector<2x2x12xf32>
    %54 = vector.extract_strided_slice %30 {offsets = [3, 0], sizes = [1, 12], strides = [1, 1]} : vector<25x12xf32> to vector<1x12xf32>
    %55 = vector.shape_cast %54 : vector<1x12xf32> to vector<12xf32>
    %56 = vector.shape_cast %55 : vector<12xf32> to vector<1x1x12xf32>
    %57 = vector.broadcast %56 : vector<1x1x12xf32> to vector<2x2x12xf32>
    %58 = arith.mulf %53, %57 : vector<2x2x12xf32>
    %59 = arith.addf %52, %58 : vector<2x2x12xf32>
    %60 = vector.extract_strided_slice %29 {offsets = [0, 4, 0], sizes = [2, 2, 12], strides = [1, 1, 1]} : vector<6x6x12xf32> to vector<2x2x12xf32>
    %61 = vector.extract_strided_slice %30 {offsets = [4, 0], sizes = [1, 12], strides = [1, 1]} : vector<25x12xf32> to vector<1x12xf32>
    %62 = vector.shape_cast %61 : vector<1x12xf32> to vector<12xf32>
    %63 = vector.shape_cast %62 : vector<12xf32> to vector<1x1x12xf32>
    %64 = vector.broadcast %63 : vector<1x1x12xf32> to vector<2x2x12xf32>
    %65 = arith.mulf %60, %64 : vector<2x2x12xf32>
    %66 = arith.addf %59, %65 : vector<2x2x12xf32>
    %67 = vector.extract_strided_slice %29 {offsets = [1, 0, 0], sizes = [2, 2, 12], strides = [1, 1, 1]} : vector<6x6x12xf32> to vector<2x2x12xf32>
    %68 = vector.extract_strided_slice %30 {offsets = [5, 0], sizes = [1, 12], strides = [1, 1]} : vector<25x12xf32> to vector<1x12xf32>
    %69 = vector.shape_cast %68 : vector<1x12xf32> to vector<12xf32>
    %70 = vector.shape_cast %69 : vector<12xf32> to vector<1x1x12xf32>
    %71 = vector.broadcast %70 : vector<1x1x12xf32> to vector<2x2x12xf32>
    %72 = arith.mulf %67, %71 : vector<2x2x12xf32>
    %73 = arith.addf %66, %72 : vector<2x2x12xf32>
    %74 = vector.extract_strided_slice %29 {offsets = [1, 1, 0], sizes = [2, 2, 12], strides = [1, 1, 1]} : vector<6x6x12xf32> to vector<2x2x12xf32>
    %75 = vector.extract_strided_slice %30 {offsets = [6, 0], sizes = [1, 12], strides = [1, 1]} : vector<25x12xf32> to vector<1x12xf32>
    %76 = vector.shape_cast %75 : vector<1x12xf32> to vector<12xf32>
    %77 = vector.shape_cast %76 : vector<12xf32> to vector<1x1x12xf32>
    %78 = vector.broadcast %77 : vector<1x1x12xf32> to vector<2x2x12xf32>
    %79 = arith.mulf %74, %78 : vector<2x2x12xf32>
    %80 = arith.addf %73, %79 : vector<2x2x12xf32>
    %81 = vector.extract_strided_slice %29 {offsets = [1, 2, 0], sizes = [2, 2, 12], strides = [1, 1, 1]} : vector<6x6x12xf32> to vector<2x2x12xf32>
    %82 = vector.extract_strided_slice %30 {offsets = [7, 0], sizes = [1, 12], strides = [1, 1]} : vector<25x12xf32> to vector<1x12xf32>
    %83 = vector.shape_cast %82 : vector<1x12xf32> to vector<12xf32>
    %84 = vector.shape_cast %83 : vector<12xf32> to vector<1x1x12xf32>
    %85 = vector.broadcast %84 : vector<1x1x12xf32> to vector<2x2x12xf32>
    %86 = arith.mulf %81, %85 : vector<2x2x12xf32>
    %87 = arith.addf %80, %86 : vector<2x2x12xf32>
    %88 = vector.extract_strided_slice %29 {offsets = [1, 3, 0], sizes = [2, 2, 12], strides = [1, 1, 1]} : vector<6x6x12xf32> to vector<2x2x12xf32>
    %89 = vector.extract_strided_slice %30 {offsets = [8, 0], sizes = [1, 12], strides = [1, 1]} : vector<25x12xf32> to vector<1x12xf32>
    %90 = vector.shape_cast %89 : vector<1x12xf32> to vector<12xf32>
    %91 = vector.shape_cast %90 : vector<12xf32> to vector<1x1x12xf32>
    %92 = vector.broadcast %91 : vector<1x1x12xf32> to vector<2x2x12xf32>
    %93 = arith.mulf %88, %92 : vector<2x2x12xf32>
    %94 = arith.addf %87, %93 : vector<2x2x12xf32>
    %95 = vector.extract_strided_slice %29 {offsets = [1, 4, 0], sizes = [2, 2, 12], strides = [1, 1, 1]} : vector<6x6x12xf32> to vector<2x2x12xf32>
    %96 = vector.extract_strided_slice %30 {offsets = [9, 0], sizes = [1, 12], strides = [1, 1]} : vector<25x12xf32> to vector<1x12xf32>
    %97 = vector.shape_cast %96 : vector<1x12xf32> to vector<12xf32>
    %98 = vector.shape_cast %97 : vector<12xf32> to vector<1x1x12xf32>
    %99 = vector.broadcast %98 : vector<1x1x12xf32> to vector<2x2x12xf32>
    %100 = arith.mulf %95, %99 : vector<2x2x12xf32>
    %101 = arith.addf %94, %100 : vector<2x2x12xf32>
    %102 = vector.extract_strided_slice %29 {offsets = [2, 0, 0], sizes = [2, 2, 12], strides = [1, 1, 1]} : vector<6x6x12xf32> to vector<2x2x12xf32>
    %103 = vector.extract_strided_slice %30 {offsets = [10, 0], sizes = [1, 12], strides = [1, 1]} : vector<25x12xf32> to vector<1x12xf32>
    %104 = vector.shape_cast %103 : vector<1x12xf32> to vector<12xf32>
    %105 = vector.shape_cast %104 : vector<12xf32> to vector<1x1x12xf32>
    %106 = vector.broadcast %105 : vector<1x1x12xf32> to vector<2x2x12xf32>
    %107 = arith.mulf %102, %106 : vector<2x2x12xf32>
    %108 = arith.addf %101, %107 : vector<2x2x12xf32>
    %109 = vector.extract_strided_slice %29 {offsets = [2, 1, 0], sizes = [2, 2, 12], strides = [1, 1, 1]} : vector<6x6x12xf32> to vector<2x2x12xf32>
    %110 = vector.extract_strided_slice %30 {offsets = [11, 0], sizes = [1, 12], strides = [1, 1]} : vector<25x12xf32> to vector<1x12xf32>
    %111 = vector.shape_cast %110 : vector<1x12xf32> to vector<12xf32>
    %112 = vector.shape_cast %111 : vector<12xf32> to vector<1x1x12xf32>
    %113 = vector.broadcast %112 : vector<1x1x12xf32> to vector<2x2x12xf32>
    %114 = arith.mulf %109, %113 : vector<2x2x12xf32>
    %115 = arith.addf %108, %114 : vector<2x2x12xf32>
    %116 = vector.extract_strided_slice %29 {offsets = [2, 2, 0], sizes = [2, 2, 12], strides = [1, 1, 1]} : vector<6x6x12xf32> to vector<2x2x12xf32>
    %117 = vector.extract_strided_slice %30 {offsets = [12, 0], sizes = [1, 12], strides = [1, 1]} : vector<25x12xf32> to vector<1x12xf32>
    %118 = vector.shape_cast %117 : vector<1x12xf32> to vector<12xf32>
    %119 = vector.shape_cast %118 : vector<12xf32> to vector<1x1x12xf32>
    %120 = vector.broadcast %119 : vector<1x1x12xf32> to vector<2x2x12xf32>
    %121 = arith.mulf %116, %120 : vector<2x2x12xf32>
    %122 = arith.addf %115, %121 : vector<2x2x12xf32>
    %123 = vector.extract_strided_slice %29 {offsets = [2, 3, 0], sizes = [2, 2, 12], strides = [1, 1, 1]} : vector<6x6x12xf32> to vector<2x2x12xf32>
    %124 = vector.extract_strided_slice %30 {offsets = [13, 0], sizes = [1, 12], strides = [1, 1]} : vector<25x12xf32> to vector<1x12xf32>
    %125 = vector.shape_cast %124 : vector<1x12xf32> to vector<12xf32>
    %126 = vector.shape_cast %125 : vector<12xf32> to vector<1x1x12xf32>
    %127 = vector.broadcast %126 : vector<1x1x12xf32> to vector<2x2x12xf32>
    %128 = arith.mulf %123, %127 : vector<2x2x12xf32>
    %129 = arith.addf %122, %128 : vector<2x2x12xf32>
    %130 = vector.extract_strided_slice %29 {offsets = [2, 4, 0], sizes = [2, 2, 12], strides = [1, 1, 1]} : vector<6x6x12xf32> to vector<2x2x12xf32>
    %131 = vector.extract_strided_slice %30 {offsets = [14, 0], sizes = [1, 12], strides = [1, 1]} : vector<25x12xf32> to vector<1x12xf32>
    %132 = vector.shape_cast %131 : vector<1x12xf32> to vector<12xf32>
    %133 = vector.shape_cast %132 : vector<12xf32> to vector<1x1x12xf32>
    %134 = vector.broadcast %133 : vector<1x1x12xf32> to vector<2x2x12xf32>
    %135 = arith.mulf %130, %134 : vector<2x2x12xf32>
    %136 = arith.addf %129, %135 : vector<2x2x12xf32>
    %137 = vector.extract_strided_slice %29 {offsets = [3, 0, 0], sizes = [2, 2, 12], strides = [1, 1, 1]} : vector<6x6x12xf32> to vector<2x2x12xf32>
    %138 = vector.extract_strided_slice %30 {offsets = [15, 0], sizes = [1, 12], strides = [1, 1]} : vector<25x12xf32> to vector<1x12xf32>
    %139 = vector.shape_cast %138 : vector<1x12xf32> to vector<12xf32>
    %140 = vector.shape_cast %139 : vector<12xf32> to vector<1x1x12xf32>
    %141 = vector.broadcast %140 : vector<1x1x12xf32> to vector<2x2x12xf32>
    %142 = arith.mulf %137, %141 : vector<2x2x12xf32>
    %143 = arith.addf %136, %142 : vector<2x2x12xf32>
    %144 = vector.extract_strided_slice %29 {offsets = [3, 1, 0], sizes = [2, 2, 12], strides = [1, 1, 1]} : vector<6x6x12xf32> to vector<2x2x12xf32>
    %145 = vector.extract_strided_slice %30 {offsets = [16, 0], sizes = [1, 12], strides = [1, 1]} : vector<25x12xf32> to vector<1x12xf32>
    %146 = vector.shape_cast %145 : vector<1x12xf32> to vector<12xf32>
    %147 = vector.shape_cast %146 : vector<12xf32> to vector<1x1x12xf32>
    %148 = vector.broadcast %147 : vector<1x1x12xf32> to vector<2x2x12xf32>
    %149 = arith.mulf %144, %148 : vector<2x2x12xf32>
    %150 = arith.addf %143, %149 : vector<2x2x12xf32>
    %151 = vector.extract_strided_slice %29 {offsets = [3, 2, 0], sizes = [2, 2, 12], strides = [1, 1, 1]} : vector<6x6x12xf32> to vector<2x2x12xf32>
    %152 = vector.extract_strided_slice %30 {offsets = [17, 0], sizes = [1, 12], strides = [1, 1]} : vector<25x12xf32> to vector<1x12xf32>
    %153 = vector.shape_cast %152 : vector<1x12xf32> to vector<12xf32>
    %154 = vector.shape_cast %153 : vector<12xf32> to vector<1x1x12xf32>
    %155 = vector.broadcast %154 : vector<1x1x12xf32> to vector<2x2x12xf32>
    %156 = arith.mulf %151, %155 : vector<2x2x12xf32>
    %157 = arith.addf %150, %156 : vector<2x2x12xf32>
    %158 = vector.extract_strided_slice %29 {offsets = [3, 3, 0], sizes = [2, 2, 12], strides = [1, 1, 1]} : vector<6x6x12xf32> to vector<2x2x12xf32>
    %159 = vector.extract_strided_slice %30 {offsets = [18, 0], sizes = [1, 12], strides = [1, 1]} : vector<25x12xf32> to vector<1x12xf32>
    %160 = vector.shape_cast %159 : vector<1x12xf32> to vector<12xf32>
    %161 = vector.shape_cast %160 : vector<12xf32> to vector<1x1x12xf32>
    %162 = vector.broadcast %161 : vector<1x1x12xf32> to vector<2x2x12xf32>
    %163 = arith.mulf %158, %162 : vector<2x2x12xf32>
    %164 = arith.addf %157, %163 : vector<2x2x12xf32>
    %165 = vector.extract_strided_slice %29 {offsets = [3, 4, 0], sizes = [2, 2, 12], strides = [1, 1, 1]} : vector<6x6x12xf32> to vector<2x2x12xf32>
    %166 = vector.extract_strided_slice %30 {offsets = [19, 0], sizes = [1, 12], strides = [1, 1]} : vector<25x12xf32> to vector<1x12xf32>
    %167 = vector.shape_cast %166 : vector<1x12xf32> to vector<12xf32>
    %168 = vector.shape_cast %167 : vector<12xf32> to vector<1x1x12xf32>
    %169 = vector.broadcast %168 : vector<1x1x12xf32> to vector<2x2x12xf32>
    %170 = arith.mulf %165, %169 : vector<2x2x12xf32>
    %171 = arith.addf %164, %170 : vector<2x2x12xf32>
    %172 = vector.extract_strided_slice %29 {offsets = [4, 0, 0], sizes = [2, 2, 12], strides = [1, 1, 1]} : vector<6x6x12xf32> to vector<2x2x12xf32>
    %173 = vector.extract_strided_slice %30 {offsets = [20, 0], sizes = [1, 12], strides = [1, 1]} : vector<25x12xf32> to vector<1x12xf32>
    %174 = vector.shape_cast %173 : vector<1x12xf32> to vector<12xf32>
    %175 = vector.shape_cast %174 : vector<12xf32> to vector<1x1x12xf32>
    %176 = vector.broadcast %175 : vector<1x1x12xf32> to vector<2x2x12xf32>
    %177 = arith.mulf %172, %176 : vector<2x2x12xf32>
    %178 = arith.addf %171, %177 : vector<2x2x12xf32>
    %179 = vector.extract_strided_slice %29 {offsets = [4, 1, 0], sizes = [2, 2, 12], strides = [1, 1, 1]} : vector<6x6x12xf32> to vector<2x2x12xf32>
    %180 = vector.extract_strided_slice %30 {offsets = [21, 0], sizes = [1, 12], strides = [1, 1]} : vector<25x12xf32> to vector<1x12xf32>
    %181 = vector.shape_cast %180 : vector<1x12xf32> to vector<12xf32>
    %182 = vector.shape_cast %181 : vector<12xf32> to vector<1x1x12xf32>
    %183 = vector.broadcast %182 : vector<1x1x12xf32> to vector<2x2x12xf32>
    %184 = arith.mulf %179, %183 : vector<2x2x12xf32>
    %185 = arith.addf %178, %184 : vector<2x2x12xf32>
    %186 = vector.extract_strided_slice %29 {offsets = [4, 2, 0], sizes = [2, 2, 12], strides = [1, 1, 1]} : vector<6x6x12xf32> to vector<2x2x12xf32>
    %187 = vector.extract_strided_slice %30 {offsets = [22, 0], sizes = [1, 12], strides = [1, 1]} : vector<25x12xf32> to vector<1x12xf32>
    %188 = vector.shape_cast %187 : vector<1x12xf32> to vector<12xf32>
    %189 = vector.shape_cast %188 : vector<12xf32> to vector<1x1x12xf32>
    %190 = vector.broadcast %189 : vector<1x1x12xf32> to vector<2x2x12xf32>
    %191 = arith.mulf %186, %190 : vector<2x2x12xf32>
    %192 = arith.addf %185, %191 : vector<2x2x12xf32>
    %193 = vector.extract_strided_slice %29 {offsets = [4, 3, 0], sizes = [2, 2, 12], strides = [1, 1, 1]} : vector<6x6x12xf32> to vector<2x2x12xf32>
    %194 = vector.extract_strided_slice %30 {offsets = [23, 0], sizes = [1, 12], strides = [1, 1]} : vector<25x12xf32> to vector<1x12xf32>
    %195 = vector.shape_cast %194 : vector<1x12xf32> to vector<12xf32>
    %196 = vector.shape_cast %195 : vector<12xf32> to vector<1x1x12xf32>
    %197 = vector.broadcast %196 : vector<1x1x12xf32> to vector<2x2x12xf32>
    %198 = arith.mulf %193, %197 : vector<2x2x12xf32>
    %199 = arith.addf %192, %198 : vector<2x2x12xf32>
    %200 = vector.extract_strided_slice %29 {offsets = [4, 4, 0], sizes = [2, 2, 12], strides = [1, 1, 1]} : vector<6x6x12xf32> to vector<2x2x12xf32>
    %201 = vector.extract_strided_slice %30 {offsets = [24, 0], sizes = [1, 12], strides = [1, 1]} : vector<25x12xf32> to vector<1x12xf32>
    %202 = vector.shape_cast %201 : vector<1x12xf32> to vector<12xf32>
    %203 = vector.shape_cast %202 : vector<12xf32> to vector<1x1x12xf32>
    %204 = vector.broadcast %203 : vector<1x1x12xf32> to vector<2x2x12xf32>
    %205 = arith.mulf %200, %204 : vector<2x2x12xf32>
    %206 = arith.addf %199, %205 : vector<2x2x12xf32>
    %c0_26 = arith.constant 0 : index
    %c0_27 = arith.constant 0 : index
    %207 = vector.load %arg6[%c0_26, %c0_27] : memref<1x12xf32, #tpu.memory_space<vmem>>, vector<1x12xf32>
    %208 = vector.shape_cast %207 : vector<1x12xf32> to vector<1x1x12xf32>
    %209 = vector.broadcast %208 : vector<1x1x12xf32> to vector<2x2x12xf32>
    %210 = arith.mulf %206, %209 : vector<2x2x12xf32>
    %c0_28 = arith.constant 0 : index
    %c0_29 = arith.constant 0 : index
    %211 = vector.load %arg7[%c0_28, %c0_29] : memref<1x12xf32, #tpu.memory_space<vmem>>, vector<1x12xf32>
    %212 = vector.shape_cast %211 : vector<1x12xf32> to vector<1x1x12xf32>
    %213 = vector.broadcast %212 : vector<1x1x12xf32> to vector<2x2x12xf32>
    %214 = arith.addf %210, %213 : vector<2x2x12xf32>
    %cst_30 = arith.constant 3.000000e+00 : f32
    %215 = vector.broadcast %cst_30 : f32 to vector<2x2x12xf32>
    %216 = arith.addf %214, %215 : vector<2x2x12xf32>
    %cst_31 = arith.constant 0.000000e+00 : f32
    %cst_32 = arith.constant 6.000000e+00 : f32
    %217 = vector.broadcast %cst_31 : f32 to vector<2x2x12xf32>
    %218 = arith.maximumf %217, %216 : vector<2x2x12xf32>
    %219 = vector.broadcast %cst_32 : f32 to vector<2x2x12xf32>
    %220 = arith.minimumf %219, %218 : vector<2x2x12xf32>
    %221 = arith.mulf %214, %220 : vector<2x2x12xf32>
    %cst_33 = arith.constant 0.166666672 : f32
    %222 = vector.broadcast %cst_33 : f32 to vector<2x2x12xf32>
    %223 = arith.mulf %221, %222 : vector<2x2x12xf32>
    %224 = vector.extract_strided_slice %223 {offsets = [0, 0, 0], sizes = [1, 2, 12], strides = [1, 1, 1]} : vector<2x2x12xf32> to vector<1x2x12xf32>
    %225 = vector.shape_cast %224 : vector<1x2x12xf32> to vector<2x12xf32>
    %c0_34 = arith.constant 0 : index
    %c0_35 = arith.constant 0 : index
    %226 = vector.load %arg13[%c0_34, %c0_35] : memref<4x12xf32, #tpu.memory_space<vmem>>, vector<2x12xf32>
    tpu.vector_store %arg13[%c0_34, %c0_35], %225 {strides = array<i32>} : memref<4x12xf32, #tpu.memory_space<vmem>>, vector<2x12xf32>,
    %227 = vector.extract_strided_slice %223 {offsets = [1, 0, 0], sizes = [1, 2, 12], strides = [1, 1, 1]} : vector<2x2x12xf32> to vector<1x2x12xf32>
    %228 = vector.shape_cast %227 : vector<1x2x12xf32> to vector<2x12xf32>
    %c2_36 = arith.constant 2 : index
    %c0_37 = arith.constant 0 : index
    %229 = vector.load %arg13[%c2_36, %c0_37] : memref<4x12xf32, #tpu.memory_space<vmem>>, vector<2x12xf32>
    tpu.vector_store %arg13[%c2_36, %c0_37], %228 {strides = array<i32>} : memref<4x12xf32, #tpu.memory_space<vmem>>, vector<2x12xf32>,
    %c0_38 = arith.constant 0 : index
    %c0_39 = arith.constant 0 : index
    %230 = vector.load %arg13[%c0_38, %c0_39] : memref<4x12xf32, #tpu.memory_space<vmem>>, vector<4x12xf32>
    %231 = arith.truncf %230 : vector<4x12xf32> to vector<4x12xbf16>
    %c0_40 = arith.constant 0 : index
    %c0_41 = arith.constant 0 : index
    %232 = vector.load %arg8[%c0_40, %c0_41] : memref<12x12xbf16, #tpu.memory_space<vmem>>, vector<12x12xbf16>
    %cst_42 = arith.constant dense<0.000000e+00> : vector<4x12xf32>
    %233 = tpu.matmul %231, %232, %cst_42 {dimension_numbers = #tpu.dot_dimension_numbers<[1], [0], [0], [1], [0, 0, 1, 1], [], []>} : vector<4x12xbf16>, vector<12x12xbf16>, vector<4x12xf32> -> vector<4x12xf32>
    %c0_43 = arith.constant 0 : index
    %c0_44 = arith.constant 0 : index
    %234 = vector.load %arg9[%c0_43, %c0_44] : memref<1x12xf32, #tpu.memory_space<vmem>>, vector<1x12xf32>
    %235 = vector.broadcast %234 : vector<1x12xf32> to vector<4x12xf32>
    %236 = arith.mulf %233, %235 : vector<4x12xf32>
    %c0_45 = arith.constant 0 : index
    %c0_46 = arith.constant 0 : index
    %237 = vector.load %arg10[%c0_45, %c0_46] : memref<1x12xf32, #tpu.memory_space<vmem>>, vector<1x12xf32>
    %238 = vector.broadcast %237 : vector<1x12xf32> to vector<4x12xf32>
    %239 = arith.addf %236, %238 : vector<4x12xf32>
    %cst_47 = arith.constant 3.000000e+00 : f32
    %240 = vector.broadcast %cst_47 : f32 to vector<4x12xf32>
    %241 = arith.addf %239, %240 : vector<4x12xf32>
    %cst_48 = arith.constant 0.000000e+00 : f32
    %cst_49 = arith.constant 6.000000e+00 : f32
    %242 = vector.broadcast %cst_48 : f32 to vector<4x12xf32>
    %243 = arith.maximumf %242, %241 : vector<4x12xf32>
    %244 = vector.broadcast %cst_49 : f32 to vector<4x12xf32>
    %245 = arith.minimumf %244, %243 : vector<4x12xf32>
    %246 = arith.mulf %239, %245 : vector<4x12xf32>
    %cst_50 = arith.constant 0.166666672 : f32
    %247 = vector.broadcast %cst_50 : f32 to vector<4x12xf32>
    %248 = arith.mulf %246, %247 : vector<4x12xf32>
    %c0_51 = arith.constant 0 : index
    %c0_52 = arith.constant 0 : index
    %c0_53 = arith.constant 0 : index
    %249 = vector.load %arg11[%c0_51, %c0_52, %c0_53] : memref<1x4x12xf32, #tpu.memory_space<vmem>>, vector<1x4x12xf32>
    %250 = vector.shape_cast %249 : vector<1x4x12xf32> to vector<4x12xf32>
    %251 = vector.shape_cast %248 : vector<4x12xf32> to vector<1x4x12xf32>
    tpu.vector_store %arg11[%c0_51, %c0_52, %c0_53], %251 {strides = array<i32>} : memref<1x4x12xf32, #tpu.memory_space<vmem>>, vector<1x4x12xf32>,
    return
  }
  func.func @transform_0(%arg0: i32) -> (i32, i32, i32) {
    %c0_i32 = arith.constant 0 : i32
    %c0_i32_0 = arith.constant 0 : i32
    %c0_i32_1 = arith.constant 0 : i32
    return %arg0, %c0_i32, %c0_i32_0 : i32, i32, i32
  }
  func.func @transform_1(%arg0: i32) -> (i32, i32) {
    %c0_i32 = arith.constant 0 : i32
    %c0_i32_0 = arith.constant 0 : i32
    %c0_i32_1 = arith.constant 0 : i32
    return %c0_i32, %c0_i32_0 : i32, i32
  }
  func.func @transform_2(%arg0: i32) -> (i32, i32) {
    %c0_i32 = arith.constant 0 : i32
    %c0_i32_0 = arith.constant 0 : i32
    %c0_i32_1 = arith.constant 0 : i32
    return %c0_i32, %c0_i32_0 : i32, i32
  }
  func.func @transform_3(%arg0: i32) -> (i32, i32) {
    %c0_i32 = arith.constant 0 : i32
    %c0_i32_0 = arith.constant 0 : i32
    %c0_i32_1 = arith.constant 0 : i32
    return %c0_i32, %c0_i32_0 : i32, i32
  }
  func.func @transform_4(%arg0: i32) -> (i32, i32) {
    %c0_i32 = arith.constant 0 : i32
    %c0_i32_0 = arith.constant 0 : i32
    %c0_i32_1 = arith.constant 0 : i32
    return %c0_i32, %c0_i32_0 : i32, i32
  }
  func.func @transform_5(%arg0: i32) -> (i32, i32) {
    %c0_i32 = arith.constant 0 : i32
    %c0_i32_0 = arith.constant 0 : i32
    %c0_i32_1 = arith.constant 0 : i32
    return %c0_i32, %c0_i32_0 : i32, i32
  }
  func.func @transform_6(%arg0: i32) -> (i32, i32) {
    %c0_i32 = arith.constant 0 : i32
    %c0_i32_0 = arith.constant 0 : i32
    %c0_i32_1 = arith.constant 0 : i32
    return %c0_i32, %c0_i32_0 : i32, i32
  }
  func.func @transform_7(%arg0: i32) -> (i32, i32) {
    %c0_i32 = arith.constant 0 : i32
    %c0_i32_0 = arith.constant 0 : i32
    %c0_i32_1 = arith.constant 0 : i32
    return %c0_i32, %c0_i32_0 : i32, i32
  }
  func.func @transform_8(%arg0: i32) -> (i32, i32) {
    %c0_i32 = arith.constant 0 : i32
    %c0_i32_0 = arith.constant 0 : i32
    %c0_i32_1 = arith.constant 0 : i32
    return %c0_i32, %c0_i32_0 : i32, i32
  }
  func.func @transform_9(%arg0: i32) -> (i32, i32) {
    %c0_i32 = arith.constant 0 : i32
    %c0_i32_0 = arith.constant 0 : i32
    %c0_i32_1 = arith.constant 0 : i32
    return %c0_i32, %c0_i32_0 : i32, i32
  }
  func.func @transform_10(%arg0: i32) -> (i32, i32, i32) {
    %c0_i32 = arith.constant 0 : i32
    %c0_i32_0 = arith.constant 0 : i32
    %c0_i32_1 = arith.constant 0 : i32
    return %arg0, %c0_i32, %c0_i32_0 : i32, i32, i32
  }
}

module attributes {stable_mosaic.version = 11 : i64} {
  func.func @_mm_bn_hswish_kernel(%arg0: i32, %arg1: memref<8x256xbf16, #tpu.memory_space<vmem>>, %arg2: memref<256x16xbf16, #tpu.memory_space<vmem>>, %arg3: memref<1x16xf32, #tpu.memory_space<vmem>>, %arg4: memref<1x16xf32, #tpu.memory_space<vmem>>, %arg5: memref<8x16xf32, #tpu.memory_space<vmem>>) attributes {dimension_semantics = [#tpu.dimension_semantics<parallel>], iteration_bounds = array<i64: 1>, scalar_prefetch = 0 : i64, scratch_operands = 0 : i64, tpu.core_type = #tpu.core_type<tc>, window_params = [{transform_indices = @transform_0, window_bounds = array<i64: 8, 256>}, {pipeline_mode = #tpu.pipeline_mode<synchronous>, transform_indices = @transform_1, window_bounds = array<i64: 256, 16>}, {pipeline_mode = #tpu.pipeline_mode<synchronous>, transform_indices = @transform_2, window_bounds = array<i64: 1, 16>}, {pipeline_mode = #tpu.pipeline_mode<synchronous>, transform_indices = @transform_3, window_bounds = array<i64: 1, 16>}, {transform_indices = @transform_4, window_bounds = array<i64: 8, 16>}]} {
    %c0 = arith.constant 0 : index
    %c0_0 = arith.constant 0 : index
    %0 = vector.load %arg1[%c0, %c0_0] : memref<8x256xbf16, #tpu.memory_space<vmem>>, vector<8x256xbf16>
    %c0_1 = arith.constant 0 : index
    %c0_2 = arith.constant 0 : index
    %1 = vector.load %arg2[%c0_1, %c0_2] : memref<256x16xbf16, #tpu.memory_space<vmem>>, vector<256x16xbf16>
    %cst = arith.constant dense<0.000000e+00> : vector<8x16xf32>
    %2 = tpu.matmul %0, %1, %cst {dimension_numbers = #tpu.dot_dimension_numbers<[1], [0], [0], [1], [0, 0, 1, 1], [], []>} : vector<8x256xbf16>, vector<256x16xbf16>, vector<8x16xf32> -> vector<8x16xf32>
    %c0_3 = arith.constant 0 : index
    %c0_4 = arith.constant 0 : index
    %3 = vector.load %arg3[%c0_3, %c0_4] : memref<1x16xf32, #tpu.memory_space<vmem>>, vector<1x16xf32>
    %4 = vector.broadcast %3 : vector<1x16xf32> to vector<8x16xf32>
    %5 = arith.mulf %2, %4 : vector<8x16xf32>
    %c0_5 = arith.constant 0 : index
    %c0_6 = arith.constant 0 : index
    %6 = vector.load %arg4[%c0_5, %c0_6] : memref<1x16xf32, #tpu.memory_space<vmem>>, vector<1x16xf32>
    %7 = vector.broadcast %6 : vector<1x16xf32> to vector<8x16xf32>
    %8 = arith.addf %5, %7 : vector<8x16xf32>
    %cst_7 = arith.constant 3.000000e+00 : f32
    %9 = vector.broadcast %cst_7 : f32 to vector<8x16xf32>
    %10 = arith.addf %8, %9 : vector<8x16xf32>
    %cst_8 = arith.constant 0.000000e+00 : f32
    %cst_9 = arith.constant 6.000000e+00 : f32
    %11 = vector.broadcast %cst_8 : f32 to vector<8x16xf32>
    %12 = arith.maximumf %11, %10 : vector<8x16xf32>
    %13 = vector.broadcast %cst_9 : f32 to vector<8x16xf32>
    %14 = arith.minimumf %13, %12 : vector<8x16xf32>
    %15 = arith.mulf %8, %14 : vector<8x16xf32>
    %cst_10 = arith.constant 0.166666672 : f32
    %16 = vector.broadcast %cst_10 : f32 to vector<8x16xf32>
    %17 = arith.mulf %15, %16 : vector<8x16xf32>
    %c0_11 = arith.constant 0 : index
    %c0_12 = arith.constant 0 : index
    %18 = vector.load %arg5[%c0_11, %c0_12] : memref<8x16xf32, #tpu.memory_space<vmem>>, vector<8x16xf32>
    tpu.vector_store %arg5[%c0_11, %c0_12], %17 {strides = array<i32>} : memref<8x16xf32, #tpu.memory_space<vmem>>, vector<8x16xf32>,
    return
  }
  func.func @transform_0(%arg0: i32) -> (i32, i32) {
    %c0_i32 = arith.constant 0 : i32
    %c0_i32_0 = arith.constant 0 : i32
    return %arg0, %c0_i32 : i32, i32
  }
  func.func @transform_1(%arg0: i32) -> (i32, i32) {
    %c0_i32 = arith.constant 0 : i32
    %c0_i32_0 = arith.constant 0 : i32
    %c0_i32_1 = arith.constant 0 : i32
    return %c0_i32, %c0_i32_0 : i32, i32
  }
  func.func @transform_2(%arg0: i32) -> (i32, i32) {
    %c0_i32 = arith.constant 0 : i32
    %c0_i32_0 = arith.constant 0 : i32
    %c0_i32_1 = arith.constant 0 : i32
    return %c0_i32, %c0_i32_0 : i32, i32
  }
  func.func @transform_3(%arg0: i32) -> (i32, i32) {
    %c0_i32 = arith.constant 0 : i32
    %c0_i32_0 = arith.constant 0 : i32
    %c0_i32_1 = arith.constant 0 : i32
    return %c0_i32, %c0_i32_0 : i32, i32
  }
  func.func @transform_4(%arg0: i32) -> (i32, i32) {
    %c0_i32 = arith.constant 0 : i32
    %c0_i32_0 = arith.constant 0 : i32
    return %arg0, %c0_i32 : i32, i32
  }
}

module attributes {stable_mosaic.version = 11 : i64} {
  func.func @_mm2_bn_hswish_kernel(%arg0: i32, %arg1: memref<8x16xbf16, #tpu.memory_space<vmem>>, %arg2: memref<8x16xbf16, #tpu.memory_space<vmem>>, %arg3: memref<16x24xbf16, #tpu.memory_space<vmem>>, %arg4: memref<16x24xbf16, #tpu.memory_space<vmem>>, %arg5: memref<1x24xf32, #tpu.memory_space<vmem>>, %arg6: memref<1x24xf32, #tpu.memory_space<vmem>>, %arg7: memref<8x24xf32, #tpu.memory_space<vmem>>) attributes {dimension_semantics = [#tpu.dimension_semantics<parallel>], iteration_bounds = array<i64: 1>, scalar_prefetch = 0 : i64, scratch_operands = 0 : i64, tpu.core_type = #tpu.core_type<tc>, window_params = [{transform_indices = @transform_0, window_bounds = array<i64: 8, 16>}, {transform_indices = @transform_1, window_bounds = array<i64: 8, 16>}, {pipeline_mode = #tpu.pipeline_mode<synchronous>, transform_indices = @transform_2, window_bounds = array<i64: 16, 24>}, {pipeline_mode = #tpu.pipeline_mode<synchronous>, transform_indices = @transform_3, window_bounds = array<i64: 16, 24>}, {pipeline_mode = #tpu.pipeline_mode<synchronous>, transform_indices = @transform_4, window_bounds = array<i64: 1, 24>}, {pipeline_mode = #tpu.pipeline_mode<synchronous>, transform_indices = @transform_5, window_bounds = array<i64: 1, 24>}, {transform_indices = @transform_6, window_bounds = array<i64: 8, 24>}]} {
    %c0 = arith.constant 0 : index
    %c0_0 = arith.constant 0 : index
    %0 = vector.load %arg1[%c0, %c0_0] : memref<8x16xbf16, #tpu.memory_space<vmem>>, vector<8x16xbf16>
    %c0_1 = arith.constant 0 : index
    %c0_2 = arith.constant 0 : index
    %1 = vector.load %arg3[%c0_1, %c0_2] : memref<16x24xbf16, #tpu.memory_space<vmem>>, vector<16x24xbf16>
    %cst = arith.constant dense<0.000000e+00> : vector<8x24xf32>
    %2 = tpu.matmul %0, %1, %cst {dimension_numbers = #tpu.dot_dimension_numbers<[1], [0], [0], [1], [0, 0, 1, 1], [], []>} : vector<8x16xbf16>, vector<16x24xbf16>, vector<8x24xf32> -> vector<8x24xf32>
    %c0_3 = arith.constant 0 : index
    %c0_4 = arith.constant 0 : index
    %3 = vector.load %arg2[%c0_3, %c0_4] : memref<8x16xbf16, #tpu.memory_space<vmem>>, vector<8x16xbf16>
    %c0_5 = arith.constant 0 : index
    %c0_6 = arith.constant 0 : index
    %4 = vector.load %arg4[%c0_5, %c0_6] : memref<16x24xbf16, #tpu.memory_space<vmem>>, vector<16x24xbf16>
    %cst_7 = arith.constant dense<0.000000e+00> : vector<8x24xf32>
    %5 = tpu.matmul %3, %4, %cst_7 {dimension_numbers = #tpu.dot_dimension_numbers<[1], [0], [0], [1], [0, 0, 1, 1], [], []>} : vector<8x16xbf16>, vector<16x24xbf16>, vector<8x24xf32> -> vector<8x24xf32>
    %6 = arith.addf %2, %5 : vector<8x24xf32>
    %c0_8 = arith.constant 0 : index
    %c0_9 = arith.constant 0 : index
    %7 = vector.load %arg5[%c0_8, %c0_9] : memref<1x24xf32, #tpu.memory_space<vmem>>, vector<1x24xf32>
    %8 = vector.broadcast %7 : vector<1x24xf32> to vector<8x24xf32>
    %9 = arith.mulf %6, %8 : vector<8x24xf32>
    %c0_10 = arith.constant 0 : index
    %c0_11 = arith.constant 0 : index
    %10 = vector.load %arg6[%c0_10, %c0_11] : memref<1x24xf32, #tpu.memory_space<vmem>>, vector<1x24xf32>
    %11 = vector.broadcast %10 : vector<1x24xf32> to vector<8x24xf32>
    %12 = arith.addf %9, %11 : vector<8x24xf32>
    %cst_12 = arith.constant 3.000000e+00 : f32
    %13 = vector.broadcast %cst_12 : f32 to vector<8x24xf32>
    %14 = arith.addf %12, %13 : vector<8x24xf32>
    %cst_13 = arith.constant 0.000000e+00 : f32
    %cst_14 = arith.constant 6.000000e+00 : f32
    %15 = vector.broadcast %cst_13 : f32 to vector<8x24xf32>
    %16 = arith.maximumf %15, %14 : vector<8x24xf32>
    %17 = vector.broadcast %cst_14 : f32 to vector<8x24xf32>
    %18 = arith.minimumf %17, %16 : vector<8x24xf32>
    %19 = arith.mulf %12, %18 : vector<8x24xf32>
    %cst_15 = arith.constant 0.166666672 : f32
    %20 = vector.broadcast %cst_15 : f32 to vector<8x24xf32>
    %21 = arith.mulf %19, %20 : vector<8x24xf32>
    %c0_16 = arith.constant 0 : index
    %c0_17 = arith.constant 0 : index
    %22 = vector.load %arg7[%c0_16, %c0_17] : memref<8x24xf32, #tpu.memory_space<vmem>>, vector<8x24xf32>
    tpu.vector_store %arg7[%c0_16, %c0_17], %21 {strides = array<i32>} : memref<8x24xf32, #tpu.memory_space<vmem>>, vector<8x24xf32>,
    return
  }
  func.func @transform_0(%arg0: i32) -> (i32, i32) {
    %c0_i32 = arith.constant 0 : i32
    %c0_i32_0 = arith.constant 0 : i32
    return %arg0, %c0_i32 : i32, i32
  }
  func.func @transform_1(%arg0: i32) -> (i32, i32) {
    %c0_i32 = arith.constant 0 : i32
    %c0_i32_0 = arith.constant 0 : i32
    return %arg0, %c0_i32 : i32, i32
  }
  func.func @transform_2(%arg0: i32) -> (i32, i32) {
    %c0_i32 = arith.constant 0 : i32
    %c0_i32_0 = arith.constant 0 : i32
    %c0_i32_1 = arith.constant 0 : i32
    return %c0_i32, %c0_i32_0 : i32, i32
  }
  func.func @transform_3(%arg0: i32) -> (i32, i32) {
    %c0_i32 = arith.constant 0 : i32
    %c0_i32_0 = arith.constant 0 : i32
    %c0_i32_1 = arith.constant 0 : i32
    return %c0_i32, %c0_i32_0 : i32, i32
  }
  func.func @transform_4(%arg0: i32) -> (i32, i32) {
    %c0_i32 = arith.constant 0 : i32
    %c0_i32_0 = arith.constant 0 : i32
    %c0_i32_1 = arith.constant 0 : i32
    return %c0_i32, %c0_i32_0 : i32, i32
  }
  func.func @transform_5(%arg0: i32) -> (i32, i32) {
    %c0_i32 = arith.constant 0 : i32
    %c0_i32_0 = arith.constant 0 : i32
    %c0_i32_1 = arith.constant 0 : i32
    return %c0_i32, %c0_i32_0 : i32, i32
  }
  func.func @transform_6(%arg0: i32) -> (i32, i32) {
    %c0_i32 = arith.constant 0 : i32
    %c0_i32_0 = arith.constant 0 : i32
    return %arg0, %c0_i32 : i32, i32
  }
}

module attributes {stable_mosaic.version = 11 : i64} {
  func.func @_mm2_bn_hswish_kernel(%arg0: i32, %arg1: memref<8x12xbf16, #tpu.memory_space<vmem>>, %arg2: memref<8x12xbf16, #tpu.memory_space<vmem>>, %arg3: memref<12x24xbf16, #tpu.memory_space<vmem>>, %arg4: memref<12x24xbf16, #tpu.memory_space<vmem>>, %arg5: memref<1x24xf32, #tpu.memory_space<vmem>>, %arg6: memref<1x24xf32, #tpu.memory_space<vmem>>, %arg7: memref<8x24xf32, #tpu.memory_space<vmem>>) attributes {dimension_semantics = [#tpu.dimension_semantics<parallel>], iteration_bounds = array<i64: 1>, scalar_prefetch = 0 : i64, scratch_operands = 0 : i64, tpu.core_type = #tpu.core_type<tc>, window_params = [{transform_indices = @transform_0, window_bounds = array<i64: 8, 12>}, {transform_indices = @transform_1, window_bounds = array<i64: 8, 12>}, {pipeline_mode = #tpu.pipeline_mode<synchronous>, transform_indices = @transform_2, window_bounds = array<i64: 12, 24>}, {pipeline_mode = #tpu.pipeline_mode<synchronous>, transform_indices = @transform_3, window_bounds = array<i64: 12, 24>}, {pipeline_mode = #tpu.pipeline_mode<synchronous>, transform_indices = @transform_4, window_bounds = array<i64: 1, 24>}, {pipeline_mode = #tpu.pipeline_mode<synchronous>, transform_indices = @transform_5, window_bounds = array<i64: 1, 24>}, {transform_indices = @transform_6, window_bounds = array<i64: 8, 24>}]} {
    %c0 = arith.constant 0 : index
    %c0_0 = arith.constant 0 : index
    %0 = vector.load %arg1[%c0, %c0_0] : memref<8x12xbf16, #tpu.memory_space<vmem>>, vector<8x12xbf16>
    %c0_1 = arith.constant 0 : index
    %c0_2 = arith.constant 0 : index
    %1 = vector.load %arg3[%c0_1, %c0_2] : memref<12x24xbf16, #tpu.memory_space<vmem>>, vector<12x24xbf16>
    %cst = arith.constant dense<0.000000e+00> : vector<8x24xf32>
    %2 = tpu.matmul %0, %1, %cst {dimension_numbers = #tpu.dot_dimension_numbers<[1], [0], [0], [1], [0, 0, 1, 1], [], []>} : vector<8x12xbf16>, vector<12x24xbf16>, vector<8x24xf32> -> vector<8x24xf32>
    %c0_3 = arith.constant 0 : index
    %c0_4 = arith.constant 0 : index
    %3 = vector.load %arg2[%c0_3, %c0_4] : memref<8x12xbf16, #tpu.memory_space<vmem>>, vector<8x12xbf16>
    %c0_5 = arith.constant 0 : index
    %c0_6 = arith.constant 0 : index
    %4 = vector.load %arg4[%c0_5, %c0_6] : memref<12x24xbf16, #tpu.memory_space<vmem>>, vector<12x24xbf16>
    %cst_7 = arith.constant dense<0.000000e+00> : vector<8x24xf32>
    %5 = tpu.matmul %3, %4, %cst_7 {dimension_numbers = #tpu.dot_dimension_numbers<[1], [0], [0], [1], [0, 0, 1, 1], [], []>} : vector<8x12xbf16>, vector<12x24xbf16>, vector<8x24xf32> -> vector<8x24xf32>
    %6 = arith.addf %2, %5 : vector<8x24xf32>
    %c0_8 = arith.constant 0 : index
    %c0_9 = arith.constant 0 : index
    %7 = vector.load %arg5[%c0_8, %c0_9] : memref<1x24xf32, #tpu.memory_space<vmem>>, vector<1x24xf32>
    %8 = vector.broadcast %7 : vector<1x24xf32> to vector<8x24xf32>
    %9 = arith.mulf %6, %8 : vector<8x24xf32>
    %c0_10 = arith.constant 0 : index
    %c0_11 = arith.constant 0 : index
    %10 = vector.load %arg6[%c0_10, %c0_11] : memref<1x24xf32, #tpu.memory_space<vmem>>, vector<1x24xf32>
    %11 = vector.broadcast %10 : vector<1x24xf32> to vector<8x24xf32>
    %12 = arith.addf %9, %11 : vector<8x24xf32>
    %cst_12 = arith.constant 3.000000e+00 : f32
    %13 = vector.broadcast %cst_12 : f32 to vector<8x24xf32>
    %14 = arith.addf %12, %13 : vector<8x24xf32>
    %cst_13 = arith.constant 0.000000e+00 : f32
    %cst_14 = arith.constant 6.000000e+00 : f32
    %15 = vector.broadcast %cst_13 : f32 to vector<8x24xf32>
    %16 = arith.maximumf %15, %14 : vector<8x24xf32>
    %17 = vector.broadcast %cst_14 : f32 to vector<8x24xf32>
    %18 = arith.minimumf %17, %16 : vector<8x24xf32>
    %19 = arith.mulf %12, %18 : vector<8x24xf32>
    %cst_15 = arith.constant 0.166666672 : f32
    %20 = vector.broadcast %cst_15 : f32 to vector<8x24xf32>
    %21 = arith.mulf %19, %20 : vector<8x24xf32>
    %c0_16 = arith.constant 0 : index
    %c0_17 = arith.constant 0 : index
    %22 = vector.load %arg7[%c0_16, %c0_17] : memref<8x24xf32, #tpu.memory_space<vmem>>, vector<8x24xf32>
    tpu.vector_store %arg7[%c0_16, %c0_17], %21 {strides = array<i32>} : memref<8x24xf32, #tpu.memory_space<vmem>>, vector<8x24xf32>,
    return
  }
  func.func @transform_0(%arg0: i32) -> (i32, i32) {
    %c0_i32 = arith.constant 0 : i32
    %c0_i32_0 = arith.constant 0 : i32
    return %arg0, %c0_i32 : i32, i32
  }
  func.func @transform_1(%arg0: i32) -> (i32, i32) {
    %c0_i32 = arith.constant 0 : i32
    %c0_i32_0 = arith.constant 0 : i32
    return %arg0, %c0_i32 : i32, i32
  }
  func.func @transform_2(%arg0: i32) -> (i32, i32) {
    %c0_i32 = arith.constant 0 : i32
    %c0_i32_0 = arith.constant 0 : i32
    %c0_i32_1 = arith.constant 0 : i32
    return %c0_i32, %c0_i32_0 : i32, i32
  }
  func.func @transform_3(%arg0: i32) -> (i32, i32) {
    %c0_i32 = arith.constant 0 : i32
    %c0_i32_0 = arith.constant 0 : i32
    %c0_i32_1 = arith.constant 0 : i32
    return %c0_i32, %c0_i32_0 : i32, i32
  }
  func.func @transform_4(%arg0: i32) -> (i32, i32) {
    %c0_i32 = arith.constant 0 : i32
    %c0_i32_0 = arith.constant 0 : i32
    %c0_i32_1 = arith.constant 0 : i32
    return %c0_i32, %c0_i32_0 : i32, i32
  }
  func.func @transform_5(%arg0: i32) -> (i32, i32) {
    %c0_i32 = arith.constant 0 : i32
    %c0_i32_0 = arith.constant 0 : i32
    %c0_i32_1 = arith.constant 0 : i32
    return %c0_i32, %c0_i32_0 : i32, i32
  }
  func.func @transform_6(%arg0: i32) -> (i32, i32) {
    %c0_i32 = arith.constant 0 : i32
    %c0_i32_0 = arith.constant 0 : i32
    return %arg0, %c0_i32 : i32, i32
  }
}

</mosaic_0001>

<bundles_post_ra>
// kernel: yolo_pafpn_forward.16
= control target key start
LH: loop header
LB: loop body
LE: loop exit
PB: predicated region body
PF: predicated region fallthrough
CT: control target
= control target key end

     0   :  { %v126_v0 = vmov 0.0   ;;  %vm35_vm0 = vcmask 1043456   ;;  %vm127_vm1 = vmmov 0   ;;  %vm31_vm2 = vcmask 195584   ;;  %s171_s1 = inlined_call_operand.vmem [shape: bf16[24,16], index: 1, kind: input, shape index: {}]   ;;  %s172_s0 = inlined_call_operand.vmem [shape: bf16[8,24], index: 0, kind: input, shape index: {}]   ;;  %s173_s2 = inlined_call_operand.vmem [shape: f32[1,16], index: 2, kind: input, shape index: {}]   ;;  %s174_s3 = inlined_call_operand.vmem [shape: f32[1,16], index: 3, kind: input, shape index: {}]   ;;  %s175_s4 = inlined_call_operand.vmem [shape: f32[8,16], index: 4, kind: output, shape index: {}]  }
   0x1   :  { %114 = vmatprep.subr.bf16.mxu0 %v126_v0  ;;  %v124_v1 = vld [vmem:[%s171_s1] sm:$0xff]   ;;  %118 = vmatprep.mubr.msk.bf16.mxu0 %vm127_vm1, %v126_v0  ;;  %v125_v2 = vld [vmem:[%s171_s1 + $0x8] ss:$0 sps:$4 sm:$0xff]   ;;  %vm100_vm3 = vcmask 130048  }
   0x2   :  { %115 = vmatpush3.bf16.msra.mxu0 %v124_v1  ;;  %v37_v3 = vsel %vm35_vm0, %v125_v2, 0  ;;  %v18_v4 = vld [vmem:[%s172_s0] sm:$0xf] }
   0x3   :  { %116 = vmatprep.subr.bf16.mxu0 %v126_v0  ;;  %v109_v5 = vld [vmem:[%s173_s2] ss:$0 sm:$0xff] }
   0x4   :  { %v110_v7 = vld [vmem:[%s174_s3] ss:$0 sm:$0xff] }
   0x6   :  { %117 = vmatpush3.bf16.msra.mxu0 %v37_v3 }
   0x9   :  { %119 = vmatmul.mubr.msk.bf16.vlgmr.msra.gmra.mrb[0].mxu0 %vm31_vm2, %v18_v4 }
  0xdc   :  { %v73_v6 = vpop.f32.mrb[0].mxu0 }
  0xdd   :  { %v86_v8 = vmul.f32 %v109_v5, %v73_v6  ;;  %v120_v9 = vpop.f32.mrb[1].mxu0 }
  0xde   :  { %v76_v10 = vpop.f32.mrb[2].mxu0 }
  0xdf   :  { %v94_v11 = vadd.f32 %v110_v7, %v86_v8  ;;  %v121_v12 = vpop.f32.mrb[3].mxu0 }
  0xe1   :  { %v95_v13 = vadd.f32 3.0, %v94_v11 }
  0xe3   :  { %v96_v14 = vmax.f32 %v95_v13, 0.0 }
  0xe5   :  { %v97_v15 = vmin.f32 %v96_v14, 6.0 }
  0xe7   :  { %v98_v16 = vmul.f32 %v97_v15, %v94_v11 }
  0xe9   :  { %v99_v17 = vmul.f32 0.16666667, %v98_v16 }
  0xeb   :  { %101 = vst.msk [vmem:[%s175_s4] sm:$0xff] %vm100_vm3, %v99_v17 }

// kernel: yolo_pafpn_forward.17
= control target key start
LH: loop header
LB: loop body
LE: loop exit
PB: predicated region body
PF: predicated region fallthrough
CT: control target
= control target key end

     0   :  { %vm52_vm0 = vcmask 130048   ;;  %s348_s3 = inlined_call_operand.vmem [shape: bf16[16,16], index: 3, kind: input, shape index: {}]   ;;  %s349_s2 = inlined_call_operand.vmem [shape: bf16[16,16], index: 2, kind: input, shape index: {}]   ;;  %s350_s1 = inlined_call_operand.vmem [shape: bf16[32,16], index: 1, kind: input, shape index: {}]   ;;  %s351_s0 = inlined_call_operand.vmem [shape: bf16[32,16], index: 0, kind: input, shape index: {}]   ;;  %s352_s4 = inlined_call_operand.vmem [shape: f32[1,16], index: 4, kind: input, shape index: {}]   ;;  %s353_s5 = inlined_call_operand.vmem [shape: f32[1,16], index: 5, kind: input, shape index: {}]   ;;  %s354_s6 = inlined_call_operand.vmem [shape: f32[32,16], index: 6, kind: output, shape index: {}]  }
   0x1   :  { %v263_v0 = vld [vmem:[%s348_s3] sm:$0xff]   ;;  %v267_v4 = vld [vmem:[%s350_s1 + $0x8] sm:$0xff]  }
   0x2   :  { %v264_v1 = vld [vmem:[%s349_s2] sm:$0xff]   ;;  %247 = vmatprep.subr.bf16.mxu1 %v263_v0  ;;  %v268_v5 = vld [vmem:[%s351_s0 + $0x8] sm:$0xff]  }
   0x3   :  { %v265_v2 = vld [vmem:[%s350_s1] sm:$0xff]   ;;  %253 = vmatprep.subr.bf16.mxu0 %v264_v1  ;;  %248 = vmatpush3.bf16.msra.mxu1 %v263_v0 }
   0x4   :  { %v266_v3 = vld [vmem:[%s351_s0] sm:$0xff]   ;;  %254 = vmatpush3.bf16.msra.mxu0 %v264_v1  ;;  %249 = vmatprep.mubr.msk.bf16.mxu1 %vm52_vm0, %v265_v2 }
   0x5   :  { %255 = vmatprep.mubr.msk.bf16.mxu0 %vm52_vm0, %v266_v3  ;;  %v239_v8 = vld [vmem:[%s352_s4] ss:$0 sm:$0xff] }
   0x6   :  { %250 = vmatmul.mubr.msk.bf16.vlgmr.msra.gmra.mrb[0].mxu1 %vm52_vm0, %v267_v4  ;;  %v240_v13 = vld [vmem:[%s353_s5] ss:$0 sm:$0xff] }
   0x7   :  { %256 = vmatmul.mubr.msk.bf16.vlgmr.msra.gmra.mrb[0].mxu0 %vm52_vm0, %v268_v5 }
  0xd9   :  { %v251_v6 = vpop.f32.mrb[0].mxu1 }
  0xda   :  { %v257_v7 = vpop.f32.mrb[0].mxu0  ;;  %v93_v9 = vpop.f32.mrb[1].mxu1 }
  0xdb   :  { %v173_v10 = vadd.f32 %v257_v7, %v251_v6  ;;  %v164_v11 = vpop.f32.mrb[1].mxu0  ;;  %v252_v12 = vpop.f32.mrb[2].mxu1 }
  0xdc   :  { %v165_v14 = vadd.f32 %v164_v11, %v93_v9  ;;  %v258_v15 = vpop.f32.mrb[2].mxu0  ;;  %v96_v16 = vpop.f32.mrb[3].mxu1 }
  0xdd   :  { %v188_v17 = vmul.f32 %v239_v8, %v173_v10  ;;  %v176_v18 = vadd.f32 %v258_v15, %v252_v12  ;;  %v167_v19 = vpop.f32.mrb[3].mxu0 }
  0xde   :  { %v186_v20 = vmul.f32 %v239_v8, %v165_v14  ;;  %v168_v21 = vadd.f32 %v167_v19, %v96_v16 }
  0xdf   :  { %v199_v22 = vadd.f32 %v240_v13, %v188_v17  ;;  %v189_v23 = vmul.f32 %v239_v8, %v176_v18 }
  0xe0   :  { %v197_v24 = vadd.f32 %v240_v13, %v186_v20  ;;  %v187_v25 = vmul.f32 %v239_v8, %v168_v21 }
  0xe1   :  { %v203_v26 = vadd.f32 3.0, %v199_v22  ;;  %v200_v27 = vadd.f32 %v240_v13, %v189_v23 }
  0xe2   :  { %v201_v28 = vadd.f32 3.0, %v197_v24  ;;  %v198_v29 = vadd.f32 %v240_v13, %v187_v25 }
  0xe3   :  { %v207_v30 = vmax.f32 %v203_v26, 0.0  ;;  %v204_v31 = vadd.f32 3.0, %v200_v27 }
  0xe4   :  { %v205_v32 = vmax.f32 %v201_v28, 0.0  ;;  %v202_v33 = vadd.f32 3.0, %v198_v29 }
  0xe5   :  { %v211_v34 = vmin.f32 %v207_v30, 6.0  ;;  %v208_v35 = vmax.f32 %v204_v31, 0.0 }
  0xe6   :  { %v209_v36 = vmin.f32 %v205_v32, 6.0  ;;  %v206_v37 = vmax.f32 %v202_v33, 0.0 }
  0xe7   :  { %v215_v38 = vmul.f32 %v211_v34, %v199_v22  ;;  %v212_v39 = vmin.f32 %v208_v35, 6.0 }
  0xe8   :  { %v213_v40 = vmul.f32 %v209_v36, %v197_v24  ;;  %v210_v41 = vmin.f32 %v206_v37, 6.0 }
  0xe9   :  { %v219_v42 = vmul.f32 0.16666667, %v215_v38  ;;  %v216_v43 = vmul.f32 %v212_v39, %v200_v27 }
  0xea   :  { %v217_v44 = vmul.f32 0.16666667, %v213_v40  ;;  %v214_v45 = vmul.f32 %v210_v41, %v198_v29 }
  0xeb   :  { %223 = vst.msk [vmem:[%s354_s6 + $0x10] sm:$0xff] %vm52_vm0, %v219_v42  ;;  %v220_v46 = vmul.f32 0.16666667, %v216_v43 }
  0xec   :  { %221 = vst.msk [vmem:[%s354_s6] sm:$0xff] %vm52_vm0, %v217_v44  ;;  %v218_v47 = vmul.f32 0.16666667, %v214_v45 }
  0xed   :  { %224 = vst.msk [vmem:[%s354_s6 + $0x18] sm:$0xff] %vm52_vm0, %v220_v46 }
  0xee   :  { %222 = vst.msk [vmem:[%s354_s6 + $0x8] sm:$0xff] %vm52_vm0, %v218_v47 }

// kernel: yolo_pafpn_forward.19
= control target key start
LH: loop header
LB: loop body
LE: loop exit
PB: predicated region body
PF: predicated region fallthrough
CT: control target
= control target key end

     0   :  { %vm51_vm0 = vcmask 1043456   ;;  %vm44_vm1 = vcmask 64512   ;;  %vm214_vm2 = vcmask 130048   ;;  %s336_s3 = inlined_call_operand.vmem [shape: bf16[8,16], index: 3, kind: input, shape index: {}]   ;;  %s337_s2 = inlined_call_operand.vmem [shape: bf16[8,16], index: 2, kind: input, shape index: {}]   ;;  %s338_s1 = inlined_call_operand.vmem [shape: bf16[32,8], index: 1, kind: input, shape index: {}]   ;;  %s339_s0 = inlined_call_operand.vmem [shape: bf16[32,8], index: 0, kind: input, shape index: {}]   ;;  %s340_s4 = inlined_call_operand.vmem [shape: f32[1,16], index: 4, kind: input, shape index: {}]   ;;  %s341_s5 = inlined_call_operand.vmem [shape: f32[1,16], index: 5, kind: input, shape index: {}]   ;;  %s342_s6 = inlined_call_operand.vmem [shape: f32[32,16], index: 6, kind: output, shape index: {}]  }
   0x1   :  { %v33_v0 = vld [vmem:[%s336_s3] sm:$0xf]  ;;  %v259_v6 = vld [vmem:[%s338_s1 + $0x8] sm:$0xff]  }
   0x2   :  { %v28_v1 = vld [vmem:[%s337_s2] sm:$0xf]  ;;  %255 = vmatprep.subr.msk.bf16.mxu1 %vm51_vm0, %v33_v0  ;;  %v53_v2 = vsel %vm51_vm0, %v33_v0, 0  ;;  %v260_v7 = vld [vmem:[%s339_s0 + $0x8] sm:$0xff]  }
   0x3   :  { %256 = vmatprep.subr.msk.bf16.mxu0 %vm51_vm0, %v28_v1  ;;  %v121_v3 = vsel %vm51_vm0, %v28_v1, 0  ;;  %v257_v4 = vld [vmem:[%s338_s1] sm:$0xff]   ;;  %240 = vmatpush3.bf16.msra.mxu1 %v53_v2 }
   0x4   :  { %v258_v5 = vld [vmem:[%s339_s0] sm:$0xff]   ;;  %246 = vmatpush3.bf16.msra.mxu0 %v121_v3  ;;  %241 = vmatprep.mubr.msk.bf16.mxu1 %vm44_vm1, %v257_v4 }
   0x5   :  { %247 = vmatprep.mubr.msk.bf16.mxu0 %vm44_vm1, %v258_v5  ;;  %v231_v10 = vld [vmem:[%s340_s4] ss:$0 sm:$0xff] }
   0x6   :  { %242 = vmatmul.mubr.msk.bf16.vlgmr.msra.gmra.mrb[0].mxu1 %vm44_vm1, %v259_v6  ;;  %v232_v15 = vld [vmem:[%s341_s5] ss:$0 sm:$0xff] }
   0x7   :  { %248 = vmatmul.mubr.msk.bf16.vlgmr.msra.gmra.mrb[0].mxu0 %vm44_vm1, %v260_v7 }
  0xd9   :  { %v243_v8 = vpop.f32.mrb[0].mxu1 }
  0xda   :  { %v249_v9 = vpop.f32.mrb[0].mxu0  ;;  %v89_v11 = vpop.f32.mrb[1].mxu1 }
  0xdb   :  { %v166_v12 = vadd.f32 %v249_v9, %v243_v8  ;;  %v157_v13 = vpop.f32.mrb[1].mxu0  ;;  %v244_v14 = vpop.f32.mrb[2].mxu1 }
  0xdc   :  { %v158_v16 = vadd.f32 %v157_v13, %v89_v11  ;;  %v250_v17 = vpop.f32.mrb[2].mxu0  ;;  %v92_v18 = vpop.f32.mrb[3].mxu1 }
  0xdd   :  { %v181_v19 = vmul.f32 %v231_v10, %v166_v12  ;;  %v169_v20 = vadd.f32 %v250_v17, %v244_v14  ;;  %v160_v21 = vpop.f32.mrb[3].mxu0 }
  0xde   :  { %v179_v22 = vmul.f32 %v231_v10, %v158_v16  ;;  %v161_v23 = vadd.f32 %v160_v21, %v92_v18 }
  0xdf   :  { %v192_v24 = vadd.f32 %v232_v15, %v181_v19  ;;  %v182_v25 = vmul.f32 %v231_v10, %v169_v20 }
  0xe0   :  { %v190_v26 = vadd.f32 %v232_v15, %v179_v22  ;;  %v180_v27 = vmul.f32 %v231_v10, %v161_v23 }
  0xe1   :  { %v196_v28 = vadd.f32 3.0, %v192_v24  ;;  %v193_v29 = vadd.f32 %v232_v15, %v182_v25 }
  0xe2   :  { %v194_v30 = vadd.f32 3.0, %v190_v26  ;;  %v191_v31 = vadd.f32 %v232_v15, %v180_v27 }
  0xe3   :  { %v200_v32 = vmax.f32 %v196_v28, 0.0  ;;  %v197_v33 = vadd.f32 3.0, %v193_v29 }
  0xe4   :  { %v198_v34 = vmax.f32 %v194_v30, 0.0  ;;  %v195_v35 = vadd.f32 3.0, %v191_v31 }
  0xe5   :  { %v204_v36 = vmin.f32 %v200_v32, 6.0  ;;  %v201_v37 = vmax.f32 %v197_v33, 0.0 }
  0xe6   :  { %v202_v38 = vmin.f32 %v198_v34, 6.0  ;;  %v199_v39 = vmax.f32 %v195_v35, 0.0 }
  0xe7   :  { %v208_v40 = vmul.f32 %v204_v36, %v192_v24  ;;  %v205_v41 = vmin.f32 %v201_v37, 6.0 }
  0xe8   :  { %v206_v42 = vmul.f32 %v202_v38, %v190_v26  ;;  %v203_v43 = vmin.f32 %v199_v39, 6.0 }
  0xe9   :  { %v212_v44 = vmul.f32 0.16666667, %v208_v40  ;;  %v209_v45 = vmul.f32 %v205_v41, %v193_v29 }
  0xea   :  { %v210_v46 = vmul.f32 0.16666667, %v206_v42  ;;  %v207_v47 = vmul.f32 %v203_v43, %v191_v31 }
  0xeb   :  { %217 = vst.msk [vmem:[%s342_s6 + $0x10] sm:$0xff] %vm214_vm2, %v212_v44  ;;  %v213_v48 = vmul.f32 0.16666667, %v209_v45 }
  0xec   :  { %215 = vst.msk [vmem:[%s342_s6] sm:$0xff] %vm214_vm2, %v210_v46  ;;  %v211_v49 = vmul.f32 0.16666667, %v207_v47 }
  0xed   :  { %218 = vst.msk [vmem:[%s342_s6 + $0x18] sm:$0xff] %vm214_vm2, %v213_v48 }
  0xee   :  { %216 = vst.msk [vmem:[%s342_s6 + $0x8] sm:$0xff] %vm214_vm2, %v211_v49 }

// kernel: yolo_pafpn_forward.20
= control target key start
LH: loop header
LB: loop body
LE: loop exit
PB: predicated region body
PF: predicated region fallthrough
CT: control target
= control target key end

     0   :  { %vm40_vm0 = vcmask 130048   ;;  %vm138_vm1 = vcmask 64512   ;;  %s218_s1 = inlined_call_operand.vmem [shape: bf16[16,8], index: 1, kind: input, shape index: {}]   ;;  %s219_s0 = inlined_call_operand.vmem [shape: bf16[32,16], index: 0, kind: input, shape index: {}]   ;;  %s220_s2 = inlined_call_operand.vmem [shape: f32[1,8], index: 2, kind: input, shape index: {}]   ;;  %s221_s3 = inlined_call_operand.vmem [shape: f32[1,8], index: 3, kind: input, shape index: {}]   ;;  %s222_s4 = inlined_call_operand.vmem [shape: f32[32,8], index: 4, kind: output, shape index: {}]  }
   0x1   :  { %v163_v0 = vld [vmem:[%s218_s1] sm:$0xff]   ;;  %v165_v2 = vld [vmem:[%s219_s0 + $0x8] sm:$0xff]  }
   0x2   :  { %v164_v1 = vld [vmem:[%s219_s0] sm:$0xff]   ;;  %157 = vmatprep.subr.bf16.mxu0 %v163_v0 }
   0x3   :  { %158 = vmatpush3.bf16.msra.mxu0 %v163_v0  ;;  %159 = vmatprep.mubr.msk.bf16.mxu0 %vm40_vm0, %v164_v1  ;;  %v152_v3 = vld [vmem:[%s220_s2] ss:$0 sm:$0xff] }
   0x4   :  { %v153_v5 = vld [vmem:[%s221_s3] ss:$0 sm:$0xff] }
   0x6   :  { %160 = vmatmul.mubr.msk.bf16.vlgmr.msra.gmra.mrb[0].mxu0 %vm40_vm0, %v165_v2 }
  0xd9   :  { %v161_v4 = vpop.f32.mrb[0].mxu0 }
  0xda   :  { %v105_v6 = vmul.f32 %v161_v4, %v152_v3  ;;  %v81_v7 = vpop.f32.mrb[1].mxu0 }
  0xdb   :  { %v103_v8 = vmul.f32 %v152_v3, %v81_v7  ;;  %v162_v9 = vpop.f32.mrb[2].mxu0 }
  0xdc   :  { %v116_v10 = vadd.f32 %v153_v5, %v105_v6  ;;  %v106_v11 = vmul.f32 %v162_v9, %v152_v3  ;;  %v84_v12 = vpop.f32.mrb[3].mxu0 }
  0xdd   :  { %v114_v13 = vadd.f32 %v153_v5, %v103_v8  ;;  %v104_v14 = vmul.f32 %v152_v3, %v84_v12 }
  0xde   :  { %v120_v15 = vadd.f32 3.0, %v116_v10  ;;  %v117_v16 = vadd.f32 %v153_v5, %v106_v11 }
  0xdf   :  { %v118_v17 = vadd.f32 3.0, %v114_v13  ;;  %v115_v18 = vadd.f32 %v153_v5, %v104_v14 }
  0xe0   :  { %v124_v19 = vmax.f32 %v120_v15, 0.0  ;;  %v121_v20 = vadd.f32 3.0, %v117_v16 }
  0xe1   :  { %v122_v21 = vmax.f32 %v118_v17, 0.0  ;;  %v119_v22 = vadd.f32 3.0, %v115_v18 }
  0xe2   :  { %v128_v23 = vmin.f32 %v124_v19, 6.0  ;;  %v125_v24 = vmax.f32 %v121_v20, 0.0 }
  0xe3   :  { %v126_v25 = vmin.f32 %v122_v21, 6.0  ;;  %v123_v26 = vmax.f32 %v119_v22, 0.0 }
  0xe4   :  { %v132_v27 = vmul.f32 %v128_v23, %v116_v10  ;;  %v129_v28 = vmin.f32 %v125_v24, 6.0 }
  0xe5   :  { %v130_v29 = vmul.f32 %v126_v25, %v114_v13  ;;  %v127_v30 = vmin.f32 %v123_v26, 6.0 }
  0xe6   :  { %v136_v31 = vmul.f32 0.16666667, %v132_v27  ;;  %v133_v32 = vmul.f32 %v129_v28, %v117_v16 }
  0xe7   :  { %v134_v33 = vmul.f32 0.16666667, %v130_v29  ;;  %v131_v34 = vmul.f32 %v127_v30, %v115_v18 }
  0xe8   :  { %141 = vst.msk [vmem:[%s222_s4 + $0x10] sm:$0xff] %vm138_vm1, %v136_v31  ;;  %v137_v35 = vmul.f32 0.16666667, %v133_v32 }
  0xe9   :  { %139 = vst.msk [vmem:[%s222_s4] sm:$0xff] %vm138_vm1, %v134_v33  ;;  %v135_v36 = vmul.f32 0.16666667, %v131_v34 }
  0xea   :  { %142 = vst.msk [vmem:[%s222_s4 + $0x18] sm:$0xff] %vm138_vm1, %v137_v35 }
  0xeb   :  { %140 = vst.msk [vmem:[%s222_s4 + $0x8] sm:$0xff] %vm138_vm1, %v135_v36 }

// kernel: yolo_pafpn_forward.18
= control target key start
LH: loop header
LB: loop body
LE: loop exit
PB: predicated region body
PF: predicated region fallthrough
CT: control target
= control target key end

     0   :  { %s1313_s13 = smov 0   ;;  %s1743_s0 = inlined_call_operand.vmem [shape: bf16[2,16,8], index: 0, kind: input, shape index: {}]   ;;  %s1744_s1 = inlined_call_operand.vmem [shape: bf16[8,8], index: 1, kind: input, shape index: {}]   ;;  %s1745_s2 = inlined_call_operand.vmem [shape: f32[1,8], index: 2, kind: input, shape index: {}]   ;;  %s1746_s3 = inlined_call_operand.vmem [shape: f32[1,8], index: 3, kind: input, shape index: {}]   ;;  %s1747_s4 = inlined_call_operand.vmem [shape: f32[25,8], index: 4, kind: input, shape index: {}]   ;;  %s1748_s5 = inlined_call_operand.vmem [shape: f32[1,8], index: 5, kind: input, shape index: {}]   ;;  %s1749_s6 = inlined_call_operand.vmem [shape: f32[1,8], index: 6, kind: input, shape index: {}]   ;;  %s1750_s7 = inlined_call_operand.vmem [shape: bf16[8,8], index: 7, kind: input, shape index: {}]   ;;  %s1751_s8 = inlined_call_operand.vmem [shape: f32[1,8], index: 8, kind: input, shape index: {}]   ;;  %s1752_s9 = inlined_call_operand.vmem [shape: f32[1,8], index: 9, kind: input, shape index: {}]   ;;  %s1753_s10 = inlined_call_operand.vmem [shape: f32[2,16,8], index: 10, kind: output, shape index: {}]  }
   0x1 LB: > { %s1198_s14 = sadd.s32 4294967295, %s1254_s13   ;;  %p1202_p0 = scmp.ge.s32.totalorder %s1254_s13, 1  ;;  %s1254_s13 = sphi %s1313_s13, %s20_s13  }
   0x2   : > { %p312_p1 = scmp.lt.s32.totalorder %s1254_s13, 3 }
   0x4   : > { %p313_p2 = pnand %p1202_p0, %p312_p1 }
   0x6   : > { %316 = sbr.rel (%p313_p2) target bundleno = 565 (0x235), region = 60 }
   0xd   : > { %v363_v0 = vld [vmem:[%s1744_s1] sm:$0xf]  ;;  %vm373_vm0 = vcmask 1043456   ;;  %p350_p3 = scmp.lt.s32.totalorder %s1198_s14, 1  ;;  %v1256_v1 = vmov 0.0   ;;  %vm1257_vm1 = vmmov 0   ;;  %v476_v6 = vlaneseq }
   0xe   : > { %1225 = vmatprep.subr.bf16.mxu0 %v1256_v1  ;;  %v375_v2 = vsel %vm373_vm0, %v363_v0, 0  ;;  %1227 = vmatprep.mubr.msk.bf16.mxu0 %vm1257_vm1, %v1256_v1  ;;  %vm369_vm2 = vcmask 64512   ;;  %v1065_v4 = vld [vmem:[%s1750_s7] sm:$0xf]  ;;  %v1398_v43 = vld [vmem:[%s1747_s4 + $0x8] sm:$0xff]  ;;  %vm455_vm3 = vcmask 60416  }
   0xf   : > { %1226 = vmatpush3.bf16.msra.mxu0 %v375_v2  ;;  %s1769_s14 = smov (!%p350_p3, %s1198_s14), 1  ;;  %446 = vst.msk [vmem:[#allocation2] sm:$0xff] %vm369_vm2, %v1256_v1  ;;  %447 = vst.msk [vmem:[#allocation2 + $0x8] sm:$0xff] %vm369_vm2, %v1256_v1  ;;  %1231 = vmatprep.subr.bf16.mxu1 %v1256_v1  ;;  %v1070_v5 = vsel %vm373_vm0, %v1065_v4, 0  ;;  %v477_v7 = vshrl.u32 %v476_v6, 7  ;;  %v472_v9 = vld [vmem:[%s1747_s4] sm:$0xff] }
  0x10   : > { %452 = vst.msk [vmem:[#allocation2 + $0x30] sm:$0xff] %vm369_vm2, %v1256_v1  ;;  %453 = vst.msk [vmem:[#allocation2 + $0x38] sm:$0xff] %vm369_vm2, %v1256_v1  ;;  %1233 = vmatprep.mubr.msk.bf16.mxu1 %vm1257_vm1, %v1256_v1  ;;  %s1219_s17 = sshll.u32 %s1769_s14, 3  ;;  %1232 = vmatpush3.bf16.msra.mxu1 %v1070_v5  ;;  %v1209_v51 = vld [vmem:[%s1745_s2] ss:$0 sm:$0xff]  ;;  %vm458_vm4 = vcmask 64516  }
  0x11   : > { %448 = vst.msk [vmem:[#allocation2 + $0x10] sm:$0xff] %vm369_vm2, %v1256_v1  ;;  %449 = vst.msk [vmem:[#allocation2 + $0x18] sm:$0xff] %vm369_vm2, %v1256_v1  ;;  %s354_s20 = scalar_lea.vmem %s1743_s0, %s1219_s17  ;;  %v1344_v8 = vsub.s32 1, %v477_v7  ;;  %v1349_v10 = vsub.s32 0, %v477_v7  ;;  %v1354_v12 = vsub.s32 2, %v477_v7  ;;  %v1363_v17 = vsub.s32 3, %v477_v7 }
  0x12   : > { %450 = vst.msk [vmem:[#allocation2 + $0x20] sm:$0xff] %vm369_vm2, %v1256_v1  ;;  %451 = vst.msk [vmem:[#allocation2 + $0x28] sm:$0xff] %vm369_vm2, %v1256_v1  ;;  %v1247_v3 = vld [vmem:[%s354_s20] sm:$0xff]   ;;  %v1370_v22 = vsub.s32 4, %v477_v7  ;;  %v1377_v30 = vsub.s32 5, %v477_v7  ;;  %v1379_v31 = vsub.s32 6, %v477_v7 }
  0x13   : > { %1228 = vmatmul.mubr.msk.bf16.vlgmr.msra.gmra.mrb[0].mxu0 %vm369_vm2, %v1247_v3  ;;  %v1352_v11 = vrot.slane %v472_v9, %v1344_v8  ;;  %v1357_v14 = vrot.slane %v472_v9, %v1349_v10  ;;  %v1361_v16 = vrot.slane %v472_v9, %v1354_v12  ;;  %v1368_v21 = vrot.slane %v472_v9, %v1363_v17  ;;  %v1210_v56 = vld [vmem:[%s1746_s3] ss:$0 sm:$0xff]  ;;  %s1220_s25 = sshll.u32 %s1769_s14, 4 }
  0x14   : > { %v1374_v26 = vrot.slane %v472_v9, %v1370_v22  ;;  %v1382_v35 = vrot.slane %v472_v9, %v1377_v30  ;;  %v1385_v36 = vrot.slane %v472_v9, %v1379_v31  ;;  %v1387_v37 = vsub.s32 7, %v477_v7  ;;  %s359_s28 = scalar_lea.vmem %s1753_s10, %s1220_s25 }
  0x15   : > { %v1405_v50 = vrot.slane %v1398_v43, %v1349_v10  ;;  %v1417_v60 = vrot.slane %v1398_v43, %v1344_v8 }
  0x16   : > { %v464_v13 = vld [vmem:[#allocation2] sm:$0xff]  ;;  %v465_v32 = vld [vmem:[#allocation2 + $0x8] sm:$0xff]  ;;  %v1393_v42 = vrot.slane %v472_v9, %v1387_v37 }
  0x17   : > { %v492_v15 = vmul.f32 %v1352_v11, %v464_v13  ;;  %v480_v18 = vmul.f32 %v1357_v14, %v464_v13  ;;  %v516_v20 = vmul.f32 %v1361_v16, %v464_v13  ;;  %v540_v25 = vmul.f32 %v1368_v21, %v464_v13 }
  0x18   : > { %v564_v29 = vmul.f32 %v1374_v26, %v464_v13  ;;  %v493_v38 = vmul.f32 %v1352_v11, %v465_v32  ;;  %v588_v40 = vmul.f32 %v1382_v35, %v465_v32  ;;  %v600_v41 = vmul.f32 %v1385_v36, %v465_v32 }
  0x19   : > { %v500_v19 = vrot.slane %v492_v15, 1  ;;  %v524_v24 = vrot.slane %v516_v20, 2  ;;  %v548_v28 = vrot.slane %v540_v25, 3  ;;  %v481_v44 = vmul.f32 %v1357_v14, %v465_v32 }
  0x1a   : > { %v572_v34 = vrot.slane %v564_v29, 4  ;;  %v501_v45 = vrot.slane %v493_v38, 1  ;;  %v517_v46 = vmul.f32 %v1361_v16, %v465_v32  ;;  %v608_v48 = vrot.slane %v600_v41, 1  ;;  %v474_v29 = vld [vmem:[%s1747_s4 + $0x10] sm:$0xff] }
  0x1b   : > { %v508_v23 = vadd.f32 %v500_v19, %v480_v18  ;;  %v624_v49 = vmul.f32 %v1393_v42, %v465_v32  ;;  %v541_v54 = vmul.f32 %v1368_v21, %v465_v32  ;;  %v648_v59 = vmul.f32 %v1405_v50, %v465_v32  ;;  %v470_v38 = vld [vmem:[#allocation2 + $0x30] sm:$0xff] }
  0x1c   : > { %v509_v52 = vadd.f32 %v501_v45, %v481_v44  ;;  %v525_v53 = vrot.slane %v517_v46, 2  ;;  %v565_v5 = vmul.f32 %v1374_v26, %v465_v32  ;;  %v672_v9 = vmul.f32 %v1417_v60, %v465_v32 }
  0x1d   : > { %v532_v27 = vadd.f32 %v524_v24, %v508_v23  ;;  %v632_v58 = vrot.slane %v624_v49, 2  ;;  %v549_v4 = vrot.slane %v541_v54, 3  ;;  %v656_v7 = vrot.slane %v648_v59, 3  ;;  %v471_v49 = vld [vmem:[#allocation2 + $0x38] sm:$0xff] }
  0x1e   : > { %v533_v0 = vadd.f32 %v525_v53, %v509_v52  ;;  %v573_v23 = vrot.slane %v565_v5, 4  ;;  %v680_v25 = vrot.slane %v672_v9, 4  ;;  %v1434_v41 = vrot.slane %v1398_v43, %v1363_v17 }
  0x1f   : > { %v556_v33 = vadd.f32 %v548_v28, %v532_v27  ;;  %v1437_v44 = vrot.slane %v474_v29, %v1349_v10  ;;  %v1454_v10 = vrot.slane %v474_v29, %v1354_v12  ;;  %v1457_v53 = vrot.slane %v474_v29, %v1363_v17 }
  0x20   : > { %v557_v20 = vadd.f32 %v549_v4, %v533_v0 }
  0x21   : > { %v580_v39 = vadd.f32 %v572_v34, %v556_v33  ;;  %v1451_v52 = vmul.f32 %v1437_v44, %v470_v38  ;;  %v1475_v17 = vmul.f32 %v1454_v10, %v470_v38 }
  0x22   : > { %v1424_v32 = vadd.f32 %v573_v23, %v557_v20 }
  0x23   : > { %v592_v47 = vadd.f32 %v588_v40, %v580_v39  ;;  %v1430_v40 = vrot.slane %v1398_v43, %v1354_v12  ;;  %v1472_v12 = vrot.slane %v1398_v43, %v1387_v37 }
  0x25   : > { %v616_v57 = vadd.f32 %v608_v48, %v592_v47  ;;  %v1441_v47 = vrot.slane %v1398_v43, %v1370_v22  ;;  %v1444_v48 = vrot.slane %v474_v29, %v1344_v8  ;;  %v1519_v4 = vmul.f32 %v1472_v12, %v470_v38 }
  0x27   : > { %v640_v6 = vadd.f32 %v632_v58, %v616_v57  ;;  %v1462_v54 = vmul.f32 %v1444_v48, %v470_v38  ;;  %v1478_v57 = vmul.f32 %v1457_v53, %v470_v38  ;;  %v1481_v58 = vrot.slane %v474_v29, %v1387_v37 }
  0x29   : > { %v664_v24 = vadd.f32 %v656_v7, %v640_v6  ;;  %v1506_v0 = vmul.f32 %v1481_v58, %v470_v38 }
  0x2b   : > { %v1426_v39 = vadd.f32 %v680_v25, %v664_v24 }
  0xe6   : > { %v411_v55 = vpop.f32.mrb[0].mxu0 }
  0xe7   : > { %v425_v61 = vmul.f32 %v1209_v51, %v411_v55  ;;  %v1229_v62 = vpop.f32.mrb[1].mxu0  ;;  %v1465_v55 = vrot.slane %v474_v29, %v1377_v30 }
  0xe8   : > { %v414_v63 = vpop.f32.mrb[2].mxu0 }
  0xe9   : > { %v434_v1 = vadd.f32 %v1210_v56, %v425_v61  ;;  %v426_v2 = vmul.f32 %v1209_v51, %v414_v63  ;;  %v1230_v3 = vpop.f32.mrb[3].mxu0  ;;  %v1448_v51 = vrot.slane %v1398_v43, %v1377_v30  ;;  %v1488_v30 = vld [vmem:[%s1747_s4 + $0x18] ss:$0 sm:$0xff]  ;;  %v1491_v59 = vmul.f32 %v1465_v55, %v470_v38 }
  0xea   : > { %v1494_v61 = vmul.f32 %v1465_v55, %v471_v49  ;;  %v1503_v63 = vrot.slane %v474_v29, %v1370_v22  ;;  %v1516_v3 = vrot.slane %v1398_v43, %v1379_v31  ;;  %v1542_v25 = vmul.f32 %v1488_v30, %v470_v38 }
  0xeb   : > { %v436_v13 = vadd.f32 3.0, %v434_v1  ;;  %v435_v15 = vadd.f32 %v1210_v56, %v426_v2  ;;  %v1468_v56 = vrot.slane %v474_v29, %v1379_v31  ;;  %v1512_v2 = vmul.f32 %v1488_v30, %v471_v49 }
  0xec   : > { %v1526_v9 = vmul.f32 %v1503_v63, %v470_v38 }
  0xed   : > { %v438_v18 = vmax.f32 %v436_v13, 0.0  ;;  %v437_v19 = vadd.f32 3.0, %v435_v15  ;;  %v1497_v62 = vmul.f32 %v1468_v56, %v470_v38  ;;  %v1500_v37 = vmul.f32 %v1468_v56, %v471_v49  ;;  %1755 = vst [vmem:[#allocation4_spill] sm:$0xff] %v1512_v2 }
  0xee   : > { %v1529_v13 = vmul.f32 %v1503_v63, %v471_v49 }
  0xef   : > { %v440_v27 = vmin.f32 %v438_v18, 6.0  ;;  %v439_v28 = vmax.f32 %v437_v19, 0.0 }
  0xf1   : > { %v442_v33 = vmul.f32 %v440_v27, %v434_v1  ;;  %v441_v34 = vmin.f32 %v439_v28, 6.0  ;;  %v1509_v1 = vmul.f32 %v1481_v58, %v471_v49 }
  0xf3   : > { %v444_v45 = vmul.f32 0.16666667, %v442_v33  ;;  %v443_v46 = vmul.f32 %v441_v34, %v435_v15 }
  0xf5   : > { %456 = vst.msk [vmem:[#allocation2 + $0x12] sm:$0xf] %vm455_vm3, %v444_v45  ;;  %v445_v8 = vmul.f32 0.16666667, %v443_v46 }
  0xf6   : > { %459 = vst.msk [vmem:[#allocation2 + $0x16] sm:$0xf0] %vm458_vm4, %v444_v45 }
  0xf7   : > { %461 = vst.msk [vmem:[#allocation2 + $0x22] sm:$0xf] %vm455_vm3, %v445_v8 }
  0xf8   : > { %463 = vst.msk [vmem:[#allocation2 + $0x26] sm:$0xf0] %vm458_vm4, %v445_v8 }
  0xfc   : > { %v1535_v19 = vld [vmem:[#allocation2 + $0x10] sm:$0xff] }
  0xfd   : > { %v1537_v20 = vld [vmem:[#allocation2 + $0x18] sm:$0xff]  ;;  %v482_v28 = vmul.f32 %v1357_v14, %v1535_v19  ;;  %v494_v33 = vmul.f32 %v1352_v11, %v1535_v19  ;;  %v518_v45 = vmul.f32 %v1361_v16, %v1535_v19  ;;  %v542_v46 = vmul.f32 %v1368_v21, %v1535_v19 }
  0xfe   : > { %v483_v29 = vmul.f32 %v1357_v14, %v1537_v20  ;;  %v495_v34 = vmul.f32 %v1352_v11, %v1537_v20  ;;  %v519_v38 = vmul.f32 %v1361_v16, %v1537_v20  ;;  %v543_v49 = vmul.f32 %v1368_v21, %v1537_v20  ;;  %v1561_v8 = vld [vmem:[#allocation2 + $0x20] sm:$0xff] }
  0xff   : > { %v502_v14 = vrot.slane %v494_v33, 1  ;;  %v566_v23 = vmul.f32 %v1374_v26, %v1535_v19  ;;  %v567_v11 = vmul.f32 %v1374_v26, %v1537_v20  ;;  %v526_v24 = vrot.slane %v518_v45, 2 }
 0x100   : > { %v503_v27 = vrot.slane %v495_v34, 1  ;;  %v527_v15 = vrot.slane %v519_v38, 2  ;;  %v550_v18 = vrot.slane %v542_v46, 3  ;;  %v551_v16 = vrot.slane %v543_v49, 3 }
 0x101   : > { %v510_v31 = vadd.f32 %v502_v14, %v482_v28  ;;  %v574_v7 = vrot.slane %v566_v23, 4  ;;  %v575_v6 = vrot.slane %v567_v11, 4  ;;  %v589_v21 = vmul.f32 %v1382_v35, %v1535_v19 }
 0x102   : > { %v511_v43 = vadd.f32 %v503_v27, %v483_v29  ;;  %v590_v33 = vmul.f32 %v1382_v35, %v1537_v20  ;;  %v591_v34 = vmul.f32 %v1382_v35, %v1561_v8  ;;  %v601_v26 = vmul.f32 %v1385_v36, %v1535_v19 }
 0x103   : > { %v534_v45 = vadd.f32 %v526_v24, %v510_v31  ;;  %v602_v28 = vmul.f32 %v1385_v36, %v1537_v20  ;;  %v603_v23 = vmul.f32 %v1385_v36, %v1561_v8  ;;  %v593_v27 = vadd.f32 %v589_v21, %v1424_v32 }
 0x104   : > { %v535_v38 = vadd.f32 %v527_v15, %v511_v43  ;;  %v609_v29 = vrot.slane %v601_v26, 1  ;;  %v625_v46 = vmul.f32 %v1393_v42, %v1535_v19  ;;  %v626_v35 = vmul.f32 %v1393_v42, %v1537_v20 }
 0x105   : > { %v558_v49 = vadd.f32 %v550_v18, %v534_v45  ;;  %v610_v11 = vrot.slane %v602_v28, 1  ;;  %v611_v31 = vrot.slane %v603_v23, 1  ;;  %v627_v15 = vmul.f32 %v1393_v42, %v1561_v8 }
 0x106   : > { %v559_v14 = vadd.f32 %v551_v16, %v535_v38  ;;  %v617_v43 = vadd.f32 %v609_v29, %v593_v27  ;;  %v633_v24 = vrot.slane %v625_v46, 2  ;;  %v634_v22 = vrot.slane %v626_v35, 2 }
 0x107   : > { %v582_v36 = vadd.f32 %v574_v7, %v558_v49  ;;  %v649_v32 = vmul.f32 %v1405_v50, %v1535_v19  ;;  %v650_v21 = vmul.f32 %v1405_v50, %v1537_v20  ;;  %v635_v26 = vrot.slane %v627_v15, 2  ;;  %v1594_v7 = vld [vmem:[#allocation2 + $0x28] sm:$0xff] }
 0x108   : > { %v583_v5 = vadd.f32 %v575_v6, %v559_v14  ;;  %v641_v2 = vadd.f32 %v633_v24, %v617_v43  ;;  %v651_v18 = vmul.f32 %v1405_v50, %v1561_v8  ;;  %v673_v16 = vmul.f32 %v1417_v60, %v1535_v19 }
 0x109   : > { %v594_v45 = vadd.f32 %v590_v33, %v582_v36  ;;  %v657_v38 = vrot.slane %v649_v32, 3  ;;  %v658_v28 = vrot.slane %v650_v21, 3  ;;  %v674_v23 = vmul.f32 %v1417_v60, %v1537_v20 }
 0x10a   : > { %v595_v42 = vadd.f32 %v591_v34, %v583_v5  ;;  %v659_v6 = vrot.slane %v651_v18, 3  ;;  %v675_v27 = vmul.f32 %v1417_v60, %v1561_v8  ;;  %v681_v29 = vrot.slane %v673_v16, 4 }
 0x10b   : > { %v618_v46 = vadd.f32 %v610_v11, %v594_v45  ;;  %v665_v50 = vadd.f32 %v657_v38, %v641_v2  ;;  %v696_v49 = vmul.f32 %v1430_v40, %v1535_v19  ;;  %v682_v33 = vrot.slane %v674_v23, 4 }
 0x10c   : > { %v619_v35 = vadd.f32 %v611_v31, %v595_v42  ;;  %v683_v5 = vrot.slane %v675_v27, 4  ;;  %v697_v34 = vmul.f32 %v1430_v40, %v1537_v20  ;;  %v698_v14 = vmul.f32 %v1430_v40, %v1561_v8 }
 0x10d   : > { %v642_v43 = vadd.f32 %v634_v22, %v618_v46  ;;  %v689_v24 = vadd.f32 %v681_v29, %v665_v50  ;;  %v699_v60 = vmul.f32 %v1430_v40, %v1594_v7  ;;  %v700_v11 = vadd.f32 %v696_v49, %v1426_v39 }
 0x10e   : > { %v643_v15 = vadd.f32 %v635_v26, %v619_v35  ;;  %v708_v2 = vmul.f32 %v1434_v41, %v1535_v19  ;;  %v709_v31 = vmul.f32 %v1434_v41, %v1537_v20  ;;  %v710_v36 = vmul.f32 %v1434_v41, %v1561_v8 }
 0x10f   : > { %v666_v32 = vadd.f32 %v658_v28, %v642_v43  ;;  %v701_v18 = vadd.f32 %v697_v34, %v689_v24  ;;  %v711_v22 = vmul.f32 %v1434_v41, %v1594_v7  ;;  %v732_v39 = vmul.f32 %v1441_v47, %v1535_v19 }
 0x110   : > { %v667_v21 = vadd.f32 %v659_v6, %v643_v15  ;;  %v716_v26 = vrot.slane %v708_v2, 1  ;;  %v717_v16 = vrot.slane %v709_v31, 1  ;;  %v718_v40 = vrot.slane %v710_v36, 1 }
 0x111   : > { %v690_v45 = vadd.f32 %v682_v33, %v666_v32  ;;  %v719_v38 = vrot.slane %v711_v22, 1  ;;  %v733_v23 = vmul.f32 %v1441_v47, %v1537_v20  ;;  %v734_v28 = vmul.f32 %v1441_v47, %v1561_v8 }
 0x112   : > { %v691_v42 = vadd.f32 %v683_v5, %v667_v21  ;;  %v724_v27 = vadd.f32 %v716_v26, %v700_v11  ;;  %v725_v29 = vadd.f32 %v717_v16, %v701_v18  ;;  %v735_v41 = vmul.f32 %v1441_v47, %v1594_v7 }
 0x113   : > { %v702_v6 = vadd.f32 %v698_v14, %v690_v45  ;;  %v740_v35 = vrot.slane %v732_v39, 2  ;;  %v741_v50 = vrot.slane %v733_v23, 2  ;;  %v742_v49 = vrot.slane %v734_v28, 2 }
 0x114   : > { %v703_v46 = vadd.f32 %v699_v60, %v691_v42  ;;  %v743_v34 = vrot.slane %v735_v41, 2  ;;  %v756_v33 = vmul.f32 %v1448_v51, %v1535_v19  ;;  %v757_v5 = vmul.f32 %v1448_v51, %v1537_v20 }
 0x115   : > { %v726_v43 = vadd.f32 %v718_v40, %v702_v6  ;;  %v748_v24 = vadd.f32 %v740_v35, %v724_v27  ;;  %v749_v11 = vadd.f32 %v741_v50, %v725_v29  ;;  %v758_v2 = vmul.f32 %v1448_v51, %v1561_v8 }
 0x116   : > { %v727_v15 = vadd.f32 %v719_v38, %v703_v46  ;;  %v759_v47 = vmul.f32 %v1448_v51, %v1594_v7  ;;  %v764_v14 = vrot.slane %v756_v33, 3  ;;  %v765_v60 = vrot.slane %v757_v5, 3 }
 0x117   : > { %v750_v31 = vadd.f32 %v742_v49, %v726_v43  ;;  %v780_v32 = vmul.f32 %v1516_v3, %v1535_v19  ;;  %v781_v21 = vmul.f32 %v1516_v3, %v1537_v20  ;;  %v766_v18 = vrot.slane %v758_v2, 3 }
 0x118   : > { %v751_v36 = vadd.f32 %v743_v34, %v727_v15  ;;  %v767_v22 = vrot.slane %v759_v47, 3  ;;  %v772_v26 = vadd.f32 %v764_v14, %v748_v24  ;;  %v773_v16 = vadd.f32 %v765_v60, %v749_v11 }
 0x119   : > { %v782_v40 = vmul.f32 %v1516_v3, %v1561_v8  ;;  %v783_v51 = vmul.f32 %v1516_v3, %v1594_v7  ;;  %v788_v39 = vrot.slane %v780_v32, 4  ;;  %v789_v45 = vrot.slane %v781_v21, 4 }
 0x11a   : > { %v774_v42 = vadd.f32 %v766_v18, %v750_v31  ;;  %v775_v38 = vadd.f32 %v767_v22, %v751_v36  ;;  %v804_v19 = vmul.f32 %v1472_v12, %v1537_v20  ;;  %v805_v23 = vmul.f32 %v1472_v12, %v1561_v8 }
 0x11b   : > { %v790_v27 = vrot.slane %v782_v40, 4  ;;  %v791_v29 = vrot.slane %v783_v51, 4  ;;  %v796_v28 = vadd.f32 %v788_v39, %v772_v26  ;;  %v797_v41 = vadd.f32 %v789_v45, %v773_v16 }
 0x11c   : > { %v806_v6 = vmul.f32 %v1472_v12, %v1594_v7  ;;  %v816_v3 = vmul.f32 %v1437_v44, %v1537_v20  ;;  %v817_v46 = vmul.f32 %v1437_v44, %v1561_v8  ;;  %v818_v35 = vmul.f32 %v1437_v44, %v1594_v7 }
 0x11d   : > { %v798_v50 = vadd.f32 %v790_v27, %v774_v42  ;;  %v799_v49 = vadd.f32 %v791_v29, %v775_v38  ;;  %v808_v34 = vadd.f32 %v804_v19, %v796_v28  ;;  %v809_v33 = vadd.f32 %v805_v23, %v797_v41 }
 0x11e   : > { %v824_v5 = vrot.slane %v816_v3, 1  ;;  %v825_v43 = vrot.slane %v817_v46, 1  ;;  %v826_v15 = vrot.slane %v818_v35, 1  ;;  %v840_v24 = vmul.f32 %v1444_v48, %v1537_v20 }
 0x11f   : > { %v810_v12 = vadd.f32 %v806_v6, %v798_v50  ;;  %v811_v11 = vadd.f32 %v1519_v4, %v799_v49  ;;  %v841_v2 = vmul.f32 %v1444_v48, %v1561_v8  ;;  %v842_v47 = vmul.f32 %v1444_v48, %v1594_v7 }
 0x120   : > { %v832_v44 = vadd.f32 %v824_v5, %v808_v34  ;;  %v833_v14 = vadd.f32 %v825_v43, %v809_v33  ;;  %v848_v60 = vrot.slane %v840_v24, 2  ;;  %v864_v31 = vmul.f32 %v1454_v10, %v1537_v20 }
 0x121   : > { %v834_v36 = vadd.f32 %v826_v15, %v810_v12  ;;  %v1756_v32 = vrot.slane %v1451_v52, 1  ;;  %v849_v18 = vrot.slane %v841_v2, 2  ;;  %v850_v22 = vrot.slane %v842_v47, 2 }
 0x122   : > { %v856_v26 = vadd.f32 %v848_v60, %v832_v44  ;;  %v865_v4 = vmul.f32 %v1454_v10, %v1561_v8  ;;  %v866_v16 = vmul.f32 %v1454_v10, %v1594_v7  ;;  %v872_v48 = vrot.slane %v864_v31, 3 }
 0x123   : > { %v835_v21 = vadd.f32 %v1756_v32, %v811_v11  ;;  %v857_v40 = vadd.f32 %v849_v18, %v833_v14  ;;  %v858_v51 = vadd.f32 %v850_v22, %v834_v36  ;;  %v1757_v39 = vrot.slane %v1462_v54, 2 }
 0x124   : > { %v888_v42 = vmul.f32 %v1457_v53, %v1537_v20  ;;  %v873_v52 = vrot.slane %v865_v4, 3  ;;  %v874_v38 = vrot.slane %v866_v16, 3  ;;  %v880_v19 = vadd.f32 %v872_v48, %v856_v26 }
 0x125   : > { %v859_v45 = vadd.f32 %v1757_v39, %v835_v21  ;;  %v889_v23 = vmul.f32 %v1457_v53, %v1561_v8  ;;  %v1758_v27 = vrot.slane %v1475_v17, 3  ;;  %v890_v10 = vmul.f32 %v1457_v53, %v1594_v7 }
 0x126   : > { %v896_v28 = vrot.slane %v888_v42, 4  ;;  %v912_v54 = vmul.f32 %v1503_v63, %v1561_v8  ;;  %v881_v41 = vadd.f32 %v873_v52, %v857_v40  ;;  %v882_v6 = vadd.f32 %v874_v38, %v858_v51  ;;  %v1766_v52 = vld [vmem:[#allocation4_spill] sm:$0xff] }
 0x127   : > { %v883_v29 = vadd.f32 %v1758_v27, %v859_v45  ;;  %v897_v3 = vrot.slane %v889_v23, 4  ;;  %v913_v20 = vmul.f32 %v1503_v63, %v1594_v7  ;;  %v898_v46 = vrot.slane %v890_v10, 4 }
 0x128   : > { %v904_v35 = vadd.f32 %v896_v28, %v880_v19  ;;  %v1759_v50 = vrot.slane %v1478_v57, 4  ;;  %v924_v17 = vmul.f32 %v1465_v55, %v1561_v8  ;;  %v925_v53 = vmul.f32 %v1465_v55, %v1594_v7 }
 0x129   : > { %v905_v34 = vadd.f32 %v897_v3, %v881_v41  ;;  %v948_v33 = vmul.f32 %v1468_v56, %v1561_v8  ;;  %v949_v5 = vmul.f32 %v1468_v56, %v1594_v7  ;;  %v906_v43 = vadd.f32 %v898_v46, %v882_v6 }
 0x12a   : > { %v907_v49 = vadd.f32 %v1759_v50, %v883_v29  ;;  %v916_v63 = vadd.f32 %v912_v54, %v904_v35  ;;  %v932_v24 = vrot.slane %v924_v17, 1  ;;  %v933_v12 = vrot.slane %v925_v53, 1 }
 0x12b   : > { %v917_v57 = vadd.f32 %v913_v20, %v905_v34  ;;  %v956_v11 = vrot.slane %v948_v33, 2  ;;  %v957_v2 = vrot.slane %v949_v5, 2  ;;  %v918_v47 = vadd.f32 %v1526_v9, %v906_v43 }
 0x12c   : > { %v919_v15 = vadd.f32 %v1529_v13, %v907_v49  ;;  %v940_v44 = vadd.f32 %v932_v24, %v916_v63  ;;  %v1760_v55 = vrot.slane %v1494_v61, 1  ;;  %v972_v60 = vmul.f32 %v1481_v58, %v1561_v8 }
 0x12d   : > { %v941_v31 = vadd.f32 %v933_v12, %v917_v57  ;;  %v973_v56 = vmul.f32 %v1481_v58, %v1594_v7  ;;  %v996_v13 = vmul.f32 %v1488_v30, %v1561_v8  ;;  %v997_v36 = vmul.f32 %v1488_v30, %v1594_v7 }
 0x12e   : > { %v943_v14 = vadd.f32 %v1760_v55, %v919_v15  ;;  %v1761_v32 = vrot.slane %v1491_v59, 1  ;;  %v964_v21 = vadd.f32 %v956_v11, %v940_v44  ;;  %v1762_v61 = vrot.slane %v1500_v37, 2  ;;  %v1212_v37 = vld [vmem:[%s1748_s5] ss:$0 sm:$0xff] }
 0x12f   : > { %v980_v22 = vrot.slane %v972_v60, 3  ;;  %v965_v26 = vadd.f32 %v957_v2, %v941_v31  ;;  %v981_v4 = vrot.slane %v973_v56, 3  ;;  %v1006_v16 = vrot.slane %v1542_v25, 4  ;;  %v1216_v31 = vld [vmem:[%s1752_s9] ss:$0 sm:$0xff] }
 0x130   : > { %v942_v9 = vadd.f32 %v1761_v32, %v918_v47  ;;  %v967_v18 = vadd.f32 %v1762_v61, %v943_v14  ;;  %v1763_v58 = vrot.slane %v1497_v62, 2  ;;  %v1764_v8 = vrot.slane %v1509_v1, 3  ;;  %v1213_v1 = vld [vmem:[%s1749_s6] ss:$0 sm:$0xff] }
 0x131   : > { %v988_v40 = vadd.f32 %v980_v22, %v964_v21  ;;  %v1004_v30 = vrot.slane %v996_v13, 4  ;;  %v989_v7 = vadd.f32 %v981_v4, %v965_v26  ;;  %v1005_v59 = vrot.slane %v997_v36, 4  ;;  %v1215_v14 = vld [vmem:[%s1751_s8] ss:$0 sm:$0xff] }
 0x132   : > { %v966_v48 = vadd.f32 %v1763_v58, %v942_v9  ;;  %v991_v51 = vadd.f32 %v1764_v8, %v967_v18  ;;  %v1765_v39 = vrot.slane %v1506_v0, 3  ;;  %v1767_v25 = vrot.slane %v1766_v52, 4 }
 0x133   : > { %v1012_v42 = vadd.f32 %v1004_v30, %v988_v40  ;;  %v1013_v62 = vadd.f32 %v1005_v59, %v989_v7 }
 0x134   : > { %v990_v45 = vadd.f32 %v1765_v39, %v966_v48  ;;  %v1015_v38 = vadd.f32 %v1767_v25, %v991_v51 }
 0x135   : > { %v1023_v23 = vmul.f32 %v1212_v37, %v1012_v42  ;;  %v1024_v29 = vmul.f32 %v1212_v37, %v1013_v62 }
 0x136   : > { %v1014_v19 = vadd.f32 %v1006_v16, %v990_v45  ;;  %v1026_v27 = vmul.f32 %v1212_v37, %v1015_v38 }
 0x137   : > { %v1034_v28 = vadd.f32 %v1213_v1, %v1023_v23  ;;  %v1035_v41 = vadd.f32 %v1213_v1, %v1024_v29 }
 0x138   : > { %v1025_v10 = vmul.f32 %v1212_v37, %v1014_v19  ;;  %v1037_v54 = vadd.f32 %v1213_v1, %v1026_v27 }
 0x139   : > { %v1038_v0 = vadd.f32 3.0, %v1034_v28  ;;  %v1039_v20 = vadd.f32 3.0, %v1035_v41 }
 0x13a   : > { %v1036_v6 = vadd.f32 %v1213_v1, %v1025_v10  ;;  %v1041_v3 = vadd.f32 3.0, %v1037_v54 }
 0x13b   : > { %v1042_v35 = vmax.f32 %v1038_v0, 0.0  ;;  %v1043_v49 = vmax.f32 %v1039_v20, 0.0 }
 0x13c   : > { %v1040_v46 = vadd.f32 3.0, %v1036_v6  ;;  %v1045_v50 = vmax.f32 %v1041_v3, 0.0 }
 0x13d   : > { %v1046_v34 = vmin.f32 %v1042_v35, 6.0  ;;  %v1047_v33 = vmin.f32 %v1043_v49, 6.0 }
 0x13e   : > { %v1044_v17 = vmax.f32 %v1040_v46, 0.0  ;;  %v1049_v53 = vmin.f32 %v1045_v50, 6.0 }
 0x13f   : > { %v1050_v43 = vmul.f32 %v1046_v34, %v1034_v28  ;;  %v1051_v15 = vmul.f32 %v1047_v33, %v1035_v41 }
 0x140   : > { %v1048_v5 = vmin.f32 %v1044_v17, 6.0  ;;  %v1053_v63 = vmul.f32 %v1049_v53, %v1037_v54 }
 0x141   : > { %v1054_v57 = vmul.f32 0.16666667, %v1050_v43  ;;  %v1055_v11 = vmul.f32 0.16666667, %v1051_v15 }
 0x142   : > { %v1052_v24 = vmul.f32 %v1048_v5, %v1036_v6  ;;  %v1057_v12 = vmul.f32 0.16666667, %v1053_v63 }
 0x143   : > { %1058 = vst.msk [vmem:[#allocation3] sm:$0xf] %vm455_vm3, %v1054_v57  ;;  %1059 = vst.msk [vmem:[#allocation3 + $0x4] sm:$0xf] %vm455_vm3, %v1055_v11 }
 0x144   : > { %v1056_v2 = vmul.f32 0.16666667, %v1052_v24  ;;  %1061 = vst.msk [vmem:[#allocation3 + $0xc] sm:$0xf] %vm455_vm3, %v1057_v12 }
 0x146   : > { %1060 = vst.msk [vmem:[#allocation3 + $0x8] sm:$0xf] %vm455_vm3, %v1056_v2 }
 0x14a   : > { %v1062_v47 = vld [vmem:[#allocation3] sm:$0xff] }
 0x14d   : > { %v1063_v44 = vld [vmem:[#allocation3 + $0x8] sm:$0xff] }
 0x14e   : > { %v1064_v55 = vpack.c.bf16 %v1063_v44, %v1062_v47 }
 0x150   : > { %1234 = vmatmul.mubr.msk.bf16.vlgmr.msra.gmra.mrb[0].mxu1 %vm369_vm2, %v1064_v55 }
 0x223   : > { %v1106_v60 = vpop.f32.mrb[0].mxu1 }
 0x224   : > { %v1120_v56 = vmul.f32 %v1215_v14, %v1106_v60  ;;  %v1235_v13 = vpop.f32.mrb[1].mxu1 }
 0x225   : > { %v1109_v36 = vpop.f32.mrb[2].mxu1 }
 0x226   : > { %v1129_v32 = vadd.f32 %v1216_v31, %v1120_v56  ;;  %v1121_v9 = vmul.f32 %v1215_v14, %v1109_v36  ;;  %v1236_v21 = vpop.f32.mrb[3].mxu1 }
 0x228   : > { %v1131_v61 = vadd.f32 3.0, %v1129_v32  ;;  %v1130_v18 = vadd.f32 %v1216_v31, %v1121_v9 }
 0x22a   : > { %v1133_v22 = vmax.f32 %v1131_v61, 0.0  ;;  %v1132_v26 = vadd.f32 3.0, %v1130_v18 }
 0x22c   : > { %v1135_v4 = vmin.f32 %v1133_v22, 6.0  ;;  %v1134_v16 = vmax.f32 %v1132_v26, 0.0 }
 0x22e   : > { %v1137_v58 = vmul.f32 %v1135_v4, %v1129_v32  ;;  %v1136_v48 = vmin.f32 %v1134_v16, 6.0 }
 0x230   : > { %v1139_v40 = vmul.f32 0.16666667, %v1137_v58  ;;  %v1138_v8 = vmul.f32 %v1136_v48, %v1130_v18 }
 0x232   : > { %1141 = vst.msk [vmem:[%s359_s28] sm:$0xff] %vm369_vm2, %v1139_v40  ;;  %v1140_v51 = vmul.f32 0.16666667, %v1138_v8 }
 0x234   : > { %1142 = vst.msk [vmem:[%s359_s28 + $0x8] sm:$0xff] %vm369_vm2, %v1140_v51 }
 0x235 PF: > { %s20_s13 = sadd.s32 1, %s1254_s13  }
 0x236   : > { %p17_p4 = scmp.ge.s32.totalorder %s20_s13, 4  }
 0x238   :  { %19 = sbr.rel (!%p17_p4) target bundleno = 1 (0x1), region = 94 }

// kernel: yolo_pafpn_forward.21
= control target key start
LH: loop header
LB: loop body
LE: loop exit
PB: predicated region body
PF: predicated region fallthrough
CT: control target
= control target key end

     0   :  { %vm123_vm0 = vcmask 1043456   ;;  %vm98_vm1 = vcmask 64512   ;;  %s867_s3 = inlined_call_operand.vmem [shape: bf16[8,8], index: 3, kind: input, shape index: {}]   ;;  %s868_s2 = inlined_call_operand.vmem [shape: bf16[8,8], index: 2, kind: input, shape index: {}]   ;;  %s869_s1 = inlined_call_operand.vmem [shape: bf16[128,8], index: 1, kind: input, shape index: {}]   ;;  %s870_s0 = inlined_call_operand.vmem [shape: bf16[128,8], index: 0, kind: input, shape index: {}]   ;;  %s871_s4 = inlined_call_operand.vmem [shape: f32[1,8], index: 4, kind: input, shape index: {}]   ;;  %s872_s5 = inlined_call_operand.vmem [shape: f32[1,8], index: 5, kind: input, shape index: {}]   ;;  %s873_s6 = inlined_call_operand.vmem [shape: f32[128,8], index: 6, kind: output, shape index: {}]  }
   0x1   :  { %v57_v0 = vld [vmem:[%s867_s3] sm:$0xf]  ;;  %v642_v6 = vld [vmem:[%s869_s1 + $0x8] sm:$0xff]   ;;  %v644_v8 = vld [vmem:[%s869_s1 + $0x10] sm:$0xff]  }
   0x2   :  { %v40_v1 = vld [vmem:[%s868_s2] sm:$0xf]  ;;  %638 = vmatprep.subr.msk.bf16.mxu1 %vm123_vm0, %v57_v0  ;;  %v125_v2 = vsel %vm123_vm0, %v57_v0, 0  ;;  %v643_v7 = vld [vmem:[%s870_s0 + $0x8] sm:$0xff]   ;;  %v645_v9 = vld [vmem:[%s870_s0 + $0x10] sm:$0xff]  }
   0x3   :  { %639 = vmatprep.subr.msk.bf16.mxu0 %vm123_vm0, %v40_v1  ;;  %v289_v3 = vsel %vm123_vm0, %v40_v1, 0  ;;  %v640_v4 = vld [vmem:[%s869_s1] sm:$0xff]   ;;  %587 = vmatpush3.bf16.msra.mxu1 %v125_v2  ;;  %v646_v10 = vld [vmem:[%s869_s1 + $0x18] sm:$0xff]   ;;  %v650_v14 = vld [vmem:[%s869_s1 + $0x28] sm:$0xff]  }
   0x4   :  { %v641_v5 = vld [vmem:[%s870_s0] sm:$0xff]   ;;  %605 = vmatpush3.bf16.msra.mxu0 %v289_v3  ;;  %588 = vmatprep.mubr.msk.bf16.mxu1 %vm98_vm1, %v640_v4  ;;  %v647_v11 = vld [vmem:[%s870_s0 + $0x18] sm:$0xff]   ;;  %v651_v15 = vld [vmem:[%s870_s0 + $0x28] sm:$0xff]  }
   0x5   :  { %606 = vmatprep.mubr.msk.bf16.mxu0 %vm98_vm1, %v641_v5  ;;  %v648_v12 = vld [vmem:[%s869_s1 + $0x20] sm:$0xff]   ;;  %v652_v16 = vld [vmem:[%s869_s1 + $0x30] sm:$0xff]   ;;  %v654_v18 = vld [vmem:[%s869_s1 + $0x38] sm:$0xff]  }
   0x6   :  { %589 = vmatmul.mubr.msk.bf16.vlgmr.msra.gmra.mrb[0].mxu1 %vm98_vm1, %v642_v6  ;;  %v649_v13 = vld [vmem:[%s870_s0 + $0x20] sm:$0xff]   ;;  %v653_v17 = vld [vmem:[%s870_s0 + $0x30] sm:$0xff]   ;;  %v655_v19 = vld [vmem:[%s870_s0 + $0x38] sm:$0xff]  }
   0x7   :  { %607 = vmatmul.mubr.msk.bf16.vlgmr.msra.gmra.mrb[0].mxu0 %vm98_vm1, %v643_v7  ;;  %592 = vmatprep.mubr.msk.bf16.mxu1 %vm98_vm1, %v644_v8  ;;  %v764_v22 = vld [vmem:[%s871_s4] ss:$0 sm:$0xff] }
   0x8   :  { %610 = vmatprep.mubr.msk.bf16.mxu0 %vm98_vm1, %v645_v9  ;;  %v769_v27 = vld [vmem:[%s872_s5] ss:$0 sm:$0xff] }
   0xe   :  { %593 = vmatmul.mubr.msk.bf16.gmra.mrb[4].mxu1 %vm98_vm1, %v646_v10 }
   0xf   :  { %611 = vmatmul.mubr.msk.bf16.gmra.mrb[4].mxu0 %vm98_vm1, %v647_v11  ;;  %596 = vmatprep.mubr.msk.bf16.mxu1 %vm98_vm1, %v648_v12 }
  0x10   :  { %614 = vmatprep.mubr.msk.bf16.mxu0 %vm98_vm1, %v649_v13 }
  0x16   :  { %597 = vmatmul.mubr.msk.bf16.gmra.mrb[8].mxu1 %vm98_vm1, %v650_v14 }
  0x17   :  { %615 = vmatmul.mubr.msk.bf16.gmra.mrb[8].mxu0 %vm98_vm1, %v651_v15  ;;  %600 = vmatprep.mubr.msk.bf16.mxu1 %vm98_vm1, %v652_v16 }
  0x18   :  { %618 = vmatprep.mubr.msk.bf16.mxu0 %vm98_vm1, %v653_v17 }
  0x1e   :  { %601 = vmatmul.mubr.msk.bf16.gmra.mrb[12].mxu1 %vm98_vm1, %v654_v18 }
  0x1f   :  { %619 = vmatmul.mubr.msk.bf16.gmra.mrb[12].mxu0 %vm98_vm1, %v655_v19 }
  0xd9   :  { %v590_v20 = vpop.f32.mrb[0].mxu1 }
  0xda   :  { %v608_v21 = vpop.f32.mrb[0].mxu0  ;;  %v161_v23 = vpop.f32.mrb[1].mxu1 }
  0xdb   :  { %v334_v24 = vadd.f32 %v608_v21, %v590_v20  ;;  %v325_v25 = vpop.f32.mrb[1].mxu0  ;;  %v591_v26 = vpop.f32.mrb[2].mxu1 }
  0xdc   :  { %v326_v28 = vadd.f32 %v325_v25, %v161_v23  ;;  %v609_v29 = vpop.f32.mrb[2].mxu0  ;;  %v164_v30 = vpop.f32.mrb[3].mxu1 }
  0xdd   :  { %v397_v31 = vmul.f32 %v764_v22, %v334_v24  ;;  %v337_v32 = vadd.f32 %v609_v29, %v591_v26  ;;  %v328_v33 = vpop.f32.mrb[3].mxu0 }
  0xde   :  { %v395_v34 = vmul.f32 %v764_v22, %v326_v28  ;;  %v329_v35 = vadd.f32 %v328_v33, %v164_v30 }
  0xdf   :  { %v420_v36 = vadd.f32 %v769_v27, %v397_v31  ;;  %v398_v37 = vmul.f32 %v764_v22, %v337_v32 }
  0xe0   :  { %v418_v38 = vadd.f32 %v769_v27, %v395_v34  ;;  %v396_v39 = vmul.f32 %v764_v22, %v329_v35 }
  0xe1   :  { %v436_v40 = vadd.f32 3.0, %v420_v36  ;;  %v421_v41 = vadd.f32 %v769_v27, %v398_v37  ;;  %v594_v42 = vpop.f32.mrb[4].mxu1 }
  0xe2   :  { %v434_v43 = vadd.f32 3.0, %v418_v38  ;;  %v419_v44 = vadd.f32 %v769_v27, %v396_v39  ;;  %v612_v45 = vpop.f32.mrb[4].mxu0  ;;  %v177_v46 = vpop.f32.mrb[5].mxu1 }
  0xe3   :  { %v452_v47 = vmax.f32 %v436_v40, 0.0  ;;  %v437_v48 = vadd.f32 3.0, %v421_v41  ;;  %v350_v49 = vadd.f32 %v612_v45, %v594_v42  ;;  %v341_v50 = vpop.f32.mrb[5].mxu0  ;;  %v595_v51 = vpop.f32.mrb[6].mxu1 }
  0xe4   :  { %v450_v52 = vmax.f32 %v434_v43, 0.0  ;;  %v435_v53 = vadd.f32 3.0, %v419_v44  ;;  %v342_v54 = vadd.f32 %v341_v50, %v177_v46  ;;  %v613_v55 = vpop.f32.mrb[6].mxu0  ;;  %v180_v56 = vpop.f32.mrb[7].mxu1 }
  0xe5   :  { %v468_v57 = vmin.f32 %v452_v47, 6.0  ;;  %v453_v58 = vmax.f32 %v437_v48, 0.0  ;;  %v401_v59 = vmul.f32 %v764_v22, %v350_v49  ;;  %v353_v60 = vadd.f32 %v613_v55, %v595_v51  ;;  %v344_v61 = vpop.f32.mrb[7].mxu0 }
  0xe6   :  { %v466_v62 = vmin.f32 %v450_v52, 6.0  ;;  %v451_v63 = vmax.f32 %v435_v53, 0.0  ;;  %v399_v0 = vmul.f32 %v764_v22, %v342_v54  ;;  %v345_v1 = vadd.f32 %v344_v61, %v180_v56 }
  0xe7   :  { %v484_v2 = vmul.f32 %v468_v57, %v420_v36  ;;  %v469_v3 = vmin.f32 %v453_v58, 6.0  ;;  %v424_v4 = vadd.f32 %v769_v27, %v401_v59  ;;  %v402_v5 = vmul.f32 %v764_v22, %v353_v60 }
  0xe8   :  { %v482_v6 = vmul.f32 %v466_v62, %v418_v38  ;;  %v467_v7 = vmin.f32 %v451_v63, 6.0  ;;  %v422_v8 = vadd.f32 %v769_v27, %v399_v0  ;;  %v400_v9 = vmul.f32 %v764_v22, %v345_v1 }
  0xe9   :  { %v500_v10 = vmul.f32 0.16666667, %v484_v2  ;;  %v485_v11 = vmul.f32 %v469_v3, %v421_v41  ;;  %v440_v12 = vadd.f32 3.0, %v424_v4  ;;  %v425_v13 = vadd.f32 %v769_v27, %v402_v5  ;;  %v598_v14 = vpop.f32.mrb[8].mxu1 }
  0xea   :  { %v498_v15 = vmul.f32 0.16666667, %v482_v6  ;;  %v483_v16 = vmul.f32 %v467_v7, %v419_v44  ;;  %v438_v17 = vadd.f32 3.0, %v422_v8  ;;  %v423_v18 = vadd.f32 %v769_v27, %v400_v9  ;;  %v616_v19 = vpop.f32.mrb[8].mxu0  ;;  %v193_v20 = vpop.f32.mrb[9].mxu1 }
  0xeb   :  { %516 = vst.msk [vmem:[%s873_s6 + $0x10] sm:$0xff] %vm98_vm1, %v500_v10  ;;  %v501_v21 = vmul.f32 0.16666667, %v485_v11  ;;  %v456_v23 = vmax.f32 %v440_v12, 0.0  ;;  %v441_v24 = vadd.f32 3.0, %v425_v13  ;;  %v366_v25 = vadd.f32 %v616_v19, %v598_v14  ;;  %v357_v26 = vpop.f32.mrb[9].mxu0 }
  0xec   :  { %v599_v28 = vpop.f32.mrb[10].mxu1  ;;  %514 = vst.msk [vmem:[%s873_s6] sm:$0xff] %vm98_vm1, %v498_v15  ;;  %v499_v29 = vmul.f32 0.16666667, %v483_v16  ;;  %v454_v30 = vmax.f32 %v438_v17, 0.0  ;;  %v439_v31 = vadd.f32 3.0, %v423_v18  ;;  %v358_v32 = vadd.f32 %v357_v26, %v193_v20 }
  0xed   :  { %v617_v33 = vpop.f32.mrb[10].mxu0  ;;  %v196_v34 = vpop.f32.mrb[11].mxu1  ;;  %517 = vst.msk [vmem:[%s873_s6 + $0x18] sm:$0xff] %vm98_vm1, %v501_v21  ;;  %v472_v35 = vmin.f32 %v456_v23, 6.0  ;;  %v457_v36 = vmax.f32 %v441_v24, 0.0  ;;  %v405_v37 = vmul.f32 %v764_v22, %v366_v25 }
  0xee   :  { %v369_v38 = vadd.f32 %v617_v33, %v599_v28  ;;  %v360_v39 = vpop.f32.mrb[11].mxu0  ;;  %515 = vst.msk [vmem:[%s873_s6 + $0x8] sm:$0xff] %vm98_vm1, %v499_v29  ;;  %v470_v40 = vmin.f32 %v454_v30, 6.0  ;;  %v455_v41 = vmax.f32 %v439_v31, 0.0  ;;  %v403_v42 = vmul.f32 %v764_v22, %v358_v32 }
  0xef   :  { %v361_v43 = vadd.f32 %v360_v39, %v196_v34  ;;  %v488_v44 = vmul.f32 %v472_v35, %v424_v4  ;;  %v473_v45 = vmin.f32 %v457_v36, 6.0  ;;  %v428_v46 = vadd.f32 %v769_v27, %v405_v37 }
  0xf0   :  { %v406_v47 = vmul.f32 %v764_v22, %v369_v38  ;;  %v486_v48 = vmul.f32 %v470_v40, %v422_v8  ;;  %v471_v49 = vmin.f32 %v455_v41, 6.0  ;;  %v426_v50 = vadd.f32 %v769_v27, %v403_v42 }
  0xf1   :  { %v404_v51 = vmul.f32 %v764_v22, %v361_v43  ;;  %v504_v52 = vmul.f32 0.16666667, %v488_v44  ;;  %v489_v53 = vmul.f32 %v473_v45, %v425_v13  ;;  %v444_v54 = vadd.f32 3.0, %v428_v46  ;;  %v602_v56 = vpop.f32.mrb[12].mxu1 }
  0xf2   :  { %v429_v55 = vadd.f32 %v769_v27, %v406_v47  ;;  %v502_v57 = vmul.f32 0.16666667, %v486_v48  ;;  %v487_v58 = vmul.f32 %v471_v49, %v423_v18  ;;  %v442_v59 = vadd.f32 3.0, %v426_v50  ;;  %v620_v61 = vpop.f32.mrb[12].mxu0  ;;  %v209_v62 = vpop.f32.mrb[13].mxu1 }
  0xf3   :  { %v427_v60 = vadd.f32 %v769_v27, %v404_v51  ;;  %520 = vst.msk [vmem:[%s873_s6 + $0x30] sm:$0xff] %vm98_vm1, %v504_v52  ;;  %v505_v63 = vmul.f32 0.16666667, %v489_v53  ;;  %v460_v0 = vmax.f32 %v444_v54, 0.0  ;;  %v382_v2 = vadd.f32 %v620_v61, %v602_v56  ;;  %v373_v3 = vpop.f32.mrb[13].mxu0  ;;  %v603_v4 = vpop.f32.mrb[14].mxu1 }
  0xf4   :  { %v445_v1 = vadd.f32 3.0, %v429_v55  ;;  %518 = vst.msk [vmem:[%s873_s6 + $0x20] sm:$0xff] %vm98_vm1, %v502_v57  ;;  %v503_v5 = vmul.f32 0.16666667, %v487_v58  ;;  %v458_v6 = vmax.f32 %v442_v59, 0.0  ;;  %v374_v8 = vadd.f32 %v373_v3, %v209_v62  ;;  %v621_v9 = vpop.f32.mrb[14].mxu0 }
  0xf5   :  { %v443_v7 = vadd.f32 3.0, %v427_v60  ;;  %v212_v10 = vpop.f32.mrb[15].mxu1  ;;  %521 = vst.msk [vmem:[%s873_s6 + $0x38] sm:$0xff] %vm98_vm1, %v505_v63  ;;  %v476_v11 = vmin.f32 %v460_v0, 6.0  ;;  %v409_v13 = vmul.f32 %v764_v22, %v382_v2  ;;  %v385_v14 = vadd.f32 %v621_v9, %v603_v4  ;;  %v376_v15 = vpop.f32.mrb[15].mxu0 }
  0xf6   :  { %v461_v12 = vmax.f32 %v445_v1, 0.0  ;;  %519 = vst.msk [vmem:[%s873_s6 + $0x28] sm:$0xff] %vm98_vm1, %v503_v5  ;;  %v474_v16 = vmin.f32 %v458_v6, 6.0  ;;  %v407_v18 = vmul.f32 %v764_v22, %v374_v8  ;;  %v377_v19 = vadd.f32 %v376_v15, %v212_v10 }
  0xf7   :  { %v459_v17 = vmax.f32 %v443_v7, 0.0  ;;  %v492_v20 = vmul.f32 %v476_v11, %v428_v46  ;;  %v432_v23 = vadd.f32 %v769_v27, %v409_v13  ;;  %v410_v24 = vmul.f32 %v764_v22, %v385_v14 }
  0xf8   :  { %v477_v21 = vmin.f32 %v461_v12, 6.0  ;;  %v490_v25 = vmul.f32 %v474_v16, %v426_v50  ;;  %v430_v28 = vadd.f32 %v769_v27, %v407_v18  ;;  %v408_v29 = vmul.f32 %v764_v22, %v377_v19 }
  0xf9   :  { %v475_v26 = vmin.f32 %v459_v17, 6.0  ;;  %v508_v30 = vmul.f32 0.16666667, %v492_v20  ;;  %v448_v32 = vadd.f32 3.0, %v432_v23  ;;  %v433_v33 = vadd.f32 %v769_v27, %v410_v24 }
  0xfa   :  { %v493_v31 = vmul.f32 %v477_v21, %v429_v55  ;;  %v506_v34 = vmul.f32 0.16666667, %v490_v25  ;;  %v446_v36 = vadd.f32 3.0, %v430_v28  ;;  %v431_v37 = vadd.f32 %v769_v27, %v408_v29 }
  0xfb   :  { %v491_v35 = vmul.f32 %v475_v26, %v427_v60  ;;  %524 = vst.msk [vmem:[%s873_s6 + $0x50] sm:$0xff] %vm98_vm1, %v508_v30  ;;  %v464_v39 = vmax.f32 %v448_v32, 0.0  ;;  %v449_v40 = vadd.f32 3.0, %v433_v33 }
  0xfc   :  { %v509_v38 = vmul.f32 0.16666667, %v493_v31  ;;  %522 = vst.msk [vmem:[%s873_s6 + $0x40] sm:$0xff] %vm98_vm1, %v506_v34  ;;  %v462_v41 = vmax.f32 %v446_v36, 0.0  ;;  %v447_v42 = vadd.f32 3.0, %v431_v37 }
  0xfd   :  { %v507_v22 = vmul.f32 0.16666667, %v491_v35  ;;  %v480_v27 = vmin.f32 %v464_v39, 6.0  ;;  %v465_v43 = vmax.f32 %v449_v40, 0.0 }
  0xfe   :  { %525 = vst.msk [vmem:[%s873_s6 + $0x58] sm:$0xff] %vm98_vm1, %v509_v38  ;;  %v478_v44 = vmin.f32 %v462_v41, 6.0  ;;  %v463_v45 = vmax.f32 %v447_v42, 0.0 }
  0xff   :  { %523 = vst.msk [vmem:[%s873_s6 + $0x48] sm:$0xff] %vm98_vm1, %v507_v22  ;;  %v496_v46 = vmul.f32 %v480_v27, %v432_v23  ;;  %v481_v47 = vmin.f32 %v465_v43, 6.0 }
 0x100   :  { %v494_v48 = vmul.f32 %v478_v44, %v430_v28  ;;  %v479_v49 = vmin.f32 %v463_v45, 6.0 }
 0x101   :  { %v512_v50 = vmul.f32 0.16666667, %v496_v46  ;;  %v497_v51 = vmul.f32 %v481_v47, %v433_v33 }
 0x102   :  { %v510_v52 = vmul.f32 0.16666667, %v494_v48  ;;  %v495_v53 = vmul.f32 %v479_v49, %v431_v37 }
 0x103   :  { %528 = vst.msk [vmem:[%s873_s6 + $0x70] sm:$0xff] %vm98_vm1, %v512_v50  ;;  %v513_v54 = vmul.f32 0.16666667, %v497_v51 }
 0x104   :  { %526 = vst.msk [vmem:[%s873_s6 + $0x60] sm:$0xff] %vm98_vm1, %v510_v52  ;;  %v511_v55 = vmul.f32 0.16666667, %v495_v53 }
 0x105   :  { %529 = vst.msk [vmem:[%s873_s6 + $0x78] sm:$0xff] %vm98_vm1, %v513_v54 }
 0x106   :  { %527 = vst.msk [vmem:[%s873_s6 + $0x68] sm:$0xff] %vm98_vm1, %v511_v55 }

// kernel: yolo_pafpn_forward.23
= control target key start
LH: loop header
LB: loop body
LE: loop exit
PB: predicated region body
PF: predicated region fallthrough
CT: control target
= control target key end

     0   :  { %vm123_vm0 = vcmask 1041408   ;;  %vm98_vm1 = vcmask 31744   ;;  %vm514_vm2 = vcmask 64512   ;;  %s868_s3 = inlined_call_operand.vmem [shape: bf16[4,8], index: 3, kind: input, shape index: {}]   ;;  %s869_s2 = inlined_call_operand.vmem [shape: bf16[4,8], index: 2, kind: input, shape index: {}]   ;;  %s870_s1 = inlined_call_operand.vmem [shape: bf16[128,4], index: 1, kind: input, shape index: {}]   ;;  %s871_s0 = inlined_call_operand.vmem [shape: bf16[128,4], index: 0, kind: input, shape index: {}]   ;;  %s872_s4 = inlined_call_operand.vmem [shape: f32[1,8], index: 4, kind: input, shape index: {}]   ;;  %s873_s5 = inlined_call_operand.vmem [shape: f32[1,8], index: 5, kind: input, shape index: {}]   ;;  %s874_s6 = inlined_call_operand.vmem [shape: f32[128,8], index: 6, kind: output, shape index: {}]  }
   0x1   :  { %v57_v0 = vld [vmem:[%s868_s3] sm:$0x3]  ;;  %v643_v6 = vld [vmem:[%s870_s1 + $0x8] sm:$0xff]   ;;  %v645_v8 = vld [vmem:[%s870_s1 + $0x10] sm:$0xff]  }
   0x2   :  { %v40_v1 = vld [vmem:[%s869_s2] sm:$0x3]  ;;  %639 = vmatprep.subr.msk.bf16.mxu1 %vm123_vm0, %v57_v0  ;;  %v125_v2 = vsel %vm123_vm0, %v57_v0, 0  ;;  %v644_v7 = vld [vmem:[%s871_s0 + $0x8] sm:$0xff]   ;;  %v646_v9 = vld [vmem:[%s871_s0 + $0x10] sm:$0xff]  }
   0x3   :  { %640 = vmatprep.subr.msk.bf16.mxu0 %vm123_vm0, %v40_v1  ;;  %v289_v3 = vsel %vm123_vm0, %v40_v1, 0  ;;  %v641_v4 = vld [vmem:[%s870_s1] sm:$0xff]   ;;  %588 = vmatpush3.bf16.msra.mxu1 %v125_v2  ;;  %v647_v10 = vld [vmem:[%s870_s1 + $0x18] sm:$0xff]   ;;  %v651_v14 = vld [vmem:[%s870_s1 + $0x28] sm:$0xff]  }
   0x4   :  { %v642_v5 = vld [vmem:[%s871_s0] sm:$0xff]   ;;  %606 = vmatpush3.bf16.msra.mxu0 %v289_v3  ;;  %589 = vmatprep.mubr.msk.bf16.mxu1 %vm98_vm1, %v641_v4  ;;  %v648_v11 = vld [vmem:[%s871_s0 + $0x18] sm:$0xff]   ;;  %v652_v15 = vld [vmem:[%s871_s0 + $0x28] sm:$0xff]  }
   0x5   :  { %607 = vmatprep.mubr.msk.bf16.mxu0 %vm98_vm1, %v642_v5  ;;  %v649_v12 = vld [vmem:[%s870_s1 + $0x20] sm:$0xff]   ;;  %v653_v16 = vld [vmem:[%s870_s1 + $0x30] sm:$0xff]   ;;  %v655_v18 = vld [vmem:[%s870_s1 + $0x38] sm:$0xff]  }
   0x6   :  { %590 = vmatmul.mubr.msk.bf16.vlgmr.msra.gmra.mrb[0].mxu1 %vm98_vm1, %v643_v6  ;;  %v650_v13 = vld [vmem:[%s871_s0 + $0x20] sm:$0xff]   ;;  %v654_v17 = vld [vmem:[%s871_s0 + $0x30] sm:$0xff]   ;;  %v656_v19 = vld [vmem:[%s871_s0 + $0x38] sm:$0xff]  }
   0x7   :  { %608 = vmatmul.mubr.msk.bf16.vlgmr.msra.gmra.mrb[0].mxu0 %vm98_vm1, %v644_v7  ;;  %593 = vmatprep.mubr.msk.bf16.mxu1 %vm98_vm1, %v645_v8  ;;  %v765_v22 = vld [vmem:[%s872_s4] ss:$0 sm:$0xff] }
   0x8   :  { %611 = vmatprep.mubr.msk.bf16.mxu0 %vm98_vm1, %v646_v9  ;;  %v770_v27 = vld [vmem:[%s873_s5] ss:$0 sm:$0xff] }
   0xe   :  { %594 = vmatmul.mubr.msk.bf16.gmra.mrb[4].mxu1 %vm98_vm1, %v647_v10 }
   0xf   :  { %612 = vmatmul.mubr.msk.bf16.gmra.mrb[4].mxu0 %vm98_vm1, %v648_v11  ;;  %597 = vmatprep.mubr.msk.bf16.mxu1 %vm98_vm1, %v649_v12 }
  0x10   :  { %615 = vmatprep.mubr.msk.bf16.mxu0 %vm98_vm1, %v650_v13 }
  0x16   :  { %598 = vmatmul.mubr.msk.bf16.gmra.mrb[8].mxu1 %vm98_vm1, %v651_v14 }
  0x17   :  { %616 = vmatmul.mubr.msk.bf16.gmra.mrb[8].mxu0 %vm98_vm1, %v652_v15  ;;  %601 = vmatprep.mubr.msk.bf16.mxu1 %vm98_vm1, %v653_v16 }
  0x18   :  { %619 = vmatprep.mubr.msk.bf16.mxu0 %vm98_vm1, %v654_v17 }
  0x1e   :  { %602 = vmatmul.mubr.msk.bf16.gmra.mrb[12].mxu1 %vm98_vm1, %v655_v18 }
  0x1f   :  { %620 = vmatmul.mubr.msk.bf16.gmra.mrb[12].mxu0 %vm98_vm1, %v656_v19 }
  0xd9   :  { %v591_v20 = vpop.f32.mrb[0].mxu1 }
  0xda   :  { %v609_v21 = vpop.f32.mrb[0].mxu0  ;;  %v161_v23 = vpop.f32.mrb[1].mxu1 }
  0xdb   :  { %v334_v24 = vadd.f32 %v609_v21, %v591_v20  ;;  %v325_v25 = vpop.f32.mrb[1].mxu0  ;;  %v592_v26 = vpop.f32.mrb[2].mxu1 }
  0xdc   :  { %v326_v28 = vadd.f32 %v325_v25, %v161_v23  ;;  %v610_v29 = vpop.f32.mrb[2].mxu0  ;;  %v164_v30 = vpop.f32.mrb[3].mxu1 }
  0xdd   :  { %v397_v31 = vmul.f32 %v765_v22, %v334_v24  ;;  %v337_v32 = vadd.f32 %v610_v29, %v592_v26  ;;  %v328_v33 = vpop.f32.mrb[3].mxu0 }
  0xde   :  { %v395_v34 = vmul.f32 %v765_v22, %v326_v28  ;;  %v329_v35 = vadd.f32 %v328_v33, %v164_v30 }
  0xdf   :  { %v420_v36 = vadd.f32 %v770_v27, %v397_v31  ;;  %v398_v37 = vmul.f32 %v765_v22, %v337_v32 }
  0xe0   :  { %v418_v38 = vadd.f32 %v770_v27, %v395_v34  ;;  %v396_v39 = vmul.f32 %v765_v22, %v329_v35 }
  0xe1   :  { %v436_v40 = vadd.f32 3.0, %v420_v36  ;;  %v421_v41 = vadd.f32 %v770_v27, %v398_v37  ;;  %v595_v42 = vpop.f32.mrb[4].mxu1 }
  0xe2   :  { %v434_v43 = vadd.f32 3.0, %v418_v38  ;;  %v419_v44 = vadd.f32 %v770_v27, %v396_v39  ;;  %v613_v45 = vpop.f32.mrb[4].mxu0  ;;  %v177_v46 = vpop.f32.mrb[5].mxu1 }
  0xe3   :  { %v452_v47 = vmax.f32 %v436_v40, 0.0  ;;  %v437_v48 = vadd.f32 3.0, %v421_v41  ;;  %v350_v49 = vadd.f32 %v613_v45, %v595_v42  ;;  %v341_v50 = vpop.f32.mrb[5].mxu0  ;;  %v596_v51 = vpop.f32.mrb[6].mxu1 }
  0xe4   :  { %v450_v52 = vmax.f32 %v434_v43, 0.0  ;;  %v435_v53 = vadd.f32 3.0, %v419_v44  ;;  %v342_v54 = vadd.f32 %v341_v50, %v177_v46  ;;  %v614_v55 = vpop.f32.mrb[6].mxu0  ;;  %v180_v56 = vpop.f32.mrb[7].mxu1 }
  0xe5   :  { %v468_v57 = vmin.f32 %v452_v47, 6.0  ;;  %v453_v58 = vmax.f32 %v437_v48, 0.0  ;;  %v401_v59 = vmul.f32 %v765_v22, %v350_v49  ;;  %v353_v60 = vadd.f32 %v614_v55, %v596_v51  ;;  %v344_v61 = vpop.f32.mrb[7].mxu0 }
  0xe6   :  { %v466_v62 = vmin.f32 %v450_v52, 6.0  ;;  %v451_v63 = vmax.f32 %v435_v53, 0.0  ;;  %v399_v0 = vmul.f32 %v765_v22, %v342_v54  ;;  %v345_v1 = vadd.f32 %v344_v61, %v180_v56 }
  0xe7   :  { %v484_v2 = vmul.f32 %v468_v57, %v420_v36  ;;  %v469_v3 = vmin.f32 %v453_v58, 6.0  ;;  %v424_v4 = vadd.f32 %v770_v27, %v401_v59  ;;  %v402_v5 = vmul.f32 %v765_v22, %v353_v60 }
  0xe8   :  { %v482_v6 = vmul.f32 %v466_v62, %v418_v38  ;;  %v467_v7 = vmin.f32 %v451_v63, 6.0  ;;  %v422_v8 = vadd.f32 %v770_v27, %v399_v0  ;;  %v400_v9 = vmul.f32 %v765_v22, %v345_v1 }
  0xe9   :  { %v500_v10 = vmul.f32 0.16666667, %v484_v2  ;;  %v485_v11 = vmul.f32 %v469_v3, %v421_v41  ;;  %v440_v12 = vadd.f32 3.0, %v424_v4  ;;  %v425_v13 = vadd.f32 %v770_v27, %v402_v5  ;;  %v599_v14 = vpop.f32.mrb[8].mxu1 }
  0xea   :  { %v498_v15 = vmul.f32 0.16666667, %v482_v6  ;;  %v483_v16 = vmul.f32 %v467_v7, %v419_v44  ;;  %v438_v17 = vadd.f32 3.0, %v422_v8  ;;  %v423_v18 = vadd.f32 %v770_v27, %v400_v9  ;;  %v617_v19 = vpop.f32.mrb[8].mxu0  ;;  %v193_v20 = vpop.f32.mrb[9].mxu1 }
  0xeb   :  { %517 = vst.msk [vmem:[%s874_s6 + $0x10] sm:$0xff] %vm514_vm2, %v500_v10  ;;  %v501_v21 = vmul.f32 0.16666667, %v485_v11  ;;  %v456_v23 = vmax.f32 %v440_v12, 0.0  ;;  %v441_v24 = vadd.f32 3.0, %v425_v13  ;;  %v366_v25 = vadd.f32 %v617_v19, %v599_v14  ;;  %v357_v26 = vpop.f32.mrb[9].mxu0 }
  0xec   :  { %v600_v28 = vpop.f32.mrb[10].mxu1  ;;  %515 = vst.msk [vmem:[%s874_s6] sm:$0xff] %vm514_vm2, %v498_v15  ;;  %v499_v29 = vmul.f32 0.16666667, %v483_v16  ;;  %v454_v30 = vmax.f32 %v438_v17, 0.0  ;;  %v439_v31 = vadd.f32 3.0, %v423_v18  ;;  %v358_v32 = vadd.f32 %v357_v26, %v193_v20 }
  0xed   :  { %v618_v33 = vpop.f32.mrb[10].mxu0  ;;  %v196_v34 = vpop.f32.mrb[11].mxu1  ;;  %518 = vst.msk [vmem:[%s874_s6 + $0x18] sm:$0xff] %vm514_vm2, %v501_v21  ;;  %v472_v35 = vmin.f32 %v456_v23, 6.0  ;;  %v457_v36 = vmax.f32 %v441_v24, 0.0  ;;  %v405_v37 = vmul.f32 %v765_v22, %v366_v25 }
  0xee   :  { %v369_v38 = vadd.f32 %v618_v33, %v600_v28  ;;  %v360_v39 = vpop.f32.mrb[11].mxu0  ;;  %516 = vst.msk [vmem:[%s874_s6 + $0x8] sm:$0xff] %vm514_vm2, %v499_v29  ;;  %v470_v40 = vmin.f32 %v454_v30, 6.0  ;;  %v455_v41 = vmax.f32 %v439_v31, 0.0  ;;  %v403_v42 = vmul.f32 %v765_v22, %v358_v32 }
  0xef   :  { %v361_v43 = vadd.f32 %v360_v39, %v196_v34  ;;  %v488_v44 = vmul.f32 %v472_v35, %v424_v4  ;;  %v473_v45 = vmin.f32 %v457_v36, 6.0  ;;  %v428_v46 = vadd.f32 %v770_v27, %v405_v37 }
  0xf0   :  { %v406_v47 = vmul.f32 %v765_v22, %v369_v38  ;;  %v486_v48 = vmul.f32 %v470_v40, %v422_v8  ;;  %v471_v49 = vmin.f32 %v455_v41, 6.0  ;;  %v426_v50 = vadd.f32 %v770_v27, %v403_v42 }
  0xf1   :  { %v404_v51 = vmul.f32 %v765_v22, %v361_v43  ;;  %v504_v52 = vmul.f32 0.16666667, %v488_v44  ;;  %v489_v53 = vmul.f32 %v473_v45, %v425_v13  ;;  %v444_v54 = vadd.f32 3.0, %v428_v46  ;;  %v603_v56 = vpop.f32.mrb[12].mxu1 }
  0xf2   :  { %v429_v55 = vadd.f32 %v770_v27, %v406_v47  ;;  %v502_v57 = vmul.f32 0.16666667, %v486_v48  ;;  %v487_v58 = vmul.f32 %v471_v49, %v423_v18  ;;  %v442_v59 = vadd.f32 3.0, %v426_v50  ;;  %v621_v61 = vpop.f32.mrb[12].mxu0  ;;  %v209_v62 = vpop.f32.mrb[13].mxu1 }
  0xf3   :  { %v427_v60 = vadd.f32 %v770_v27, %v404_v51  ;;  %521 = vst.msk [vmem:[%s874_s6 + $0x30] sm:$0xff] %vm514_vm2, %v504_v52  ;;  %v505_v63 = vmul.f32 0.16666667, %v489_v53  ;;  %v460_v0 = vmax.f32 %v444_v54, 0.0  ;;  %v382_v2 = vadd.f32 %v621_v61, %v603_v56  ;;  %v373_v3 = vpop.f32.mrb[13].mxu0  ;;  %v604_v4 = vpop.f32.mrb[14].mxu1 }
  0xf4   :  { %v445_v1 = vadd.f32 3.0, %v429_v55  ;;  %519 = vst.msk [vmem:[%s874_s6 + $0x20] sm:$0xff] %vm514_vm2, %v502_v57  ;;  %v503_v5 = vmul.f32 0.16666667, %v487_v58  ;;  %v458_v6 = vmax.f32 %v442_v59, 0.0  ;;  %v374_v8 = vadd.f32 %v373_v3, %v209_v62  ;;  %v622_v9 = vpop.f32.mrb[14].mxu0 }
  0xf5   :  { %v443_v7 = vadd.f32 3.0, %v427_v60  ;;  %v212_v10 = vpop.f32.mrb[15].mxu1  ;;  %522 = vst.msk [vmem:[%s874_s6 + $0x38] sm:$0xff] %vm514_vm2, %v505_v63  ;;  %v476_v11 = vmin.f32 %v460_v0, 6.0  ;;  %v409_v13 = vmul.f32 %v765_v22, %v382_v2  ;;  %v385_v14 = vadd.f32 %v622_v9, %v604_v4  ;;  %v376_v15 = vpop.f32.mrb[15].mxu0 }
  0xf6   :  { %v461_v12 = vmax.f32 %v445_v1, 0.0  ;;  %520 = vst.msk [vmem:[%s874_s6 + $0x28] sm:$0xff] %vm514_vm2, %v503_v5  ;;  %v474_v16 = vmin.f32 %v458_v6, 6.0  ;;  %v407_v18 = vmul.f32 %v765_v22, %v374_v8  ;;  %v377_v19 = vadd.f32 %v376_v15, %v212_v10 }
  0xf7   :  { %v459_v17 = vmax.f32 %v443_v7, 0.0  ;;  %v492_v20 = vmul.f32 %v476_v11, %v428_v46  ;;  %v432_v23 = vadd.f32 %v770_v27, %v409_v13  ;;  %v410_v24 = vmul.f32 %v765_v22, %v385_v14 }
  0xf8   :  { %v477_v21 = vmin.f32 %v461_v12, 6.0  ;;  %v490_v25 = vmul.f32 %v474_v16, %v426_v50  ;;  %v430_v28 = vadd.f32 %v770_v27, %v407_v18  ;;  %v408_v29 = vmul.f32 %v765_v22, %v377_v19 }
  0xf9   :  { %v475_v26 = vmin.f32 %v459_v17, 6.0  ;;  %v508_v30 = vmul.f32 0.16666667, %v492_v20  ;;  %v448_v32 = vadd.f32 3.0, %v432_v23  ;;  %v433_v33 = vadd.f32 %v770_v27, %v410_v24 }
  0xfa   :  { %v493_v31 = vmul.f32 %v477_v21, %v429_v55  ;;  %v506_v34 = vmul.f32 0.16666667, %v490_v25  ;;  %v446_v36 = vadd.f32 3.0, %v430_v28  ;;  %v431_v37 = vadd.f32 %v770_v27, %v408_v29 }
  0xfb   :  { %v491_v35 = vmul.f32 %v475_v26, %v427_v60  ;;  %525 = vst.msk [vmem:[%s874_s6 + $0x50] sm:$0xff] %vm514_vm2, %v508_v30  ;;  %v464_v39 = vmax.f32 %v448_v32, 0.0  ;;  %v449_v40 = vadd.f32 3.0, %v433_v33 }
  0xfc   :  { %v509_v38 = vmul.f32 0.16666667, %v493_v31  ;;  %523 = vst.msk [vmem:[%s874_s6 + $0x40] sm:$0xff] %vm514_vm2, %v506_v34  ;;  %v462_v41 = vmax.f32 %v446_v36, 0.0  ;;  %v447_v42 = vadd.f32 3.0, %v431_v37 }
  0xfd   :  { %v507_v22 = vmul.f32 0.16666667, %v491_v35  ;;  %v480_v27 = vmin.f32 %v464_v39, 6.0  ;;  %v465_v43 = vmax.f32 %v449_v40, 0.0 }
  0xfe   :  { %526 = vst.msk [vmem:[%s874_s6 + $0x58] sm:$0xff] %vm514_vm2, %v509_v38  ;;  %v478_v44 = vmin.f32 %v462_v41, 6.0  ;;  %v463_v45 = vmax.f32 %v447_v42, 0.0 }
  0xff   :  { %524 = vst.msk [vmem:[%s874_s6 + $0x48] sm:$0xff] %vm514_vm2, %v507_v22  ;;  %v496_v46 = vmul.f32 %v480_v27, %v432_v23  ;;  %v481_v47 = vmin.f32 %v465_v43, 6.0 }
 0x100   :  { %v494_v48 = vmul.f32 %v478_v44, %v430_v28  ;;  %v479_v49 = vmin.f32 %v463_v45, 6.0 }
 0x101   :  { %v512_v50 = vmul.f32 0.16666667, %v496_v46  ;;  %v497_v51 = vmul.f32 %v481_v47, %v433_v33 }
 0x102   :  { %v510_v52 = vmul.f32 0.16666667, %v494_v48  ;;  %v495_v53 = vmul.f32 %v479_v49, %v431_v37 }
 0x103   :  { %529 = vst.msk [vmem:[%s874_s6 + $0x70] sm:$0xff] %vm514_vm2, %v512_v50  ;;  %v513_v54 = vmul.f32 0.16666667, %v497_v51 }
 0x104   :  { %527 = vst.msk [vmem:[%s874_s6 + $0x60] sm:$0xff] %vm514_vm2, %v510_v52  ;;  %v511_v55 = vmul.f32 0.16666667, %v495_v53 }
 0x105   :  { %530 = vst.msk [vmem:[%s874_s6 + $0x78] sm:$0xff] %vm514_vm2, %v513_v54 }
 0x106   :  { %528 = vst.msk [vmem:[%s874_s6 + $0x68] sm:$0xff] %vm514_vm2, %v511_v55 }

// kernel: yolo_pafpn_forward.22
= control target key start
LH: loop header
LB: loop body
LE: loop exit
PB: predicated region body
PF: predicated region fallthrough
CT: control target
= control target key end

     0   :  { %s2685_s13 = smov 0   ;;  %s3852_s0 = inlined_call_operand.vmem [shape: bf16[2,64,4], index: 0, kind: input, shape index: {}]   ;;  %s3853_s1 = inlined_call_operand.vmem [shape: bf16[4,4], index: 1, kind: input, shape index: {}]   ;;  %s3854_s2 = inlined_call_operand.vmem [shape: f32[1,4], index: 2, kind: input, shape index: {}]   ;;  %s3855_s3 = inlined_call_operand.vmem [shape: f32[1,4], index: 3, kind: input, shape index: {}]   ;;  %s3856_s4 = inlined_call_operand.vmem [shape: f32[25,4], index: 4, kind: input, shape index: {}]   ;;  %s3857_s5 = inlined_call_operand.vmem [shape: f32[1,4], index: 5, kind: input, shape index: {}]   ;;  %s3858_s6 = inlined_call_operand.vmem [shape: f32[1,4], index: 6, kind: input, shape index: {}]   ;;  %s3859_s7 = inlined_call_operand.vmem [shape: bf16[4,4], index: 7, kind: input, shape index: {}]   ;;  %s3860_s8 = inlined_call_operand.vmem [shape: f32[1,4], index: 8, kind: input, shape index: {}]   ;;  %s3861_s9 = inlined_call_operand.vmem [shape: f32[1,4], index: 9, kind: input, shape index: {}]   ;;  %s3862_s10 = inlined_call_operand.vmem [shape: f32[2,64,4], index: 10, kind: output, shape index: {}]  }
   0x1 LB: > { %s2539_s14 = sadd.s32 4294967295, %s2627_s13   ;;  %p2543_p0 = scmp.ge.s32.totalorder %s2627_s13, 1  ;;  %s2627_s13 = sphi %s2685_s13, %s20_s13  }
   0x2   : > { %p312_p1 = scmp.lt.s32.totalorder %s2627_s13, 3 }
   0x4   : > { %p313_p2 = pnand %p2543_p0, %p312_p1 }
   0x5   : > { %v369_v0 = vld [vmem:[%s3853_s1] sm:$0x3] (!%p313_p2)  ;;  %vm403_vm0 = vcmask (!%p313_p2), 1041408   ;;  %p350_p3 = scmp.lt.s32.totalorder (!%p313_p2), %s2539_s14, 1  ;;  %vm390_vm1 = vcmask (!%p313_p2), 31744   ;;  %vm543_vm2 = vcmask (!%p313_p2), 27648   ;;  %v611_v7 = vlaneseq (!%p313_p2) }
   0x6   : > { %316 = sbr.rel (%p313_p2) target bundleno = 761 (0x2f9), region = 60  ;;  %2601 = vmatprep.subr.msk.bf16.mxu0 (!%p313_p2), %vm403_vm0, %v369_v0  ;;  %v405_v1 = vsel (!%p313_p2), %vm403_vm0, %v369_v0, 0  ;;  %v2629_v6 = vmov (!%p313_p2), 0.0   ;;  %v607_v10 = vld [vmem:[%s3856_s4] sm:$0xff] (!%p313_p2)  ;;  %vm667_vm3 = vcmask (!%p313_p2), 1046528   ;;  %vm744_vm4 = vcmask (!%p313_p2), 1045504  }
   0x7   : > { %2582 = vmatpush3.bf16.msra.mxu0 (!%p313_p2), %v405_v1  ;;  %544 = vst.msk [vmem:[#allocation2 + $0x8] sm:$0xf] (!%p313_p2), %vm543_vm2, %v2629_v6  ;;  %546 = vst.msk [vmem:[#allocation2 + $0x18] sm:$0xf] (!%p313_p2), %vm543_vm2, %v2629_v6  ;;  %v612_v8 = vshrl.u32 (!%p313_p2), %v611_v7, 7  ;;  %vm821_vm5 = vcmask (!%p313_p2), 1044480  }
   0x8   : > { %551 = vst.msk [vmem:[#allocation2 + $0x40] sm:$0xff] (!%p313_p2), %vm390_vm1, %v2629_v6  ;;  %542 = vst.msk [vmem:[#allocation2] sm:$0xff] (!%p313_p2), %vm390_vm1, %v2629_v6  ;;  %v2325_v31 = vld [vmem:[%s3859_s7] sm:$0x3] (!%p313_p2)  ;;  %vm898_vm6 = vcmask (!%p313_p2), 1043456   ;;  %v2802_v0 = vld [vmem:[%s3856_s4 + $0x8] sm:$0xff] (!%p313_p2) }
   0x9   : > { %552 = vst.msk [vmem:[#allocation2 + $0x48] sm:$0xf] (!%p313_p2), %vm543_vm2, %v2629_v6  ;;  %564 = vst.msk [vmem:[#allocation2 + $0xa8] sm:$0xf] (!%p313_p2), %vm543_vm2, %v2629_v6  ;;  %v2732_v9 = vsub.s32 (!%p313_p2), 1, %v612_v8  ;;  %v2740_v12 = vsub.s32 (!%p313_p2), 2, %v612_v8  ;;  %2602 = vmatprep.subr.msk.bf16.mxu1 (!%p313_p2), %vm403_vm0, %v2325_v31 }
   0xa   : > { %566 = vst.msk [vmem:[#allocation2 + $0xb8] sm:$0xf] (!%p313_p2), %vm543_vm2, %v2629_v6  ;;  %548 = vst.msk [vmem:[#allocation2 + $0x28] sm:$0xf] (!%p313_p2), %vm543_vm2, %v2629_v6  ;;  %v2742_v15 = vsub.s32 (!%p313_p2), 0, %v612_v8  ;;  %v2749_v19 = vsub.s32 (!%p313_p2), 3, %v612_v8 }
   0xb   : > { %545 = vst.msk [vmem:[#allocation2 + $0x10] sm:$0xff] (!%p313_p2), %vm390_vm1, %v2629_v6  ;;  %547 = vst.msk [vmem:[#allocation2 + $0x20] sm:$0xff] (!%p313_p2), %vm390_vm1, %v2629_v6  ;;  %v2738_v11 = vrot.slane (!%p313_p2), %v607_v10, %v2732_v9  ;;  %v2745_v16 = vrot.slane (!%p313_p2), %v607_v10, %v2740_v12  ;;  %v2754_v21 = vsub.s32 (!%p313_p2), 4, %v612_v8  ;;  %v2339_v35 = vsel (!%p313_p2), %vm403_vm0, %v2325_v31, 0 }
   0xc   : > { %549 = vst.msk [vmem:[#allocation2 + $0x30] sm:$0xff] (!%p313_p2), %vm390_vm1, %v2629_v6  ;;  %553 = vst.msk [vmem:[#allocation2 + $0x50] sm:$0xff] (!%p313_p2), %vm390_vm1, %v2629_v6  ;;  %v2752_v20 = vrot.slane (!%p313_p2), %v607_v10, %v2742_v15  ;;  %v2758_v25 = vrot.slane (!%p313_p2), %v607_v10, %v2749_v19  ;;  %2592 = vmatpush3.bf16.msra.mxu1 (!%p313_p2), %v2339_v35  ;;  %v2776_v42 = vsub.s32 (!%p313_p2), 6, %v612_v8  ;;  %v2778_v47 = vsub.s32 (!%p313_p2), 5, %v612_v8 }
   0xd   : > { %s3864_s14 = smov (!%p350_p3, %s2539_s14), 1  ;;  %550 = vst.msk [vmem:[#allocation2 + $0x38] sm:$0xf] %vm543_vm2, %v2629_v6  ;;  %554 = vst.msk [vmem:[#allocation2 + $0x58] sm:$0xf] %vm543_vm2, %v2629_v6  ;;  %v2762_v27 = vrot.slane %v607_v10, %v2754_v21  ;;  %v2786_v53 = vsub.s32 7, %v612_v8 }
   0xe   : > { %s2569_s17 = sshll.u32 %s3864_s14, 5  ;;  %555 = vst.msk [vmem:[#allocation2 + $0x60] sm:$0xff] %vm390_vm1, %v2629_v6  ;;  %557 = vst.msk [vmem:[#allocation2 + $0x70] sm:$0xff] %vm390_vm1, %v2629_v6  ;;  %v584_v14 = vld [vmem:[#allocation2 + $0x8] sm:$0xf]  ;;  %v2784_v52 = vrot.slane %v607_v10, %v2776_v42  ;;  %v2790_v58 = vrot.slane %v607_v10, %v2778_v47  ;;  %s2570_s11 = sshll.u32 %s3864_s14, 6 }
   0xf   : > { %s354_s20 = scalar_lea.vmem %s3852_s0, %s2569_s17  ;;  %556 = vst.msk [vmem:[#allocation2 + $0x68] sm:$0xf] %vm543_vm2, %v2629_v6  ;;  %558 = vst.msk [vmem:[#allocation2 + $0x78] sm:$0xf] %vm543_vm2, %v2629_v6  ;;  %v583_v13 = vld [vmem:[#allocation2] sm:$0xff]  ;;  %v636_v18 = vmul.f32 %v2738_v11, %v584_v14  ;;  %v713_v26 = vmul.f32 %v2745_v16, %v584_v14  ;;  %v790_v34 = vmul.f32 %v2758_v25, %v584_v14  ;;  %s3831_s16 = scalar_lea.vmem %s3862_s10, %s2570_s11 }
  0x10   : > { %v2612_v2 = vld [vmem:[%s354_s20] sm:$0xff]   ;;  %v2613_v3 = vld [vmem:[%s354_s20 + $0x8] sm:$0xff]   ;;  %v2614_v4 = vld [vmem:[%s354_s20 + $0x10] sm:$0xff]   ;;  %559 = vst.msk [vmem:[#allocation2 + $0x80] sm:$0xff] %vm390_vm1, %v2629_v6  ;;  %v635_v17 = vmul.f32 %v2738_v11, %v583_v13  ;;  %v712_v24 = vmul.f32 %v2745_v16, %v583_v13  ;;  %v615_v28 = vmul.f32 %v2752_v20, %v583_v13  ;;  %v789_v33 = vmul.f32 %v2758_v25, %v583_v13 }
  0x11   : > { %2583 = vmatprep.mubr.msk.bf16.mxu0 %vm390_vm1, %v2612_v2  ;;  %v2615_v5 = vld [vmem:[%s354_s20 + $0x18] sm:$0xff]   ;;  %560 = vst.msk [vmem:[#allocation2 + $0x88] sm:$0xf] %vm543_vm2, %v2629_v6  ;;  %562 = vst.msk [vmem:[#allocation2 + $0x98] sm:$0xf] %vm543_vm2, %v2629_v6  ;;  %v669_v23 = vrot.slane %v636_v18, 1  ;;  %v866_v37 = vmul.f32 %v2762_v27, %v583_v13  ;;  %v867_v41 = vmul.f32 %v2762_v27, %v584_v14 }
  0x12   : > { %2584 = vmatmul.mubr.msk.bf16.vlgmr.msra.gmra.mrb[0].mxu0 %vm390_vm1, %v2613_v3  ;;  %561 = vst.msk [vmem:[#allocation2 + $0x90] sm:$0xff] %vm390_vm1, %v2629_v6  ;;  %563 = vst.msk [vmem:[#allocation2 + $0xa0] sm:$0xff] %vm390_vm1, %v2629_v6  ;;  %v668_v22 = vrot.slane %v635_v17, 1  ;;  %v745_v30 = vrot.slane %v712_v24, 2  ;;  %v746_v32 = vrot.slane %v713_v26, 2  ;;  %v822_v39 = vrot.slane %v789_v33, 3 }
  0x13   : > { %2587 = vmatprep.mubr.msk.bf16.mxu0 %vm390_vm1, %v2614_v4  ;;  %565 = vst.msk [vmem:[#allocation2 + $0xb0] sm:$0xff] %vm390_vm1, %v2629_v6  ;;  %v823_v40 = vrot.slane %v790_v34, 3  ;;  %v585_v43 = vld [vmem:[#allocation2 + $0x10] sm:$0xff]  ;;  %v586_v44 = vld [vmem:[#allocation2 + $0x18] sm:$0xf]  ;;  %v899_v46 = vrot.slane %v866_v37, 4  ;;  %v2797_v63 = vrot.slane %v607_v10, %v2786_v53  ;;  %v2813_v18 = vrot.slane %v2802_v0, %v2742_v15 }
  0x14   : > { %v670_v29 = vsel %vm667_vm3, %v668_v22, %v669_v23  ;;  %v747_v38 = vsel %vm744_vm4, %v745_v30, %v746_v32  ;;  %v637_v48 = vmul.f32 %v2738_v11, %v585_v43  ;;  %v638_v49 = vmul.f32 %v2738_v11, %v586_v44  ;;  %v2556_v33 = vld [vmem:[%s3854_s2] ss:$0 sm:$0xff] }
  0x15   : > { %v700_v36 = vadd.f32 %v670_v29, %v615_v28  ;;  %v824_v50 = vsel %vm821_vm5, %v822_v39, %v823_v40  ;;  %v900_v51 = vrot.slane %v867_v41, 4  ;;  %v714_v59 = vmul.f32 %v2745_v16, %v585_v43  ;;  %v2831_v39 = vld [vmem:[%s3855_s3] ss:$0 sm:$0xff] }
  0x16   : > { %v671_v55 = vrot.slane %v637_v48, 1  ;;  %v672_v56 = vrot.slane %v638_v49, 1  ;;  %v715_v60 = vmul.f32 %v2745_v16, %v586_v44  ;;  %v963_v61 = vmul.f32 %v2784_v52, %v585_v43 }
  0x17   : > { %v777_v45 = vadd.f32 %v747_v38, %v700_v36  ;;  %v901_v57 = vsel %vm898_vm6, %v899_v46, %v900_v51  ;;  %v964_v62 = vmul.f32 %v2784_v52, %v586_v44  ;;  %v616_v1 = vmul.f32 %v2752_v20, %v585_v43 }
  0x18   : > { %v673_v3 = vsel %vm667_vm3, %v671_v55, %v672_v56  ;;  %v791_v4 = vmul.f32 %v2758_v25, %v585_v43  ;;  %v943_v6 = vmul.f32 %v2790_v58, %v585_v43  ;;  %v748_v7 = vrot.slane %v714_v59, 2 }
  0x19   : > { %v854_v54 = vadd.f32 %v824_v50, %v777_v45  ;;  %v749_v8 = vrot.slane %v715_v60, 2  ;;  %v995_v10 = vrot.slane %v963_v61, 1  ;;  %v996_v13 = vrot.slane %v964_v62, 1 }
  0x1a   : > { %2588 = vmatmul.mubr.msk.bf16.gmra.mrb[4].mxu0 %vm390_vm1, %v2615_v5  ;;  %v792_v5 = vmul.f32 %v2758_v25, %v586_v44  ;;  %v1039_v14 = vmul.f32 %v2797_v63, %v585_v43  ;;  %v1040_v17 = vmul.f32 %v2797_v63, %v586_v44  ;;  %v701_v22 = vadd.f32 %v673_v3, %v616_v1 }
  0x1b   : > { %v931_v2 = vadd.f32 %v901_v57, %v854_v54  ;;  %v825_v23 = vrot.slane %v791_v4, 3  ;;  %v868_v26 = vmul.f32 %v2762_v27, %v585_v43  ;;  %v869_v28 = vmul.f32 %v2762_v27, %v586_v44 }
  0x1c   : > { %v826_v24 = vrot.slane %v792_v5, 3  ;;  %v750_v29 = vsel %vm744_vm4, %v748_v7, %v749_v8  ;;  %v997_v31 = vsel %vm667_vm3, %v995_v10, %v996_v13  ;;  %v2821_v32 = vrot.slane %v2802_v0, %v2732_v9 }
  0x1d   : > { %v951_v30 = vadd.f32 %v943_v6, %v931_v2  ;;  %v1071_v34 = vrot.slane %v1039_v14, 2  ;;  %v1072_v35 = vrot.slane %v1040_v17, 2  ;;  %v1115_v36 = vmul.f32 %v2813_v18, %v585_v43 }
  0x1e   : > { %v1116_v37 = vmul.f32 %v2813_v18, %v586_v44  ;;  %v778_v40 = vadd.f32 %v750_v29, %v701_v22  ;;  %v827_v41 = vsel %vm821_vm5, %v825_v23, %v826_v24  ;;  %v902_v45 = vrot.slane %v868_v26, 4 }
  0x1f   : > { %v903_v46 = vrot.slane %v869_v28, 4  ;;  %v1027_v50 = vadd.f32 %v997_v31, %v951_v30  ;;  %v1191_v51 = vmul.f32 %v2821_v32, %v585_v43  ;;  %v1192_v54 = vmul.f32 %v2821_v32, %v586_v44 }
  0x20   : > { %v1073_v57 = vsel %vm744_vm4, %v1071_v34, %v1072_v35  ;;  %v1147_v59 = vrot.slane %v1115_v36, 3  ;;  %v1148_v60 = vrot.slane %v1116_v37, 3  ;;  %v855_v4 = vadd.f32 %v827_v41, %v778_v40 }
  0x21   : > { %v904_v5 = vsel %vm898_vm6, %v902_v45, %v903_v46  ;;  %v1103_v44 = vadd.f32 %v1073_v57, %v1027_v50  ;;  %v1223_v7 = vrot.slane %v1191_v51, 4  ;;  %v1224_v14 = vrot.slane %v1192_v54, 4 }
  0x22   : > { %v1149_v13 = vsel %vm821_vm5, %v1147_v59, %v1148_v60  ;;  %v2843_v28 = vadd.f32 %v904_v5, %v855_v4  ;;  %v2847_v29 = vrot.slane %v2802_v0, %v2740_v12 }
  0x23   : > { %v1179_v36 = vadd.f32 %v1149_v13, %v1103_v44  ;;  %v1225_v45 = vsel %vm898_vm6, %v1223_v7, %v1224_v14 }
  0xe5   : > { %v2585_v38 = vpop.f32.mrb[0].mxu0 }
  0xe6   : > { %v481_v48 = vmul.f32 %v2585_v38, %v2556_v33  ;;  %v441_v49 = vpop.f32.mrb[1].mxu0 }
  0xe7   : > { %v479_v55 = vmul.f32 %v2556_v33, %v441_v49  ;;  %v2586_v56 = vpop.f32.mrb[2].mxu0 }
  0xe8   : > { %v496_v61 = vadd.f32 %v2831_v39, %v481_v48  ;;  %v482_v62 = vmul.f32 %v2586_v56, %v2556_v33  ;;  %v444_v1 = vpop.f32.mrb[3].mxu0 }
  0xe9   : > { %v494_v2 = vadd.f32 %v2831_v39, %v479_v55  ;;  %v480_v3 = vmul.f32 %v2556_v33, %v444_v1 }
  0xea   : > { %v504_v6 = vadd.f32 3.0, %v496_v61  ;;  %v497_v43 = vadd.f32 %v2831_v39, %v482_v62 }
  0xeb   : > { %v502_v8 = vadd.f32 3.0, %v494_v2  ;;  %v495_v10 = vadd.f32 %v2831_v39, %v480_v3 }
  0xec   : > { %v512_v17 = vmax.f32 %v504_v6, 0.0  ;;  %v505_v22 = vadd.f32 3.0, %v497_v43 }
  0xed   : > { %v510_v23 = vmax.f32 %v502_v8, 0.0  ;;  %v503_v24 = vadd.f32 3.0, %v495_v10  ;;  %v2589_v26 = vpop.f32.mrb[4].mxu0 }
  0xee   : > { %v520_v30 = vmin.f32 %v512_v17, 6.0  ;;  %v513_v31 = vmax.f32 %v505_v22, 0.0  ;;  %v485_v34 = vmul.f32 %v2589_v26, %v2556_v33  ;;  %v457_v35 = vpop.f32.mrb[5].mxu0  ;;  %v2868_v17 = vadd.f32 %v1225_v45, %v1179_v36 }
  0xef   : > { %v518_v37 = vmin.f32 %v510_v23, 6.0  ;;  %v511_v38 = vmax.f32 %v503_v24, 0.0  ;;  %v483_v40 = vmul.f32 %v2556_v33, %v457_v35  ;;  %v2590_v41 = vpop.f32.mrb[6].mxu0  ;;  %v2872_v22 = vrot.slane %v2802_v0, %v2778_v47 }
  0xf0   : > { %v528_v46 = vmul.f32 %v520_v30, %v496_v61  ;;  %v521_v48 = vmin.f32 %v513_v31, 6.0  ;;  %v500_v49 = vadd.f32 %v2831_v39, %v485_v34  ;;  %v486_v50 = vmul.f32 %v2590_v41, %v2556_v33  ;;  %v460_v51 = vpop.f32.mrb[7].mxu0 }
  0xf1   : > { %v526_v54 = vmul.f32 %v518_v37, %v494_v2  ;;  %v519_v55 = vmin.f32 %v511_v38, 6.0  ;;  %v498_v56 = vadd.f32 %v2831_v39, %v483_v40  ;;  %v484_v57 = vmul.f32 %v2556_v33, %v460_v51 }
  0xf2   : > { %v536_v59 = vmul.f32 0.16666667, %v528_v46  ;;  %v529_v60 = vmul.f32 %v521_v48, %v497_v43  ;;  %v508_v62 = vadd.f32 3.0, %v500_v49  ;;  %v501_v1 = vadd.f32 %v2831_v39, %v486_v50 }
  0xf3   : > { %v534_v3 = vmul.f32 0.16666667, %v526_v54  ;;  %v527_v4 = vmul.f32 %v519_v55, %v495_v10  ;;  %v506_v5 = vadd.f32 3.0, %v498_v56  ;;  %v499_v61 = vadd.f32 %v2831_v39, %v484_v57  ;;  %v609_v10 = vld [vmem:[%s3856_s4 + $0x10] sm:$0xff] }
  0xf4   : > { %572 = vst.msk [vmem:[#allocation2 + $0x42] sm:$0xff] %vm390_vm1, %v536_v59  ;;  %v537_v6 = vmul.f32 0.16666667, %v529_v60  ;;  %v516_v44 = vmax.f32 %v508_v62, 0.0  ;;  %v509_v7 = vadd.f32 3.0, %v501_v1  ;;  %v2857_v2 = vrot.slane %v2802_v0, %v2749_v19 }
  0xf5   : > { %568 = vst.msk [vmem:[#allocation2 + $0x22] sm:$0xff] %vm390_vm1, %v534_v3  ;;  %v535_v33 = vmul.f32 0.16666667, %v527_v4  ;;  %v514_v43 = vmax.f32 %v506_v5, 0.0  ;;  %v507_v8 = vadd.f32 3.0, %v499_v61  ;;  %v2865_v39 = vrot.slane %v2802_v0, %v2754_v21 }
  0xf6   : > { %574 = vst.msk [vmem:[#allocation2 + $0x52] sm:$0xff] %vm390_vm1, %v537_v6  ;;  %v524_v13 = vmin.f32 %v516_v44, 6.0  ;;  %v517_v14 = vmax.f32 %v509_v7, 0.0  ;;  %v2877_v26 = vrot.slane %v2802_v0, %v2776_v42  ;;  %v2881_v30 = vrot.slane %v2802_v0, %v2786_v53 }
  0xf7   : > { %570 = vst.msk [vmem:[#allocation2 + $0x32] sm:$0xff] %vm390_vm1, %v535_v33  ;;  %v522_v23 = vmin.f32 %v514_v43, 6.0  ;;  %v515_v24 = vmax.f32 %v507_v8, 0.0  ;;  %v2884_v35 = vrot.slane %v609_v10, %v2742_v15  ;;  %v2887_v36 = vrot.slane %v609_v10, %v2732_v9 }
  0xf8   : > { %v532_v31 = vmul.f32 %v524_v13, %v500_v49  ;;  %v525_v34 = vmin.f32 %v517_v14, 6.0  ;;  %v2890_v40 = vrot.slane %v609_v10, %v2740_v12  ;;  %v2893_v41 = vrot.slane %v609_v10, %v2749_v19 }
  0xf9   : > { %v530_v37 = vmul.f32 %v522_v23, %v498_v56  ;;  %v523_v38 = vmin.f32 %v515_v24, 6.0  ;;  %v2896_v0 = vrot.slane %v609_v10, %v2754_v21  ;;  %v2899_v48 = vrot.slane %v609_v10, %v2778_v47 }
  0xfa   : > { %v540_v45 = vmul.f32 0.16666667, %v532_v31  ;;  %v533_v46 = vmul.f32 %v525_v34, %v501_v1  ;;  %v2906_v12 = vrot.slane %v609_v10, %v2776_v42  ;;  %v2909_v19 = vrot.slane %v609_v10, %v2786_v53 }
  0xfb   : > { %v2901_v15 = vld [vmem:[#allocation2 + $0x40] sm:$0xff]  ;;  %v2903_v9 = vld [vmem:[#allocation2 + $0x48] sm:$0xf]  ;;  %v538_v49 = vmul.f32 0.16666667, %v530_v37  ;;  %v531_v50 = vmul.f32 %v523_v38, %v499_v61 }
  0xfc   : > { %v2911_v51 = vld [vmem:[#allocation2 + $0x20] sm:$0xff]  ;;  %v2913_v54 = vld [vmem:[#allocation2 + $0x28] sm:$0xf]  ;;  %580 = vst.msk [vmem:[#allocation2 + $0x82] sm:$0xff] %vm390_vm1, %v540_v45  ;;  %v541_v21 = vmul.f32 0.16666667, %v533_v46  ;;  %v2918_v47 = vmul.f32 %v2881_v30, %v2901_v15  ;;  %v2922_v55 = vmul.f32 %v2884_v35, %v2901_v15  ;;  %v2926_v42 = vmul.f32 %v2884_v35, %v2903_v9 }
  0xfd   : > { %v617_v53 = vmul.f32 %v2752_v20, %v2911_v51  ;;  %v639_v56 = vmul.f32 %v2738_v11, %v2911_v51  ;;  %v640_v57 = vmul.f32 %v2738_v11, %v2913_v54  ;;  %v716_v59 = vmul.f32 %v2745_v16, %v2911_v51  ;;  %576 = vst.msk [vmem:[#allocation2 + $0x62] sm:$0xff] %vm390_vm1, %v538_v49 }
  0xfe   : > { %v717_v60 = vmul.f32 %v2745_v16, %v2913_v54  ;;  %v793_v62 = vmul.f32 %v2758_v25, %v2911_v51  ;;  %v794_v1 = vmul.f32 %v2758_v25, %v2913_v54  ;;  %v870_v3 = vmul.f32 %v2762_v27, %v2911_v51  ;;  %582 = vst.msk [vmem:[#allocation2 + $0x92] sm:$0xff] %vm390_vm1, %v541_v21 }
  0xff   : > { %v674_v4 = vrot.slane %v639_v56, 1  ;;  %v675_v5 = vrot.slane %v640_v57, 1  ;;  %v751_v61 = vrot.slane %v716_v59, 2  ;;  %v871_v6 = vmul.f32 %v2762_v27, %v2913_v54 }
 0x100   : > { %v752_v44 = vrot.slane %v717_v60, 2  ;;  %v828_v7 = vrot.slane %v793_v62, 3  ;;  %v829_v33 = vrot.slane %v794_v1, 3  ;;  %v905_v43 = vrot.slane %v870_v3, 4 }
 0x101   : > { %v676_v8 = vsel %vm667_vm3, %v674_v4, %v675_v5  ;;  %v906_v10 = vrot.slane %v871_v6, 4  ;;  %v966_v13 = vmul.f32 %v2784_v52, %v2913_v54  ;;  %v1042_v14 = vmul.f32 %v2797_v63, %v2913_v54 }
 0x102   : > { %v702_v23 = vadd.f32 %v676_v8, %v617_v53  ;;  %v753_v24 = vsel %vm744_vm4, %v751_v61, %v752_v44  ;;  %v830_v31 = vsel %vm821_vm5, %v828_v7, %v829_v33  ;;  %v539_v34 = vmul.f32 0.16666667, %v531_v50  ;;  %v2965_v50 = vld [vmem:[#allocation2 + $0x30] sm:$0xff]  ;;  %v2974_v61 = vld [vmem:[#allocation2 + $0x38] sm:$0xf] }
 0x103   : > { %v907_v37 = vsel %vm898_vm6, %v905_v43, %v906_v10  ;;  %v999_v38 = vrot.slane %v966_v13, 1  ;;  %v1075_v45 = vrot.slane %v1042_v14, 2  ;;  %v944_v46 = vmul.f32 %v2790_v58, %v2911_v51 }
 0x104   : > { %v779_v49 = vadd.f32 %v753_v24, %v702_v23  ;;  %578 = vst.msk [vmem:[#allocation2 + $0x72] sm:$0xff] %vm390_vm1, %v539_v34  ;;  %v965_v21 = vmul.f32 %v2784_v52, %v2911_v51  ;;  %v1041_v53 = vmul.f32 %v2797_v63, %v2911_v51  ;;  %v1117_v56 = vmul.f32 %v2813_v18, %v2911_v51 }
 0x105   : > { %v952_v57 = vadd.f32 %v944_v46, %v2843_v28  ;;  %v1118_v59 = vmul.f32 %v2813_v18, %v2913_v54  ;;  %v1193_v60 = vmul.f32 %v2821_v32, %v2911_v51  ;;  %v1194_v62 = vmul.f32 %v2821_v32, %v2913_v54 }
 0x106   : > { %v856_v1 = vadd.f32 %v830_v31, %v779_v49  ;;  %v998_v3 = vrot.slane %v965_v21, 1  ;;  %v1074_v4 = vrot.slane %v1041_v53, 2  ;;  %v1150_v5 = vrot.slane %v1117_v56, 3 }
 0x107   : > { %v1151_v6 = vrot.slane %v1118_v59, 3  ;;  %v1226_v44 = vrot.slane %v1193_v60, 4  ;;  %v1227_v7 = vrot.slane %v1194_v62, 4  ;;  %v1267_v28 = vmul.f32 %v2847_v29, %v2911_v51 }
 0x108   : > { %v2978_v33 = vadd.f32 %v907_v37, %v856_v1  ;;  %v1000_v43 = vsel %vm667_vm3, %v998_v3, %v999_v38  ;;  %v1076_v8 = vsel %vm744_vm4, %v1074_v4, %v1075_v45  ;;  %v1268_v10 = vmul.f32 %v2847_v29, %v2965_v50 }
 0x109   : > { %v1028_v13 = vadd.f32 %v1000_v43, %v952_v57  ;;  %v1152_v14 = vsel %vm821_vm5, %v1150_v5, %v1151_v6  ;;  %v1228_v23 = vsel %vm898_vm6, %v1226_v44, %v1227_v7  ;;  %v1275_v24 = vadd.f32 %v1267_v28, %v2868_v17 }
 0x10a   : > { %v1287_v31 = vmul.f32 %v2857_v2, %v2911_v51  ;;  %v1288_v34 = vmul.f32 %v2857_v2, %v2913_v54  ;;  %v1289_v37 = vmul.f32 %v2857_v2, %v2965_v50  ;;  %v1290_v38 = vmul.f32 %v2857_v2, %v2974_v61 }
 0x10b   : > { %v1104_v45 = vadd.f32 %v1076_v8, %v1028_v13  ;;  %v1363_v46 = vmul.f32 %v2865_v39, %v2911_v51  ;;  %v1364_v49 = vmul.f32 %v2865_v39, %v2913_v54  ;;  %v1365_v17 = vmul.f32 %v2865_v39, %v2965_v50 }
 0x10c   : > { %v1319_v21 = vrot.slane %v1287_v31, 1  ;;  %v1320_v53 = vrot.slane %v1288_v34, 1  ;;  %v1322_v56 = vrot.slane %v1289_v37, 1  ;;  %v1323_v57 = vrot.slane %v1290_v38, 1 }
 0x10d   : > { %v1180_v59 = vadd.f32 %v1152_v14, %v1104_v45  ;;  %v1366_v60 = vmul.f32 %v2865_v39, %v2974_v61  ;;  %v1395_v62 = vrot.slane %v1363_v46, 2  ;;  %v1396_v1 = vrot.slane %v1364_v49, 2 }
 0x10e   : > { %v1321_v3 = vsel %vm667_vm3, %v1319_v21, %v1320_v53  ;;  %v1324_v4 = vsel %vm667_vm3, %v1322_v56, %v1323_v57  ;;  %v1398_v5 = vrot.slane %v1365_v17, 2  ;;  %v1439_v6 = vmul.f32 %v2872_v22, %v2911_v51 }
 0x10f   : > { %v1256_v44 = vadd.f32 %v1228_v23, %v1180_v59  ;;  %v1351_v7 = vadd.f32 %v1321_v3, %v1275_v24  ;;  %v1397_v28 = vsel %vm744_vm4, %v1395_v62, %v1396_v1  ;;  %v1399_v43 = vrot.slane %v1366_v60, 2 }
 0x110   : > { %v1440_v8 = vmul.f32 %v2872_v22, %v2913_v54  ;;  %v1441_v13 = vmul.f32 %v2872_v22, %v2965_v50  ;;  %v1442_v14 = vmul.f32 %v2872_v22, %v2974_v61  ;;  %v1471_v31 = vrot.slane %v1439_v6, 3 }
 0x111   : > { %v1276_v34 = vadd.f32 %v1268_v10, %v1256_v44  ;;  %v1400_v37 = vsel %vm744_vm4, %v1398_v5, %v1399_v43  ;;  %v1427_v38 = vadd.f32 %v1397_v28, %v1351_v7  ;;  %v1515_v23 = vmul.f32 %v2877_v26, %v2911_v51 }
 0x112   : > { %v1472_v24 = vrot.slane %v1440_v8, 3  ;;  %v1474_v45 = vrot.slane %v1441_v13, 3  ;;  %v1475_v46 = vrot.slane %v1442_v14, 3  ;;  %v1516_v49 = vmul.f32 %v2877_v26, %v2913_v54 }
 0x113   : > { %v1352_v17 = vadd.f32 %v1324_v4, %v1276_v34  ;;  %v1517_v21 = vmul.f32 %v2877_v26, %v2965_v50  ;;  %v1518_v53 = vmul.f32 %v2877_v26, %v2974_v61  ;;  %v1547_v10 = vrot.slane %v1515_v23, 4 }
 0x114   : > { %v1473_v56 = vsel %vm821_vm5, %v1471_v31, %v1472_v24  ;;  %v1476_v57 = vsel %vm821_vm5, %v1474_v45, %v1475_v46  ;;  %v1548_v59 = vrot.slane %v1516_v49, 4  ;;  %v1591_v51 = vmul.f32 %v2881_v30, %v2965_v50 }
 0x115   : > { %v1428_v60 = vadd.f32 %v1400_v37, %v1352_v17  ;;  %v1503_v62 = vadd.f32 %v1473_v56, %v1427_v38  ;;  %v1550_v1 = vrot.slane %v1517_v21, 4  ;;  %v1551_v54 = vrot.slane %v1518_v53, 4 }
 0x116   : > { %v1549_v3 = vsel %vm898_vm6, %v1547_v10, %v1548_v59  ;;  %v1611_v4 = vmul.f32 %v2884_v35, %v2965_v50  ;;  %v1612_v5 = vmul.f32 %v2884_v35, %v2974_v61  ;;  %v1646_v6 = vrot.slane %v2922_v55, 1 }
 0x117   : > { %v1504_v44 = vadd.f32 %v1476_v57, %v1428_v60  ;;  %v1552_v7 = vsel %vm898_vm6, %v1550_v1, %v1551_v54  ;;  %v1579_v28 = vadd.f32 %v1549_v3, %v1503_v62  ;;  %v1647_v43 = vrot.slane %v2926_v42, 1 }
 0x118   : > { %v1643_v8 = vrot.slane %v1611_v4, 1  ;;  %v1644_v13 = vrot.slane %v1612_v5, 1  ;;  %v1687_v14 = vmul.f32 %v2887_v36, %v2965_v50  ;;  %v1688_v31 = vmul.f32 %v2887_v36, %v2974_v61  ;;  %v3058_v4 = vld [vmem:[#allocation2 + $0x50] sm:$0xff] }
 0x119   : > { %v1580_v34 = vadd.f32 %v1552_v7, %v1504_v44  ;;  %v1599_v37 = vadd.f32 %v1591_v51, %v1579_v28  ;;  %v1648_v38 = vsel %vm667_vm3, %v1646_v6, %v1647_v43  ;;  %v1689_v55 = vmul.f32 %v2887_v36, %v2901_v15  ;;  %v3064_v28 = vld [vmem:[#allocation2 + $0x58] sm:$0xf] }
 0x11a   : > { %v1645_v23 = vsel %vm667_vm3, %v1643_v8, %v1644_v13  ;;  %v1690_v42 = vmul.f32 %v2887_v36, %v2903_v9  ;;  %v1719_v24 = vrot.slane %v1687_v14, 2  ;;  %v1720_v45 = vrot.slane %v1688_v31, 2 }
 0x11b   : > { %v1600_v46 = vadd.f32 %v2918_v47, %v1580_v34  ;;  %v1675_v49 = vadd.f32 %v1645_v23, %v1599_v37  ;;  %v1722_v17 = vrot.slane %v1689_v55, 2  ;;  %v1763_v21 = vmul.f32 %v2890_v40, %v2965_v50 }
 0x11c   : > { %v1721_v53 = vsel %vm744_vm4, %v1719_v24, %v1720_v45  ;;  %v1723_v10 = vrot.slane %v1690_v42, 2  ;;  %v1764_v56 = vmul.f32 %v2890_v40, %v2974_v61  ;;  %v1765_v57 = vmul.f32 %v2890_v40, %v2901_v15 }
 0x11d   : > { %v1676_v59 = vadd.f32 %v1648_v38, %v1600_v46  ;;  %v1751_v51 = vadd.f32 %v1721_v53, %v1675_v49  ;;  %v1766_v60 = vmul.f32 %v2890_v40, %v2903_v9  ;;  %v1795_v47 = vrot.slane %v1763_v21, 3 }
 0x11e   : > { %v1724_v62 = vsel %vm744_vm4, %v1722_v17, %v1723_v10  ;;  %v1796_v1 = vrot.slane %v1764_v56, 3  ;;  %v1798_v54 = vrot.slane %v1765_v57, 3  ;;  %v1839_v3 = vmul.f32 %v2893_v41, %v2965_v50 }
 0x11f   : > { %v1752_v5 = vadd.f32 %v1724_v62, %v1676_v59  ;;  %v1799_v6 = vrot.slane %v1766_v60, 3  ;;  %v1840_v44 = vmul.f32 %v2893_v41, %v2974_v61  ;;  %v1841_v7 = vmul.f32 %v2893_v41, %v2901_v15 }
 0x120   : > { %v1797_v43 = vsel %vm821_vm5, %v1795_v47, %v1796_v1  ;;  %v1842_v8 = vmul.f32 %v2893_v41, %v2903_v9  ;;  %v1871_v13 = vrot.slane %v1839_v3, 4  ;;  %v1915_v14 = vmul.f32 %v2896_v0, %v2901_v15  ;;  %v3095_v3 = vld [vmem:[%s3856_s4 + $0x18] ss:$0 sm:$0xff] }
 0x121   : > { %v1800_v31 = vsel %vm821_vm5, %v1798_v54, %v1799_v6  ;;  %v1827_v34 = vadd.f32 %v1797_v43, %v1751_v51  ;;  %v1872_v37 = vrot.slane %v1840_v44, 4  ;;  %v1874_v38 = vrot.slane %v1841_v7, 4 }
 0x122   : > { %v1828_v55 = vadd.f32 %v1800_v31, %v1752_v5  ;;  %v1875_v23 = vrot.slane %v1842_v8, 4  ;;  %v1916_v42 = vmul.f32 %v2896_v0, %v3058_v4  ;;  %v1935_v24 = vmul.f32 %v2899_v48, %v2901_v15 }
 0x123   : > { %v1873_v45 = vsel %vm898_vm6, %v1871_v13, %v1872_v37  ;;  %v1936_v46 = vmul.f32 %v2899_v48, %v2903_v9  ;;  %v1937_v49 = vmul.f32 %v2899_v48, %v3058_v4  ;;  %v1938_v17 = vmul.f32 %v2899_v48, %v3064_v28 }
 0x124   : > { %v1876_v21 = vsel %vm898_vm6, %v1874_v38, %v1875_v23  ;;  %v1903_v53 = vadd.f32 %v1873_v45, %v1827_v34  ;;  %v1967_v10 = vrot.slane %v1935_v24, 1  ;;  %v2011_v56 = vmul.f32 %v2906_v12, %v2901_v15 }
 0x125   : > { %v1904_v57 = vadd.f32 %v1876_v21, %v1828_v55  ;;  %v1968_v59 = vrot.slane %v1936_v46, 1  ;;  %v1970_v51 = vrot.slane %v1937_v49, 1  ;;  %v1971_v60 = vrot.slane %v1938_v17, 1 }
 0x126   : > { %v1923_v47 = vadd.f32 %v1915_v14, %v1903_v53  ;;  %v2012_v62 = vmul.f32 %v2906_v12, %v2903_v9  ;;  %v2013_v1 = vmul.f32 %v2906_v12, %v3058_v4  ;;  %v2014_v54 = vmul.f32 %v2906_v12, %v3064_v28 }
 0x127   : > { %v1924_v5 = vadd.f32 %v1916_v42, %v1904_v57  ;;  %v1969_v6 = vsel %vm667_vm3, %v1967_v10, %v1968_v59  ;;  %v1972_v44 = vsel %vm667_vm3, %v1970_v51, %v1971_v60  ;;  %v2043_v7 = vrot.slane %v2011_v56, 2 }
 0x128   : > { %v1999_v43 = vadd.f32 %v1969_v6, %v1923_v47  ;;  %v2044_v8 = vrot.slane %v2012_v62, 2  ;;  %v2046_v13 = vrot.slane %v2013_v1, 2  ;;  %v2047_v14 = vrot.slane %v2014_v54, 2 }
 0x129   : > { %v2000_v31 = vadd.f32 %v1972_v44, %v1924_v5  ;;  %v2087_v34 = vmul.f32 %v2909_v19, %v2901_v15  ;;  %v2088_v37 = vmul.f32 %v2909_v19, %v2903_v9  ;;  %v2089_v38 = vmul.f32 %v2909_v19, %v3058_v4 }
 0x12a   : > { %v2045_v55 = vsel %vm744_vm4, %v2043_v7, %v2044_v8  ;;  %v2048_v23 = vsel %vm744_vm4, %v2046_v13, %v2047_v14  ;;  %v2090_v42 = vmul.f32 %v2909_v19, %v3064_v28  ;;  %v2163_v24 = vmul.f32 %v3095_v3, %v2901_v15  ;;  %v3129_v8 = vld [vmem:[%s3857_s5] ss:$0 sm:$0xff] }
 0x12b   : > { %v2075_v45 = vadd.f32 %v2045_v55, %v1999_v43  ;;  %v2076_v46 = vadd.f32 %v2048_v23, %v2000_v31  ;;  %v2119_v49 = vrot.slane %v2087_v34, 3  ;;  %v2120_v17 = vrot.slane %v2088_v37, 3 }
 0x12c   : > { %v2122_v21 = vrot.slane %v2089_v38, 3  ;;  %v2123_v53 = vrot.slane %v2090_v42, 3  ;;  %v2164_v10 = vmul.f32 %v3095_v3, %v2903_v9  ;;  %v2165_v56 = vmul.f32 %v3095_v3, %v3058_v4  ;;  %v3141_v42 = vld [vmem:[%s3858_s6] ss:$0 sm:$0xff] }
 0x12d   : > { %v2121_v57 = vsel %vm821_vm5, %v2119_v49, %v2120_v17  ;;  %v2166_v59 = vmul.f32 %v3095_v3, %v3064_v28  ;;  %v2195_v51 = vrot.slane %v2163_v24, 4  ;;  %v618_v60 = vmul.f32 %v2752_v20, %v2965_v50 }
 0x12e   : > { %v2124_v47 = vsel %vm821_vm5, %v2122_v21, %v2123_v53  ;;  %v2151_v62 = vadd.f32 %v2121_v57, %v2075_v45  ;;  %v2196_v1 = vrot.slane %v2164_v10, 4  ;;  %v2198_v54 = vrot.slane %v2165_v56, 4 }
 0x12f   : > { %v2152_v5 = vadd.f32 %v2124_v47, %v2076_v46  ;;  %v2199_v6 = vrot.slane %v2166_v59, 4  ;;  %v641_v44 = vmul.f32 %v2738_v11, %v2965_v50  ;;  %v642_v7 = vmul.f32 %v2738_v11, %v2974_v61 }
 0x130   : > { %v2197_v43 = vsel %vm898_vm6, %v2195_v51, %v2196_v1  ;;  %v718_v13 = vmul.f32 %v2745_v16, %v2965_v50  ;;  %v719_v14 = vmul.f32 %v2745_v16, %v2974_v61  ;;  %v795_v31 = vmul.f32 %v2758_v25, %v2965_v50 }
 0x131   : > { %v2200_v34 = vsel %vm898_vm6, %v2198_v54, %v2199_v6  ;;  %v2227_v37 = vadd.f32 %v2197_v43, %v2151_v62  ;;  %v677_v38 = vrot.slane %v641_v44, 1  ;;  %v678_v55 = vrot.slane %v642_v7, 1 }
 0x132   : > { %v2228_v23 = vadd.f32 %v2200_v34, %v2152_v5  ;;  %v754_v24 = vrot.slane %v718_v13, 2  ;;  %v755_v45 = vrot.slane %v719_v14, 2  ;;  %v796_v46 = vmul.f32 %v2758_v25, %v2974_v61 }
 0x133   : > { %v2242_v49 = vmul.f32 %v3129_v8, %v2227_v37  ;;  %v679_v17 = vsel %vm667_vm3, %v677_v38, %v678_v55  ;;  %v831_v21 = vrot.slane %v795_v31, 3  ;;  %v872_v53 = vmul.f32 %v2762_v27, %v2965_v50 }
 0x134   : > { %v2243_v10 = vmul.f32 %v3129_v8, %v2228_v23  ;;  %v703_v56 = vadd.f32 %v679_v17, %v618_v60  ;;  %v756_v57 = vsel %vm744_vm4, %v754_v24, %v755_v45  ;;  %v832_v59 = vrot.slane %v796_v46, 3 }
 0x135   : > { %v2257_v51 = vadd.f32 %v3141_v42, %v2242_v49  ;;  %v873_v47 = vmul.f32 %v2762_v27, %v2974_v61  ;;  %v908_v62 = vrot.slane %v872_v53, 4  ;;  %v945_v1 = vmul.f32 %v2790_v58, %v2965_v50 }
 0x136   : > { %v2258_v54 = vadd.f32 %v3141_v42, %v2243_v10  ;;  %v780_v5 = vadd.f32 %v756_v57, %v703_v56  ;;  %v833_v6 = vsel %vm821_vm5, %v831_v21, %v832_v59  ;;  %v946_v60 = vmul.f32 %v2790_v58, %v2901_v15 }
 0x137   : > { %v2265_v44 = vadd.f32 3.0, %v2257_v51  ;;  %v909_v7 = vrot.slane %v873_v47, 4  ;;  %v953_v43 = vadd.f32 %v945_v1, %v2978_v33  ;;  %v967_v13 = vmul.f32 %v2784_v52, %v2965_v50 }
 0x138   : > { %v2266_v14 = vadd.f32 3.0, %v2258_v54  ;;  %v857_v31 = vadd.f32 %v833_v6, %v780_v5  ;;  %v968_v34 = vmul.f32 %v2784_v52, %v2974_v61  ;;  %v969_v37 = vmul.f32 %v2784_v52, %v2901_v15 }
 0x139   : > { %v2273_v38 = vmax.f32 %v2265_v44, 0.0  ;;  %v910_v55 = vsel %vm898_vm6, %v908_v62, %v909_v7  ;;  %v970_v23 = vmul.f32 %v2784_v52, %v2903_v9  ;;  %v1001_v24 = vrot.slane %v967_v13, 1 }
 0x13a   : > { %v2274_v45 = vmax.f32 %v2266_v14, 0.0  ;;  %v934_v33 = vadd.f32 %v910_v55, %v857_v31  ;;  %v1002_v46 = vrot.slane %v968_v34, 1  ;;  %v1004_v49 = vrot.slane %v969_v37, 1 }
 0x13b   : > { %v2281_v17 = vmin.f32 %v2273_v38, 6.0  ;;  %v1005_v21 = vrot.slane %v970_v23, 1  ;;  %v1043_v53 = vmul.f32 %v2797_v63, %v2965_v50  ;;  %v1044_v10 = vmul.f32 %v2797_v63, %v2974_v61 }
 0x13c   : > { %v2282_v56 = vmin.f32 %v2274_v45, 6.0  ;;  %v954_v57 = vadd.f32 %v946_v60, %v934_v33  ;;  %v1003_v59 = vsel %vm667_vm3, %v1001_v24, %v1002_v46  ;;  %v1045_v47 = vmul.f32 %v2797_v63, %v2901_v15 }
 0x13d   : > { %v2289_v62 = vmul.f32 %v2281_v17, %v2257_v51  ;;  %v1006_v1 = vsel %vm667_vm3, %v1004_v49, %v1005_v21  ;;  %v1029_v5 = vadd.f32 %v1003_v59, %v953_v43  ;;  %v1046_v6 = vmul.f32 %v2797_v63, %v2903_v9 }
 0x13e   : > { %v2290_v44 = vmul.f32 %v2282_v56, %v2258_v54  ;;  %v1030_v7 = vadd.f32 %v1006_v1, %v954_v57  ;;  %v1077_v13 = vrot.slane %v1043_v53, 2  ;;  %v1078_v14 = vrot.slane %v1044_v10, 2 }
 0x13f   : > { %v2297_v31 = vmul.f32 0.16666667, %v2289_v62  ;;  %v1080_v34 = vrot.slane %v1045_v47, 2  ;;  %v1081_v37 = vrot.slane %v1046_v6, 2  ;;  %v1119_v60 = vmul.f32 %v2813_v18, %v2965_v50 }
 0x140   : > { %v2298_v38 = vmul.f32 0.16666667, %v2290_v44  ;;  %v1079_v55 = vsel %vm744_vm4, %v1077_v13, %v1078_v14  ;;  %v1120_v51 = vmul.f32 %v2813_v18, %v2974_v61  ;;  %v1121_v43 = vmul.f32 %v2813_v18, %v2901_v15 }
 0x141   : > { %2305 = vst.msk [vmem:[#allocation3] sm:$0xff] %vm390_vm1, %v2297_v31  ;;  %v1082_v54 = vsel %vm744_vm4, %v1080_v34, %v1081_v37  ;;  %v1105_v23 = vadd.f32 %v1079_v55, %v1029_v5  ;;  %v1122_v24 = vmul.f32 %v2813_v18, %v2903_v9  ;;  %v1153_v45 = vrot.slane %v1119_v60, 3 }
 0x142   : > { %2306 = vst.msk [vmem:[#allocation3 + $0x8] sm:$0xff] %vm390_vm1, %v2298_v38  ;;  %v1106_v33 = vadd.f32 %v1082_v54, %v1030_v7  ;;  %v1154_v46 = vrot.slane %v1120_v51, 3  ;;  %v1156_v49 = vrot.slane %v1121_v43, 3  ;;  %v1195_v17 = vmul.f32 %v2821_v32, %v2965_v50 }
 0x143   : > { %v1157_v21 = vrot.slane %v1122_v24, 3  ;;  %v1196_v53 = vmul.f32 %v2821_v32, %v2974_v61  ;;  %v1197_v10 = vmul.f32 %v2821_v32, %v2901_v15  ;;  %v1198_v56 = vmul.f32 %v2821_v32, %v2903_v9 }
 0x144   : > { %v1155_v57 = vsel %vm821_vm5, %v1153_v45, %v1154_v46  ;;  %v1229_v59 = vrot.slane %v1195_v17, 4  ;;  %v1269_v47 = vmul.f32 %v2847_v29, %v2901_v15  ;;  %v1270_v62 = vmul.f32 %v2847_v29, %v3058_v4 }
 0x145   : > { %v1158_v50 = vsel %vm821_vm5, %v1156_v49, %v1157_v21  ;;  %v1181_v1 = vadd.f32 %v1155_v57, %v1105_v23  ;;  %v1230_v5 = vrot.slane %v1196_v53, 4  ;;  %v1232_v61 = vrot.slane %v1197_v10, 4 }
 0x146   : > { %v1182_v6 = vadd.f32 %v1158_v50, %v1106_v33  ;;  %v1233_v44 = vrot.slane %v1198_v56, 4  ;;  %v1291_v7 = vmul.f32 %v2857_v2, %v2901_v15  ;;  %v1292_v13 = vmul.f32 %v2857_v2, %v2903_v9 }
 0x147   : > { %v1231_v14 = vsel %vm898_vm6, %v1229_v59, %v1230_v5  ;;  %v1293_v31 = vmul.f32 %v2857_v2, %v3058_v4  ;;  %v1294_v34 = vmul.f32 %v2857_v2, %v3064_v28  ;;  %v1367_v37 = vmul.f32 %v2865_v39, %v2901_v15 }
 0x148   : > { %v1234_v60 = vsel %vm898_vm6, %v1232_v61, %v1233_v44  ;;  %v1257_v38 = vadd.f32 %v1231_v14, %v1181_v1  ;;  %v1325_v55 = vrot.slane %v1291_v7, 1  ;;  %v1326_v51 = vrot.slane %v1292_v13, 1  ;;  %v2313_v43 = vld [vmem:[#allocation3] sm:$0xff] }
 0x149   : > { %v2314_v54 = vld [vmem:[#allocation3 + $0x8] sm:$0xff]  ;;  %v1258_v23 = vadd.f32 %v1234_v60, %v1182_v6  ;;  %v1328_v24 = vrot.slane %v1293_v31, 1  ;;  %v1329_v45 = vrot.slane %v1294_v34, 1  ;;  %v1368_v33 = vmul.f32 %v2865_v39, %v2903_v9 }
 0x14a   : > { %v2321_v46 = vpack.c.bf16 %v2314_v54, %v2313_v43  ;;  %v1277_v49 = vadd.f32 %v1269_v47, %v1257_v38  ;;  %v1327_v17 = vsel %vm667_vm3, %v1325_v55, %v1326_v51  ;;  %v1369_v21 = vmul.f32 %v2865_v39, %v3058_v4  ;;  %v3239_v38 = vld [vmem:[#allocation2 + $0x60] sm:$0xff] }
 0x14b   : > { %v1278_v53 = vadd.f32 %v1270_v62, %v1258_v23  ;;  %v1330_v10 = vsel %vm667_vm3, %v1328_v24, %v1329_v45  ;;  %v1370_v56 = vmul.f32 %v2865_v39, %v3064_v28  ;;  %v1401_v57 = vrot.slane %v1367_v37, 2  ;;  %v3245_v23 = vld [vmem:[#allocation2 + $0x68] sm:$0xf] }
 0x14c   : > { %2593 = vmatprep.mubr.msk.bf16.mxu1 %vm390_vm1, %v2321_v46  ;;  %v1353_v59 = vadd.f32 %v1327_v17, %v1277_v49  ;;  %v1402_v50 = vrot.slane %v1368_v33, 2  ;;  %v1404_v1 = vrot.slane %v1369_v21, 2  ;;  %v1443_v47 = vmul.f32 %v2872_v22, %v2901_v15 }
 0x14d   : > { %v1354_v5 = vadd.f32 %v1330_v10, %v1278_v53  ;;  %v1405_v61 = vrot.slane %v1370_v56, 2  ;;  %v1444_v6 = vmul.f32 %v2872_v22, %v2903_v9  ;;  %v1445_v62 = vmul.f32 %v2872_v22, %v3058_v4 }
 0x14e   : > { %v1403_v44 = vsel %vm744_vm4, %v1401_v57, %v1402_v50  ;;  %v1446_v7 = vmul.f32 %v2872_v22, %v3064_v28  ;;  %v1477_v13 = vrot.slane %v1443_v47, 3  ;;  %v1519_v14 = vmul.f32 %v2877_v26, %v2901_v15 }
 0x14f   : > { %v1406_v31 = vsel %vm744_vm4, %v1404_v1, %v1405_v61  ;;  %v1429_v34 = vadd.f32 %v1403_v44, %v1353_v59  ;;  %v1478_v37 = vrot.slane %v1444_v6, 3  ;;  %v1480_v60 = vrot.slane %v1445_v62, 3 }
 0x150   : > { %v1430_v55 = vadd.f32 %v1406_v31, %v1354_v5  ;;  %v1481_v51 = vrot.slane %v1446_v7, 3  ;;  %v1520_v43 = vmul.f32 %v2877_v26, %v2903_v9  ;;  %v1521_v54 = vmul.f32 %v2877_v26, %v3058_v4 }
 0x151   : > { %v1479_v24 = vsel %vm821_vm5, %v1477_v13, %v1478_v37  ;;  %v1522_v45 = vmul.f32 %v2877_v26, %v3064_v28  ;;  %v1553_v33 = vrot.slane %v1519_v14, 4  ;;  %v1593_v46 = vmul.f32 %v2881_v30, %v3058_v4 }
 0x152   : > { %v1482_v49 = vsel %vm821_vm5, %v1480_v60, %v1481_v51  ;;  %v1505_v17 = vadd.f32 %v1479_v24, %v1429_v34  ;;  %v1554_v21 = vrot.slane %v1520_v43, 4  ;;  %v1556_v53 = vrot.slane %v1521_v54, 4 }
 0x153   : > { %v1506_v10 = vadd.f32 %v1482_v49, %v1430_v55  ;;  %v1557_v56 = vrot.slane %v1522_v45, 4  ;;  %v1594_v57 = vmul.f32 %v2881_v30, %v3239_v38  ;;  %v1615_v59 = vmul.f32 %v2884_v35, %v3058_v4 }
 0x154   : > { %v1555_v50 = vsel %vm898_vm6, %v1553_v33, %v1554_v21  ;;  %v1616_v1 = vmul.f32 %v2884_v35, %v3064_v28  ;;  %v1617_v47 = vmul.f32 %v2884_v35, %v3239_v38  ;;  %v1618_v5 = vmul.f32 %v2884_v35, %v3245_v23 }
 0x155   : > { %v1558_v61 = vsel %vm898_vm6, %v1556_v53, %v1557_v56  ;;  %v1581_v6 = vadd.f32 %v1555_v50, %v1505_v17  ;;  %v1649_v62 = vrot.slane %v1615_v59, 1  ;;  %v1691_v44 = vmul.f32 %v2887_v36, %v3058_v4 }
 0x156   : > { %v1582_v7 = vadd.f32 %v1558_v61, %v1506_v10  ;;  %v1650_v13 = vrot.slane %v1616_v1, 1  ;;  %v1652_v14 = vrot.slane %v1617_v47, 1  ;;  %v1653_v31 = vrot.slane %v1618_v5, 1 }
 0x157   : > { %v1601_v34 = vadd.f32 %v1593_v46, %v1581_v6  ;;  %v1692_v37 = vmul.f32 %v2887_v36, %v3064_v28  ;;  %v1693_v60 = vmul.f32 %v2887_v36, %v3239_v38  ;;  %v1694_v55 = vmul.f32 %v2887_v36, %v3245_v23  ;;  %v3287_v6 = vld [vmem:[#allocation2 + $0x70] sm:$0xff] }
 0x158   : > { %v1602_v51 = vadd.f32 %v1594_v57, %v1582_v7  ;;  %v1651_v43 = vsel %vm667_vm3, %v1649_v62, %v1650_v13  ;;  %v1654_v54 = vsel %vm667_vm3, %v1652_v14, %v1653_v31  ;;  %v1725_v24 = vrot.slane %v1691_v44, 2  ;;  %v3293_v14 = vld [vmem:[#allocation2 + $0x78] sm:$0xf] }
 0x159   : > { %v1677_v45 = vadd.f32 %v1651_v43, %v1601_v34  ;;  %v1726_v33 = vrot.slane %v1692_v37, 2  ;;  %v1728_v49 = vrot.slane %v1693_v60, 2  ;;  %v1729_v17 = vrot.slane %v1694_v55, 2 }
 0x15a   : > { %v1678_v46 = vadd.f32 %v1654_v54, %v1602_v51  ;;  %v1767_v21 = vmul.f32 %v2890_v40, %v3058_v4  ;;  %v1768_v53 = vmul.f32 %v2890_v40, %v3064_v28  ;;  %v1769_v10 = vmul.f32 %v2890_v40, %v3239_v38 }
 0x15b   : > { %v1727_v56 = vsel %vm744_vm4, %v1725_v24, %v1726_v33  ;;  %v1730_v57 = vsel %vm744_vm4, %v1728_v49, %v1729_v17  ;;  %v1770_v59 = vmul.f32 %v2890_v40, %v3245_v23  ;;  %v1843_v50 = vmul.f32 %v2893_v41, %v3058_v4 }
 0x15c   : > { %v1753_v1 = vadd.f32 %v1727_v56, %v1677_v45  ;;  %v1754_v47 = vadd.f32 %v1730_v57, %v1678_v46  ;;  %v1801_v5 = vrot.slane %v1767_v21, 3  ;;  %v1802_v61 = vrot.slane %v1768_v53, 3 }
 0x15d   : > { %v1804_v62 = vrot.slane %v1769_v10, 3  ;;  %v1805_v44 = vrot.slane %v1770_v59, 3  ;;  %v1844_v7 = vmul.f32 %v2893_v41, %v3064_v28  ;;  %v1845_v13 = vmul.f32 %v2893_v41, %v3239_v38 }
 0x15e   : > { %v1803_v31 = vsel %vm821_vm5, %v1801_v5, %v1802_v61  ;;  %v1846_v34 = vmul.f32 %v2893_v41, %v3245_v23  ;;  %v1877_v37 = vrot.slane %v1843_v50, 4  ;;  %v1917_v60 = vmul.f32 %v2896_v0, %v3239_v38 }
 0x15f   : > { %v1806_v55 = vsel %vm821_vm5, %v1804_v62, %v1805_v44  ;;  %v1829_v51 = vadd.f32 %v1803_v31, %v1753_v1  ;;  %v1878_v43 = vrot.slane %v1844_v7, 4  ;;  %v1880_v54 = vrot.slane %v1845_v13, 4 }
 0x160   : > { %v1830_v24 = vadd.f32 %v1806_v55, %v1754_v47  ;;  %v1881_v45 = vrot.slane %v1846_v34, 4  ;;  %v1918_v33 = vmul.f32 %v2896_v0, %v3287_v6  ;;  %v1939_v49 = vmul.f32 %v2899_v48, %v3239_v38 }
 0x161   : > { %v1879_v17 = vsel %vm898_vm6, %v1877_v37, %v1878_v43  ;;  %v1940_v46 = vmul.f32 %v2899_v48, %v3245_v23  ;;  %v1941_v21 = vmul.f32 %v2899_v48, %v3287_v6  ;;  %v1942_v53 = vmul.f32 %v2899_v48, %v3293_v14 }
 0x162   : > { %v1882_v10 = vsel %vm898_vm6, %v1880_v54, %v1881_v45  ;;  %v1905_v56 = vadd.f32 %v1879_v17, %v1829_v51  ;;  %v1973_v57 = vrot.slane %v1939_v49, 1  ;;  %v2015_v59 = vmul.f32 %v2906_v12, %v3239_v38 }
 0x163   : > { %v1906_v50 = vadd.f32 %v1882_v10, %v1830_v24  ;;  %v1974_v1 = vrot.slane %v1940_v46, 1  ;;  %v1976_v47 = vrot.slane %v1941_v21, 1  ;;  %v1977_v5 = vrot.slane %v1942_v53, 1 }
 0x164   : > { %v1925_v61 = vadd.f32 %v1917_v60, %v1905_v56  ;;  %v2016_v62 = vmul.f32 %v2906_v12, %v3245_v23  ;;  %v2017_v44 = vmul.f32 %v2906_v12, %v3287_v6  ;;  %v2018_v7 = vmul.f32 %v2906_v12, %v3293_v14 }
 0x165   : > { %v1926_v13 = vadd.f32 %v1918_v33, %v1906_v50  ;;  %v1975_v31 = vsel %vm667_vm3, %v1973_v57, %v1974_v1  ;;  %v1978_v34 = vsel %vm667_vm3, %v1976_v47, %v1977_v5  ;;  %v2049_v37 = vrot.slane %v2015_v59, 2 }
 0x166   : > { %v2001_v55 = vadd.f32 %v1975_v31, %v1925_v61  ;;  %v2050_v51 = vrot.slane %v2016_v62, 2  ;;  %v2052_v43 = vrot.slane %v2017_v44, 2  ;;  %v2053_v54 = vrot.slane %v2018_v7, 2 }
 0x167   : > { %v2002_v60 = vadd.f32 %v1978_v34, %v1926_v13  ;;  %v2091_v24 = vmul.f32 %v2909_v19, %v3239_v38  ;;  %v2092_v45 = vmul.f32 %v2909_v19, %v3245_v23  ;;  %v2093_v49 = vmul.f32 %v2909_v19, %v3287_v6 }
 0x168   : > { %v2051_v33 = vsel %vm744_vm4, %v2049_v37, %v2050_v51  ;;  %v2054_v17 = vsel %vm744_vm4, %v2052_v43, %v2053_v54  ;;  %v2094_v46 = vmul.f32 %v2909_v19, %v3293_v14  ;;  %v2167_v21 = vmul.f32 %v3095_v3, %v3239_v38 }
 0x169   : > { %v2077_v53 = vadd.f32 %v2051_v33, %v2001_v55  ;;  %v2078_v10 = vadd.f32 %v2054_v17, %v2002_v60  ;;  %v2125_v56 = vrot.slane %v2091_v24, 3  ;;  %v2126_v57 = vrot.slane %v2092_v45, 3 }
 0x16a   : > { %v2128_v59 = vrot.slane %v2093_v49, 3  ;;  %v2129_v50 = vrot.slane %v2094_v46, 3  ;;  %v2168_v1 = vmul.f32 %v3095_v3, %v3245_v23  ;;  %v2169_v47 = vmul.f32 %v3095_v3, %v3287_v6 }
 0x16b   : > { %v2127_v5 = vsel %vm821_vm5, %v2125_v56, %v2126_v57  ;;  %v2170_v61 = vmul.f32 %v3095_v3, %v3293_v14  ;;  %v2201_v62 = vrot.slane %v2167_v21, 4  ;;  %v619_v44 = vmul.f32 %v2752_v20, %v2901_v15 }
 0x16c   : > { %v2130_v7 = vsel %vm821_vm5, %v2128_v59, %v2129_v50  ;;  %v2153_v13 = vadd.f32 %v2127_v5, %v2077_v53  ;;  %v2202_v31 = vrot.slane %v2168_v1, 4  ;;  %v2204_v34 = vrot.slane %v2169_v47, 4 }
 0x16d   : > { %v2154_v37 = vadd.f32 %v2130_v7, %v2078_v10  ;;  %v2205_v55 = vrot.slane %v2170_v61, 4  ;;  %v620_v51 = vmul.f32 %v2752_v20, %v3058_v4  ;;  %v643_v43 = vmul.f32 %v2738_v11, %v2901_v15 }
 0x16e   : > { %v2203_v54 = vsel %vm898_vm6, %v2201_v62, %v2202_v31  ;;  %v644_v3 = vmul.f32 %v2738_v11, %v2903_v9  ;;  %v645_v60 = vmul.f32 %v2738_v11, %v3058_v4  ;;  %v646_v24 = vmul.f32 %v2738_v11, %v3064_v28 }
 0x16f   : > { %v2206_v45 = vsel %vm898_vm6, %v2204_v34, %v2205_v55  ;;  %v2229_v49 = vadd.f32 %v2203_v54, %v2153_v13  ;;  %v680_v33 = vrot.slane %v643_v43, 1  ;;  %v720_v17 = vmul.f32 %v2745_v16, %v2901_v15  ;;  %v2616_v54 = vld [vmem:[#allocation2 + $0x48] sm:$0xf] }
 0x170   : > { %v2230_v46 = vadd.f32 %v2206_v45, %v2154_v37  ;;  %v681_v21 = vrot.slane %v644_v3, 1  ;;  %v683_v53 = vrot.slane %v645_v60, 1  ;;  %v684_v10 = vrot.slane %v646_v24, 1 }
 0x171   : > { %v2244_v56 = vmul.f32 %v3129_v8, %v2229_v49  ;;  %v721_v57 = vmul.f32 %v2745_v16, %v2903_v9  ;;  %v722_v59 = vmul.f32 %v2745_v16, %v3058_v4  ;;  %v723_v50 = vmul.f32 %v2745_v16, %v3064_v28 }
 0x172   : > { %v2245_v1 = vmul.f32 %v3129_v8, %v2230_v46  ;;  %v682_v47 = vsel %vm667_vm3, %v680_v33, %v681_v21  ;;  %v685_v5 = vsel %vm667_vm3, %v683_v53, %v684_v10  ;;  %v757_v61 = vrot.slane %v720_v17, 2  ;;  %v2617_v53 = vld [vmem:[#allocation2 + $0x40] sm:$0xff] }
 0x173   : > { %v2259_v62 = vadd.f32 %v3141_v42, %v2244_v56  ;;  %v704_v7 = vadd.f32 %v682_v47, %v619_v44  ;;  %v705_v13 = vadd.f32 %v685_v5, %v620_v51  ;;  %v758_v31 = vrot.slane %v721_v57, 2 }
 0x174   : > { %v2260_v9 = vadd.f32 %v3141_v42, %v2245_v1  ;;  %v760_v34 = vrot.slane %v722_v59, 2  ;;  %v761_v37 = vrot.slane %v723_v50, 2  ;;  %v797_v55 = vmul.f32 %v2758_v25, %v2901_v15 }
 0x175   : > { %v2267_v43 = vadd.f32 3.0, %v2259_v62  ;;  %v759_v8 = vsel %vm744_vm4, %v757_v61, %v758_v31  ;;  %v798_v3 = vmul.f32 %v2616_v54, %v2758_v25  ;;  %v799_v60 = vmul.f32 %v2758_v25, %v3058_v4 }
 0x176   : > { %v2268_v24 = vadd.f32 3.0, %v2260_v9  ;;  %v762_v44 = vsel %vm744_vm4, %v760_v34, %v761_v37  ;;  %v781_v51 = vadd.f32 %v759_v8, %v704_v7  ;;  %v800_v42 = vmul.f32 %v2758_v25, %v3064_v28 }
 0x177   : > { %v2275_v45 = vmax.f32 %v2267_v43, 0.0  ;;  %v782_v49 = vadd.f32 %v762_v44, %v705_v13  ;;  %v834_v33 = vrot.slane %v797_v55, 3  ;;  %v835_v15 = vrot.slane %v798_v3, 3 }
 0x178   : > { %v2276_v17 = vmax.f32 %v2268_v24, 0.0  ;;  %v837_v46 = vrot.slane %v799_v60, 3  ;;  %v838_v21 = vrot.slane %v800_v42, 3  ;;  %v874_v10 = vmul.f32 %v2617_v53, %v2762_v27 }
 0x179   : > { %v2283_v56 = vmin.f32 %v2275_v45, 6.0  ;;  %v836_v57 = vsel %vm821_vm5, %v834_v33, %v835_v15  ;;  %v875_v59 = vmul.f32 %v2616_v54, %v2762_v27  ;;  %v876_v50 = vmul.f32 %v2762_v27, %v3058_v4 }
 0x17a   : > { %v2284_v1 = vmin.f32 %v2276_v17, 6.0  ;;  %v839_v47 = vsel %vm821_vm5, %v837_v46, %v838_v21  ;;  %v858_v5 = vadd.f32 %v836_v57, %v781_v51  ;;  %v877_v61 = vmul.f32 %v2762_v27, %v3064_v28 }
 0x17b   : > { %v2291_v7 = vmul.f32 %v2283_v56, %v2259_v62  ;;  %v859_v13 = vadd.f32 %v839_v47, %v782_v49  ;;  %v911_v31 = vrot.slane %v874_v10, 4  ;;  %v912_v34 = vrot.slane %v875_v59, 4 }
 0x17c   : > { %v2292_v37 = vmul.f32 %v2284_v1, %v2260_v9  ;;  %v914_v55 = vrot.slane %v876_v50, 4  ;;  %v915_v43 = vrot.slane %v877_v61, 4  ;;  %v947_v8 = vmul.f32 %v2790_v58, %v3058_v4 }
 0x17d   : > { %v2299_v54 = vmul.f32 0.16666667, %v2291_v7  ;;  %v913_v3 = vsel %vm898_vm6, %v911_v31, %v912_v34  ;;  %v948_v60 = vmul.f32 %v2790_v58, %v3239_v38  ;;  %v971_v24 = vmul.f32 %v2784_v52, %v3058_v4 }
 0x17e   : > { %v2300_v44 = vmul.f32 0.16666667, %v2292_v37  ;;  %v916_v62 = vsel %vm898_vm6, %v914_v55, %v915_v43  ;;  %v935_v51 = vadd.f32 %v913_v3, %v858_v5  ;;  %v972_v9 = vmul.f32 %v2784_v52, %v3064_v28 }
 0x17f   : > { %2307 = vst.msk [vmem:[#allocation3 + $0x10] sm:$0xff] %vm390_vm1, %v2299_v54  ;;  %v936_v42 = vadd.f32 %v916_v62, %v859_v13  ;;  %v973_v45 = vmul.f32 %v2784_v52, %v3239_v38  ;;  %v974_v49 = vmul.f32 %v2784_v52, %v3245_v23  ;;  %v1007_v33 = vrot.slane %v971_v24, 1 }
 0x180   : > { %2308 = vst.msk [vmem:[#allocation3 + $0x18] sm:$0xff] %vm390_vm1, %v2300_v44  ;;  %v955_v15 = vadd.f32 %v947_v8, %v935_v51  ;;  %v1008_v17 = vrot.slane %v972_v9, 1  ;;  %v1047_v46 = vmul.f32 %v2797_v63, %v3058_v4  ;;  %v1048_v21 = vmul.f32 %v2797_v63, %v3064_v28 }
 0x181   : > { %v956_v53 = vadd.f32 %v948_v60, %v936_v42  ;;  %v1010_v10 = vrot.slane %v973_v45, 1  ;;  %v1011_v56 = vrot.slane %v974_v49, 1  ;;  %v1049_v57 = vmul.f32 %v2797_v63, %v3239_v38 }
 0x182   : > { %v1009_v59 = vsel %vm667_vm3, %v1007_v33, %v1008_v17  ;;  %v1050_v50 = vmul.f32 %v2797_v63, %v3245_v23  ;;  %v1083_v1 = vrot.slane %v1047_v46, 2  ;;  %v1084_v47 = vrot.slane %v1048_v21, 2 }
 0x183   : > { %v1012_v5 = vsel %vm667_vm3, %v1010_v10, %v1011_v56  ;;  %v1031_v61 = vadd.f32 %v1009_v59, %v955_v15  ;;  %v1086_v7 = vrot.slane %v1049_v57, 2  ;;  %v1123_v13 = vmul.f32 %v2813_v18, %v3058_v4 }
 0x184   : > { %v1032_v31 = vadd.f32 %v1012_v5, %v956_v53  ;;  %v1085_v34 = vsel %vm744_vm4, %v1083_v1, %v1084_v47  ;;  %v1087_v37 = vrot.slane %v1050_v50, 2  ;;  %v1124_v55 = vmul.f32 %v2813_v18, %v3064_v28 }
 0x185   : > { %v1107_v43 = vadd.f32 %v1085_v34, %v1031_v61  ;;  %v1125_v8 = vmul.f32 %v2813_v18, %v3239_v38  ;;  %v1126_v54 = vmul.f32 %v2813_v18, %v3245_v23  ;;  %v1159_v3 = vrot.slane %v1123_v13, 3 }
 0x186   : > { %v1088_v60 = vsel %vm744_vm4, %v1086_v7, %v1087_v37  ;;  %v1160_v24 = vrot.slane %v1124_v55, 3  ;;  %v1199_v44 = vmul.f32 %v2821_v32, %v3058_v4  ;;  %v1200_v62 = vmul.f32 %v2821_v32, %v3064_v28  ;;  %v2315_v51 = vld [vmem:[#allocation3 + $0x10] sm:$0xff] }
 0x187   : > { %v2316_v9 = vld [vmem:[#allocation3 + $0x18] sm:$0xff]  ;;  %v1108_v42 = vadd.f32 %v1088_v60, %v1032_v31  ;;  %v1162_v45 = vrot.slane %v1125_v8, 3  ;;  %v1163_v49 = vrot.slane %v1126_v54, 3  ;;  %v1201_v33 = vmul.f32 %v2821_v32, %v3239_v38 }
 0x188   : > { %v2322_v15 = vpack.c.bf16 %v2316_v9, %v2315_v51  ;;  %v1161_v17 = vsel %vm821_vm5, %v1159_v3, %v1160_v24  ;;  %v1202_v46 = vmul.f32 %v2821_v32, %v3245_v23  ;;  %v1235_v21 = vrot.slane %v1199_v44, 4 }
 0x189   : > { %v1164_v4 = vsel %vm821_vm5, %v1162_v45, %v1163_v49  ;;  %v1183_v53 = vadd.f32 %v1161_v17, %v1107_v43  ;;  %v1236_v10 = vrot.slane %v1200_v62, 4  ;;  %v1238_v28 = vrot.slane %v1201_v33, 4 }
 0x18a   : > { %2594 = vmatmul.mubr.msk.bf16.vlgmr.msra.gmra.mrb[0].mxu1 %vm390_vm1, %v2322_v15  ;;  %v1184_v56 = vadd.f32 %v1164_v4, %v1108_v42  ;;  %v1239_v57 = vrot.slane %v1202_v46, 4  ;;  %v1271_v59 = vmul.f32 %v2847_v29, %v3239_v38  ;;  %v1272_v50 = vmul.f32 %v2847_v29, %v3287_v6 }
 0x18b   : > { %v1237_v1 = vsel %vm898_vm6, %v1235_v21, %v1236_v10  ;;  %v1295_v47 = vmul.f32 %v2857_v2, %v3239_v38  ;;  %v1296_v5 = vmul.f32 %v2857_v2, %v3245_v23  ;;  %v1297_v61 = vmul.f32 %v2857_v2, %v3287_v6 }
 0x18c   : > { %v1240_v7 = vsel %vm898_vm6, %v1238_v28, %v1239_v57  ;;  %v1259_v13 = vadd.f32 %v1237_v1, %v1183_v53  ;;  %v1298_v31 = vmul.f32 %v2857_v2, %v3293_v14  ;;  %v1371_v34 = vmul.f32 %v2865_v39, %v3239_v38  ;;  %v3471_v1 = vld [vmem:[#allocation2 + $0x80] sm:$0xff] }
 0x18d   : > { %v1260_v37 = vadd.f32 %v1240_v7, %v1184_v56  ;;  %v1331_v55 = vrot.slane %v1295_v47, 1  ;;  %v1332_v43 = vrot.slane %v1296_v5, 1  ;;  %v1334_v8 = vrot.slane %v1297_v61, 1 }
 0x18e   : > { %v1279_v54 = vadd.f32 %v1271_v59, %v1259_v13  ;;  %v1335_v3 = vrot.slane %v1298_v31, 1  ;;  %v1372_v60 = vmul.f32 %v2865_v39, %v3245_v23  ;;  %v1373_v24 = vmul.f32 %v2865_v39, %v3287_v6 }
 0x18f   : > { %v1280_v44 = vadd.f32 %v1272_v50, %v1260_v37  ;;  %v1333_v62 = vsel %vm667_vm3, %v1331_v55, %v1332_v43  ;;  %v1374_v51 = vmul.f32 %v2865_v39, %v3293_v14  ;;  %v1407_v9 = vrot.slane %v1371_v34, 2  ;;  %v3480_v55 = vld [vmem:[#allocation2 + $0x88] sm:$0xf] }
 0x190   : > { %v1336_v42 = vsel %vm667_vm3, %v1334_v8, %v1335_v3  ;;  %v1355_v45 = vadd.f32 %v1333_v62, %v1279_v54  ;;  %v1408_v49 = vrot.slane %v1372_v60, 2  ;;  %v1410_v33 = vrot.slane %v1373_v24, 2 }
 0x191   : > { %v1356_v15 = vadd.f32 %v1336_v42, %v1280_v44  ;;  %v1411_v17 = vrot.slane %v1374_v51, 2  ;;  %v1447_v46 = vmul.f32 %v2872_v22, %v3239_v38  ;;  %v1448_v21 = vmul.f32 %v2872_v22, %v3245_v23 }
 0x192   : > { %v1409_v4 = vsel %vm744_vm4, %v1407_v9, %v1408_v49  ;;  %v1449_v53 = vmul.f32 %v2872_v22, %v3287_v6  ;;  %v1450_v10 = vmul.f32 %v2872_v22, %v3293_v14  ;;  %v1523_v28 = vmul.f32 %v2877_v26, %v3239_v38 }
 0x193   : > { %v1412_v56 = vsel %vm744_vm4, %v1410_v33, %v1411_v17  ;;  %v1431_v57 = vadd.f32 %v1409_v4, %v1355_v45  ;;  %v1483_v59 = vrot.slane %v1447_v46, 3  ;;  %v1484_v50 = vrot.slane %v1448_v21, 3 }
 0x194   : > { %v1432_v47 = vadd.f32 %v1412_v56, %v1356_v15  ;;  %v1486_v5 = vrot.slane %v1449_v53, 3  ;;  %v1487_v61 = vrot.slane %v1450_v10, 3  ;;  %v1524_v7 = vmul.f32 %v2877_v26, %v3245_v23 }
 0x195   : > { %v1485_v13 = vsel %vm821_vm5, %v1483_v59, %v1484_v50  ;;  %v1525_v31 = vmul.f32 %v2877_v26, %v3287_v6  ;;  %v1526_v34 = vmul.f32 %v2877_v26, %v3293_v14  ;;  %v1559_v37 = vrot.slane %v1523_v28, 4 }
 0x196   : > { %v1488_v43 = vsel %vm821_vm5, %v1486_v5, %v1487_v61  ;;  %v1507_v8 = vadd.f32 %v1485_v13, %v1431_v57  ;;  %v1560_v54 = vrot.slane %v1524_v7, 4  ;;  %v1595_v3 = vmul.f32 %v2881_v30, %v3287_v6 }
 0x197   : > { %v1508_v60 = vadd.f32 %v1488_v43, %v1432_v47  ;;  %v1562_v24 = vrot.slane %v1525_v31, 4  ;;  %v1563_v44 = vrot.slane %v1526_v34, 4  ;;  %v1596_v62 = vmul.f32 %v2881_v30, %v3471_v1 }
 0x198   : > { %v1561_v51 = vsel %vm898_vm6, %v1559_v37, %v1560_v54  ;;  %v1619_v9 = vmul.f32 %v2884_v35, %v3287_v6  ;;  %v1620_v42 = vmul.f32 %v2884_v35, %v3293_v14  ;;  %v1621_v45 = vmul.f32 %v2884_v35, %v3471_v1 }
 0x199   : > { %v1564_v49 = vsel %vm898_vm6, %v1562_v24, %v1563_v44  ;;  %v1583_v33 = vadd.f32 %v1561_v51, %v1507_v8  ;;  %v1622_v15 = vmul.f32 %v2884_v35, %v3480_v55  ;;  %v1695_v17 = vmul.f32 %v2887_v36, %v3287_v6 }
 0x19a   : > { %v1584_v46 = vadd.f32 %v1564_v49, %v1508_v60  ;;  %v1655_v21 = vrot.slane %v1619_v9, 1  ;;  %v1656_v4 = vrot.slane %v1620_v42, 1  ;;  %v1658_v53 = vrot.slane %v1621_v45, 1  ;;  %v3519_v42 = vld [vmem:[#allocation2 + $0x90] sm:$0xff] }
 0x19b   : > { %v1603_v10 = vadd.f32 %v1595_v3, %v1583_v33  ;;  %v1659_v28 = vrot.slane %v1622_v15, 1  ;;  %v1696_v56 = vmul.f32 %v2887_v36, %v3293_v14  ;;  %v1697_v57 = vmul.f32 %v2887_v36, %v3471_v1 }
 0x19c   : > { %v1604_v59 = vadd.f32 %v1596_v62, %v1584_v46  ;;  %v1657_v50 = vsel %vm667_vm3, %v1655_v21, %v1656_v4  ;;  %v1698_v47 = vmul.f32 %v2887_v36, %v3480_v55  ;;  %v1731_v5 = vrot.slane %v1695_v17, 2 }
 0x19d   : > { %v1660_v61 = vsel %vm667_vm3, %v1658_v53, %v1659_v28  ;;  %v1679_v7 = vadd.f32 %v1657_v50, %v1603_v10  ;;  %v1732_v13 = vrot.slane %v1696_v56, 2  ;;  %v1734_v31 = vrot.slane %v1697_v57, 2  ;;  %v3528_v53 = vld [vmem:[#allocation2 + $0x98] sm:$0xf] }
 0x19e   : > { %v1680_v34 = vadd.f32 %v1660_v61, %v1604_v59  ;;  %v1735_v37 = vrot.slane %v1698_v47, 2  ;;  %v1771_v43 = vmul.f32 %v2890_v40, %v3287_v6  ;;  %v1772_v8 = vmul.f32 %v2890_v40, %v3293_v14 }
 0x19f   : > { %v1733_v54 = vsel %vm744_vm4, %v1731_v5, %v1732_v13  ;;  %v1773_v3 = vmul.f32 %v2890_v40, %v3471_v1  ;;  %v1774_v60 = vmul.f32 %v2890_v40, %v3480_v55  ;;  %v1847_v24 = vmul.f32 %v2893_v41, %v3287_v6 }
 0x1a0   : > { %v1736_v44 = vsel %vm744_vm4, %v1734_v31, %v1735_v37  ;;  %v1755_v62 = vadd.f32 %v1733_v54, %v1679_v7  ;;  %v1807_v51 = vrot.slane %v1771_v43, 3  ;;  %v1808_v9 = vrot.slane %v1772_v8, 3 }
 0x1a1   : > { %v1756_v45 = vadd.f32 %v1736_v44, %v1680_v34  ;;  %v1810_v49 = vrot.slane %v1773_v3, 3  ;;  %v1811_v33 = vrot.slane %v1774_v60, 3  ;;  %v1848_v15 = vmul.f32 %v2893_v41, %v3293_v14 }
 0x1a2   : > { %v1809_v17 = vsel %vm821_vm5, %v1807_v51, %v1808_v9  ;;  %v1849_v46 = vmul.f32 %v2893_v41, %v3471_v1  ;;  %v1850_v21 = vmul.f32 %v2893_v41, %v3480_v55  ;;  %v1883_v4 = vrot.slane %v1847_v24, 4 }
 0x1a3   : > { %v1812_v10 = vsel %vm821_vm5, %v1810_v49, %v1811_v33  ;;  %v1831_v28 = vadd.f32 %v1809_v17, %v1755_v62  ;;  %v1884_v56 = vrot.slane %v1848_v15, 4  ;;  %v1919_v57 = vmul.f32 %v2896_v0, %v3471_v1 }
 0x1a4   : > { %v1832_v59 = vadd.f32 %v1812_v10, %v1756_v45  ;;  %v1886_v50 = vrot.slane %v1849_v46, 4  ;;  %v1887_v47 = vrot.slane %v1850_v21, 4  ;;  %v1920_v5 = vmul.f32 %v2896_v0, %v3519_v42 }
 0x1a5   : > { %v1885_v61 = vsel %vm898_vm6, %v1883_v4, %v1884_v56  ;;  %v1943_v7 = vmul.f32 %v2899_v48, %v3471_v1  ;;  %v1944_v13 = vmul.f32 %v2899_v48, %v3480_v55  ;;  %v1945_v31 = vmul.f32 %v2899_v48, %v3519_v42 }
 0x1a6   : > { %v1888_v34 = vsel %vm898_vm6, %v1886_v50, %v1887_v47  ;;  %v1907_v37 = vadd.f32 %v1885_v61, %v1831_v28  ;;  %v1946_v43 = vmul.f32 %v2899_v48, %v3528_v53  ;;  %v2019_v8 = vmul.f32 %v2906_v12, %v3471_v1 }
 0x1a7   : > { %v1908_v54 = vadd.f32 %v1888_v34, %v1832_v59  ;;  %v1979_v3 = vrot.slane %v1943_v7, 1  ;;  %v1980_v60 = vrot.slane %v1944_v13, 1  ;;  %v1982_v24 = vrot.slane %v1945_v31, 1 }
 0x1a8   : > { %v1927_v44 = vadd.f32 %v1919_v57, %v1907_v37  ;;  %v1983_v62 = vrot.slane %v1946_v43, 1  ;;  %v2020_v51 = vmul.f32 %v2906_v12, %v3480_v55  ;;  %v2021_v9 = vmul.f32 %v2906_v12, %v3519_v42 }
 0x1a9   : > { %v1928_v45 = vadd.f32 %v1920_v5, %v1908_v54  ;;  %v1981_v49 = vsel %vm667_vm3, %v1979_v3, %v1980_v60  ;;  %v2022_v33 = vmul.f32 %v2906_v12, %v3528_v53  ;;  %v2055_v15 = vrot.slane %v2019_v8, 2  ;;  %v3567_v5 = vld [vmem:[%s3856_s4 + $0x18] ss:$0 sm:$0xff] }
 0x1aa   : > { %v1984_v17 = vsel %vm667_vm3, %v1982_v24, %v1983_v62  ;;  %v2003_v46 = vadd.f32 %v1981_v49, %v1927_v44  ;;  %v2056_v21 = vrot.slane %v2020_v51, 2  ;;  %v2058_v4 = vrot.slane %v2021_v9, 2 }
 0x1ab   : > { %v2004_v10 = vadd.f32 %v1984_v17, %v1928_v45  ;;  %v2059_v28 = vrot.slane %v2022_v33, 2  ;;  %v2095_v56 = vmul.f32 %v2909_v19, %v3471_v1  ;;  %v2096_v57 = vmul.f32 %v2909_v19, %v3480_v55 }
 0x1ac   : > { %v2057_v59 = vsel %vm744_vm4, %v2055_v15, %v2056_v21  ;;  %v2097_v50 = vmul.f32 %v2909_v19, %v3519_v42  ;;  %v2098_v47 = vmul.f32 %v2909_v19, %v3528_v53  ;;  %v2171_v61 = vmul.f32 %v3567_v5, %v3471_v1 }
 0x1ad   : > { %v2060_v7 = vsel %vm744_vm4, %v2058_v4, %v2059_v28  ;;  %v2079_v13 = vadd.f32 %v2057_v59, %v2003_v46  ;;  %v2131_v31 = vrot.slane %v2095_v56, 3  ;;  %v2132_v34 = vrot.slane %v2096_v57, 3 }
 0x1ae   : > { %v2080_v37 = vadd.f32 %v2060_v7, %v2004_v10  ;;  %v2134_v43 = vrot.slane %v2097_v50, 3  ;;  %v2135_v8 = vrot.slane %v2098_v47, 3  ;;  %v2172_v54 = vmul.f32 %v3567_v5, %v3480_v55  ;;  %v3599_v7 = vld [vmem:[%s3857_s5] ss:$0 sm:$0xff] }
 0x1af   : > { %v2133_v3 = vsel %vm821_vm5, %v2131_v31, %v2132_v34  ;;  %v2173_v60 = vmul.f32 %v3567_v5, %v3519_v42  ;;  %v2174_v24 = vmul.f32 %v3567_v5, %v3528_v53  ;;  %v2207_v44 = vrot.slane %v2171_v61, 4 }
 0x1b0   : > { %v2136_v62 = vsel %vm821_vm5, %v2134_v43, %v2135_v8  ;;  %v2155_v51 = vadd.f32 %v2133_v3, %v2079_v13  ;;  %v2208_v9 = vrot.slane %v2172_v54, 4  ;;  %v621_v45 = vmul.f32 %v2752_v20, %v3239_v38  ;;  %v3613_v3 = vld [vmem:[%s3858_s6] ss:$0 sm:$0xff] }
 0x1b1   : > { %v2156_v49 = vadd.f32 %v2136_v62, %v2080_v37  ;;  %v2210_v33 = vrot.slane %v2173_v60, 4  ;;  %v2211_v15 = vrot.slane %v2174_v24, 4  ;;  %v622_v17 = vmul.f32 %v2752_v20, %v3287_v6 }
 0x1b2   : > { %v2209_v46 = vsel %vm898_vm6, %v2207_v44, %v2208_v9  ;;  %v647_v21 = vmul.f32 %v2738_v11, %v3239_v38  ;;  %v648_v4 = vmul.f32 %v2738_v11, %v3245_v23  ;;  %v649_v10 = vmul.f32 %v2738_v11, %v3287_v6 }
 0x1b3   : > { %v2212_v28 = vsel %vm898_vm6, %v2210_v33, %v2211_v15  ;;  %v2231_v56 = vadd.f32 %v2209_v46, %v2155_v51  ;;  %v650_v57 = vmul.f32 %v2738_v11, %v3293_v14  ;;  %v724_v20 = vmul.f32 %v2745_v16, %v3239_v38 }
 0x1b4   : > { %v2232_v59 = vadd.f32 %v2212_v28, %v2156_v49  ;;  %v686_v50 = vrot.slane %v647_v21, 1  ;;  %v687_v47 = vrot.slane %v648_v4, 1  ;;  %v689_v61 = vrot.slane %v649_v10, 1 }
 0x1b5   : > { %v2246_v13 = vmul.f32 %v3599_v7, %v2231_v56  ;;  %v690_v31 = vrot.slane %v650_v57, 1  ;;  %v725_v34 = vmul.f32 %v2745_v16, %v3245_v23  ;;  %v726_v11 = vmul.f32 %v2745_v16, %v3287_v6 }
 0x1b6   : > { %v2247_v37 = vmul.f32 %v3599_v7, %v2232_v59  ;;  %v688_v43 = vsel %vm667_vm3, %v686_v50, %v687_v47  ;;  %v727_v8 = vmul.f32 %v2745_v16, %v3293_v14  ;;  %v763_v54 = vrot.slane %v724_v20, 2 }
 0x1b7   : > { %v2261_v60 = vadd.f32 %v3613_v3, %v2246_v13  ;;  %v691_v24 = vsel %vm667_vm3, %v689_v61, %v690_v31  ;;  %v706_v44 = vadd.f32 %v688_v43, %v621_v45  ;;  %v764_v62 = vrot.slane %v725_v34, 2 }
 0x1b8   : > { %v2262_v51 = vadd.f32 %v3613_v3, %v2247_v37  ;;  %v707_v9 = vadd.f32 %v691_v24, %v622_v17  ;;  %v766_v49 = vrot.slane %v726_v11, 2  ;;  %v767_v33 = vrot.slane %v727_v8, 2 }
 0x1b9   : > { %v2269_v15 = vadd.f32 3.0, %v2261_v60  ;;  %v765_v16 = vsel %vm744_vm4, %v763_v54, %v764_v62  ;;  %v801_v46 = vmul.f32 %v2758_v25, %v3239_v38  ;;  %v802_v21 = vmul.f32 %v2758_v25, %v3245_v23 }
 0x1ba   : > { %v2270_v4 = vadd.f32 3.0, %v2262_v51  ;;  %v768_v10 = vsel %vm744_vm4, %v766_v49, %v767_v33  ;;  %v783_v28 = vadd.f32 %v765_v16, %v706_v44  ;;  %v803_v45 = vmul.f32 %v2758_v25, %v3287_v6 }
 0x1bb   : > { %v2277_v56 = vmax.f32 %v2269_v15, 0.0  ;;  %v784_v17 = vadd.f32 %v768_v10, %v707_v9  ;;  %v804_v57 = vmul.f32 %v2758_v25, %v3293_v14  ;;  %v840_v20 = vrot.slane %v801_v46, 3 }
 0x1bc   : > { %v2278_v59 = vmax.f32 %v2270_v4, 0.0  ;;  %v841_v50 = vrot.slane %v802_v21, 3  ;;  %v843_v47 = vrot.slane %v803_v45, 3  ;;  %v878_v61 = vmul.f32 %v2762_v27, %v3239_v38 }
 0x1bd   : > { %v2285_v13 = vmin.f32 %v2277_v56, 6.0  ;;  %v844_v31 = vrot.slane %v804_v57, 3  ;;  %v879_v34 = vmul.f32 %v2762_v27, %v3245_v23  ;;  %v880_v11 = vmul.f32 %v2762_v27, %v3287_v6 }
 0x1be   : > { %v2286_v37 = vmin.f32 %v2278_v59, 6.0  ;;  %v842_v43 = vsel %vm821_vm5, %v840_v20, %v841_v50  ;;  %v881_v25 = vmul.f32 %v2762_v27, %v3293_v14  ;;  %v917_v8 = vrot.slane %v878_v61, 4 }
 0x1bf   : > { %v2293_v54 = vmul.f32 %v2285_v13, %v2261_v60  ;;  %v845_v24 = vsel %vm821_vm5, %v843_v47, %v844_v31  ;;  %v860_v44 = vadd.f32 %v842_v43, %v783_v28  ;;  %v918_v38 = vrot.slane %v879_v34, 4 }
 0x1c0   : > { %v2294_v62 = vmul.f32 %v2286_v37, %v2262_v51  ;;  %v861_v9 = vadd.f32 %v845_v24, %v784_v17  ;;  %v920_v49 = vrot.slane %v880_v11, 4  ;;  %v921_v33 = vrot.slane %v881_v25, 4 }
 0x1c1   : > { %v2301_v23 = vmul.f32 0.16666667, %v2293_v54  ;;  %v919_v15 = vsel %vm898_vm6, %v917_v8, %v918_v38  ;;  %v949_v16 = vmul.f32 %v2790_v58, %v3287_v6  ;;  %v950_v46 = vmul.f32 %v2790_v58, %v3471_v1 }
 0x1c2   : > { %v2302_v27 = vmul.f32 0.16666667, %v2294_v62  ;;  %v922_v60 = vsel %vm898_vm6, %v920_v49, %v921_v33  ;;  %v937_v21 = vadd.f32 %v919_v15, %v860_v44  ;;  %v975_v4 = vmul.f32 %v2784_v52, %v3287_v6 }
 0x1c3   : > { %2309 = vst.msk [vmem:[#allocation3 + $0x20] sm:$0xff] %vm390_vm1, %v2301_v23  ;;  %v938_v51 = vadd.f32 %v922_v60, %v861_v9  ;;  %v976_v10 = vmul.f32 %v2784_v52, %v3293_v14  ;;  %v977_v28 = vmul.f32 %v2784_v52, %v3471_v1  ;;  %v978_v45 = vmul.f32 %v2784_v52, %v3480_v55 }
 0x1c4   : > { %2310 = vst.msk [vmem:[#allocation3 + $0x28] sm:$0xff] %vm390_vm1, %v2302_v27  ;;  %v957_v58 = vadd.f32 %v949_v16, %v937_v21  ;;  %v1013_v56 = vrot.slane %v975_v4, 1  ;;  %v1051_v17 = vmul.f32 %v2797_v63, %v3287_v6  ;;  %v1052_v57 = vmul.f32 %v2797_v63, %v3293_v14 }
 0x1c5   : > { %v958_v20 = vadd.f32 %v950_v46, %v938_v51  ;;  %v1014_v59 = vrot.slane %v976_v10, 1  ;;  %v1016_v50 = vrot.slane %v977_v28, 1  ;;  %v1017_v47 = vrot.slane %v978_v45, 1 }
 0x1c6   : > { %v1053_v61 = vmul.f32 %v2797_v63, %v3471_v1  ;;  %v1054_v52 = vmul.f32 %v2797_v63, %v3480_v55  ;;  %v1089_v13 = vrot.slane %v1051_v17, 2  ;;  %v1090_v31 = vrot.slane %v1052_v57, 2 }
 0x1c7   : > { %v1015_v34 = vsel %vm667_vm3, %v1013_v56, %v1014_v59  ;;  %v1018_v11 = vsel %vm667_vm3, %v1016_v50, %v1017_v47  ;;  %v1127_v37 = vmul.f32 %v2813_v18, %v3287_v6  ;;  %v1128_v43 = vmul.f32 %v2813_v18, %v3293_v14 }
 0x1c8   : > { %v1033_v25 = vadd.f32 %v1015_v34, %v957_v58  ;;  %v1034_v8 = vadd.f32 %v1018_v11, %v958_v20  ;;  %v1091_v54 = vsel %vm744_vm4, %v1089_v13, %v1090_v31  ;;  %v1092_v24 = vrot.slane %v1053_v61, 2 }
 0x1c9   : > { %v1093_v44 = vrot.slane %v1054_v52, 2  ;;  %v1129_v63 = vmul.f32 %v2813_v18, %v3471_v1  ;;  %v1130_v38 = vmul.f32 %v2813_v18, %v3480_v55  ;;  %v1165_v62 = vrot.slane %v1127_v37, 3 }
 0x1ca   : > { %v1109_v9 = vadd.f32 %v1091_v54, %v1033_v25  ;;  %v1166_v49 = vrot.slane %v1128_v43, 3  ;;  %v1203_v33 = vmul.f32 %v2821_v32, %v3287_v6  ;;  %v1204_v23 = vmul.f32 %v2821_v32, %v3293_v14  ;;  %v2317_v15 = vld [vmem:[#allocation3 + $0x20] sm:$0xff] }
 0x1cb   : > { %v2318_v16 = vld [vmem:[#allocation3 + $0x28] sm:$0xff]  ;;  %v1094_v46 = vsel %vm744_vm4, %v1092_v24, %v1093_v44  ;;  %v1168_v27 = vrot.slane %v1129_v63, 3  ;;  %v1169_v60 = vrot.slane %v1130_v38, 3  ;;  %v1205_v21 = vmul.f32 %v2821_v32, %v3471_v1 }
 0x1cc   : > { %v2323_v4 = vpack.c.bf16 %v2318_v16, %v2317_v15  ;;  %v1110_v18 = vadd.f32 %v1094_v46, %v1034_v8  ;;  %v1167_v51 = vsel %vm821_vm5, %v1165_v62, %v1166_v49  ;;  %v1206_v10 = vmul.f32 %v2821_v32, %v3480_v55 }
 0x1cd   : > { %v1170_v6 = vsel %vm821_vm5, %v1168_v27, %v1169_v60  ;;  %v1185_v28 = vadd.f32 %v1167_v51, %v1109_v9  ;;  %v1241_v14 = vrot.slane %v1203_v33, 4  ;;  %v1242_v45 = vrot.slane %v1204_v23, 4  ;;  %v3718_v60 = vld [vmem:[#allocation2 + $0xa0] sm:$0xff] }
 0x1ce   : > { %2597 = vmatprep.mubr.msk.bf16.mxu1 %vm390_vm1, %v2323_v4  ;;  %v1186_v58 = vadd.f32 %v1170_v6, %v1110_v18  ;;  %v1244_v56 = vrot.slane %v1205_v21, 4  ;;  %v1245_v17 = vrot.slane %v1206_v10, 4  ;;  %v1273_v57 = vmul.f32 %v2847_v29, %v3471_v1 }
 0x1cf   : > { %v1243_v20 = vsel %vm898_vm6, %v1241_v14, %v1242_v45  ;;  %v1274_v59 = vmul.f32 %v2847_v29, %v3519_v42  ;;  %v1299_v32 = vmul.f32 %v2857_v2, %v3471_v1  ;;  %v1300_v50 = vmul.f32 %v2857_v2, %v3480_v55 }
 0x1d0   : > { %v1246_v47 = vsel %vm898_vm6, %v1244_v56, %v1245_v17  ;;  %v1261_v61 = vadd.f32 %v1243_v20, %v1185_v28  ;;  %v1301_v52 = vmul.f32 %v2857_v2, %v3519_v42  ;;  %v1302_v13 = vmul.f32 %v2857_v2, %v3528_v53  ;;  %v3729_v17 = vld [vmem:[#allocation2 + $0xa8] sm:$0xf] }
 0x1d1   : > { %v1262_v31 = vadd.f32 %v1246_v47, %v1186_v58  ;;  %v1337_v34 = vrot.slane %v1299_v32, 1  ;;  %v1338_v11 = vrot.slane %v1300_v50, 1  ;;  %v1375_v29 = vmul.f32 %v2865_v39, %v3471_v1 }
 0x1d2   : > { %v1281_v37 = vadd.f32 %v1273_v57, %v1261_v61  ;;  %v1340_v43 = vrot.slane %v1301_v52, 1  ;;  %v1341_v25 = vrot.slane %v1302_v13, 1  ;;  %v1376_v8 = vmul.f32 %v2865_v39, %v3480_v55 }
 0x1d3   : > { %v1282_v54 = vadd.f32 %v1274_v59, %v1262_v31  ;;  %v1339_v24 = vsel %vm667_vm3, %v1337_v34, %v1338_v11  ;;  %v1377_v44 = vmul.f32 %v2865_v39, %v3519_v42  ;;  %v1378_v2 = vmul.f32 %v2865_v39, %v3528_v53 }
 0x1d4   : > { %v1342_v63 = vsel %vm667_vm3, %v1340_v43, %v1341_v25  ;;  %v1357_v38 = vadd.f32 %v1339_v24, %v1281_v37  ;;  %v1413_v62 = vrot.slane %v1375_v29, 2  ;;  %v1414_v9 = vrot.slane %v1376_v8, 2 }
 0x1d5   : > { %v1358_v49 = vadd.f32 %v1342_v63, %v1282_v54  ;;  %v1416_v33 = vrot.slane %v1377_v44, 2  ;;  %v1417_v23 = vrot.slane %v1378_v2, 2  ;;  %v1451_v15 = vmul.f32 %v2872_v22, %v3471_v1 }
 0x1d6   : > { %v1415_v16 = vsel %vm744_vm4, %v1413_v62, %v1414_v9  ;;  %v1452_v46 = vmul.f32 %v2872_v22, %v3480_v55  ;;  %v1453_v27 = vmul.f32 %v2872_v22, %v3519_v42  ;;  %v1454_v39 = vmul.f32 %v2872_v22, %v3528_v53 }
 0x1d7   : > { %v1418_v21 = vsel %vm744_vm4, %v1416_v33, %v1417_v23  ;;  %v1433_v4 = vadd.f32 %v1415_v16, %v1357_v38  ;;  %v1489_v18 = vrot.slane %v1451_v15, 3  ;;  %v1527_v51 = vmul.f32 %v2877_v26, %v3471_v1 }
 0x1d8   : > { %v1434_v10 = vadd.f32 %v1418_v21, %v1358_v49  ;;  %v1490_v6 = vrot.slane %v1452_v46, 3  ;;  %v1492_v28 = vrot.slane %v1453_v27, 3  ;;  %v1493_v14 = vrot.slane %v1454_v39, 3 }
 0x1d9   : > { %v1528_v45 = vmul.f32 %v2877_v26, %v3480_v55  ;;  %v1529_v58 = vmul.f32 %v2877_v26, %v3519_v42  ;;  %v1530_v22 = vmul.f32 %v2877_v26, %v3528_v53  ;;  %v1565_v56 = vrot.slane %v1527_v51, 4 }
 0x1da   : > { %v1491_v57 = vsel %vm821_vm5, %v1489_v18, %v1490_v6  ;;  %v1494_v1 = vsel %vm821_vm5, %v1492_v28, %v1493_v14  ;;  %v1597_v20 = vmul.f32 %v2881_v30, %v3519_v42  ;;  %v1598_v59 = vmul.f32 %v2881_v30, %v3718_v60 }
 0x1db   : > { %v1509_v55 = vadd.f32 %v1491_v57, %v1433_v4  ;;  %v1510_v32 = vadd.f32 %v1494_v1, %v1434_v10  ;;  %v1566_v50 = vrot.slane %v1528_v45, 4  ;;  %v1568_v47 = vrot.slane %v1529_v58, 4  ;;  %v605_v58 = vld [vmem:[#allocation2 + $0xb0] sm:$0xff]  ;;  %v606_v1 = vld [vmem:[#allocation2 + $0xb8] sm:$0xf] }
 0x1dc   : > { %v1569_v61 = vrot.slane %v1530_v22, 4  ;;  %v1623_v26 = vmul.f32 %v2884_v35, %v3519_v42  ;;  %v1624_v52 = vmul.f32 %v2884_v35, %v3528_v53  ;;  %v1625_v13 = vmul.f32 %v2884_v35, %v3718_v60 }
 0x1dd   : > { %v1567_v31 = vsel %vm898_vm6, %v1565_v56, %v1566_v50  ;;  %v1626_v34 = vmul.f32 %v2884_v35, %v3729_v17  ;;  %v1699_v30 = vmul.f32 %v2887_v36, %v3519_v42  ;;  %v1700_v11 = vmul.f32 %v2887_v36, %v3528_v53 }
 0x1de   : > { %v1570_v29 = vsel %vm898_vm6, %v1568_v47, %v1569_v61  ;;  %v1585_v37 = vadd.f32 %v1567_v31, %v1509_v55  ;;  %v1661_v43 = vrot.slane %v1623_v26, 1  ;;  %v1662_v25 = vrot.slane %v1624_v52, 1 }
 0x1df   : > { %v1586_v8 = vadd.f32 %v1570_v29, %v1510_v32  ;;  %v1664_v54 = vrot.slane %v1625_v13, 1  ;;  %v1665_v24 = vrot.slane %v1626_v34, 1  ;;  %v1701_v44 = vmul.f32 %v2887_v36, %v3718_v60 }
 0x1e0   : > { %v1605_v2 = vadd.f32 %v1597_v20, %v1585_v37  ;;  %v1663_v35 = vsel %vm667_vm3, %v1661_v43, %v1662_v25  ;;  %v1702_v63 = vmul.f32 %v2887_v36, %v3729_v17  ;;  %v1737_v38 = vrot.slane %v1699_v30, 2 }
 0x1e1   : > { %v1606_v62 = vadd.f32 %v1598_v59, %v1586_v8  ;;  %v1666_v9 = vsel %vm667_vm3, %v1664_v54, %v1665_v24  ;;  %v1738_v49 = vrot.slane %v1700_v11, 2  ;;  %v1740_v33 = vrot.slane %v1701_v44, 2 }
 0x1e2   : > { %v1681_v23 = vadd.f32 %v1663_v35, %v1605_v2  ;;  %v1741_v15 = vrot.slane %v1702_v63, 2  ;;  %v1775_v16 = vmul.f32 %v2890_v40, %v3519_v42  ;;  %v1776_v46 = vmul.f32 %v2890_v40, %v3528_v53 }
 0x1e3   : > { %v1682_v27 = vadd.f32 %v1666_v9, %v1606_v62  ;;  %v1739_v39 = vsel %vm744_vm4, %v1737_v38, %v1738_v49  ;;  %v1777_v36 = vmul.f32 %v2890_v40, %v3718_v60  ;;  %v1778_v21 = vmul.f32 %v2890_v40, %v3729_v17 }
 0x1e4   : > { %v1742_v4 = vsel %vm744_vm4, %v1740_v33, %v1741_v15  ;;  %v1757_v18 = vadd.f32 %v1739_v39, %v1681_v23  ;;  %v1813_v51 = vrot.slane %v1775_v16, 3  ;;  %v1814_v10 = vrot.slane %v1776_v46, 3 }
 0x1e5   : > { %v1758_v6 = vadd.f32 %v1742_v4, %v1682_v27  ;;  %v1816_v28 = vrot.slane %v1777_v36, 3  ;;  %v1817_v14 = vrot.slane %v1778_v21, 3  ;;  %v1851_v45 = vmul.f32 %v2893_v41, %v3519_v42 }
 0x1e6   : > { %v1815_v22 = vsel %vm821_vm5, %v1813_v51, %v1814_v10  ;;  %v1852_v56 = vmul.f32 %v2893_v41, %v3528_v53  ;;  %v1853_v40 = vmul.f32 %v2893_v41, %v3718_v60  ;;  %v1854_v57 = vmul.f32 %v2893_v41, %v3729_v17 }
 0x1e7   : > { %v1818_v20 = vsel %vm821_vm5, %v1816_v28, %v1817_v14  ;;  %v1833_v59 = vadd.f32 %v1815_v22, %v1757_v18  ;;  %v1889_v55 = vrot.slane %v1851_v45, 4  ;;  %v1921_v42 = vmul.f32 %v2896_v0, %v3718_v60 }
 0x1e8   : > { %v1834_v32 = vadd.f32 %v1818_v20, %v1758_v6  ;;  %v1890_v50 = vrot.slane %v1852_v56, 4  ;;  %v1892_v47 = vrot.slane %v1853_v40, 4  ;;  %v1893_v61 = vrot.slane %v1854_v57, 4 }
 0x1e9   : > { %v1922_v53 = vmul.f32 %v2896_v0, %v605_v58  ;;  %v1947_v26 = vmul.f32 %v2899_v48, %v3718_v60  ;;  %v1948_v41 = vmul.f32 %v2899_v48, %v3729_v17  ;;  %v1949_v52 = vmul.f32 %v2899_v48, %v605_v58 }
 0x1ea   : > { %v1891_v13 = vsel %vm898_vm6, %v1889_v55, %v1890_v50  ;;  %v1894_v31 = vsel %vm898_vm6, %v1892_v47, %v1893_v61  ;;  %v1950_v34 = vmul.f32 %v2899_v48, %v606_v1  ;;  %v2023_v30 = vmul.f32 %v2906_v12, %v3718_v60 }
 0x1eb   : > { %v1909_v11 = vadd.f32 %v1891_v13, %v1833_v59  ;;  %v1910_v29 = vadd.f32 %v1894_v31, %v1834_v32  ;;  %v1985_v0 = vrot.slane %v1947_v26, 1  ;;  %v1986_v37 = vrot.slane %v1948_v41, 1 }
 0x1ec   : > { %v1988_v43 = vrot.slane %v1949_v52, 1  ;;  %v1989_v25 = vrot.slane %v1950_v34, 1  ;;  %v2024_v8 = vmul.f32 %v2906_v12, %v3729_v17  ;;  %v2025_v54 = vmul.f32 %v2906_v12, %v605_v58 }
 0x1ed   : > { %v1929_v24 = vadd.f32 %v1921_v42, %v1909_v11  ;;  %v1930_v44 = vadd.f32 %v1922_v53, %v1910_v29  ;;  %v1987_v2 = vsel %vm667_vm3, %v1985_v0, %v1986_v37  ;;  %v2026_v48 = vmul.f32 %v2906_v12, %v606_v1  ;;  %v2566_v0 = vld [vmem:[%s3861_s9] ss:$0 sm:$0xff] }
 0x1ee   : > { %v1990_v35 = vsel %vm667_vm3, %v1988_v43, %v1989_v25  ;;  %v2061_v63 = vrot.slane %v2023_v30, 2  ;;  %v2062_v38 = vrot.slane %v2024_v8, 2  ;;  %v2064_v62 = vrot.slane %v2025_v54, 2 }
 0x1ef   : > { %v2005_v9 = vadd.f32 %v1987_v2, %v1929_v24  ;;  %v2006_v49 = vadd.f32 %v1990_v35, %v1930_v44  ;;  %v2065_v33 = vrot.slane %v2026_v48, 2  ;;  %v2099_v23 = vmul.f32 %v2909_v19, %v3718_v60 }
 0x1f0   : > { %v2063_v15 = vsel %vm744_vm4, %v2061_v63, %v2062_v38  ;;  %v2100_v16 = vmul.f32 %v2909_v19, %v3729_v17  ;;  %v2101_v46 = vmul.f32 %v2909_v19, %v605_v58  ;;  %v2102_v12 = vmul.f32 %v2909_v19, %v606_v1 }
 0x1f1   : > { %v2066_v27 = vsel %vm744_vm4, %v2064_v62, %v2065_v33  ;;  %v2081_v39 = vadd.f32 %v2063_v15, %v2005_v9  ;;  %v2137_v36 = vrot.slane %v2099_v23, 3  ;;  %v2175_v21 = vmul.f32 %v3567_v5, %v3718_v60 }
 0x1f2   : > { %v2082_v4 = vadd.f32 %v2066_v27, %v2006_v49  ;;  %v2138_v18 = vrot.slane %v2100_v16, 3  ;;  %v2140_v51 = vrot.slane %v2101_v46, 3  ;;  %v2141_v10 = vrot.slane %v2102_v12, 3 }
 0x1f3   : > { %v2176_v6 = vmul.f32 %v3567_v5, %v3729_v17  ;;  %v2177_v28 = vmul.f32 %v3567_v5, %v605_v58  ;;  %v2178_v14 = vmul.f32 %v3567_v5, %v606_v1  ;;  %v2213_v45 = vrot.slane %v2175_v21, 4 }
 0x1f4   : > { %v2139_v19 = vsel %vm821_vm5, %v2137_v36, %v2138_v18  ;;  %v2142_v22 = vsel %vm821_vm5, %v2140_v51, %v2141_v10 }
 0x1f5   : > { %v2157_v56 = vadd.f32 %v2139_v19, %v2081_v39  ;;  %v2158_v40 = vadd.f32 %v2142_v22, %v2082_v4  ;;  %v2214_v57 = vrot.slane %v2176_v6, 4  ;;  %v2216_v60 = vrot.slane %v2177_v28, 4 }
 0x1f6   : > { %v2217_v20 = vrot.slane %v2178_v14, 4 }
 0x1f7   : > { %v2215_v59 = vsel %vm898_vm6, %v2213_v45, %v2214_v57 }
 0x1f8   : > { %v2218_v55 = vsel %vm898_vm6, %v2216_v60, %v2217_v20  ;;  %v2233_v42 = vadd.f32 %v2215_v59, %v2157_v56 }
 0x1f9   : > { %v2234_v17 = vadd.f32 %v2218_v55, %v2158_v40 }
 0x1fa   : > { %v2248_v58 = vmul.f32 %v3599_v7, %v2233_v42 }
 0x1fb   : > { %v2249_v5 = vmul.f32 %v3599_v7, %v2234_v17 }
 0x1fc   : > { %v2263_v1 = vadd.f32 %v3613_v3, %v2248_v58 }
 0x1fd   : > { %v2264_v32 = vadd.f32 %v3613_v3, %v2249_v5  ;;  %v2565_v3 = vld [vmem:[%s3860_s8] ss:$0 sm:$0xff] }
 0x1fe   : > { %v2271_v50 = vadd.f32 3.0, %v2263_v1 }
 0x1ff   : > { %v2272_v47 = vadd.f32 3.0, %v2264_v32 }
 0x200   : > { %v2279_v61 = vmax.f32 %v2271_v50, 0.0 }
 0x201   : > { %v2280_v53 = vmax.f32 %v2272_v47, 0.0 }
 0x202   : > { %v2287_v26 = vmin.f32 %v2279_v61, 6.0 }
 0x203   : > { %v2288_v41 = vmin.f32 %v2280_v53, 6.0 }
 0x204   : > { %v2295_v52 = vmul.f32 %v2287_v26, %v2263_v1 }
 0x205   : > { %v2296_v13 = vmul.f32 %v2288_v41, %v2264_v32 }
 0x206   : > { %v2303_v31 = vmul.f32 0.16666667, %v2295_v52 }
 0x207   : > { %v2304_v34 = vmul.f32 0.16666667, %v2296_v13 }
 0x208   : > { %2311 = vst.msk [vmem:[#allocation3 + $0x30] sm:$0xff] %vm390_vm1, %v2303_v31 }
 0x209   : > { %2312 = vst.msk [vmem:[#allocation3 + $0x38] sm:$0xff] %vm390_vm1, %v2304_v34 }
 0x20f   : > { %v2319_v30 = vld [vmem:[#allocation3 + $0x30] sm:$0xff] }
 0x210   : > { %v2320_v7 = vld [vmem:[#allocation3 + $0x38] sm:$0xff] }
 0x211   : > { %v2324_v11 = vpack.c.bf16 %v2320_v7, %v2319_v30 }
 0x213   : > { %2598 = vmatmul.mubr.msk.bf16.gmra.mrb[4].mxu1 %vm390_vm1, %v2324_v11 }
 0x25d   : > { %v2595_v29 = vpop.f32.mrb[0].mxu1 }
 0x25e   : > { %v2415_v37 = vmul.f32 %v2595_v29, %v2565_v3  ;;  %v2375_v43 = vpop.f32.mrb[1].mxu1 }
 0x25f   : > { %v2413_v25 = vmul.f32 %v2565_v3, %v2375_v43  ;;  %v2596_v8 = vpop.f32.mrb[2].mxu1 }
 0x260   : > { %v2430_v54 = vadd.f32 %v2566_v0, %v2415_v37  ;;  %v2416_v24 = vmul.f32 %v2596_v8, %v2565_v3  ;;  %v2378_v44 = vpop.f32.mrb[3].mxu1 }
 0x261   : > { %v2428_v2 = vadd.f32 %v2566_v0, %v2413_v25  ;;  %v2414_v48 = vmul.f32 %v2565_v3, %v2378_v44 }
 0x262   : > { %v2438_v35 = vadd.f32 3.0, %v2430_v54  ;;  %v2431_v63 = vadd.f32 %v2566_v0, %v2416_v24 }
 0x263   : > { %v2436_v38 = vadd.f32 3.0, %v2428_v2  ;;  %v2429_v62 = vadd.f32 %v2566_v0, %v2414_v48 }
 0x264   : > { %v2446_v9 = vmax.f32 %v2438_v35, 0.0  ;;  %v2439_v49 = vadd.f32 3.0, %v2431_v63 }
 0x265   : > { %v2444_v33 = vmax.f32 %v2436_v38, 0.0  ;;  %v2437_v23 = vadd.f32 3.0, %v2429_v62 }
 0x266   : > { %v2454_v15 = vmin.f32 %v2446_v9, 6.0  ;;  %v2447_v16 = vmax.f32 %v2439_v49, 0.0 }
 0x267   : > { %v2452_v46 = vmin.f32 %v2444_v33, 6.0  ;;  %v2445_v12 = vmax.f32 %v2437_v23, 0.0 }
 0x268   : > { %v2462_v27 = vmul.f32 %v2454_v15, %v2430_v54  ;;  %v2455_v39 = vmin.f32 %v2447_v16, 6.0 }
 0x269   : > { %v2460_v36 = vmul.f32 %v2452_v46, %v2428_v2  ;;  %v2453_v21 = vmin.f32 %v2445_v12, 6.0 }
 0x26a   : > { %v2470_v4 = vmul.f32 0.16666667, %v2462_v27  ;;  %v2463_v18 = vmul.f32 %v2455_v39, %v2431_v63 }
 0x26b   : > { %v2468_v51 = vmul.f32 0.16666667, %v2460_v36  ;;  %v2461_v10 = vmul.f32 %v2453_v21, %v2429_v62 }
 0x26c   : > { %2478 = vst.msk [vmem:[%s3831_s16 + $0x10] sm:$0xff] %vm390_vm1, %v2470_v4  ;;  %v2471_v6 = vmul.f32 0.16666667, %v2463_v18 }
 0x26d   : > { %2476 = vst.msk [vmem:[%s3831_s16] sm:$0xff] %vm390_vm1, %v2468_v51  ;;  %v2469_v28 = vmul.f32 0.16666667, %v2461_v10 }
 0x26e   : > { %2479 = vst.msk [vmem:[%s3831_s16 + $0x18] sm:$0xff] %vm390_vm1, %v2471_v6 }
 0x26f   : > { %2477 = vst.msk [vmem:[%s3831_s16 + $0x8] sm:$0xff] %vm390_vm1, %v2469_v28 }
 0x2e6   : > { %v2599_v14 = vpop.f32.mrb[4].mxu1 }
 0x2e7   : > { %v2419_v45 = vmul.f32 %v2599_v14, %v2565_v3  ;;  %v2391_v19 = vpop.f32.mrb[5].mxu1 }
 0x2e8   : > { %v2417_v22 = vmul.f32 %v2565_v3, %v2391_v19  ;;  %v2600_v56 = vpop.f32.mrb[6].mxu1 }
 0x2e9   : > { %v2434_v40 = vadd.f32 %v2566_v0, %v2419_v45  ;;  %v2420_v57 = vmul.f32 %v2600_v56, %v2565_v3  ;;  %v2394_v60 = vpop.f32.mrb[7].mxu1 }
 0x2ea   : > { %v2432_v20 = vadd.f32 %v2566_v0, %v2417_v22  ;;  %v2418_v59 = vmul.f32 %v2565_v3, %v2394_v60 }
 0x2eb   : > { %v2442_v55 = vadd.f32 3.0, %v2434_v40  ;;  %v2435_v42 = vadd.f32 %v2566_v0, %v2420_v57 }
 0x2ec   : > { %v2440_v17 = vadd.f32 3.0, %v2432_v20  ;;  %v2433_v58 = vadd.f32 %v2566_v0, %v2418_v59 }
 0x2ed   : > { %v2450_v5 = vmax.f32 %v2442_v55, 0.0  ;;  %v2443_v1 = vadd.f32 3.0, %v2435_v42 }
 0x2ee   : > { %v2448_v32 = vmax.f32 %v2440_v17, 0.0  ;;  %v2441_v50 = vadd.f32 3.0, %v2433_v58 }
 0x2ef   : > { %v2458_v47 = vmin.f32 %v2450_v5, 6.0  ;;  %v2451_v61 = vmax.f32 %v2443_v1, 0.0 }
 0x2f0   : > { %v2456_v53 = vmin.f32 %v2448_v32, 6.0  ;;  %v2449_v26 = vmax.f32 %v2441_v50, 0.0 }
 0x2f1   : > { %v2466_v41 = vmul.f32 %v2458_v47, %v2434_v40  ;;  %v2459_v52 = vmin.f32 %v2451_v61, 6.0 }
 0x2f2   : > { %v2464_v13 = vmul.f32 %v2456_v53, %v2432_v20  ;;  %v2457_v31 = vmin.f32 %v2449_v26, 6.0 }
 0x2f3   : > { %v2474_v34 = vmul.f32 0.16666667, %v2466_v41  ;;  %v2467_v30 = vmul.f32 %v2459_v52, %v2435_v42 }
 0x2f4   : > { %v2472_v7 = vmul.f32 0.16666667, %v2464_v13  ;;  %v2465_v11 = vmul.f32 %v2457_v31, %v2433_v58 }
 0x2f5   : > { %2482 = vst.msk [vmem:[%s3831_s16 + $0x30] sm:$0xff] %vm390_vm1, %v2474_v34  ;;  %v2475_v3 = vmul.f32 0.16666667, %v2467_v30 }
 0x2f6   : > { %2480 = vst.msk [vmem:[%s3831_s16 + $0x20] sm:$0xff] %vm390_vm1, %v2472_v7  ;;  %v2473_v29 = vmul.f32 0.16666667, %v2465_v11 }
 0x2f7   : > { %2483 = vst.msk [vmem:[%s3831_s16 + $0x38] sm:$0xff] %vm390_vm1, %v2475_v3 }
 0x2f8   : > { %2481 = vst.msk [vmem:[%s3831_s16 + $0x28] sm:$0xff] %vm390_vm1, %v2473_v29 }
 0x2f9 PF: > { %s20_s13 = sadd.s32 1, %s2627_s13  }
 0x2fa   : > { %p17_p4 = scmp.ge.s32.totalorder %s20_s13, 4  }
 0x2fc   :  { %19 = sbr.rel (!%p17_p4) target bundleno = 1 (0x1), region = 98 }

// kernel: yolo_pafpn_forward.24
= control target key start
LH: loop header
LB: loop body
LE: loop exit
PB: predicated region body
PF: predicated region fallthrough
CT: control target
= control target key end

     0   :  { %vm189_vm0 = vcmask 64512   ;;  %s323_s1 = inlined_call_operand.vmem [shape: bf16[128,8], index: 1, kind: input, shape index: {}]   ;;  %s324_s0 = inlined_call_operand.vmem [shape: bf16[32,128], index: 0, kind: input, shape index: {}]   ;;  %s325_s2 = inlined_call_operand.vmem [shape: f32[1,8], index: 2, kind: input, shape index: {}]   ;;  %s326_s3 = inlined_call_operand.vmem [shape: f32[1,8], index: 3, kind: input, shape index: {}]   ;;  %s327_s4 = inlined_call_operand.vmem [shape: f32[32,8], index: 4, kind: output, shape index: {}]  }
   0x1   :  { %v240_v0 = vld [vmem:[%s323_s1] sm:$0xff]   ;;  %v241_v1 = vld [vmem:[%s323_s1 + $0x8] sm:$0xff]   ;;  %v242_v2 = vld [vmem:[%s323_s1 + $0x10] sm:$0xff]  }
   0x2   :  { %220 = vmatprep.subr.bf16.mxu0 %v240_v0  ;;  %v243_v3 = vld [vmem:[%s323_s1 + $0x18] sm:$0xff]   ;;  %v248_v4 = vld [vmem:[%s324_s0] sm:$0xff]   ;;  %v245_v6 = vld [vmem:[%s323_s1 + $0x28] sm:$0xff]  }
   0x3   :  { %221 = vmatpush3.bf16.msra.mxu0 %v240_v0  ;;  %236 = vmatprep.mubr.bf16.mxu0 %v248_v4  ;;  %v244_v5 = vld [vmem:[%s323_s1 + $0x20] sm:$0xff]   ;;  %v246_v7 = vld [vmem:[%s323_s1 + $0x30] sm:$0xff]   ;;  %v247_v8 = vld [vmem:[%s323_s1 + $0x38] sm:$0xff]  }
   0x4   :  { %222 = vmatprep.subr.bf16.mxu0 %v241_v1  ;;  %v249_v9 = vld [vmem:[%s324_s0 + $0x8] sm:$0xff]   ;;  %v208_v10 = vld [vmem:[%s325_s2] ss:$0 sm:$0xff] }
   0x5   :  { %v209_v12 = vld [vmem:[%s326_s3] ss:$0 sm:$0xff] }
   0x7   :  { %223 = vmatpush3.bf16.msra.mxu0 %v241_v1 }
   0x8   :  { %224 = vmatprep.subr.bf16.mxu0 %v242_v2 }
   0xb   :  { %225 = vmatpush3.bf16.msra.mxu0 %v242_v2 }
   0xc   :  { %226 = vmatprep.subr.bf16.mxu0 %v243_v3 }
   0xf   :  { %227 = vmatpush3.bf16.msra.mxu0 %v243_v3 }
  0x10   :  { %228 = vmatprep.subr.bf16.mxu0 %v244_v5 }
  0x13   :  { %229 = vmatpush3.bf16.msra.mxu0 %v244_v5 }
  0x14   :  { %230 = vmatprep.subr.bf16.mxu0 %v245_v6 }
  0x17   :  { %231 = vmatpush3.bf16.msra.mxu0 %v245_v6 }
  0x18   :  { %232 = vmatprep.subr.bf16.mxu0 %v246_v7 }
  0x1b   :  { %233 = vmatpush3.bf16.msra.mxu0 %v246_v7 }
  0x1c   :  { %234 = vmatprep.subr.bf16.mxu0 %v247_v8 }
  0x1f   :  { %235 = vmatpush3.bf16.msra.mxu0 %v247_v8 }
  0x22   :  { %237 = vmatmul.mubr.bf16.vlgmr.msra.gmra.mrb[0].mxu0 %v249_v9 }
  0xf5   :  { %v238_v11 = vpop.f32.mrb[0].mxu0 }
  0xf6   :  { %v156_v13 = vmul.f32 %v238_v11, %v208_v10  ;;  %v132_v14 = vpop.f32.mrb[1].mxu0 }
  0xf7   :  { %v154_v15 = vmul.f32 %v208_v10, %v132_v14  ;;  %v239_v16 = vpop.f32.mrb[2].mxu0 }
  0xf8   :  { %v167_v17 = vadd.f32 %v209_v12, %v156_v13  ;;  %v157_v18 = vmul.f32 %v239_v16, %v208_v10  ;;  %v135_v19 = vpop.f32.mrb[3].mxu0 }
  0xf9   :  { %v165_v20 = vadd.f32 %v209_v12, %v154_v15  ;;  %v155_v21 = vmul.f32 %v208_v10, %v135_v19 }
  0xfa   :  { %v171_v22 = vadd.f32 3.0, %v167_v17  ;;  %v168_v23 = vadd.f32 %v209_v12, %v157_v18 }
  0xfb   :  { %v169_v24 = vadd.f32 3.0, %v165_v20  ;;  %v166_v25 = vadd.f32 %v209_v12, %v155_v21 }
  0xfc   :  { %v175_v26 = vmax.f32 %v171_v22, 0.0  ;;  %v172_v27 = vadd.f32 3.0, %v168_v23 }
  0xfd   :  { %v173_v28 = vmax.f32 %v169_v24, 0.0  ;;  %v170_v29 = vadd.f32 3.0, %v166_v25 }
  0xfe   :  { %v179_v30 = vmin.f32 %v175_v26, 6.0  ;;  %v176_v31 = vmax.f32 %v172_v27, 0.0 }
  0xff   :  { %v177_v32 = vmin.f32 %v173_v28, 6.0  ;;  %v174_v33 = vmax.f32 %v170_v29, 0.0 }
 0x100   :  { %v183_v34 = vmul.f32 %v179_v30, %v167_v17  ;;  %v180_v35 = vmin.f32 %v176_v31, 6.0 }
 0x101   :  { %v181_v36 = vmul.f32 %v177_v32, %v165_v20  ;;  %v178_v37 = vmin.f32 %v174_v33, 6.0 }
 0x102   :  { %v187_v38 = vmul.f32 0.16666667, %v183_v34  ;;  %v184_v39 = vmul.f32 %v180_v35, %v168_v23 }
 0x103   :  { %v185_v40 = vmul.f32 0.16666667, %v181_v36  ;;  %v182_v41 = vmul.f32 %v178_v37, %v166_v25 }
 0x104   :  { %192 = vst.msk [vmem:[%s327_s4 + $0x10] sm:$0xff] %vm189_vm0, %v187_v38  ;;  %v188_v42 = vmul.f32 0.16666667, %v184_v39 }
 0x105   :  { %190 = vst.msk [vmem:[%s327_s4] sm:$0xff] %vm189_vm0, %v185_v40  ;;  %v186_v43 = vmul.f32 0.16666667, %v182_v41 }
 0x106   :  { %193 = vst.msk [vmem:[%s327_s4 + $0x18] sm:$0xff] %vm189_vm0, %v188_v42 }
 0x107   :  { %191 = vst.msk [vmem:[%s327_s4 + $0x8] sm:$0xff] %vm189_vm0, %v186_v43 }

// kernel: yolo_pafpn_forward.28
= control target key start
LH: loop header
LB: loop body
LE: loop exit
PB: predicated region body
PF: predicated region fallthrough
CT: control target
= control target key end

     0   :  { %vm215_vm0 = vcmask 130048   ;;  %s366_s1 = inlined_call_operand.vmem [shape: bf16[256,16], index: 1, kind: input, shape index: {}]   ;;  %s367_s0 = inlined_call_operand.vmem [shape: bf16[8,256], index: 0, kind: input, shape index: {}]   ;;  %s368_s2 = inlined_call_operand.vmem [shape: f32[1,16], index: 2, kind: input, shape index: {}]   ;;  %s369_s3 = inlined_call_operand.vmem [shape: f32[1,16], index: 3, kind: input, shape index: {}]   ;;  %s370_s4 = inlined_call_operand.vmem [shape: f32[8,16], index: 4, kind: output, shape index: {}]  }
   0x1   :  { %v263_v0 = vld [vmem:[%s366_s1 + $0x40] sm:$0xff]   ;;  %v265_v2 = vld [vmem:[%s366_s1 + $0x48] sm:$0xff]   ;;  %v267_v4 = vld [vmem:[%s366_s1 + $0x50] sm:$0xff]  }
   0x2   :  { %v264_v1 = vld [vmem:[%s366_s1] sm:$0xff]   ;;  %241 = vmatprep.subr.bf16.mxu0 %v263_v0  ;;  %v266_v3 = vld [vmem:[%s366_s1 + $0x8] sm:$0xff]   ;;  %v268_v5 = vld [vmem:[%s366_s1 + $0x10] sm:$0xff]  }
   0x3   :  { %242 = vmatpush3.bf16.msra.mxu0 %v264_v1  ;;  %v269_v6 = vld [vmem:[%s366_s1 + $0x58] sm:$0xff]   ;;  %v271_v8 = vld [vmem:[%s366_s1 + $0x60] sm:$0xff]   ;;  %v273_v10 = vld [vmem:[%s366_s1 + $0x68] sm:$0xff]  }
   0x4   :  { %243 = vmatprep.subr.bf16.mxu0 %v265_v2  ;;  %v270_v7 = vld [vmem:[%s366_s1 + $0x18] sm:$0xff]   ;;  %v272_v9 = vld [vmem:[%s366_s1 + $0x20] sm:$0xff]   ;;  %v274_v13 = vld [vmem:[%s366_s1 + $0x28] sm:$0xff]  }
   0x5   :  { %v18_v11 = vld [vmem:[%s367_s0] sm:$0xff]  ;;  %v275_v14 = vld [vmem:[%s366_s1 + $0x70] sm:$0xff]   ;;  %v277_v16 = vld [vmem:[%s366_s1 + $0x78] sm:$0xff]  }
   0x6   :  { %v222_v12 = vcombine.high %v18_v11, %v18_v11  ;;  %v276_v15 = vld [vmem:[%s366_s1 + $0x30] sm:$0xff]   ;;  %v278_v17 = vld [vmem:[%s366_s1 + $0x38] sm:$0xff]   ;;  %v221_v18 = vcombine.low %v18_v11, %v18_v11  ;;  %v239_v21 = vld [vmem:[%s368_s2] ss:$0 sm:$0xff] }
   0x7   :  { %244 = vmatpush3.bf16.msra.mxu0 %v266_v3  ;;  %v240_v24 = vld [vmem:[%s369_s3] ss:$0 sm:$0xff] }
   0x8   :  { %245 = vmatprep.subr.bf16.mxu0 %v267_v4  ;;  %186 = vmatprep.mubr.bf16.mxu0 %v222_v12 }
   0xb   :  { %246 = vmatpush3.bf16.msra.mxu0 %v268_v5 }
   0xc   :  { %247 = vmatprep.subr.bf16.mxu0 %v269_v6 }
   0xf   :  { %248 = vmatpush3.bf16.msra.mxu0 %v270_v7 }
  0x10   :  { %249 = vmatprep.subr.bf16.mxu0 %v271_v8 }
  0x13   :  { %250 = vmatpush3.bf16.msra.mxu0 %v272_v9 }
  0x14   :  { %251 = vmatprep.subr.bf16.mxu0 %v273_v10 }
  0x17   :  { %252 = vmatpush3.bf16.msra.mxu0 %v274_v13 }
  0x18   :  { %253 = vmatprep.subr.bf16.mxu0 %v275_v14 }
  0x1b   :  { %254 = vmatpush3.bf16.msra.mxu0 %v276_v15 }
  0x1c   :  { %255 = vmatprep.subr.bf16.mxu0 %v277_v16 }
  0x1f   :  { %256 = vmatpush3.bf16.msra.mxu0 %v278_v17 }
  0x22   :  { %187 = vmatmul.mubr.bf16.vlgmr.msra.gmra.mrb[0].mxu0 %v221_v18 }
  0xf5   :  { %v257_v19 = vpop.f32.mrb[0].mxu0 }
  0xf6   :  { %v258_v20 = vpop.f32.mrb[1].mxu0 }
  0xf7   :  { %v259_v22 = vadd.f32 %v258_v20, %v257_v19  ;;  %v260_v23 = vpop.f32.mrb[2].mxu0 }
  0xf8   :  { %v261_v25 = vpop.f32.mrb[3].mxu0 }
  0xf9   :  { %v201_v26 = vmul.f32 %v259_v22, %v239_v21 }
  0xfb   :  { %v209_v27 = vadd.f32 %v240_v24, %v201_v26 }
  0xfd   :  { %v210_v28 = vadd.f32 3.0, %v209_v27 }
  0xff   :  { %v211_v29 = vmax.f32 %v210_v28, 0.0 }
 0x101   :  { %v212_v30 = vmin.f32 %v211_v29, 6.0 }
 0x103   :  { %v213_v31 = vmul.f32 %v212_v30, %v209_v27 }
 0x105   :  { %v214_v32 = vmul.f32 0.16666667, %v213_v31 }
 0x107   :  { %216 = vst.msk [vmem:[%s370_s4] sm:$0xff] %vm215_vm0, %v214_v32 }

// kernel: yolo_pafpn_forward.30
= control target key start
LH: loop header
LB: loop body
LE: loop exit
PB: predicated region body
PF: predicated region fallthrough
CT: control target
= control target key end

     0   :  { %s1050_s13 = smov 0   ;;  %s1164_s0 = inlined_call_operand.vmem [shape: bf16[2,4,12], index: 0, kind: input, shape index: {}]   ;;  %s1165_s1 = inlined_call_operand.vmem [shape: bf16[12,12], index: 1, kind: input, shape index: {}]   ;;  %s1166_s2 = inlined_call_operand.vmem [shape: f32[1,12], index: 2, kind: input, shape index: {}]   ;;  %s1167_s3 = inlined_call_operand.vmem [shape: f32[1,12], index: 3, kind: input, shape index: {}]   ;;  %s1168_s4 = inlined_call_operand.vmem [shape: f32[25,12], index: 4, kind: input, shape index: {}]   ;;  %s1169_s5 = inlined_call_operand.vmem [shape: f32[1,12], index: 5, kind: input, shape index: {}]   ;;  %s1170_s6 = inlined_call_operand.vmem [shape: f32[1,12], index: 6, kind: input, shape index: {}]   ;;  %s1171_s7 = inlined_call_operand.vmem [shape: bf16[12,12], index: 7, kind: input, shape index: {}]   ;;  %s1172_s8 = inlined_call_operand.vmem [shape: f32[1,12], index: 8, kind: input, shape index: {}]   ;;  %s1173_s9 = inlined_call_operand.vmem [shape: f32[1,12], index: 9, kind: input, shape index: {}]   ;;  %s1174_s10 = inlined_call_operand.vmem [shape: f32[2,4,12], index: 10, kind: output, shape index: {}]  }
   0x1 LB: > { %s937_s14 = sadd.s32 4294967295, %s991_s13   ;;  %p941_p0 = scmp.ge.s32.totalorder %s991_s13, 1  ;;  %s991_s13 = sphi %s1050_s13, %s20_s13  }
   0x2   : > { %p311_p1 = scmp.lt.s32.totalorder %s991_s13, 3 }
   0x4   : > { %p312_p2 = pnand %p941_p0, %p311_p1 }
   0x5   : > { %vm368_vm0 = vcmask (!%p312_p2), 1045504   ;;  %v993_v0 = vmov (!%p312_p2), 0.0   ;;  %v983_v1 = vld [vmem:[%s1165_s1] sm:$0x3f] (!%p312_p2)   ;;  %p347_p3 = scmp.lt.s32.totalorder (!%p312_p2), %s937_s14, 1  ;;  %vm994_vm1 = vmmov (!%p312_p2), 0   ;;  %v456_v6 = vlaneseq (!%p312_p2) }
   0x6   : > { %315 = sbr.rel (%p312_p2) target bundleno = 544 (0x220), region = 60  ;;  %961 = vmatprep.subr.bf16.mxu0 (!%p312_p2), %v993_v0  ;;  %967 = vmatprep.subr.bf16.mxu1 (!%p312_p2), %v993_v0  ;;  %v370_v2 = vsel (!%p312_p2), %vm368_vm0, %v983_v1, 0  ;;  %vm364_vm2 = vcmask (!%p312_p2), 97280   ;;  %vm433_vm3 = vcmask (!%p312_p2), 95232   ;;  %v984_v4 = vld [vmem:[%s1171_s7] sm:$0x3f] (!%p312_p2)  }
   0x7   : > { %963 = vmatprep.mubr.msk.bf16.mxu0 (!%p312_p2), %vm994_vm1, %v993_v0  ;;  %969 = vmatprep.mubr.msk.bf16.mxu1 (!%p312_p2), %vm994_vm1, %v993_v0  ;;  %434 = vst.msk [vmem:[#allocation2] sm:$0x3f] (!%p312_p2), %vm433_vm3, %v993_v0  ;;  %435 = vst.msk [vmem:[#allocation2 + $0x8] sm:$0x3f] (!%p312_p2), %vm433_vm3, %v993_v0  ;;  %v819_v5 = vsel (!%p312_p2), %vm368_vm0, %v984_v4, 0  ;;  %v457_v7 = vshrl.u32 (!%p312_p2), %v456_v6, 7 }
   0x8   : > { %962 = vmatpush3.bf16.msra.mxu0 (!%p312_p2), %v370_v2  ;;  %436 = vst.msk [vmem:[#allocation2 + $0x10] sm:$0x3f] (!%p312_p2), %vm433_vm3, %v993_v0  ;;  %437 = vst.msk [vmem:[#allocation2 + $0x18] sm:$0x3f] (!%p312_p2), %vm433_vm3, %v993_v0  ;;  %968 = vmatpush3.bf16.msra.mxu1 (!%p312_p2), %v819_v5  ;;  %v452_v9 = vld [vmem:[%s1168_s4] sm:$0xff] (!%p312_p2)  ;;  %v1109_v50 = vld [vmem:[%s1168_s4 + $0x8] sm:$0xff] (!%p312_p2) }
   0x9   : > { %438 = vst.msk [vmem:[#allocation2 + $0x20] sm:$0x3f] (!%p312_p2), %vm433_vm3, %v993_v0  ;;  %439 = vst.msk [vmem:[#allocation2 + $0x28] sm:$0x3f] (!%p312_p2), %vm433_vm3, %v993_v0  ;;  %v1073_v8 = vsub.s32 (!%p312_p2), 1, %v457_v7  ;;  %v1078_v10 = vsub.s32 (!%p312_p2), 0, %v457_v7 }
   0xa   : > { %v1081_v12 = vsub.s32 (!%p312_p2), 2, %v457_v7  ;;  %v1085_v17 = vsub.s32 (!%p312_p2), 3, %v457_v7  ;;  %v1088_v22 = vsub.s32 (!%p312_p2), 4, %v457_v7  ;;  %v1091_v30 = vsub.s32 (!%p312_p2), 5, %v457_v7  ;;  %v946_v33 = vld [vmem:[%s1166_s2] ss:$0 sm:$0xff] (!%p312_p2) }
   0xb   : > { %v467_v11 = vrot.slane (!%p312_p2), %v452_v9, %v1073_v8  ;;  %v459_v14 = vrot.slane (!%p312_p2), %v452_v9, %v1078_v10  ;;  %v1093_v31 = vsub.s32 (!%p312_p2), 6, %v457_v7  ;;  %v1100_v38 = vsub.s32 (!%p312_p2), 7, %v457_v7  ;;  %v947_v40 = vld [vmem:[%s1167_s3] ss:$0 sm:$0xff] (!%p312_p2) }
   0xc   : > { %v481_v16 = vrot.slane (!%p312_p2), %v452_v9, %v1081_v12  ;;  %v495_v21 = vrot.slane (!%p312_p2), %v452_v9, %v1085_v17  ;;  %v509_v26 = vrot.slane (!%p312_p2), %v452_v9, %v1088_v22  ;;  %v523_v36 = vrot.slane (!%p312_p2), %v452_v9, %v1091_v30 }
   0xd   : > { %s1176_s14 = smov (!%p347_p3, %s937_s14), 1  ;;  %v531_v37 = vrot.slane %v452_v9, %v1093_v31  ;;  %v545_v47 = vrot.slane %v452_v9, %v1100_v38  ;;  %v559_v59 = vrot.slane %v1109_v50, %v1078_v10  ;;  %v573_v4 = vrot.slane %v1109_v50, %v1073_v8 }
   0xe   : > { %s942_s17 = sshll.u32 %s1176_s14, 1  ;;  %v446_v13 = vld [vmem:[#allocation2] sm:$0x3f]  ;;  %v447_v34 = vld [vmem:[#allocation2 + $0x8] sm:$0x3f]  ;;  %vm441_vm4 = vcmask 91136  }
   0xf   : > { %s350_s20 = scalar_lea.vmem %s1164_s0, %s942_s17  ;;  %v468_v15 = vmul.f32 %v467_v11, %v446_v13  ;;  %v460_v18 = vmul.f32 %v459_v14, %v446_v13  ;;  %v482_v20 = vmul.f32 %v481_v16, %v446_v13  ;;  %v496_v25 = vmul.f32 %v495_v21, %v446_v13  ;;  %s943_s25 = sshll.u32 %s1176_s14, 2 }
  0x10   : > { %v356_v3 = vld [vmem:[%s350_s20] sm:$0x3]  ;;  %v510_v29 = vmul.f32 %v509_v26, %v446_v13  ;;  %v469_v42 = vmul.f32 %v467_v11, %v447_v34  ;;  %v524_v45 = vmul.f32 %v523_v36, %v447_v34  ;;  %v532_v46 = vmul.f32 %v531_v37, %v447_v34  ;;  %s354_s28 = scalar_lea.vmem %s1174_s10, %s943_s25 }
  0x11   : > { %964 = vmatmul.mubr.msk.bf16.vlgmr.msra.gmra.mrb[0].mxu0 %vm364_vm2, %v356_v3  ;;  %v472_v19 = vrot.slane %v468_v15, 1  ;;  %v486_v24 = vrot.slane %v482_v20, 2  ;;  %v500_v28 = vrot.slane %v496_v25, 3  ;;  %v461_v53 = vmul.f32 %v459_v14, %v447_v34 }
  0x12   : > { %v514_v35 = vrot.slane %v510_v29, 4  ;;  %v473_v54 = vrot.slane %v469_v42, 1  ;;  %v483_v55 = vmul.f32 %v481_v16, %v447_v34  ;;  %v536_v57 = vrot.slane %v532_v46, 1 }
  0x13   : > { %v476_v23 = vadd.f32 %v472_v19, %v460_v18  ;;  %v546_v58 = vmul.f32 %v545_v47, %v447_v34  ;;  %v497_v0 = vmul.f32 %v495_v21, %v447_v34  ;;  %v560_v3 = vmul.f32 %v559_v59, %v447_v34 }
  0x14   : > { %v477_v62 = vadd.f32 %v473_v54, %v461_v53  ;;  %v487_v63 = vrot.slane %v483_v55, 2  ;;  %vm444_vm5 = vcmask 93186   ;;  %v511_v11 = vmul.f32 %v509_v26, %v447_v34 }
  0x15   : > { %v490_v27 = vadd.f32 %v486_v24, %v476_v23  ;;  %v550_v2 = vrot.slane %v546_v58, 2  ;;  %v501_v9 = vrot.slane %v497_v0, 3  ;;  %v564_v14 = vrot.slane %v560_v3, 3 }
  0x16   : > { %v491_v7 = vadd.f32 %v487_v63, %v477_v62  ;;  %v574_v15 = vmul.f32 %v573_v4, %v447_v34  ;;  %v515_v18 = vrot.slane %v511_v11, 4  ;;  %v587_v21 = vrot.slane %v1109_v50, %v1081_v12  ;;  %v450_v11 = vld [vmem:[#allocation2 + $0x20] sm:$0x3f] }
  0x17   : > { %v504_v32 = vadd.f32 %v500_v28, %v490_v27  ;;  %v595_v23 = vrot.slane %v1109_v50, %v1085_v17  ;;  %v609_v26 = vrot.slane %v1109_v50, %v1088_v22  ;;  %v651_v58 = vrot.slane %v1109_v50, %v1100_v38 }
  0x18   : > { %v505_v16 = vadd.f32 %v501_v9, %v491_v7  ;;  %v578_v20 = vrot.slane %v574_v15, 4  ;;  %vm882_vm6 = vcmask 93184  }
  0x19   : > { %v518_v44 = vadd.f32 %v514_v35, %v504_v32 }
  0x1a   : > { %v519_v24 = vadd.f32 %v515_v18, %v505_v16 }
  0x1b   : > { %v526_v56 = vadd.f32 %v524_v45, %v518_v44 }
  0x1d   : > { %v540_v1 = vadd.f32 %v536_v57, %v526_v56 }
  0x1f   : > { %v554_v13 = vadd.f32 %v550_v2, %v540_v1 }
  0x21   : > { %v568_v19 = vadd.f32 %v564_v14, %v554_v13 }
  0x23   : > { %v582_v27 = vadd.f32 %v578_v20, %v568_v19 }
  0xe4   : > { %v406_v39 = vpop.f32.mrb[0].mxu0 }
  0xe5   : > { %v419_v41 = vmul.f32 %v946_v33, %v406_v39  ;;  %v965_v43 = vpop.f32.mrb[1].mxu0  ;;  %v623_v33 = vrot.slane %v1109_v50, %v1091_v30  ;;  %v454_v39 = vld [vmem:[%s1168_s4 + $0x10] sm:$0xff] }
  0xe6   : > { %v409_v48 = vpop.f32.mrb[2].mxu0  ;;  %v637_v43 = vrot.slane %v1109_v50, %v1093_v31  ;;  %v687_v2 = vrot.slane %v454_v39, %v1081_v12  ;;  %v701_v9 = vrot.slane %v454_v39, %v1085_v17  ;;  %v723_v18 = vrot.slane %v454_v39, %v1091_v30 }
  0xe7   : > { %v427_v49 = vadd.f32 %v947_v40, %v419_v41  ;;  %v966_v51 = vpop.f32.mrb[3].mxu0 }
  0xe9   : > { %v428_v52 = vadd.f32 3.0, %v427_v49 }
  0xeb   : > { %v429_v60 = vmax.f32 %v428_v52, 0.0  ;;  %v659_v52 = vrot.slane %v454_v39, %v1078_v10 }
  0xed   : > { %v430_v61 = vmin.f32 %v429_v60, 6.0 }
  0xef   : > { %v431_v5 = vmul.f32 %v430_v61, %v427_v49 }
  0xf1   : > { %v432_v6 = vmul.f32 0.16666667, %v431_v5 }
  0xf3   : > { %442 = vst.msk [vmem:[#allocation2 + $0x12] sm:$0x3] %vm441_vm4, %v432_v6 }
  0xf4   : > { %445 = vst.msk [vmem:[#allocation2 + $0x18] sm:$0xc] %vm444_vm5, %v432_v6 }
  0xfa   : > { %v448_v25 = vld [vmem:[#allocation2 + $0x10] sm:$0x3f] }
  0xfb   : > { %v525_v28 = vmul.f32 %v523_v36, %v448_v25  ;;  %v533_v29 = vmul.f32 %v531_v37, %v448_v25  ;;  %v547_v32 = vmul.f32 %v545_v47, %v448_v25  ;;  %v588_v34 = vmul.f32 %v587_v21, %v448_v25  ;;  %v449_v37 = vld [vmem:[#allocation2 + $0x18] sm:$0x3f] }
  0xfc   : > { %v596_v35 = vmul.f32 %v595_v23, %v448_v25  ;;  %v561_v42 = vmul.f32 %v559_v59, %v448_v25  ;;  %v575_v44 = vmul.f32 %v573_v4, %v448_v25  ;;  %v610_v48 = vmul.f32 %v609_v26, %v448_v25 }
  0xfd   : > { %v527_v40 = vadd.f32 %v525_v28, %v519_v24  ;;  %v537_v41 = vrot.slane %v533_v29, 1  ;;  %v590_v45 = vadd.f32 %v588_v34, %v582_v27  ;;  %v551_v47 = vrot.slane %v547_v32, 2 }
  0xfe   : > { %v600_v36 = vrot.slane %v596_v35, 1  ;;  %v624_v49 = vmul.f32 %v623_v33, %v448_v25  ;;  %v565_v54 = vrot.slane %v561_v42, 3  ;;  %v614_v55 = vrot.slane %v610_v48, 2 }
  0xff   : > { %v541_v46 = vadd.f32 %v537_v41, %v527_v40  ;;  %v638_v56 = vmul.f32 %v637_v43, %v448_v25  ;;  %v597_v57 = vmul.f32 %v595_v23, %v449_v37  ;;  %v673_v59 = vrot.slane %v454_v39, %v1073_v8 }
 0x100   : > { %v604_v51 = vadd.f32 %v600_v36, %v590_v45  ;;  %v579_v61 = vrot.slane %v575_v44, 4  ;;  %v628_v63 = vrot.slane %v624_v49, 3  ;;  %v589_v0 = vmul.f32 %v587_v21, %v449_v37 }
 0x101   : > { %v555_v53 = vadd.f32 %v551_v47, %v541_v46  ;;  %v611_v1 = vmul.f32 %v609_v26, %v449_v37  ;;  %v642_v4 = vrot.slane %v638_v56, 4  ;;  %v660_v5 = vmul.f32 %v659_v52, %v449_v37 }
 0x102   : > { %v618_v62 = vadd.f32 %v614_v55, %v604_v51  ;;  %v601_v6 = vrot.slane %v597_v57, 1  ;;  %v625_v7 = vmul.f32 %v623_v33, %v449_v37  ;;  %v652_v8 = vmul.f32 %v651_v58, %v449_v37 }
 0x103   : > { %v569_v60 = vadd.f32 %v565_v54, %v555_v53  ;;  %v674_v14 = vmul.f32 %v673_v59, %v449_v37  ;;  %v615_v15 = vrot.slane %v611_v1, 2  ;;  %v639_v16 = vmul.f32 %v637_v43, %v449_v37 }
 0x104   : > { %v632_v10 = vadd.f32 %v628_v63, %v618_v62  ;;  %v664_v12 = vrot.slane %v660_v5, 1  ;;  %v688_v21 = vmul.f32 %v687_v2, %v449_v37  ;;  %v629_v23 = vrot.slane %v625_v7, 3  ;;  %v949_v7 = vld [vmem:[%s1169_s5] ss:$0 sm:$0xff] }
 0x105   : > { %v583_v3 = vadd.f32 %v579_v61, %v569_v60  ;;  %v661_v24 = vmul.f32 %v659_v52, %v450_v11  ;;  %v715_v25 = vrot.slane %v454_v39, %v1088_v22  ;;  %v737_v27 = vrot.slane %v454_v39, %v1093_v31  ;;  %v451_v52 = vld [vmem:[#allocation2 + $0x28] sm:$0x3f] }
 0x106   : > { %v646_v13 = vadd.f32 %v642_v4, %v632_v10  ;;  %v678_v28 = vrot.slane %v674_v14, 2  ;;  %v702_v29 = vmul.f32 %v701_v9, %v449_v37  ;;  %v653_v32 = vmul.f32 %v651_v58, %v450_v11  ;;  %v948_v37 = vld [vmem:[%s1168_s4 + $0x18] ss:$0 sm:$0xff] }
 0x107   : > { %v591_v50 = vadd.f32 %v589_v0, %v583_v3  ;;  %v675_v33 = vmul.f32 %v673_v59, %v450_v11  ;;  %v724_v34 = vmul.f32 %v723_v18, %v450_v11  ;;  %v751_v35 = vrot.slane %v454_v39, %v1100_v38 }
 0x108   : > { %v654_v20 = vadd.f32 %v652_v8, %v646_v13  ;;  %v643_v40 = vrot.slane %v639_v16, 4  ;;  %v692_v42 = vrot.slane %v688_v21, 3  ;;  %v665_v43 = vrot.slane %v661_v24, 1  ;;  %v950_v8 = vld [vmem:[%s1170_s6] ss:$0 sm:$0xff] }
 0x109   : > { %v605_v19 = vadd.f32 %v601_v6, %v591_v50  ;;  %v689_v44 = vmul.f32 %v687_v2, %v450_v11  ;;  %v716_v45 = vmul.f32 %v715_v25, %v450_v11  ;;  %v706_v46 = vrot.slane %v702_v29, 4 }
 0x10a   : > { %v668_v26 = vadd.f32 %v664_v12, %v654_v20  ;;  %v738_v31 = vmul.f32 %v737_v27, %v450_v11  ;;  %v679_v47 = vrot.slane %v675_v33, 2  ;;  %v703_v48 = vmul.f32 %v701_v9, %v450_v11 }
 0x10b   : > { %v619_v17 = vadd.f32 %v615_v15, %v605_v19  ;;  %v728_v38 = vrot.slane %v724_v34, 1  ;;  %v752_v39 = vmul.f32 %v751_v35, %v450_v11  ;;  %v693_v53 = vrot.slane %v689_v44, 3 }
 0x10c   : > { %v682_v41 = vadd.f32 %v678_v28, %v668_v26  ;;  %v742_v56 = vrot.slane %v738_v31, 2  ;;  %v766_v57 = vmul.f32 %v948_v37, %v450_v11  ;;  %v707_v58 = vrot.slane %v703_v48, 4 }
 0x10d   : > { %v633_v30 = vadd.f32 %v629_v23, %v619_v17  ;;  %v725_v60 = vmul.f32 %v723_v18, %v451_v52  ;;  %v756_v62 = vrot.slane %v752_v39, 3  ;;  %v717_v63 = vmul.f32 %v715_v25, %v451_v52 }
 0x10e   : > { %v696_v22 = vadd.f32 %v692_v42, %v682_v41  ;;  %v739_v1 = vmul.f32 %v737_v27, %v451_v52  ;;  %v770_v3 = vrot.slane %v766_v57, 4  ;;  %v753_v5 = vmul.f32 %v751_v35, %v451_v52  ;;  %v953_v41 = vld [vmem:[%s1172_s8] ss:$0 sm:$0xff] }
 0x10f   : > { %v647_v36 = vadd.f32 %v643_v40, %v633_v30  ;;  %v729_v4 = vrot.slane %v725_v60, 1  ;;  %v767_v50 = vmul.f32 %v948_v37, %v451_v52 }
 0x110   : > { %v710_v51 = vadd.f32 %v706_v46, %v696_v22  ;;  %v743_v11 = vrot.slane %v739_v1, 2  ;;  %v757_v15 = vrot.slane %v753_v5, 3 }
 0x111   : > { %v655_v49 = vadd.f32 %v653_v32, %v647_v36  ;;  %v771_v19 = vrot.slane %v767_v50, 4 }
 0x112   : > { %v718_v55 = vadd.f32 %v716_v45, %v710_v51 }
 0x113   : > { %v669_v54 = vadd.f32 %v665_v43, %v655_v49  ;;  %v954_v43 = vld [vmem:[%s1173_s9] ss:$0 sm:$0xff] }
 0x114   : > { %v732_v61 = vadd.f32 %v728_v38, %v718_v55 }
 0x115   : > { %v683_v59 = vadd.f32 %v679_v47, %v669_v54 }
 0x116   : > { %v746_v2 = vadd.f32 %v742_v56, %v732_v61 }
 0x117   : > { %v697_v0 = vadd.f32 %v693_v53, %v683_v59 }
 0x118   : > { %v760_v6 = vadd.f32 %v756_v62, %v746_v2 }
 0x119   : > { %v711_v10 = vadd.f32 %v707_v58, %v697_v0 }
 0x11a   : > { %v774_v13 = vadd.f32 %v770_v3, %v760_v6 }
 0x11b   : > { %v719_v9 = vadd.f32 %v717_v63, %v711_v10 }
 0x11c   : > { %v783_v16 = vmul.f32 %v949_v7, %v774_v13 }
 0x11d   : > { %v733_v14 = vadd.f32 %v729_v4, %v719_v9 }
 0x11e   : > { %v792_v20 = vadd.f32 %v950_v8, %v783_v16 }
 0x11f   : > { %v747_v18 = vadd.f32 %v743_v11, %v733_v14 }
 0x120   : > { %v794_v21 = vadd.f32 3.0, %v792_v20 }
 0x121   : > { %v761_v12 = vadd.f32 %v757_v15, %v747_v18 }
 0x122   : > { %v796_v24 = vmax.f32 %v794_v21, 0.0 }
 0x123   : > { %v775_v23 = vadd.f32 %v771_v19, %v761_v12 }
 0x124   : > { %v798_v27 = vmin.f32 %v796_v24, 6.0 }
 0x125   : > { %v784_v25 = vmul.f32 %v949_v7, %v775_v23 }
 0x126   : > { %v800_v26 = vmul.f32 %v798_v27, %v792_v20 }
 0x127   : > { %v793_v17 = vadd.f32 %v950_v8, %v784_v25 }
 0x128   : > { %v802_v29 = vmul.f32 0.16666667, %v800_v26 }
 0x129   : > { %v795_v28 = vadd.f32 3.0, %v793_v17 }
 0x12a   : > { %804 = vst.msk [vmem:[#allocation3] sm:$0x3] %vm441_vm4, %v802_v29 }
 0x12b   : > { %v797_v32 = vmax.f32 %v795_v28, 0.0 }
 0x12d   : > { %v799_v33 = vmin.f32 %v797_v32, 6.0 }
 0x12f   : > { %v801_v34 = vmul.f32 %v799_v33, %v793_v17 }
 0x131   : > { %v803_v35 = vmul.f32 0.16666667, %v801_v34 }
 0x133   : > { %805 = vst.msk [vmem:[#allocation3 + $0x2] sm:$0x3] %vm441_vm4, %v803_v35 }
 0x13a   : > { %v806_v30 = vld [vmem:[#allocation3] sm:$0xf] }
 0x13b   : > { %v807_v40 = vpack.c.bf16 %v806_v30, %v806_v30 }
 0x13d   : > { %970 = vmatmul.mubr.msk.bf16.vlgmr.msra.gmra.mrb[0].mxu1 %vm364_vm2, %v807_v40 }
 0x210   : > { %v855_v42 = vpop.f32.mrb[0].mxu1 }
 0x211   : > { %v868_v44 = vmul.f32 %v953_v41, %v855_v42  ;;  %v971_v45 = vpop.f32.mrb[1].mxu1 }
 0x212   : > { %v858_v36 = vpop.f32.mrb[2].mxu1 }
 0x213   : > { %v876_v22 = vadd.f32 %v954_v43, %v868_v44  ;;  %v972_v46 = vpop.f32.mrb[3].mxu1 }
 0x215   : > { %v877_v31 = vadd.f32 3.0, %v876_v22 }
 0x217   : > { %v878_v37 = vmax.f32 %v877_v31, 0.0 }
 0x219   : > { %v879_v47 = vmin.f32 %v878_v37, 6.0 }
 0x21b   : > { %v880_v48 = vmul.f32 %v879_v47, %v876_v22 }
 0x21d   : > { %v881_v49 = vmul.f32 0.16666667, %v880_v48 }
 0x21f   : > { %883 = vst.msk [vmem:[%s354_s28] sm:$0xf] %vm882_vm6, %v881_v49 }
 0x220 PF: > { %s20_s13 = sadd.s32 1, %s991_s13  }
 0x221   : > { %p17_p4 = scmp.ge.s32.totalorder %s20_s13, 4  }
 0x223   :  { %19 = sbr.rel (!%p17_p4) target bundleno = 1 (0x1), region = 92 }

// kernel: yolo_pafpn_forward.29
= control target key start
LH: loop header
LB: loop body
LE: loop exit
PB: predicated region body
PF: predicated region fallthrough
CT: control target
= control target key end

     0   :  { %v183_v0 = vmov 0.0   ;;  %vm184_vm0 = vmmov 0   ;;  %vm36_vm1 = vcmask 130048   ;;  %vm150_vm2 = vcmask 195584   ;;  %s241_s3 = inlined_call_operand.vmem [shape: bf16[16,24], index: 3, kind: input, shape index: {}]   ;;  %s242_s2 = inlined_call_operand.vmem [shape: bf16[16,24], index: 2, kind: input, shape index: {}]   ;;  %s243_s1 = inlined_call_operand.vmem [shape: bf16[8,16], index: 1, kind: input, shape index: {}]   ;;  %s244_s0 = inlined_call_operand.vmem [shape: bf16[8,16], index: 0, kind: input, shape index: {}]   ;;  %s245_s4 = inlined_call_operand.vmem [shape: f32[1,24], index: 4, kind: input, shape index: {}]   ;;  %s246_s5 = inlined_call_operand.vmem [shape: f32[1,24], index: 5, kind: input, shape index: {}]   ;;  %s247_s6 = inlined_call_operand.vmem [shape: f32[8,24], index: 6, kind: output, shape index: {}]  }
   0x1   :  { %166 = vmatprep.subr.bf16.mxu1 %v183_v0  ;;  %172 = vmatprep.subr.bf16.mxu0 %v183_v0  ;;  %v181_v1 = vld [vmem:[%s241_s3] sm:$0xff]  }
   0x2   :  { %v182_v2 = vld [vmem:[%s242_s2] sm:$0xff]   ;;  %168 = vmatprep.mubr.msk.bf16.mxu1 %vm184_vm0, %v183_v0  ;;  %174 = vmatprep.mubr.msk.bf16.mxu0 %vm184_vm0, %v183_v0 }
   0x3   :  { %167 = vmatpush3.bf16.msra.mxu1 %v181_v1  ;;  %v27_v3 = vld [vmem:[%s243_s1] sm:$0xf]  ;;  %173 = vmatpush3.bf16.msra.mxu0 %v182_v2 }
   0x4   :  { %v24_v4 = vld [vmem:[%s244_s0] sm:$0xf] }
   0x5   :  { %v160_v7 = vld [vmem:[%s245_s4] ss:$0 sm:$0xff] }
   0x6   :  { %169 = vmatmul.mubr.msk.bf16.vlgmr.msra.gmra.mrb[0].mxu1 %vm36_vm1, %v27_v3  ;;  %175 = vmatmul.mubr.msk.bf16.vlgmr.msra.gmra.mrb[0].mxu0 %vm36_vm1, %v24_v4  ;;  %v161_v12 = vld [vmem:[%s246_s5] ss:$0 sm:$0xff] }
  0xd9   :  { %v74_v5 = vpop.f32.mrb[0].mxu1  ;;  %v123_v6 = vpop.f32.mrb[0].mxu0 }
  0xda   :  { %v170_v8 = vpop.f32.mrb[1].mxu1  ;;  %v124_v9 = vadd.f32 %v123_v6, %v74_v5  ;;  %v176_v10 = vpop.f32.mrb[1].mxu0 }
  0xdb   :  { %v77_v11 = vpop.f32.mrb[2].mxu1  ;;  %v126_v13 = vpop.f32.mrb[2].mxu0 }
  0xdc   :  { %v171_v14 = vpop.f32.mrb[3].mxu1  ;;  %v136_v15 = vmul.f32 %v160_v7, %v124_v9  ;;  %v177_v16 = vpop.f32.mrb[3].mxu0 }
  0xde   :  { %v144_v17 = vadd.f32 %v161_v12, %v136_v15 }
  0xe0   :  { %v145_v18 = vadd.f32 3.0, %v144_v17 }
  0xe2   :  { %v146_v19 = vmax.f32 %v145_v18, 0.0 }
  0xe4   :  { %v147_v20 = vmin.f32 %v146_v19, 6.0 }
  0xe6   :  { %v148_v21 = vmul.f32 %v147_v20, %v144_v17 }
  0xe8   :  { %v149_v22 = vmul.f32 0.16666667, %v148_v21 }
  0xea   :  { %151 = vst.msk [vmem:[%s247_s6] sm:$0xff] %vm150_vm2, %v149_v22 }

// kernel: yolo_pafpn_forward.31
= control target key start
LH: loop header
LB: loop body
LE: loop exit
PB: predicated region body
PF: predicated region fallthrough
CT: control target
= control target key end

     0   :  { %vm40_vm0 = vcmask 1045504   ;;  %v224_v0 = vmov 0.0   ;;  %vm225_vm1 = vmmov 0   ;;  %s292_s0 = inlined_call_operand.vmem [shape: bf16[8,12], index: 0, kind: input, shape index: {}]   ;;  %s293_s1 = inlined_call_operand.vmem [shape: bf16[8,12], index: 1, kind: input, shape index: {}]   ;;  %s294_s2 = inlined_call_operand.vmem [shape: bf16[12,24], index: 2, kind: input, shape index: {}]   ;;  %s295_s3 = inlined_call_operand.vmem [shape: bf16[12,24], index: 3, kind: input, shape index: {}]   ;;  %s296_s4 = inlined_call_operand.vmem [shape: f32[1,24], index: 4, kind: input, shape index: {}]   ;;  %s297_s5 = inlined_call_operand.vmem [shape: f32[1,24], index: 5, kind: input, shape index: {}]   ;;  %s298_s6 = inlined_call_operand.hbm [shape: f32[8,24], index: 6, kind: output, shape index: {}]  }
   0x1   :  { %182 = vmatprep.subr.bf16.mxu1 %v224_v0  ;;  %188 = vmatprep.subr.bf16.mxu0 %v224_v0  ;;  %v198_v1 = vld [vmem:[%s295_s3] sm:$0x3f]  }
   0x2   :  { %v199_v2 = vld [vmem:[%s294_s2] sm:$0x3f]   ;;  %v42_v3 = vsel %vm40_vm0, %v198_v1, 0  ;;  %184 = vmatprep.mubr.msk.bf16.mxu1 %vm225_vm1, %v224_v0  ;;  %190 = vmatprep.mubr.msk.bf16.mxu0 %vm225_vm1, %v224_v0 }
   0x3   :  { %11 = vsyncpa [#allocation3], 0  ;;  %183 = vmatpush3.bf16.msra.mxu1 %v42_v3  ;;  %v93_v4 = vsel %vm40_vm0, %v199_v2, 0  ;;  %v28_v5 = vld [vmem:[%s293_s1] sm:$0xf]  ;;  %vm36_vm2 = vcmask 97280  }
   0x4   :  { %189 = vmatpush3.bf16.msra.mxu0 %v93_v4  ;;  %v25_v6 = vld [vmem:[%s292_s0] sm:$0xf]  ;;  %s226_s0 = smov [#allocation2]   ;;  %vm156_vm3 = vcmask 195584  }
   0x5   :  { %v176_v9 = vld [vmem:[%s296_s4] ss:$0 sm:$0xff]  ;;  %s164_s30 = sshll.u32 %s226_s0, 4  ;;  %s165_s30 = int_to_ptr.vmem [resolvable:$true] %s164_s30 }
   0x6   :  { %185 = vmatmul.mubr.msk.bf16.vlgmr.msra.gmra.mrb[0].mxu1 %vm36_vm2, %v28_v5  ;;  %v177_v14 = vld [vmem:[%s297_s5] ss:$0 sm:$0xff]  ;;  %s200_s4 = scalar_lea.vmem %s165_s30, 128  ;;  %p205_p1 = scmp.lt.s32.totalorder %s165_s30, %s165_s30 }
   0x7   :  { %191 = vmatmul.mubr.msk.bf16.vlgmr.msra.gmra.mrb[0].mxu0 %vm36_vm2, %v25_v6  ;;  %p201_p0 = scmp.ne.s32.totalorder %s165_s30, %s200_s4  ;;  %p206_p2 = scmp.lt.s32.totalorder %s200_s4, %s200_s4 }
   0x9   :  { %p207_p3 = por %p206_p2, %p205_p1 }
   0xb   :  { %p208_p4 = pnand %p207_p3, %p201_p0 }
  0xd9   :  { %v78_v7 = vpop.f32.mrb[0].mxu1 }
  0xda   :  { %v129_v8 = vpop.f32.mrb[0].mxu0  ;;  %v186_v10 = vpop.f32.mrb[1].mxu1 }
  0xdb   :  { %v130_v11 = vadd.f32 %v129_v8, %v78_v7  ;;  %v192_v12 = vpop.f32.mrb[1].mxu0  ;;  %v81_v13 = vpop.f32.mrb[2].mxu1 }
  0xdc   :  { %v132_v15 = vpop.f32.mrb[2].mxu0  ;;  %v187_v16 = vpop.f32.mrb[3].mxu1 }
  0xdd   :  { %v142_v17 = vmul.f32 %v176_v9, %v130_v11  ;;  %v193_v18 = vpop.f32.mrb[3].mxu0 }
  0xdf   :  { %v150_v19 = vadd.f32 %v177_v14, %v142_v17 }
  0xe1   :  { %v151_v20 = vadd.f32 3.0, %v150_v19 }
  0xe3   :  { %v152_v21 = vmax.f32 %v151_v20, 0.0 }
  0xe5   :  { %v153_v22 = vmin.f32 %v152_v21, 6.0 }
  0xe7   :  { %v154_v23 = vmul.f32 %v153_v22, %v150_v19 }
  0xe9   :  { %v155_v24 = vmul.f32 0.16666667, %v154_v23 }
  0xeb   :  { %157 = vst.msk [vmem:[#allocation2] sm:$0xff] %vm156_vm3, %v155_v24 }
  0xec   :  { %211 = shalt.err (!%p208_p4)
}
  0xed   :  { %s212_s8 = scalar_lea.hbm %s298_s6, 128 }
  0xee   :  { %p213_p5 = scmp.ne.s32.totalorder %s298_s6, %s212_s8  ;;  %p216_p6 = scmp.lt.u32.totalorder %s212_s8, %s298_s6 }
  0xf0   :  { %p218_p7 = pnand %p216_p6, %p213_p5 }
  0xf2   :  { %221 = shalt.err (!%p218_p7)
}
  0xf3   :  { %167 = dma.vmem_to_hbm [thread:$0]  %s165_s30, 128, %s298_s6, [#allocation3]  }
  0xf4   :  { %222 = dma.done.wait [#allocation3], 128  }
  0xf5   :  { %223 = vsyncadd [#allocation3], 4294967168 }
  0xf6   :  { %171 = vsyncpa [#allocation3], 1 }

</bundles_post_ra>
